<compile_context>
chip_gen: v7x
topology: tpu7x:2x2x1
jax: 0.10.0
libtpu: 0.0.40
codegen_flags: <defaults>
</compile_context>

<pallas_src>
import functools

import jax
import jax.numpy as jnp
import numpy as np
from jax import lax
from jax.experimental import pallas as pl
from jax.experimental.pallas import tpu as pltpu

COMPUTE_DTYPE = jnp.bfloat16   # MXU operands + intermediate activation storage
_EPS = 1e-5


def _select_defaults():
    """Per-generation M-tile and scoped-VMEM budget (v5e/v6e vs v7x)."""
    try:
        vmem = int(pltpu.get_tpu_info().vmem_capacity_bytes)
    except Exception:
        vmem = 64 * 1024 * 1024
    if vmem >= 100 * 1024 * 1024:          # v5e / v6e: 128 MiB VMEM
        return 1024, 96 * 1024 * 1024
    return 512, 48 * 1024 * 1024           # v7x: 64 MiB VMEM


_TM, _VMEM_LIMIT = _select_defaults()


# ----------------------------- helpers (glue) -------------------------------

def _round_up(x, m):
    return (x + m - 1) // m * m


def _pad_rows(x, mp):
    m = x.shape[0]
    return x if mp == m else jnp.pad(x, ((0, mp - m), (0, 0)))


def _pad2d(m, rows, cols):
    return jnp.pad(m, ((0, rows - m.shape[0]), (0, cols - m.shape[1])))


def _pad_vec(v, c):
    return jnp.pad(v.astype(jnp.float32), (0, c - v.shape[0])).reshape(1, c)


def _pick_tm(M, tm_max):
    """Largest row tile <= tm_max; prefer tiles that divide M (no padded rows)."""
    if M <= tm_max:
        return _round_up(M, 8)
    for t in (tm_max, 1024, 512, 256, 128):
        if t <= tm_max and M % t == 0:
            return t
    return tm_max


def _pick_tn(N):
    """Column tile (parallel grid axis); N is always a multiple of 128 here."""
    for t in (512, 384, 256, 128):
        if N % t == 0:
            return t
    return N


def _bn_scale_shift(s, q, count, gamma, beta, eps=_EPS):
    """Fold batch statistics + affine into per-channel scale/shift (tiny glue)."""
    mean = s / count
    var = jnp.maximum(q / count - mean * mean, 0.0)
    scale = gamma * lax.rsqrt(var + eps)
    shift = beta - mean * scale
    return scale, shift          # both (1, C) float32; padded channels -> 0


# ----------------------------- Pallas kernels ------------------------------

def _matmul_stats_kernel(*refs, prologue, tm, m_valid):
    """y = [relu(x*scale+shift)] @ w ; accumulate per-channel sum / sumsq of y.

    Grid is (N blocks ["parallel"], M blocks ["arbitrary"]); stats accumulate
    across the M axis per N block.
    """
    if prologue:
        x_ref, scale_ref, shift_ref, w_ref, y_ref, sum_ref, ssq_ref = refs
    else:
        x_ref, w_ref, y_ref, sum_ref, ssq_ref = refs
    m = pl.program_id(1)

    @pl.when(m == 0)
    def _():
        sum_ref[...] = jnp.zeros_like(sum_ref)
        ssq_ref[...] = jnp.zeros_like(ssq_ref)

    if prologue:
        # Fused BN(+ReLU) of the *previous* layer's raw output (f32 VPU math).
        a = x_ref[...].astype(jnp.float32) * scale_ref[...] + shift_ref[...]
        a = jnp.maximum(a, 0.0)
        if m_valid is not None:   # mask zero-padded rows out of the statistics
            rows = lax.broadcasted_iota(jnp.int32, (tm, 1), 0) + m * tm
            a = jnp.where(rows < m_valid, a, 0.0)
        a = a.astype(w_ref.dtype)
    else:
        a = x_ref[...]

    y = jnp.dot(a, w_ref[...], preferred_element_type=jnp.float32)
    y_ref[...] = y.astype(y_ref.dtype)
    sum_ref[...] += jnp.sum(y, axis=0, keepdims=True)
    ssq_ref[...] += jnp.sum(y * y, axis=0, keepdims=True)


def _conv3x3_stats_kernel(y1_ref, scale_ref, shift_ref, w2_ref,
                          y2_ref, sum_ref, ssq_ref, xpad_ref,
                          *, H, W, Ho, Wo, stride, rt):
    """Per-batch 3x3 conv: fused bn1+relu prologue, zero-pad into VMEM scratch,
    9 accumulated MXU taps per output-row tile (accumulator lives in vregs and
    is stored once per tile), plus bn2 statistics. No HBM im2col."""
    b = pl.program_id(0)
    Cp = y1_ref.shape[-1]

    @pl.when(b == 0)
    def _():
        sum_ref[...] = jnp.zeros_like(sum_ref)
        ssq_ref[...] = jnp.zeros_like(ssq_ref)
        xpad_ref[...] = jnp.zeros_like(xpad_ref)   # border stays zero forever

    # bn1 + relu prologue (f32 math), write interior of the padded scratch.
    a = y1_ref[0].astype(jnp.float32)
    a = a * scale_ref[...].reshape(1, 1, Cp) + shift_ref[...].reshape(1, 1, Cp)
    a = jnp.maximum(a, 0.0)
    xpad_ref[1:H + 1, 1:W + 1, :] = a.astype(xpad_ref.dtype)

    nrt = Ho // rt

    def row_tile(r):
        r0 = pl.multiple_of(r * rt, rt)          # first output row of the tile
        acc = None
        # TODO(synk): replace kw-offset sublane slices with pltpu.roll/im2col.
        for kh in range(3):
            for kw in range(3):
                h0 = r0 * stride + kh
                if stride == 1:
                    win = xpad_ref[pl.ds(h0, rt), pl.ds(kw, Wo), :]
                else:
                    win = xpad_ref[pl.ds(h0, rt, stride=stride),
                                   pl.ds(kw, Wo, stride=stride), :]
                tap = jnp.dot(win.reshape(rt * Wo, Cp), w2_ref[kh * 3 + kw],
                              preferred_element_type=jnp.float32)
                acc = tap if acc is None else acc + tap
        y2_ref[0, pl.ds(r0, rt)] = acc.reshape(rt, Wo, Cp).astype(y2_ref.dtype)
        sum_ref[...] += jnp.sum(acc, axis=0, keepdims=True)
        ssq_ref[...] += jnp.sum(acc * acc, axis=0, keepdims=True)

    if nrt == 1:
        row_tile(0)
    else:
        def body(r, carry):
            row_tile(r)
            return carry
        lax.fori_loop(0, nrt, body, 0)


def _bn_add_relu_kernel(y_ref, sc_ref, sy_ref, ty_ref, ss_ref, ts_ref, o_ref):
    """Fused block epilogue: bn3(y3) + bn_s(shortcut) + add + relu (bf16 out)."""
    y = y_ref[...].astype(jnp.float32) * sy_ref[...] + ty_ref[...]
    s = sc_ref[...].astype(jnp.float32) * ss_ref[...] + ts_ref[...]
    o_ref[...] = jnp.maximum(y + s, 0.0).astype(o_ref.dtype)


# ----------------------------- Pallas wrappers ------------------------------

def matmul_bn_stats(x, w, *, norm_relu_prologue=None, m_valid=None):
    """Tiled matmul with fused BN-statistics accumulation (and optional fused
    normalize+relu prologue on the input).  x:(M,K), w:(K,N); K,N % 128 == 0.
    Grid: (N//tn ["parallel"], M_padded//tm ["arbitrary"])."""
    M, K = x.shape
    N = w.shape[1]
    tm = _pick_tm(M, _TM)
    tn = _pick_tn(N)
    mp = _round_up(M, tm)
    x = _pad_rows(x, mp)
    grid = (N // tn, mp // tm)

    if norm_relu_prologue is None:
        kernel = functools.partial(_matmul_stats_kernel,
                                   prologue=False, tm=tm, m_valid=None)
        in_specs = [pl.BlockSpec((tm, K), lambda n, m: (m, 0)),
                    pl.BlockSpec((K, tn), lambda n, m: (0, n))]
        args = (x, w)
    else:
        scale, shift = norm_relu_prologue
        mask = m_valid if (m_valid is not None and m_valid < mp) else None
        kernel = functools.partial(_matmul_stats_kernel,
                                   prologue=True, tm=tm, m_valid=mask)
        in_specs = [pl.BlockSpec((tm, K), lambda n, m: (m, 0)),
                    pl.BlockSpec((1, K), lambda n, m: (0, 0)),
                    pl.BlockSpec((1, K), lambda n, m: (0, 0)),
                    pl.BlockSpec((K, tn), lambda n, m: (0, n))]
        args = (x, scale, shift, w)

    y, s, q = pl.pallas_call(
        kernel,
        out_shape=(jax.ShapeDtypeStruct((mp, N), COMPUTE_DTYPE),
                   jax.ShapeDtypeStruct((1, N), jnp.float32),
                   jax.ShapeDtypeStruct((1, N), jnp.float32)),
        grid=grid,
        in_specs=in_specs,
        out_specs=(pl.BlockSpec((tm, tn), lambda n, m: (m, n)),
                   pl.BlockSpec((1, tn), lambda n, m: (0, n)),
                   pl.BlockSpec((1, tn), lambda n, m: (0, n))),
        compiler_params=pltpu.CompilerParams(
            # stats accumulate across the M axis -> it must stay "arbitrary";
            # the N axis is free parallelism (v7x megacore).
            dimension_semantics=("parallel", "arbitrary"),
            vmem_limit_bytes=_VMEM_LIMIT),
    )(*args)
    return y, s, q


def conv3x3_bn_stats(y1_nhwc, scale1, shift1, w2_taps, *, stride, c_block=0):
    """y1_nhwc:(Nb,H,W,C_total) raw conv1 output (conv1 channels live in block
    index `c_block` of width Cp); returns raw conv2 output + bn2 stats."""
    Nb, H, W, _ = y1_nhwc.shape
    Cp = w2_taps.shape[-1]
    Ho = (H + 2 - 3) // stride + 1
    Wo = (W + 2 - 3) // stride + 1

    # Output-row tile: f32 accumulator of (rt*Wo, Cp) must stay vreg-friendly.
    rt = 1
    for t in range(min(Ho, 64), 0, -1):
        if Ho % t == 0 and t * Wo * Cp * 4 <= 96 * 1024:
            rt = t
            break

    kernel = functools.partial(_conv3x3_stats_kernel,
                               H=H, W=W, Ho=Ho, Wo=Wo, stride=stride, rt=rt)
    # TODO(synk): add a "parallel" output-channel axis for v7x's second core.
    return pl.pallas_call(
        kernel,
        out_shape=(jax.ShapeDtypeStruct((Nb, Ho, Wo, Cp), COMPUTE_DTYPE),
                   jax.ShapeDtypeStruct((1, Cp), jnp.float32),
                   jax.ShapeDtypeStruct((1, Cp), jnp.float32)),
        grid=(Nb,),
        in_specs=[pl.BlockSpec((1, H, W, Cp), lambda b: (b, 0, 0, c_block)),
                  pl.BlockSpec((1, Cp), lambda b: (0, 0)),
                  pl.BlockSpec((1, Cp), lambda b: (0, 0)),
                  pl.BlockSpec((9, Cp, Cp), lambda b: (0, 0, 0))],
        out_specs=(pl.BlockSpec((1, Ho, Wo, Cp), lambda b: (b, 0, 0, 0)),
                   pl.BlockSpec((1, Cp), lambda b: (0, 0)),
                   pl.BlockSpec((1, Cp), lambda b: (0, 0))),
        scratch_shapes=[pltpu.VMEM((H + 2, W + 2, Cp), COMPUTE_DTYPE)],
        compiler_params=pltpu.CompilerParams(
            dimension_semantics=("arbitrary",),
            vmem_limit_bytes=_VMEM_LIMIT),
    )(y1_nhwc, scale1, shift1, w2_taps)


def bn_add_relu(y, sc, scale_y, shift_y, scale_s, shift_s, *, tm):
    """Fused epilogue; sc may be wider than y (shortcut channels are [0, C))."""
    mp, C = y.shape
    return pl.pallas_call(
        _bn_add_relu_kernel,
        out_shape=jax.ShapeDtypeStruct((mp, C), COMPUTE_DTYPE),
        grid=(mp // tm,),
        in_specs=[pl.BlockSpec((tm, C), lambda i: (i, 0)),
                  pl.BlockSpec((tm, C), lambda i: (i, 0)),
                  pl.BlockSpec((1, C), lambda i: (0, 0)),
                  pl.BlockSpec((1, C), lambda i: (0, 0)),
                  pl.BlockSpec((1, C), lambda i: (0, 0)),
                  pl.BlockSpec((1, C), lambda i: (0, 0))],
        out_specs=pl.BlockSpec((tm, C), lambda i: (i, 0)),
        compiler_params=pltpu.CompilerParams(
            dimension_semantics=("parallel",),   # purely element-parallel
            vmem_limit_bytes=_VMEM_LIMIT),
    )(y, sc, scale_y, shift_y, scale_s, shift_s)


# ------------------------------- forward ------------------------------------

def init_params(key, in_planes, planes, stride=1):
    """Deterministic parameters; shapes follow torch Bottleneck.__init__."""
    exp = 4 * planes
    k1, k2, k3, ks = jax.random.split(key, 4)
    p = {
        'w1': 0.1 * jax.random.normal(k1, (planes, in_planes, 1, 1), jnp.float32),
        'g1': jnp.ones((planes,), jnp.float32), 'b1': jnp.zeros((planes,), jnp.float32),
        'w2': 0.1 * jax.random.normal(k2, (planes, planes, 3, 3), jnp.float32),
        'g2': jnp.ones((planes,), jnp.float32), 'b2': jnp.zeros((planes,), jnp.float32),
        'w3': 0.1 * jax.random.normal(k3, (exp, planes, 1, 1), jnp.float32),
        'g3': jnp.ones((exp,), jnp.float32), 'b3': jnp.zeros((exp,), jnp.float32),
    }
    if stride != 1 or in_planes != exp:
        p['ws'] = 0.1 * jax.random.normal(ks, (exp, in_planes, 1, 1), jnp.float32)
        p['gs'] = jnp.ones((exp,), jnp.float32)
        p['bs'] = jnp.zeros((exp,), jnp.float32)
    return p


def bottleneck_forward(x_nchw, p, stride=1):
    cd = COMPUTE_DTYPE
    Nb, Cin, H, W = x_nchw.shape
    planes = p['w1'].shape[0]
    exp = p['w3'].shape[0]
    Cin_p = _round_up(Cin, 128)
    Cpl = _round_up(planes, 128)
    Cex = _round_up(exp, 128)
    has_proj = ('ws' in p)

    # NCHW -> NHWC once at the block boundary (would be hoisted out of a full
    # multi-block network); channels zero-padded to lane-dense multiples of 128.
    x = jnp.transpose(x_nchw, (0, 2, 3, 1)).astype(jnp.float32)
    x = jnp.pad(x, ((0, 0), (0, 0), (0, 0), (0, Cin_p - Cin))).astype(cd)
    M1 = Nb * H * W

    # padded weights / BN affine params (tiny glue; padded channels -> zeros)
    w1p = _pad2d(p['w1'][:, :, 0, 0].T, Cin_p, Cpl).astype(cd)
    w2p = jnp.pad(jnp.transpose(p['w2'], (2, 3, 1, 0)).reshape(9, planes, planes),
                  ((0, 0), (0, Cpl - planes), (0, Cpl - planes))).astype(cd)
    w3p = _pad2d(p['w3'][:, :, 0, 0].T, Cpl, Cex).astype(cd)
    g1, b1 = _pad_vec(p['g1'], Cpl), _pad_vec(p['b1'], Cpl)
    g2, b2 = _pad_vec(p['g2'], Cpl), _pad_vec(p['b2'], Cpl)
    g3, b3 = _pad_vec(p['g3'], Cex), _pad_vec(p['b3'], Cex)

    tm1 = _pick_tm(M1, _TM)
    # conv1 + shortcut projection share the x read when the layouts line up.
    fuse_shortcut = (has_proj and stride == 1 and Cex % Cpl == 0
                     and M1 % tm1 == 0)

    if fuse_shortcut:
        wsp = _pad2d(p['ws'][:, :, 0, 0].T, Cin_p, Cex).astype(cd)
        gs, bs = _pad_vec(p['gs'], Cex), _pad_vec(p['bs'], Cex)
        # Concatenated weight [w_shortcut | w_conv1]; shortcut channels first.
        w_cat = jnp.concatenate([wsp, w1p], axis=1)        # (Cin_p, Cex + Cpl)
        y_cat, s_cat, q_cat = matmul_bn_stats(x.reshape(M1, Cin_p), w_cat)
        s_s, q_s = s_cat[:, :Cex], q_cat[:, :Cex]
        s1, q1 = s_cat[:, Cex:], q_cat[:, Cex:]
        scale1, shift1 = _bn_scale_shift(s1, q1, M1, g1, b1)
        y1_nhwc = y_cat.reshape(Nb, H, W, Cex + Cpl)
        c_block = Cex // Cpl          # conv1 channel block inside y_cat
    else:
        y1, s1, q1 = matmul_bn_stats(x.reshape(M1, Cin_p), w1p)
        scale1, shift1 = _bn_scale_shift(s1, q1, M1, g1, b1)
        y1_nhwc = y1[:M1].reshape(Nb, H, W, Cpl)
        c_block = 0

    # conv2 (3x3, stride, pad=1): bn1+relu prologue fused, bn2 stats fused
    y2, s2, q2 = conv3x3_bn_stats(y1_nhwc, scale1, shift1, w2p,
                                  stride=stride, c_block=c_block)
    Ho, Wo = y2.shape[1], y2.shape[2]
    M2 = Nb * Ho * Wo
    scale2, shift2 = _bn_scale_shift(s2, q2, M2, g2, b2)

    # conv3 (1x1): bn2+relu prologue fused, bn3 stats fused
    y3, s3, q3 = matmul_bn_stats(y2.reshape(M2, Cpl), w3p,
                                 norm_relu_prologue=(scale2, shift2), m_valid=M2)
    scale3, shift3 = _bn_scale_shift(s3, q3, M2, g3, b3)
    tm2 = _pick_tm(M2, _TM)
    mp2 = y3.shape[0]

    # shortcut path (BN applied in the fused epilogue)
    if fuse_shortcut:
        scale_s, shift_s = _bn_scale_shift(s_s, q_s, M2, gs, bs)   # M2 == M1
        sc = y_cat                    # channels [0, Cex) are the shortcut proj
    elif has_proj:
        wsp = _pad2d(p['ws'][:, :, 0, 0].T, Cin_p, Cex).astype(cd)
        gs, bs = _pad_vec(p['gs'], Cex), _pad_vec(p['bs'], Cex)
        xs = x[:, ::stride, ::stride, :].reshape(M2, Cin_p)
        sc, ss, qs = matmul_bn_stats(xs, wsp)
        scale_s, shift_s = _bn_scale_shift(ss, qs, M2, gs, bs)
        if sc.shape[0] != mp2:
            sc = _pad_rows(sc[:M2], mp2)
    else:
        sc = _pad_rows(x.reshape(M1, Cin_p), mp2)
        scale_s = jnp.ones((1, Cex), jnp.float32)
        shift_s = jnp.zeros((1, Cex), jnp.float32)

    # fused epilogue: bn3(y3) + bn_s(shortcut) + residual add + relu (bf16 out)
    out = bn_add_relu(y3, sc, scale3, shift3, scale_s, shift_s, tm=tm2)

    # TODO(synk): in a full network keep the padded NHWC layout between blocks;
    # the channel un-pad + NCHW transpose below is a module-boundary cost only.
    out = out[:M2, :exp].reshape(Nb, Ho, Wo, exp)
    return jnp.transpose(out, (0, 3, 1, 2))                    # back to NCHW


# --------------------------- pure-JAX reference -----------------------------

def _bn_ref(y_nhwc, g, b):
    mean = jnp.mean(y_nhwc, axis=(0, 1, 2), keepdims=True)
    var = jnp.mean(jnp.square(y_nhwc - mean), axis=(0, 1, 2), keepdims=True)
    return (y_nhwc - mean) * lax.rsqrt(var + _EPS) * g + b


def _conv_ref(x_nhwc, w_oihw, stride, pad):
    w_hwio = jnp.transpose(w_oihw, (2, 3, 1, 0))
    return lax.conv_general_dilated(
        x_nhwc, w_hwio, (stride, stride), [(pad, pad), (pad, pad)],
        dimension_numbers=('NHWC', 'HWIO', 'NHWC'))


def bottleneck_ref(x_nchw, p, stride=1):
    x = jnp.transpose(x_nchw, (0, 2, 3, 1)).astype(jnp.float32)
    out = jax.nn.relu(_bn_ref(_conv_ref(x, p['w1'], 1, 0), p['g1'], p['b1']))
    out = jax.nn.relu(_bn_ref(_conv_ref(out, p['w2'], stride, 1), p['g2'], p['b2']))
    out = _bn_ref(_conv_ref(out, p['w3'], 1, 0), p['g3'], p['b3'])
    Cin, exp = x.shape[-1], p['w3'].shape[0]
    if stride != 1 or Cin != exp:
        sc = _bn_ref(_conv_ref(x, p['ws'], stride, 0), p['gs'], p['bs'])
    else:
        sc = x
    out = jax.nn.relu(out + sc)
    return jnp.transpose(out, (0, 3, 1, 2))


# ---------------------------------- main ------------------------------------

if __name__ == "__main__":
    key = jax.random.PRNGKey(0)
    kx, kp = jax.random.split(key)

    in_planes, planes, stride = 4, 4, 1
    x = jax.random.normal(kx, (2, in_planes, 16, 16), jnp.float32)  # NCHW
    params = init_params(kp, in_planes, planes, stride)

    fwd = jax.jit(functools.partial(bottleneck_forward, stride=stride))
    out = jax.block_until_ready(fwd(x, params))
    ref = jax.block_until_ready(bottleneck_ref(x, params, stride))

    # bf16 MXU operands, bf16 intermediate activations and bf16 block output
    # give ~1% relative agreement against the all-f32 reference across the
    # three BN-normalized layers; tolerance is set accordingly.
    np.testing.assert_allclose(np.asarray(out).astype(np.float32),
                               np.asarray(ref).astype(np.float32),
                               rtol=5e-2, atol=5e-2)
    assert out.shape == (2, 4 * planes, 16, 16)

    print("KERNEL_OK")
</pallas_src>

<mosaic_0001>
module attributes {stable_mosaic.version = 11 : i64} {
  func.func @_matmul_stats_kernel(%arg0: i32, %arg1: i32, %arg2: memref<512x128xbf16, #tpu.memory_space<vmem>>, %arg3: memref<128x256xbf16, #tpu.memory_space<vmem>>, %arg4: memref<512x256xbf16, #tpu.memory_space<vmem>>, %arg5: memref<1x256xf32, #tpu.memory_space<vmem>>, %arg6: memref<1x256xf32, #tpu.memory_space<vmem>>) attributes {dimension_semantics = [#tpu.dimension_semantics<parallel>, #tpu.dimension_semantics<arbitrary>], iteration_bounds = array<i64: 1, 1>, scalar_prefetch = 0 : i64, scratch_operands = 0 : i64, tpu.core_type = #tpu.core_type<tc>, window_params = [{transform_indices = @transform_0, window_bounds = array<i64: 512, 128>}, {transform_indices = @transform_1, window_bounds = array<i64: 128, 256>}, {transform_indices = @transform_2, window_bounds = array<i64: 512, 256>}, {transform_indices = @transform_3, window_bounds = array<i64: 1, 256>}, {transform_indices = @transform_4, window_bounds = array<i64: 1, 256>}]} {
    %c0_i32 = arith.constant 0 : i32
    %0 = arith.cmpi eq, %arg1, %c0_i32 : i32
    %1 = arith.extui %0 : i1 to i32
    %c0_i32_0 = arith.constant 0 : i32
    %2 = arith.cmpi ne, %1, %c0_i32_0 : i32
    scf.if %2 {
      %cst_16 = arith.constant 0.000000e+00 : f32
      %19 = vector.broadcast %cst_16 : f32 to vector<1x256xf32>
      %c0_17 = arith.constant 0 : index
      %c0_18 = arith.constant 0 : index
      %20 = vector.load %arg5[%c0_17, %c0_18] : memref<1x256xf32, #tpu.memory_space<vmem>>, vector<1x256xf32>
      tpu.vector_store %arg5[%c0_17, %c0_18], %19 {strides = array<i32>} : memref<1x256xf32, #tpu.memory_space<vmem>>, vector<1x256xf32>,
      %cst_19 = arith.constant 0.000000e+00 : f32
      %21 = vector.broadcast %cst_19 : f32 to vector<1x256xf32>
      %c0_20 = arith.constant 0 : index
      %c0_21 = arith.constant 0 : index
      %22 = vector.load %arg6[%c0_20, %c0_21] : memref<1x256xf32, #tpu.memory_space<vmem>>, vector<1x256xf32>
      tpu.vector_store %arg6[%c0_20, %c0_21], %21 {strides = array<i32>} : memref<1x256xf32, #tpu.memory_space<vmem>>, vector<1x256xf32>,
    } else {
    }
    %c0 = arith.constant 0 : index
    %c0_1 = arith.constant 0 : index
    %3 = vector.load %arg2[%c0, %c0_1] : memref<512x128xbf16, #tpu.memory_space<vmem>>, vector<512x128xbf16>
    %c0_2 = arith.constant 0 : index
    %c0_3 = arith.constant 0 : index
    %4 = vector.load %arg3[%c0_2, %c0_3] : memref<128x256xbf16, #tpu.memory_space<vmem>>, vector<128x256xbf16>
    %cst = arith.constant dense<0.000000e+00> : vector<512x256xf32>
    %5 = tpu.matmul %3, %4, %cst {dimension_numbers = #tpu.dot_dimension_numbers<[1], [0], [0], [1], [0, 0, 1, 1], [], []>} : vector<512x128xbf16>, vector<128x256xbf16>, vector<512x256xf32> -> vector<512x256xf32>
    %6 = arith.truncf %5 : vector<512x256xf32> to vector<512x256xbf16>
    %c0_4 = arith.constant 0 : index
    %c0_5 = arith.constant 0 : index
    %7 = vector.load %arg4[%c0_4, %c0_5] : memref<512x256xbf16, #tpu.memory_space<vmem>>, vector<512x256xbf16>
    tpu.vector_store %arg4[%c0_4, %c0_5], %6 {strides = array<i32>} : memref<512x256xbf16, #tpu.memory_space<vmem>>, vector<512x256xbf16>,
    %c0_6 = arith.constant 0 : index
    %c0_7 = arith.constant 0 : index
    %8 = vector.load %arg5[%c0_6, %c0_7] : memref<1x256xf32, #tpu.memory_space<vmem>>, vector<1x256xf32>
    %cst_8 = arith.constant dense<0.000000e+00> : vector<256xf32>
    %9 = vector.multi_reduction <add>, %5, %cst_8 [0] : vector<512x256xf32> to vector<256xf32>
    %10 = vector.shape_cast %9 : vector<256xf32> to vector<1x256xf32>
    %11 = arith.addf %8, %10 : vector<1x256xf32>
    %c0_9 = arith.constant 0 : index
    %c0_10 = arith.constant 0 : index
    %12 = vector.load %arg5[%c0_9, %c0_10] : memref<1x256xf32, #tpu.memory_space<vmem>>, vector<1x256xf32>
    tpu.vector_store %arg5[%c0_9, %c0_10], %11 {strides = array<i32>} : memref<1x256xf32, #tpu.memory_space<vmem>>, vector<1x256xf32>,
    %c0_11 = arith.constant 0 : index
    %c0_12 = arith.constant 0 : index
    %13 = vector.load %arg6[%c0_11, %c0_12] : memref<1x256xf32, #tpu.memory_space<vmem>>, vector<1x256xf32>
    %14 = arith.mulf %5, %5 : vector<512x256xf32>
    %cst_13 = arith.constant dense<0.000000e+00> : vector<256xf32>
    %15 = vector.multi_reduction <add>, %14, %cst_13 [0] : vector<512x256xf32> to vector<256xf32>
    %16 = vector.shape_cast %15 : vector<256xf32> to vector<1x256xf32>
    %17 = arith.addf %13, %16 : vector<1x256xf32>
    %c0_14 = arith.constant 0 : index
    %c0_15 = arith.constant 0 : index
    %18 = vector.load %arg6[%c0_14, %c0_15] : memref<1x256xf32, #tpu.memory_space<vmem>>, vector<1x256xf32>
    tpu.vector_store %arg6[%c0_14, %c0_15], %17 {strides = array<i32>} : memref<1x256xf32, #tpu.memory_space<vmem>>, vector<1x256xf32>,
    return
  }
  func.func @transform_0(%arg0: i32, %arg1: i32) -> (i32, i32) {
    %c0_i32 = arith.constant 0 : i32
    %c0_i32_0 = arith.constant 0 : i32
    return %arg1, %c0_i32 : i32, i32
  }
  func.func @transform_1(%arg0: i32, %arg1: i32) -> (i32, i32) {
    %c0_i32 = arith.constant 0 : i32
    %c0_i32_0 = arith.constant 0 : i32
    return %c0_i32, %arg0 : i32, i32
  }
  func.func @transform_2(%arg0: i32, %arg1: i32) -> (i32, i32) {
    %c0_i32 = arith.constant 0 : i32
    return %arg1, %arg0 : i32, i32
  }
  func.func @transform_3(%arg0: i32, %arg1: i32) -> (i32, i32) {
    %c0_i32 = arith.constant 0 : i32
    %c0_i32_0 = arith.constant 0 : i32
    return %c0_i32, %arg0 : i32, i32
  }
  func.func @transform_4(%arg0: i32, %arg1: i32) -> (i32, i32) {
    %c0_i32 = arith.constant 0 : i32
    %c0_i32_0 = arith.constant 0 : i32
    return %c0_i32, %arg0 : i32, i32
  }
}

module attributes {stable_mosaic.version = 11 : i64} {
  func.func @_conv3x3_stats_kernel(%arg0: i32, %arg1: memref<1x16x16x128xbf16, #tpu.memory_space<vmem>>, %arg2: memref<1x128xf32, #tpu.memory_space<vmem>>, %arg3: memref<1x128xf32, #tpu.memory_space<vmem>>, %arg4: memref<9x128x128xbf16, #tpu.memory_space<vmem>>, %arg5: memref<1x16x16x128xbf16, #tpu.memory_space<vmem>>, %arg6: memref<1x128xf32, #tpu.memory_space<vmem>>, %arg7: memref<1x128xf32, #tpu.memory_space<vmem>>, %arg8: memref<18x18x128xbf16, #tpu.memory_space<vmem>>) attributes {dimension_semantics = [#tpu.dimension_semantics<arbitrary>], iteration_bounds = array<i64: 2>, scalar_prefetch = 0 : i64, scratch_operands = 1 : i64, tpu.core_type = #tpu.core_type<tc>, window_params = [{transform_indices = @transform_0, window_bounds = array<i64: 1, 16, 16, 128>}, {pipeline_mode = #tpu.pipeline_mode<synchronous>, transform_indices = @transform_1, window_bounds = array<i64: 1, 128>}, {pipeline_mode = #tpu.pipeline_mode<synchronous>, transform_indices = @transform_2, window_bounds = array<i64: 1, 128>}, {pipeline_mode = #tpu.pipeline_mode<synchronous>, transform_indices = @transform_3, window_bounds = array<i64: 9, 128, 128>}, {transform_indices = @transform_4, window_bounds = array<i64: 1, 16, 16, 128>}, {pipeline_mode = #tpu.pipeline_mode<synchronous>, transform_indices = @transform_5, window_bounds = array<i64: 1, 128>}, {pipeline_mode = #tpu.pipeline_mode<synchronous>, transform_indices = @transform_6, window_bounds = array<i64: 1, 128>}]} {
    %c0_i32 = arith.constant 0 : i32
    %0 = arith.cmpi eq, %arg0, %c0_i32 : i32
    %1 = arith.extui %0 : i1 to i32
    %c0_i32_0 = arith.constant 0 : i32
    %2 = arith.cmpi ne, %1, %c0_i32_0 : i32
    scf.if %2 {
      %cst_12 = arith.constant 0.000000e+00 : f32
      %19 = vector.broadcast %cst_12 : f32 to vector<1x128xf32>
      %c0_13 = arith.constant 0 : index
      %c0_14 = arith.constant 0 : index
      %20 = vector.load %arg6[%c0_13, %c0_14] : memref<1x128xf32, #tpu.memory_space<vmem>>, vector<1x128xf32>
      tpu.vector_store %arg6[%c0_13, %c0_14], %19 {strides = array<i32>} : memref<1x128xf32, #tpu.memory_space<vmem>>, vector<1x128xf32>,
      %cst_15 = arith.constant 0.000000e+00 : f32
      %21 = vector.broadcast %cst_15 : f32 to vector<1x128xf32>
      %c0_16 = arith.constant 0 : index
      %c0_17 = arith.constant 0 : index
      %22 = vector.load %arg7[%c0_16, %c0_17] : memref<1x128xf32, #tpu.memory_space<vmem>>, vector<1x128xf32>
      tpu.vector_store %arg7[%c0_16, %c0_17], %21 {strides = array<i32>} : memref<1x128xf32, #tpu.memory_space<vmem>>, vector<1x128xf32>,
      %cst_18 = arith.constant 0.000000e+00 : bf16
      %23 = vector.broadcast %cst_18 : bf16 to vector<18x18x128xbf16>
      %c0_19 = arith.constant 0 : index
      %c0_20 = arith.constant 0 : index
      %c0_21 = arith.constant 0 : index
      %24 = vector.load %arg8[%c0_19, %c0_20, %c0_21] : memref<18x18x128xbf16, #tpu.memory_space<vmem>>, vector<18x18x128xbf16>
      tpu.vector_store %arg8[%c0_19, %c0_20, %c0_21], %23 {strides = array<i32>} : memref<18x18x128xbf16, #tpu.memory_space<vmem>>, vector<18x18x128xbf16>,
    } else {
    }
    %c0 = arith.constant 0 : index
    %c0_1 = arith.constant 0 : index
    %c0_2 = arith.constant 0 : index
    %c0_3 = arith.constant 0 : index
    %3 = vector.load %arg1[%c0, %c0_1, %c0_2, %c0_3] : memref<1x16x16x128xbf16, #tpu.memory_space<vmem>>, vector<1x16x16x128xbf16>
    %4 = vector.shape_cast %3 : vector<1x16x16x128xbf16> to vector<16x16x128xbf16>
    %5 = arith.extf %4 : vector<16x16x128xbf16> to vector<16x16x128xf32>
    %c0_4 = arith.constant 0 : index
    %c0_5 = arith.constant 0 : index
    %6 = vector.load %arg2[%c0_4, %c0_5] : memref<1x128xf32, #tpu.memory_space<vmem>>, vector<1x128xf32>
    %7 = vector.shape_cast %6 : vector<1x128xf32> to vector<1x1x128xf32>
    %8 = vector.broadcast %7 : vector<1x1x128xf32> to vector<16x16x128xf32>
    %9 = arith.mulf %5, %8 : vector<16x16x128xf32>
    %c0_6 = arith.constant 0 : index
    %c0_7 = arith.constant 0 : index
    %10 = vector.load %arg3[%c0_6, %c0_7] : memref<1x128xf32, #tpu.memory_space<vmem>>, vector<1x128xf32>
    %11 = vector.shape_cast %10 : vector<1x128xf32> to vector<1x1x128xf32>
    %12 = vector.broadcast %11 : vector<1x1x128xf32> to vector<16x16x128xf32>
    %13 = arith.addf %9, %12 : vector<16x16x128xf32>
    %cst = arith.constant 0.000000e+00 : f32
    %14 = vector.broadcast %cst : f32 to vector<16x16x128xf32>
    %15 = arith.maximumf %13, %14 : vector<16x16x128xf32>
    %16 = arith.truncf %15 : vector<16x16x128xf32> to vector<16x16x128xbf16>
    %c1 = arith.constant 1 : index
    %c1_8 = arith.constant 1 : index
    %c0_9 = arith.constant 0 : index
    %17 = vector.load %arg8[%c1, %c1_8, %c0_9] : memref<18x18x128xbf16, #tpu.memory_space<vmem>>, vector<16x16x128xbf16>
    tpu.vector_store %arg8[%c1, %c1_8, %c0_9], %16 {strides = array<i32>} : memref<18x18x128xbf16, #tpu.memory_space<vmem>>, vector<16x16x128xbf16>,
    %c0_i32_10 = arith.constant 0 : i32
    %c2_i32 = arith.constant 2 : i32
    %18 = arith.addi %c0_i32_10, %c2_i32 : i32
    %c1_i32 = arith.constant 1 : i32
    scf.for %arg9 = %c0_i32_10 to %18 step %c1_i32  : i32 {
      %c8_i32 = arith.constant 8 : i32
      %19 = arith.muli %arg9, %c8_i32 : i32
      %20 = tpu.assume_multiple %19, 8 : i32
      %c1_i32_12 = arith.constant 1 : i32
      %21 = arith.muli %20, %c1_i32_12 : i32
      %c0_i32_13 = arith.constant 0 : i32
      %22 = arith.addi %21, %c0_i32_13 : i32
      %23 = arith.index_cast %22 : i32 to index
      %c0_14 = arith.constant 0 : index
      %c0_15 = arith.constant 0 : index
      %24 = vector.load %arg8[%23, %c0_14, %c0_15] : memref<18x18x128xbf16, #tpu.memory_space<vmem>>, vector<8x16x128xbf16>
      %25 = vector.shape_cast %24 : vector<8x16x128xbf16> to vector<128x128xbf16>
      %c0_16 = arith.constant 0 : index
      %c0_17 = arith.constant 0 : index
      %c0_18 = arith.constant 0 : index
      %26 = vector.load %arg4[%c0_16, %c0_17, %c0_18] : memref<9x128x128xbf16, #tpu.memory_space<vmem>>, vector<1x128x128xbf16>
      %27 = vector.shape_cast %26 : vector<1x128x128xbf16> to vector<128x128xbf16>
      %cst_19 = arith.constant dense<0.000000e+00> : vector<128x128xf32>
      %28 = tpu.matmul %25, %27, %cst_19 {dimension_numbers = #tpu.dot_dimension_numbers<[1], [0], [0], [1], [0, 0, 1, 1], [], []>} : vector<128x128xbf16>, vector<128x128xbf16>, vector<128x128xf32> -> vector<128x128xf32>
      %c1_i32_20 = arith.constant 1 : i32
      %29 = arith.muli %20, %c1_i32_20 : i32
      %c0_i32_21 = arith.constant 0 : i32
      %30 = arith.addi %29, %c0_i32_21 : i32
      %31 = arith.index_cast %30 : i32 to index
      %c1_22 = arith.constant 1 : index
      %c0_23 = arith.constant 0 : index
      %32 = vector.load %arg8[%31, %c1_22, %c0_23] : memref<18x18x128xbf16, #tpu.memory_space<vmem>>, vector<8x16x128xbf16>
      %33 = vector.shape_cast %32 : vector<8x16x128xbf16> to vector<128x128xbf16>
      %c1_24 = arith.constant 1 : index
      %c0_25 = arith.constant 0 : index
      %c0_26 = arith.constant 0 : index
      %34 = vector.load %arg4[%c1_24, %c0_25, %c0_26] : memref<9x128x128xbf16, #tpu.memory_space<vmem>>, vector<1x128x128xbf16>
      %35 = vector.shape_cast %34 : vector<1x128x128xbf16> to vector<128x128xbf16>
      %cst_27 = arith.constant dense<0.000000e+00> : vector<128x128xf32>
      %36 = tpu.matmul %33, %35, %cst_27 {dimension_numbers = #tpu.dot_dimension_numbers<[1], [0], [0], [1], [0, 0, 1, 1], [], []>} : vector<128x128xbf16>, vector<128x128xbf16>, vector<128x128xf32> -> vector<128x128xf32>
      %37 = arith.addf %28, %36 : vector<128x128xf32>
      %c1_i32_28 = arith.constant 1 : i32
      %38 = arith.muli %20, %c1_i32_28 : i32
      %c0_i32_29 = arith.constant 0 : i32
      %39 = arith.addi %38, %c0_i32_29 : i32
      %40 = arith.index_cast %39 : i32 to index
      %c2 = arith.constant 2 : index
      %c0_30 = arith.constant 0 : index
      %41 = vector.load %arg8[%40, %c2, %c0_30] : memref<18x18x128xbf16, #tpu.memory_space<vmem>>, vector<8x16x128xbf16>
      %42 = vector.shape_cast %41 : vector<8x16x128xbf16> to vector<128x128xbf16>
      %c2_31 = arith.constant 2 : index
      %c0_32 = arith.constant 0 : index
      %c0_33 = arith.constant 0 : index
      %43 = vector.load %arg4[%c2_31, %c0_32, %c0_33] : memref<9x128x128xbf16, #tpu.memory_space<vmem>>, vector<1x128x128xbf16>
      %44 = vector.shape_cast %43 : vector<1x128x128xbf16> to vector<128x128xbf16>
      %cst_34 = arith.constant dense<0.000000e+00> : vector<128x128xf32>
      %45 = tpu.matmul %42, %44, %cst_34 {dimension_numbers = #tpu.dot_dimension_numbers<[1], [0], [0], [1], [0, 0, 1, 1], [], []>} : vector<128x128xbf16>, vector<128x128xbf16>, vector<128x128xf32> -> vector<128x128xf32>
      %46 = arith.addf %37, %45 : vector<128x128xf32>
      %c1_i32_35 = arith.constant 1 : i32
      %47 = arith.muli %20, %c1_i32_35 : i32
      %c1_i32_36 = arith.constant 1 : i32
      %48 = arith.addi %47, %c1_i32_36 : i32
      %49 = arith.index_cast %48 : i32 to index
      %c0_37 = arith.constant 0 : index
      %c0_38 = arith.constant 0 : index
      %50 = vector.load %arg8[%49, %c0_37, %c0_38] : memref<18x18x128xbf16, #tpu.memory_space<vmem>>, vector<8x16x128xbf16>
      %51 = vector.shape_cast %50 : vector<8x16x128xbf16> to vector<128x128xbf16>
      %c3 = arith.constant 3 : index
      %c0_39 = arith.constant 0 : index
      %c0_40 = arith.constant 0 : index
      %52 = vector.load %arg4[%c3, %c0_39, %c0_40] : memref<9x128x128xbf16, #tpu.memory_space<vmem>>, vector<1x128x128xbf16>
      %53 = vector.shape_cast %52 : vector<1x128x128xbf16> to vector<128x128xbf16>
      %cst_41 = arith.constant dense<0.000000e+00> : vector<128x128xf32>
      %54 = tpu.matmul %51, %53, %cst_41 {dimension_numbers = #tpu.dot_dimension_numbers<[1], [0], [0], [1], [0, 0, 1, 1], [], []>} : vector<128x128xbf16>, vector<128x128xbf16>, vector<128x128xf32> -> vector<128x128xf32>
      %55 = arith.addf %46, %54 : vector<128x128xf32>
      %c1_i32_42 = arith.constant 1 : i32
      %56 = arith.muli %20, %c1_i32_42 : i32
      %c1_i32_43 = arith.constant 1 : i32
      %57 = arith.addi %56, %c1_i32_43 : i32
      %58 = arith.index_cast %57 : i32 to index
      %c1_44 = arith.constant 1 : index
      %c0_45 = arith.constant 0 : index
      %59 = vector.load %arg8[%58, %c1_44, %c0_45] : memref<18x18x128xbf16, #tpu.memory_space<vmem>>, vector<8x16x128xbf16>
      %60 = vector.shape_cast %59 : vector<8x16x128xbf16> to vector<128x128xbf16>
      %c4 = arith.constant 4 : index
      %c0_46 = arith.constant 0 : index
      %c0_47 = arith.constant 0 : index
      %61 = vector.load %arg4[%c4, %c0_46, %c0_47] : memref<9x128x128xbf16, #tpu.memory_space<vmem>>, vector<1x128x128xbf16>
      %62 = vector.shape_cast %61 : vector<1x128x128xbf16> to vector<128x128xbf16>
      %cst_48 = arith.constant dense<0.000000e+00> : vector<128x128xf32>
      %63 = tpu.matmul %60, %62, %cst_48 {dimension_numbers = #tpu.dot_dimension_numbers<[1], [0], [0], [1], [0, 0, 1, 1], [], []>} : vector<128x128xbf16>, vector<128x128xbf16>, vector<128x128xf32> -> vector<128x128xf32>
      %64 = arith.addf %55, %63 : vector<128x128xf32>
      %c1_i32_49 = arith.constant 1 : i32
      %65 = arith.muli %20, %c1_i32_49 : i32
      %c1_i32_50 = arith.constant 1 : i32
      %66 = arith.addi %65, %c1_i32_50 : i32
      %67 = arith.index_cast %66 : i32 to index
      %c2_51 = arith.constant 2 : index
      %c0_52 = arith.constant 0 : index
      %68 = vector.load %arg8[%67, %c2_51, %c0_52] : memref<18x18x128xbf16, #tpu.memory_space<vmem>>, vector<8x16x128xbf16>
      %69 = vector.shape_cast %68 : vector<8x16x128xbf16> to vector<128x128xbf16>
      %c5 = arith.constant 5 : index
      %c0_53 = arith.constant 0 : index
      %c0_54 = arith.constant 0 : index
      %70 = vector.load %arg4[%c5, %c0_53, %c0_54] : memref<9x128x128xbf16, #tpu.memory_space<vmem>>, vector<1x128x128xbf16>
      %71 = vector.shape_cast %70 : vector<1x128x128xbf16> to vector<128x128xbf16>
      %cst_55 = arith.constant dense<0.000000e+00> : vector<128x128xf32>
      %72 = tpu.matmul %69, %71, %cst_55 {dimension_numbers = #tpu.dot_dimension_numbers<[1], [0], [0], [1], [0, 0, 1, 1], [], []>} : vector<128x128xbf16>, vector<128x128xbf16>, vector<128x128xf32> -> vector<128x128xf32>
      %73 = arith.addf %64, %72 : vector<128x128xf32>
      %c1_i32_56 = arith.constant 1 : i32
      %74 = arith.muli %20, %c1_i32_56 : i32
      %c2_i32_57 = arith.constant 2 : i32
      %75 = arith.addi %74, %c2_i32_57 : i32
      %76 = arith.index_cast %75 : i32 to index
      %c0_58 = arith.constant 0 : index
      %c0_59 = arith.constant 0 : index
      %77 = vector.load %arg8[%76, %c0_58, %c0_59] : memref<18x18x128xbf16, #tpu.memory_space<vmem>>, vector<8x16x128xbf16>
      %78 = vector.shape_cast %77 : vector<8x16x128xbf16> to vector<128x128xbf16>
      %c6 = arith.constant 6 : index
      %c0_60 = arith.constant 0 : index
      %c0_61 = arith.constant 0 : index
      %79 = vector.load %arg4[%c6, %c0_60, %c0_61] : memref<9x128x128xbf16, #tpu.memory_space<vmem>>, vector<1x128x128xbf16>
      %80 = vector.shape_cast %79 : vector<1x128x128xbf16> to vector<128x128xbf16>
      %cst_62 = arith.constant dense<0.000000e+00> : vector<128x128xf32>
      %81 = tpu.matmul %78, %80, %cst_62 {dimension_numbers = #tpu.dot_dimension_numbers<[1], [0], [0], [1], [0, 0, 1, 1], [], []>} : vector<128x128xbf16>, vector<128x128xbf16>, vector<128x128xf32> -> vector<128x128xf32>
      %82 = arith.addf %73, %81 : vector<128x128xf32>
      %c1_i32_63 = arith.constant 1 : i32
      %83 = arith.muli %20, %c1_i32_63 : i32
      %c2_i32_64 = arith.constant 2 : i32
      %84 = arith.addi %83, %c2_i32_64 : i32
      %85 = arith.index_cast %84 : i32 to index
      %c1_65 = arith.constant 1 : index
      %c0_66 = arith.constant 0 : index
      %86 = vector.load %arg8[%85, %c1_65, %c0_66] : memref<18x18x128xbf16, #tpu.memory_space<vmem>>, vector<8x16x128xbf16>
      %87 = vector.shape_cast %86 : vector<8x16x128xbf16> to vector<128x128xbf16>
      %c7 = arith.constant 7 : index
      %c0_67 = arith.constant 0 : index
      %c0_68 = arith.constant 0 : index
      %88 = vector.load %arg4[%c7, %c0_67, %c0_68] : memref<9x128x128xbf16, #tpu.memory_space<vmem>>, vector<1x128x128xbf16>
      %89 = vector.shape_cast %88 : vector<1x128x128xbf16> to vector<128x128xbf16>
      %cst_69 = arith.constant dense<0.000000e+00> : vector<128x128xf32>
      %90 = tpu.matmul %87, %89, %cst_69 {dimension_numbers = #tpu.dot_dimension_numbers<[1], [0], [0], [1], [0, 0, 1, 1], [], []>} : vector<128x128xbf16>, vector<128x128xbf16>, vector<128x128xf32> -> vector<128x128xf32>
      %91 = arith.addf %82, %90 : vector<128x128xf32>
      %c1_i32_70 = arith.constant 1 : i32
      %92 = arith.muli %20, %c1_i32_70 : i32
      %c2_i32_71 = arith.constant 2 : i32
      %93 = arith.addi %92, %c2_i32_71 : i32
      %94 = arith.index_cast %93 : i32 to index
      %c2_72 = arith.constant 2 : index
      %c0_73 = arith.constant 0 : index
      %95 = vector.load %arg8[%94, %c2_72, %c0_73] : memref<18x18x128xbf16, #tpu.memory_space<vmem>>, vector<8x16x128xbf16>
      %96 = vector.shape_cast %95 : vector<8x16x128xbf16> to vector<128x128xbf16>
      %c8 = arith.constant 8 : index
      %c0_74 = arith.constant 0 : index
      %c0_75 = arith.constant 0 : index
      %97 = vector.load %arg4[%c8, %c0_74, %c0_75] : memref<9x128x128xbf16, #tpu.memory_space<vmem>>, vector<1x128x128xbf16>
      %98 = vector.shape_cast %97 : vector<1x128x128xbf16> to vector<128x128xbf16>
      %cst_76 = arith.constant dense<0.000000e+00> : vector<128x128xf32>
      %99 = tpu.matmul %96, %98, %cst_76 {dimension_numbers = #tpu.dot_dimension_numbers<[1], [0], [0], [1], [0, 0, 1, 1], [], []>} : vector<128x128xbf16>, vector<128x128xbf16>, vector<128x128xf32> -> vector<128x128xf32>
      %100 = arith.addf %91, %99 : vector<128x128xf32>
      %101 = vector.shape_cast %100 : vector<128x128xf32> to vector<8x16x128xf32>
      %102 = arith.truncf %101 : vector<8x16x128xf32> to vector<8x16x128xbf16>
      %c0_77 = arith.constant 0 : index
      %103 = arith.index_cast %20 : i32 to index
      %c0_78 = arith.constant 0 : index
      %c0_79 = arith.constant 0 : index
      %104 = vector.load %arg5[%c0_77, %103, %c0_78, %c0_79] : memref<1x16x16x128xbf16, #tpu.memory_space<vmem>>, vector<1x8x16x128xbf16>
      %105 = vector.shape_cast %104 : vector<1x8x16x128xbf16> to vector<8x16x128xbf16>
      %106 = vector.shape_cast %102 : vector<8x16x128xbf16> to vector<1x8x16x128xbf16>
      tpu.vector_store %arg5[%c0_77, %103, %c0_78, %c0_79], %106 {strides = array<i32>} : memref<1x16x16x128xbf16, #tpu.memory_space<vmem>>, vector<1x8x16x128xbf16>,
      %c0_80 = arith.constant 0 : index
      %c0_81 = arith.constant 0 : index
      %107 = vector.load %arg6[%c0_80, %c0_81] : memref<1x128xf32, #tpu.memory_space<vmem>>, vector<1x128xf32>
      %cst_82 = arith.constant dense<0.000000e+00> : vector<128xf32>
      %108 = vector.multi_reduction <add>, %100, %cst_82 [0] : vector<128x128xf32> to vector<128xf32>
      %109 = vector.shape_cast %108 : vector<128xf32> to vector<1x128xf32>
      %110 = arith.addf %107, %109 : vector<1x128xf32>
      %c0_83 = arith.constant 0 : index
      %c0_84 = arith.constant 0 : index
      %111 = vector.load %arg6[%c0_83, %c0_84] : memref<1x128xf32, #tpu.memory_space<vmem>>, vector<1x128xf32>
      tpu.vector_store %arg6[%c0_83, %c0_84], %110 {strides = array<i32>} : memref<1x128xf32, #tpu.memory_space<vmem>>, vector<1x128xf32>,
      %c0_85 = arith.constant 0 : index
      %c0_86 = arith.constant 0 : index
      %112 = vector.load %arg7[%c0_85, %c0_86] : memref<1x128xf32, #tpu.memory_space<vmem>>, vector<1x128xf32>
      %113 = arith.mulf %100, %100 : vector<128x128xf32>
      %cst_87 = arith.constant dense<0.000000e+00> : vector<128xf32>
      %114 = vector.multi_reduction <add>, %113, %cst_87 [0] : vector<128x128xf32> to vector<128xf32>
      %115 = vector.shape_cast %114 : vector<128xf32> to vector<1x128xf32>
      %116 = arith.addf %112, %115 : vector<1x128xf32>
      %c0_88 = arith.constant 0 : index
      %c0_89 = arith.constant 0 : index
      %117 = vector.load %arg7[%c0_88, %c0_89] : memref<1x128xf32, #tpu.memory_space<vmem>>, vector<1x128xf32>
      tpu.vector_store %arg7[%c0_88, %c0_89], %116 {strides = array<i32>} : memref<1x128xf32, #tpu.memory_space<vmem>>, vector<1x128xf32>,
    }
    %c2_i32_11 = arith.constant 2 : i32
    return
  }
  func.func @transform_0(%arg0: i32) -> (i32, i32, i32, i32) {
    %c0_i32 = arith.constant 0 : i32
    %c0_i32_0 = arith.constant 0 : i32
    %c1_i32 = arith.constant 1 : i32
    %c0_i32_1 = arith.constant 0 : i32
    return %arg0, %c0_i32, %c0_i32_0, %c1_i32 : i32, i32, i32, i32
  }
  func.func @transform_1(%arg0: i32) -> (i32, i32) {
    %c0_i32 = arith.constant 0 : i32
    %c0_i32_0 = arith.constant 0 : i32
    %c0_i32_1 = arith.constant 0 : i32
    return %c0_i32, %c0_i32_0 : i32, i32
  }
  func.func @transform_2(%arg0: i32) -> (i32, i32) {
    %c0_i32 = arith.constant 0 : i32
    %c0_i32_0 = arith.constant 0 : i32
    %c0_i32_1 = arith.constant 0 : i32
    return %c0_i32, %c0_i32_0 : i32, i32
  }
  func.func @transform_3(%arg0: i32) -> (i32, i32, i32) {
    %c0_i32 = arith.constant 0 : i32
    %c0_i32_0 = arith.constant 0 : i32
    %c0_i32_1 = arith.constant 0 : i32
    %c0_i32_2 = arith.constant 0 : i32
    return %c0_i32, %c0_i32_0, %c0_i32_1 : i32, i32, i32
  }
  func.func @transform_4(%arg0: i32) -> (i32, i32, i32, i32) {
    %c0_i32 = arith.constant 0 : i32
    %c0_i32_0 = arith.constant 0 : i32
    %c0_i32_1 = arith.constant 0 : i32
    %c0_i32_2 = arith.constant 0 : i32
    return %arg0, %c0_i32, %c0_i32_0, %c0_i32_1 : i32, i32, i32, i32
  }
  func.func @transform_5(%arg0: i32) -> (i32, i32) {
    %c0_i32 = arith.constant 0 : i32
    %c0_i32_0 = arith.constant 0 : i32
    %c0_i32_1 = arith.constant 0 : i32
    return %c0_i32, %c0_i32_0 : i32, i32
  }
  func.func @transform_6(%arg0: i32) -> (i32, i32) {
    %c0_i32 = arith.constant 0 : i32
    %c0_i32_0 = arith.constant 0 : i32
    %c0_i32_1 = arith.constant 0 : i32
    return %c0_i32, %c0_i32_0 : i32, i32
  }
}

module attributes {stable_mosaic.version = 11 : i64} {
  func.func @_matmul_stats_kernel(%arg0: i32, %arg1: i32, %arg2: memref<512x128xbf16, #tpu.memory_space<vmem>>, %arg3: memref<1x128xf32, #tpu.memory_space<vmem>>, %arg4: memref<1x128xf32, #tpu.memory_space<vmem>>, %arg5: memref<128x128xbf16, #tpu.memory_space<vmem>>, %arg6: memref<512x128xbf16, #tpu.memory_space<vmem>>, %arg7: memref<1x128xf32, #tpu.memory_space<vmem>>, %arg8: memref<1x128xf32, #tpu.memory_space<vmem>>) attributes {dimension_semantics = [#tpu.dimension_semantics<parallel>, #tpu.dimension_semantics<arbitrary>], iteration_bounds = array<i64: 1, 1>, scalar_prefetch = 0 : i64, scratch_operands = 0 : i64, tpu.core_type = #tpu.core_type<tc>, window_params = [{transform_indices = @transform_0, window_bounds = array<i64: 512, 128>}, {pipeline_mode = #tpu.pipeline_mode<synchronous>, transform_indices = @transform_1, window_bounds = array<i64: 1, 128>}, {pipeline_mode = #tpu.pipeline_mode<synchronous>, transform_indices = @transform_2, window_bounds = array<i64: 1, 128>}, {transform_indices = @transform_3, window_bounds = array<i64: 128, 128>}, {transform_indices = @transform_4, window_bounds = array<i64: 512, 128>}, {transform_indices = @transform_5, window_bounds = array<i64: 1, 128>}, {transform_indices = @transform_6, window_bounds = array<i64: 1, 128>}]} {
    %c0_i32 = arith.constant 0 : i32
    %0 = arith.cmpi eq, %arg1, %c0_i32 : i32
    %1 = arith.extui %0 : i1 to i32
    %c0_i32_0 = arith.constant 0 : i32
    %2 = arith.cmpi ne, %1, %c0_i32_0 : i32
    scf.if %2 {
      %cst_21 = arith.constant 0.000000e+00 : f32
      %29 = vector.broadcast %cst_21 : f32 to vector<1x128xf32>
      %c0_22 = arith.constant 0 : index
      %c0_23 = arith.constant 0 : index
      %30 = vector.load %arg7[%c0_22, %c0_23] : memref<1x128xf32, #tpu.memory_space<vmem>>, vector<1x128xf32>
      tpu.vector_store %arg7[%c0_22, %c0_23], %29 {strides = array<i32>} : memref<1x128xf32, #tpu.memory_space<vmem>>, vector<1x128xf32>,
      %cst_24 = arith.constant 0.000000e+00 : f32
      %31 = vector.broadcast %cst_24 : f32 to vector<1x128xf32>
      %c0_25 = arith.constant 0 : index
      %c0_26 = arith.constant 0 : index
      %32 = vector.load %arg8[%c0_25, %c0_26] : memref<1x128xf32, #tpu.memory_space<vmem>>, vector<1x128xf32>
      tpu.vector_store %arg8[%c0_25, %c0_26], %31 {strides = array<i32>} : memref<1x128xf32, #tpu.memory_space<vmem>>, vector<1x128xf32>,
    } else {
    }
    %c0 = arith.constant 0 : index
    %c0_1 = arith.constant 0 : index
    %3 = vector.load %arg2[%c0, %c0_1] : memref<512x128xbf16, #tpu.memory_space<vmem>>, vector<512x128xbf16>
    %4 = arith.extf %3 : vector<512x128xbf16> to vector<512x128xf32>
    %c0_2 = arith.constant 0 : index
    %c0_3 = arith.constant 0 : index
    %5 = vector.load %arg3[%c0_2, %c0_3] : memref<1x128xf32, #tpu.memory_space<vmem>>, vector<1x128xf32>
    %6 = vector.broadcast %5 : vector<1x128xf32> to vector<512x128xf32>
    %7 = arith.mulf %4, %6 : vector<512x128xf32>
    %c0_4 = arith.constant 0 : index
    %c0_5 = arith.constant 0 : index
    %8 = vector.load %arg4[%c0_4, %c0_5] : memref<1x128xf32, #tpu.memory_space<vmem>>, vector<1x128xf32>
    %9 = vector.broadcast %8 : vector<1x128xf32> to vector<512x128xf32>
    %10 = arith.addf %7, %9 : vector<512x128xf32>
    %cst = arith.constant 0.000000e+00 : f32
    %11 = vector.broadcast %cst : f32 to vector<512x128xf32>
    %12 = arith.maximumf %10, %11 : vector<512x128xf32>
    %13 = arith.truncf %12 : vector<512x128xf32> to vector<512x128xbf16>
    %c0_6 = arith.constant 0 : index
    %c0_7 = arith.constant 0 : index
    %14 = vector.load %arg5[%c0_6, %c0_7] : memref<128x128xbf16, #tpu.memory_space<vmem>>, vector<128x128xbf16>
    %cst_8 = arith.constant dense<0.000000e+00> : vector<512x128xf32>
    %15 = tpu.matmul %13, %14, %cst_8 {dimension_numbers = #tpu.dot_dimension_numbers<[1], [0], [0], [1], [0, 0, 1, 1], [], []>} : vector<512x128xbf16>, vector<128x128xbf16>, vector<512x128xf32> -> vector<512x128xf32>
    %16 = arith.truncf %15 : vector<512x128xf32> to vector<512x128xbf16>
    %c0_9 = arith.constant 0 : index
    %c0_10 = arith.constant 0 : index
    %17 = vector.load %arg6[%c0_9, %c0_10] : memref<512x128xbf16, #tpu.memory_space<vmem>>, vector<512x128xbf16>
    tpu.vector_store %arg6[%c0_9, %c0_10], %16 {strides = array<i32>} : memref<512x128xbf16, #tpu.memory_space<vmem>>, vector<512x128xbf16>,
    %c0_11 = arith.constant 0 : index
    %c0_12 = arith.constant 0 : index
    %18 = vector.load %arg7[%c0_11, %c0_12] : memref<1x128xf32, #tpu.memory_space<vmem>>, vector<1x128xf32>
    %cst_13 = arith.constant dense<0.000000e+00> : vector<128xf32>
    %19 = vector.multi_reduction <add>, %15, %cst_13 [0] : vector<512x128xf32> to vector<128xf32>
    %20 = vector.shape_cast %19 : vector<128xf32> to vector<1x128xf32>
    %21 = arith.addf %18, %20 : vector<1x128xf32>
    %c0_14 = arith.constant 0 : index
    %c0_15 = arith.constant 0 : index
    %22 = vector.load %arg7[%c0_14, %c0_15] : memref<1x128xf32, #tpu.memory_space<vmem>>, vector<1x128xf32>
    tpu.vector_store %arg7[%c0_14, %c0_15], %21 {strides = array<i32>} : memref<1x128xf32, #tpu.memory_space<vmem>>, vector<1x128xf32>,
    %c0_16 = arith.constant 0 : index
    %c0_17 = arith.constant 0 : index
    %23 = vector.load %arg8[%c0_16, %c0_17] : memref<1x128xf32, #tpu.memory_space<vmem>>, vector<1x128xf32>
    %24 = arith.mulf %15, %15 : vector<512x128xf32>
    %cst_18 = arith.constant dense<0.000000e+00> : vector<128xf32>
    %25 = vector.multi_reduction <add>, %24, %cst_18 [0] : vector<512x128xf32> to vector<128xf32>
    %26 = vector.shape_cast %25 : vector<128xf32> to vector<1x128xf32>
    %27 = arith.addf %23, %26 : vector<1x128xf32>
    %c0_19 = arith.constant 0 : index
    %c0_20 = arith.constant 0 : index
    %28 = vector.load %arg8[%c0_19, %c0_20] : memref<1x128xf32, #tpu.memory_space<vmem>>, vector<1x128xf32>
    tpu.vector_store %arg8[%c0_19, %c0_20], %27 {strides = array<i32>} : memref<1x128xf32, #tpu.memory_space<vmem>>, vector<1x128xf32>,
    return
  }
  func.func @transform_0(%arg0: i32, %arg1: i32) -> (i32, i32) {
    %c0_i32 = arith.constant 0 : i32
    %c0_i32_0 = arith.constant 0 : i32
    return %arg1, %c0_i32 : i32, i32
  }
  func.func @transform_1(%arg0: i32, %arg1: i32) -> (i32, i32) {
    %c0_i32 = arith.constant 0 : i32
    %c0_i32_0 = arith.constant 0 : i32
    %c0_i32_1 = arith.constant 0 : i32
    return %c0_i32, %c0_i32_0 : i32, i32
  }
  func.func @transform_2(%arg0: i32, %arg1: i32) -> (i32, i32) {
    %c0_i32 = arith.constant 0 : i32
    %c0_i32_0 = arith.constant 0 : i32
    %c0_i32_1 = arith.constant 0 : i32
    return %c0_i32, %c0_i32_0 : i32, i32
  }
  func.func @transform_3(%arg0: i32, %arg1: i32) -> (i32, i32) {
    %c0_i32 = arith.constant 0 : i32
    %c0_i32_0 = arith.constant 0 : i32
    return %c0_i32, %arg0 : i32, i32
  }
  func.func @transform_4(%arg0: i32, %arg1: i32) -> (i32, i32) {
    %c0_i32 = arith.constant 0 : i32
    return %arg1, %arg0 : i32, i32
  }
  func.func @transform_5(%arg0: i32, %arg1: i32) -> (i32, i32) {
    %c0_i32 = arith.constant 0 : i32
    %c0_i32_0 = arith.constant 0 : i32
    return %c0_i32, %arg0 : i32, i32
  }
  func.func @transform_6(%arg0: i32, %arg1: i32) -> (i32, i32) {
    %c0_i32 = arith.constant 0 : i32
    %c0_i32_0 = arith.constant 0 : i32
    return %c0_i32, %arg0 : i32, i32
  }
}

module attributes {stable_mosaic.version = 11 : i64} {
  func.func @_bn_add_relu_kernel(%arg0: i32, %arg1: memref<512x128xbf16, #tpu.memory_space<vmem>>, %arg2: memref<512x128xbf16, #tpu.memory_space<vmem>>, %arg3: memref<1x128xf32, #tpu.memory_space<vmem>>, %arg4: memref<1x128xf32, #tpu.memory_space<vmem>>, %arg5: memref<1x128xf32, #tpu.memory_space<vmem>>, %arg6: memref<1x128xf32, #tpu.memory_space<vmem>>, %arg7: memref<512x128xbf16, #tpu.memory_space<vmem>>) attributes {dimension_semantics = [#tpu.dimension_semantics<parallel>], iteration_bounds = array<i64: 1>, scalar_prefetch = 0 : i64, scratch_operands = 0 : i64, tpu.core_type = #tpu.core_type<tc>, window_params = [{transform_indices = @transform_0, window_bounds = array<i64: 512, 128>}, {transform_indices = @transform_1, window_bounds = array<i64: 512, 128>}, {pipeline_mode = #tpu.pipeline_mode<synchronous>, transform_indices = @transform_2, window_bounds = array<i64: 1, 128>}, {pipeline_mode = #tpu.pipeline_mode<synchronous>, transform_indices = @transform_3, window_bounds = array<i64: 1, 128>}, {pipeline_mode = #tpu.pipeline_mode<synchronous>, transform_indices = @transform_4, window_bounds = array<i64: 1, 128>}, {pipeline_mode = #tpu.pipeline_mode<synchronous>, transform_indices = @transform_5, window_bounds = array<i64: 1, 128>}, {transform_indices = @transform_6, window_bounds = array<i64: 512, 128>}]} {
    %c0 = arith.constant 0 : index
    %c0_0 = arith.constant 0 : index
    %0 = vector.load %arg1[%c0, %c0_0] : memref<512x128xbf16, #tpu.memory_space<vmem>>, vector<512x128xbf16>
    %1 = arith.extf %0 : vector<512x128xbf16> to vector<512x128xf32>
    %c0_1 = arith.constant 0 : index
    %c0_2 = arith.constant 0 : index
    %2 = vector.load %arg3[%c0_1, %c0_2] : memref<1x128xf32, #tpu.memory_space<vmem>>, vector<1x128xf32>
    %3 = vector.broadcast %2 : vector<1x128xf32> to vector<512x128xf32>
    %4 = arith.mulf %1, %3 : vector<512x128xf32>
    %c0_3 = arith.constant 0 : index
    %c0_4 = arith.constant 0 : index
    %5 = vector.load %arg4[%c0_3, %c0_4] : memref<1x128xf32, #tpu.memory_space<vmem>>, vector<1x128xf32>
    %6 = vector.broadcast %5 : vector<1x128xf32> to vector<512x128xf32>
    %7 = arith.addf %4, %6 : vector<512x128xf32>
    %c0_5 = arith.constant 0 : index
    %c0_6 = arith.constant 0 : index
    %8 = vector.load %arg2[%c0_5, %c0_6] : memref<512x128xbf16, #tpu.memory_space<vmem>>, vector<512x128xbf16>
    %9 = arith.extf %8 : vector<512x128xbf16> to vector<512x128xf32>
    %c0_7 = arith.constant 0 : index
    %c0_8 = arith.constant 0 : index
    %10 = vector.load %arg5[%c0_7, %c0_8] : memref<1x128xf32, #tpu.memory_space<vmem>>, vector<1x128xf32>
    %11 = vector.broadcast %10 : vector<1x128xf32> to vector<512x128xf32>
    %12 = arith.mulf %9, %11 : vector<512x128xf32>
    %c0_9 = arith.constant 0 : index
    %c0_10 = arith.constant 0 : index
    %13 = vector.load %arg6[%c0_9, %c0_10] : memref<1x128xf32, #tpu.memory_space<vmem>>, vector<1x128xf32>
    %14 = vector.broadcast %13 : vector<1x128xf32> to vector<512x128xf32>
    %15 = arith.addf %12, %14 : vector<512x128xf32>
    %16 = arith.addf %7, %15 : vector<512x128xf32>
    %cst = arith.constant 0.000000e+00 : f32
    %17 = vector.broadcast %cst : f32 to vector<512x128xf32>
    %18 = arith.maximumf %16, %17 : vector<512x128xf32>
    %19 = arith.truncf %18 : vector<512x128xf32> to vector<512x128xbf16>
    %c0_11 = arith.constant 0 : index
    %c0_12 = arith.constant 0 : index
    %20 = vector.load %arg7[%c0_11, %c0_12] : memref<512x128xbf16, #tpu.memory_space<vmem>>, vector<512x128xbf16>
    tpu.vector_store %arg7[%c0_11, %c0_12], %19 {strides = array<i32>} : memref<512x128xbf16, #tpu.memory_space<vmem>>, vector<512x128xbf16>,
    return
  }
  func.func @transform_0(%arg0: i32) -> (i32, i32) {
    %c0_i32 = arith.constant 0 : i32
    %c0_i32_0 = arith.constant 0 : i32
    return %arg0, %c0_i32 : i32, i32
  }
  func.func @transform_1(%arg0: i32) -> (i32, i32) {
    %c0_i32 = arith.constant 0 : i32
    %c0_i32_0 = arith.constant 0 : i32
    return %arg0, %c0_i32 : i32, i32
  }
  func.func @transform_2(%arg0: i32) -> (i32, i32) {
    %c0_i32 = arith.constant 0 : i32
    %c0_i32_0 = arith.constant 0 : i32
    %c0_i32_1 = arith.constant 0 : i32
    return %c0_i32, %c0_i32_0 : i32, i32
  }
  func.func @transform_3(%arg0: i32) -> (i32, i32) {
    %c0_i32 = arith.constant 0 : i32
    %c0_i32_0 = arith.constant 0 : i32
    %c0_i32_1 = arith.constant 0 : i32
    return %c0_i32, %c0_i32_0 : i32, i32
  }
  func.func @transform_4(%arg0: i32) -> (i32, i32) {
    %c0_i32 = arith.constant 0 : i32
    %c0_i32_0 = arith.constant 0 : i32
    %c0_i32_1 = arith.constant 0 : i32
    return %c0_i32, %c0_i32_0 : i32, i32
  }
  func.func @transform_5(%arg0: i32) -> (i32, i32) {
    %c0_i32 = arith.constant 0 : i32
    %c0_i32_0 = arith.constant 0 : i32
    %c0_i32_1 = arith.constant 0 : i32
    return %c0_i32, %c0_i32_0 : i32, i32
  }
  func.func @transform_6(%arg0: i32) -> (i32, i32) {
    %c0_i32 = arith.constant 0 : i32
    %c0_i32_0 = arith.constant 0 : i32
    return %arg0, %c0_i32 : i32, i32
  }
}

</mosaic_0001>

<bundles_post_ra>
// kernel: bottleneck_forward.6
= control target key start
LH: loop header
LB: loop body
LE: loop exit
PB: predicated region body
PF: predicated region fallthrough
CT: control target
= control target key end

     0   :  { %s2553_s3 = inlined_call_operand.vmem [shape: bf16[128,128], index: 3, kind: input, shape index: {}]   ;;  %s2554_s0 = inlined_call_operand.vmem [shape: bf16[512,128], index: 0, kind: input, shape index: {}]   ;;  %s2555_s1 = inlined_call_operand.vmem [shape: f32[1,128], index: 1, kind: input, shape index: {}]   ;;  %s2556_s2 = inlined_call_operand.vmem [shape: f32[1,128], index: 2, kind: input, shape index: {}]   ;;  %s2557_s5 = inlined_call_operand.vmem [shape: f32[1,128], index: 5, kind: output, shape index: {1}]   ;;  %s2558_s6 = inlined_call_operand.vmem [shape: f32[1,128], index: 6, kind: output, shape index: {2}]   ;;  %s2559_s4 = inlined_call_operand.vmem [shape: bf16[512,128], index: 4, kind: output, shape index: {0}]  }
   0x1   :  { %v1911_v0 = vld [vmem:[%s2553_s3] sm:$0xff]   ;;  %v1912_v1 = vld [vmem:[%s2553_s3 + $0x8] sm:$0xff]   ;;  %v1913_v2 = vld [vmem:[%s2553_s3 + $0x10] sm:$0xff]  }
   0x2   :  { %1814 = vmatprep.subr.bf16.mxu0 %v1911_v0  ;;  %1894 = vmatprep.subr.bf16.mxu1 %v1911_v0  ;;  %v1914_v3 = vld [vmem:[%s2553_s3 + $0x18] sm:$0xff]   ;;  %v1425_v4 = vld [vmem:[%s2554_s0] sm:$0xff]   ;;  %v1712_v8 = vld [vmem:[%s2554_s0 + $0x8] sm:$0xff]  }
   0x3   :  { %1815 = vmatpush3.bf16.msra.mxu0 %v1911_v0  ;;  %1902 = vmatpush3.bf16.msra.mxu1 %v1911_v0  ;;  %v1973_v5 = vld [vmem:[%s2555_s1] ss:$0 sm:$0xff]  ;;  %v1426_v6 = vunpack.c.l.bf16 %v1425_v4  ;;  %v1427_v7 = vunpack.c.h.bf16 %v1425_v4  ;;  %v1713_v9 = vld [vmem:[%s2554_s0 + $0x10] sm:$0xff]   ;;  %v1430_v14 = vunpack.c.l.bf16 %v1712_v8  ;;  %v1431_v15 = vunpack.c.h.bf16 %v1712_v8  ;;  %v1916_v22 = vld [vmem:[%s2553_s3 + $0x28] sm:$0xff]  }
   0x4   :  { %1816 = vmatprep.subr.bf16.mxu0 %v1912_v1  ;;  %1895 = vmatprep.subr.bf16.mxu1 %v1912_v1  ;;  %v1984_v10 = vld [vmem:[%s2556_s2] ss:$0 sm:$0xff]  ;;  %v1434_v16 = vunpack.c.l.bf16 %v1713_v9  ;;  %v1435_v19 = vunpack.c.h.bf16 %v1713_v9  ;;  %v1714_v26 = vld [vmem:[%s2554_s0 + $0x18] sm:$0xff]   ;;  %v1917_v31 = vld [vmem:[%s2553_s3 + $0x30] sm:$0xff]  }
   0x5   :  { %v162_v11 = vmul.f32 %v1426_v6, %v1973_v5  ;;  %v163_v12 = vmul.f32 %v1427_v7, %v1973_v5  ;;  %v1915_v13 = vld [vmem:[%s2553_s3 + $0x20] sm:$0xff]   ;;  %v164_v23 = vmul.f32 %v1430_v14, %v1973_v5  ;;  %v165_v24 = vmul.f32 %v1431_v15, %v1973_v5  ;;  %v1716_v38 = vld [vmem:[%s2554_s0 + $0x28] sm:$0xff]   ;;  %v1717_v41 = vld [vmem:[%s2554_s0 + $0x30] sm:$0xff]  }
   0x6   :  { %v166_v25 = vmul.f32 %v1434_v16, %v1973_v5  ;;  %v167_v28 = vmul.f32 %v1435_v19, %v1973_v5  ;;  %v1715_v29 = vld [vmem:[%s2554_s0 + $0x20] sm:$0xff]   ;;  %v1438_v30 = vunpack.c.l.bf16 %v1714_v26  ;;  %v1439_v35 = vunpack.c.h.bf16 %v1714_v26  ;;  %v1718_v42 = vld [vmem:[%s2554_s0 + $0x38] sm:$0xff]   ;;  %v1720_v63 = vld [vmem:[%s2554_s0 + $0x48] sm:$0xff]  }
   0x7   :  { %1817 = vmatpush3.bf16.msra.mxu0 %v1912_v1  ;;  %1903 = vmatpush3.bf16.msra.mxu1 %v1912_v1  ;;  %v233_v17 = vadd.f32 %v1984_v10, %v162_v11  ;;  %v234_v18 = vadd.f32 %v1984_v10, %v163_v12  ;;  %v235_v32 = vadd.f32 %v1984_v10, %v164_v23  ;;  %v1442_v37 = vunpack.c.l.bf16 %v1715_v29  ;;  %v1918_v43 = vld [vmem:[%s2553_s3 + $0x38] sm:$0xff]   ;;  %v1719_v48 = vld [vmem:[%s2554_s0 + $0x40] sm:$0xff]   ;;  %v1721_v4 = vld [vmem:[%s2554_s0 + $0x50] sm:$0xff]  }
   0x8   :  { %1818 = vmatprep.subr.bf16.mxu0 %v1913_v2  ;;  %1896 = vmatprep.subr.bf16.mxu1 %v1913_v2  ;;  %v236_v33 = vadd.f32 %v1984_v10, %v165_v24  ;;  %v237_v34 = vadd.f32 %v1984_v10, %v166_v25  ;;  %v238_v36 = vadd.f32 %v1984_v10, %v167_v28  ;;  %v1443_v40 = vunpack.c.h.bf16 %v1715_v29  ;;  %v1722_v23 = vld [vmem:[%s2554_s0 + $0x58] sm:$0xff]  }
   0x9   :  { %v297_v20 = vmax.f32 %v233_v17, 0.0  ;;  %v298_v21 = vmax.f32 %v234_v18, 0.0  ;;  %v168_v39 = vmul.f32 %v1438_v30, %v1973_v5  ;;  %v299_v44 = vmax.f32 %v235_v32, 0.0 }
   0xa   :  { %v300_v45 = vmax.f32 %v236_v33, 0.0  ;;  %v301_v46 = vmax.f32 %v237_v34, 0.0  ;;  %v169_v47 = vmul.f32 %v1439_v35, %v1973_v5  ;;  %v302_v49 = vmax.f32 %v238_v36, 0.0 }
   0xb   :  { %1819 = vmatpush3.bf16.msra.mxu0 %v1913_v2  ;;  %1904 = vmatpush3.bf16.msra.mxu1 %v1913_v2  ;;  %v361_v27 = vpack.c.bf16 %v298_v21, %v297_v20  ;;  %v170_v50 = vmul.f32 %v1442_v37, %v1973_v5  ;;  %v1446_v51 = vunpack.c.l.bf16 %v1716_v38  ;;  %v1447_v52 = vunpack.c.h.bf16 %v1716_v38 }
   0xc   :  { %1820 = vmatprep.subr.bf16.mxu0 %v1914_v3  ;;  %1897 = vmatprep.subr.bf16.mxu1 %v1914_v3  ;;  %v1450_v53 = vunpack.c.l.bf16 %v1717_v41  ;;  %v1451_v54 = vunpack.c.h.bf16 %v1717_v41  ;;  %v1454_v55 = vunpack.c.l.bf16 %v1718_v42  ;;  %v1455_v56 = vunpack.c.h.bf16 %v1718_v42 }
   0xd   :  { %1830 = vmatprep.mubr.bf16.mxu0 %v361_v27  ;;  %v171_v57 = vmul.f32 %v1443_v40, %v1973_v5  ;;  %v1458_v58 = vunpack.c.l.bf16 %v1719_v48  ;;  %v1459_v59 = vunpack.c.h.bf16 %v1719_v48  ;;  %v362_v60 = vpack.c.bf16 %v300_v45, %v299_v44  ;;  %v1727_v44 = vld [vmem:[%s2554_s0 + $0x80] sm:$0xff]  }
   0xe   :  { %v239_v61 = vadd.f32 %v1984_v10, %v168_v39  ;;  %v240_v62 = vadd.f32 %v1984_v10, %v169_v47  ;;  %v363_v0 = vpack.c.bf16 %v302_v49, %v301_v46  ;;  %v241_v1 = vadd.f32 %v1984_v10, %v170_v50 }
   0xf   :  { %1821 = vmatpush3.bf16.msra.mxu0 %v1914_v3  ;;  %1905 = vmatpush3.bf16.msra.mxu1 %v1914_v3  ;;  %v172_v2 = vmul.f32 %v1446_v51, %v1973_v5  ;;  %v173_v3 = vmul.f32 %v1447_v52, %v1973_v5  ;;  %v174_v6 = vmul.f32 %v1450_v53, %v1973_v5  ;;  %v1462_v14 = vunpack.c.l.bf16 %v1720_v63  ;;  %v2077_v52 = vld [vmem:[%s2554_s0 + $0x60] sm:$0xff]  }
  0x10   :  { %1822 = vmatprep.subr.bf16.mxu0 %v1915_v13  ;;  %1898 = vmatprep.subr.bf16.mxu1 %v1915_v13  ;;  %v175_v7 = vmul.f32 %v1451_v54, %v1973_v5  ;;  %v176_v8 = vmul.f32 %v1454_v55, %v1973_v5  ;;  %v177_v9 = vmul.f32 %v1455_v56, %v1973_v5  ;;  %v303_v15 = vmax.f32 %v239_v61, 0.0 }
  0x11   :  { %v242_v11 = vadd.f32 %v1984_v10, %v171_v57  ;;  %v178_v12 = vmul.f32 %v1458_v58, %v1973_v5  ;;  %v304_v16 = vmax.f32 %v240_v62, 0.0  ;;  %v1463_v17 = vunpack.c.h.bf16 %v1720_v63 }
  0x12   :  { %v1466_v18 = vunpack.c.l.bf16 %v1721_v4  ;;  %v305_v19 = vmax.f32 %v241_v1, 0.0  ;;  %v243_v20 = vadd.f32 %v1984_v10, %v172_v2  ;;  %v244_v21 = vadd.f32 %v1984_v10, %v173_v3 }
  0x13   :  { %1823 = vmatpush3.bf16.msra.mxu0 %v1915_v13  ;;  %1906 = vmatpush3.bf16.msra.mxu1 %v1915_v13  ;;  %v179_v13 = vmul.f32 %v1459_v59, %v1973_v5  ;;  %v245_v24 = vadd.f32 %v1984_v10, %v174_v6  ;;  %v246_v25 = vadd.f32 %v1984_v10, %v175_v7  ;;  %v306_v28 = vmax.f32 %v242_v11, 0.0  ;;  %v1728_v59 = vld [vmem:[%s2554_s0 + $0x88] sm:$0xff]   ;;  %v1730_v11 = vld [vmem:[%s2554_s0 + $0x98] sm:$0xff]  }
  0x14   :  { %1824 = vmatprep.subr.bf16.mxu0 %v1916_v22  ;;  %1899 = vmatprep.subr.bf16.mxu1 %v1916_v22  ;;  %v247_v26 = vadd.f32 %v1984_v10, %v176_v8  ;;  %v248_v27 = vadd.f32 %v1984_v10, %v177_v9  ;;  %v249_v29 = vadd.f32 %v1984_v10, %v178_v12  ;;  %v1470_v35 = vunpack.c.l.bf16 %v1722_v23 }
  0x15   :  { %v250_v30 = vadd.f32 %v1984_v10, %v179_v13  ;;  %v364_v32 = vpack.c.bf16 %v304_v16, %v303_v15  ;;  %v181_v33 = vmul.f32 %v1463_v17, %v1973_v5  ;;  %v182_v34 = vmul.f32 %v1466_v18, %v1973_v5 }
  0x16   :  { %v307_v36 = vmax.f32 %v243_v20, 0.0  ;;  %v308_v37 = vmax.f32 %v244_v21, 0.0  ;;  %v1471_v39 = vunpack.c.h.bf16 %v1722_v23  ;;  %v309_v40 = vmax.f32 %v245_v24, 0.0  ;;  %v1731_v24 = vld [vmem:[%s2554_s0 + $0xa0] sm:$0xff]  }
  0x17   :  { %1825 = vmatpush3.bf16.msra.mxu0 %v1916_v22  ;;  %1907 = vmatpush3.bf16.msra.mxu1 %v1916_v22  ;;  %v1467_v22 = vunpack.c.h.bf16 %v1721_v4  ;;  %v310_v41 = vmax.f32 %v246_v25, 0.0  ;;  %v311_v42 = vmax.f32 %v247_v26, 0.0  ;;  %v365_v45 = vpack.c.bf16 %v306_v28, %v305_v19 }
  0x18   :  { %1826 = vmatprep.subr.bf16.mxu0 %v1917_v31  ;;  %1900 = vmatprep.subr.bf16.mxu1 %v1917_v31  ;;  %v313_v46 = vmax.f32 %v249_v29, 0.0  ;;  %v314_v47 = vmax.f32 %v250_v30, 0.0  ;;  %v252_v49 = vadd.f32 %v1984_v10, %v181_v33  ;;  %v2071_v50 = vadd.f32 %v1984_v10, %v182_v34  ;;  %v1732_v33 = vld [vmem:[%s2554_s0 + $0xa8] sm:$0xff]  }
  0x19   :  { %v183_v38 = vmul.f32 %v1467_v22, %v1973_v5  ;;  %v184_v51 = vmul.f32 %v1470_v35, %v1973_v5  ;;  %v185_v54 = vmul.f32 %v1471_v39, %v1973_v5  ;;  %v1490_v55 = vunpack.c.l.bf16 %v1727_v44 }
  0x1a   :  { %v366_v56 = vpack.c.bf16 %v308_v37, %v307_v36  ;;  %v367_v57 = vpack.c.bf16 %v310_v41, %v309_v40  ;;  %v1474_v62 = vunpack.c.l.bf16 %v2077_v52  ;;  %v1491_v63 = vunpack.c.h.bf16 %v1727_v44 }
  0x1b   :  { %1827 = vmatpush3.bf16.msra.mxu0 %v1917_v31  ;;  %1908 = vmatpush3.bf16.msra.mxu1 %v1917_v31  ;;  %v180_v31 = vmul.f32 %v1462_v14, %v1973_v5  ;;  %v2080_v53 = vadd.f32 %v1984_v10, %v183_v38  ;;  %v316_v1 = vmax.f32 %v252_v49, 0.0  ;;  %v317_v2 = vmax.f32 %v2071_v50, 0.0 }
  0x1c   :  { %1828 = vmatprep.subr.bf16.mxu0 %v1918_v43  ;;  %1901 = vmatprep.subr.bf16.mxu1 %v1918_v43  ;;  %v2096_v3 = vadd.f32 %v1984_v10, %v184_v51  ;;  %v194_v4 = vmul.f32 %v1490_v55, %v1973_v5  ;;  %v2101_v7 = vadd.f32 %v1984_v10, %v185_v54  ;;  %v1494_v9 = vunpack.c.l.bf16 %v1728_v59 }
  0x1d   :  { %v251_v48 = vadd.f32 %v1984_v10, %v180_v31  ;;  %v318_v6 = vmax.f32 %v2080_v53, 0.0  ;;  %v195_v8 = vmul.f32 %v1491_v63, %v1973_v5  ;;  %v1475_v12 = vunpack.c.h.bf16 %v2077_v52 }
  0x1e   :  { %v265_v13 = vadd.f32 %v1984_v10, %v194_v4  ;;  %v1495_v14 = vunpack.c.h.bf16 %v1728_v59  ;;  %v2110_v16 = vmul.f32 %v1474_v62, %v1973_v5  ;;  %v196_v18 = vmul.f32 %v1494_v9, %v1973_v5 }
  0x1f   :  { %1829 = vmatpush3.bf16.msra.mxu0 %v1918_v43  ;;  %1909 = vmatpush3.bf16.msra.mxu1 %v1918_v43  ;;  %v312_v43 = vmax.f32 %v248_v27, 0.0  ;;  %v315_v61 = vmax.f32 %v251_v48, 0.0  ;;  %v266_v17 = vadd.f32 %v1984_v10, %v195_v8  ;;  %v1502_v23 = vunpack.c.l.bf16 %v1730_v11 }
  0x20   :  { %v329_v20 = vmax.f32 %v265_v13, 0.0  ;;  %v197_v21 = vmul.f32 %v1495_v14, %v1973_v5  ;;  %v267_v27 = vadd.f32 %v1984_v10, %v196_v18  ;;  %v1503_v31 = vunpack.c.h.bf16 %v1730_v11  ;;  %v1735_v18 = vld [vmem:[%s2554_s0 + $0xc0] sm:$0xff]  }
  0x21   :  { %v2083_v58 = vpack.c.bf16 %v312_v43, %v311_v42  ;;  %v2119_v25 = vpack.c.bf16 %v316_v1, %v315_v61  ;;  %v330_v26 = vmax.f32 %v266_v17, 0.0  ;;  %v1506_v37 = vunpack.c.l.bf16 %v1731_v24  ;;  %v1734_v1 = vld [vmem:[%s2554_s0 + $0xb8] sm:$0xff]  }
  0x22   :  { %1831 = vmatmul.mubr.bf16.vlgmr.msra.gmra.mrb[0].mxu0 %v362_v60  ;;  %v2088_v60 = vpack.c.bf16 %v314_v47, %v313_v46  ;;  %v268_v29 = vadd.f32 %v1984_v10, %v197_v21  ;;  %v331_v35 = vmax.f32 %v267_v27, 0.0  ;;  %v201_v40 = vmul.f32 %v1503_v31, %v1973_v5  ;;  %v1733_v46 = vld [vmem:[%s2554_s0 + $0xb0] sm:$0xff]   ;;  %v1724_v47 = vld [vmem:[%s2554_s0 + $0x68] sm:$0xff]  }
  0x23   :  { %1834 = vmatprep.mubr.bf16.mxu0 %v363_v0  ;;  %v1729_v0 = vld [vmem:[%s2554_s0 + $0x90] sm:$0xff]   ;;  %v377_v34 = vpack.c.bf16 %v330_v26, %v329_v20  ;;  %v1507_v43 = vunpack.c.h.bf16 %v1731_v24  ;;  %v202_v44 = vmul.f32 %v1506_v37, %v1973_v5  ;;  %v1511_v54 = vunpack.c.h.bf16 %v1732_v33 }
  0x24   :  { %v1498_v15 = vunpack.c.l.bf16 %v1729_v0  ;;  %v1499_v19 = vunpack.c.h.bf16 %v1729_v0  ;;  %v332_v38 = vmax.f32 %v268_v29, 0.0  ;;  %v272_v49 = vadd.f32 %v1984_v10, %v201_v40  ;;  %v1737_v40 = vld [vmem:[%s2554_s0 + $0xd0] sm:$0xff]  }
  0x25   :  { %1862 = vmatprep.mubr.bf16.mxu1 %v377_v34  ;;  %v205_v62 = vmul.f32 %v1511_v54, %v1973_v5  ;;  %v1514_v63 = vunpack.c.l.bf16 %v1733_v46  ;;  %v1515_v0 = vunpack.c.h.bf16 %v1733_v46  ;;  %v319_v4 = vmax.f32 %v2096_v3, 0.0 }
  0x26   :  { %v198_v22 = vmul.f32 %v1498_v15, %v1973_v5  ;;  %v199_v28 = vmul.f32 %v1499_v19, %v1973_v5  ;;  %v378_v48 = vpack.c.bf16 %v332_v38, %v331_v35  ;;  %v336_v61 = vmax.f32 %v272_v49, 0.0 }
  0x27   :  { %v1478_v8 = vunpack.c.l.bf16 %v1724_v47  ;;  %v320_v13 = vmax.f32 %v2101_v7, 0.0  ;;  %v1479_v14 = vunpack.c.h.bf16 %v1724_v47  ;;  %v206_v15 = vmul.f32 %v1514_v63, %v1973_v5 }
  0x28   :  { %v269_v30 = vadd.f32 %v1984_v10, %v198_v22  ;;  %v270_v36 = vadd.f32 %v1984_v10, %v199_v28  ;;  %1863 = vmatmul.mubr.bf16.vlgmr.msra.gmra.mrb[0].mxu1 %v378_v48  ;;  %v207_v17 = vmul.f32 %v1515_v0, %v1973_v5  ;;  %v187_v3 = vmul.f32 %v1475_v12, %v1973_v5 }
  0x29   :  { %v1518_v19 = vunpack.c.l.bf16 %v1734_v1  ;;  %v1519_v20 = vunpack.c.h.bf16 %v1734_v1  ;;  %v277_v24 = vadd.f32 %v1984_v10, %v206_v15  ;;  %v1522_v27 = vunpack.c.l.bf16 %v1735_v18  ;;  %v1738_v15 = vld [vmem:[%s2554_s0 + $0xd8] sm:$0xff]  }
  0x2a   :  { %1835 = vmatmul.mubr.bf16.gmra.mrb[4].mxu0 %v364_v32  ;;  %v200_v32 = vmul.f32 %v1502_v23, %v1973_v5  ;;  %v333_v39 = vmax.f32 %v269_v30, 0.0  ;;  %v334_v42 = vmax.f32 %v270_v36, 0.0  ;;  %v276_v23 = vadd.f32 %v1984_v10, %v205_v62 }
  0x2b   :  { %1838 = vmatprep.mubr.bf16.mxu0 %v365_v45  ;;  %v1510_v45 = vunpack.c.l.bf16 %v1732_v33  ;;  %v1523_v52 = vunpack.c.h.bf16 %v1735_v18  ;;  %v371_v12 = vpack.c.bf16 %v318_v6, %v317_v2  ;;  %v257_v28 = vadd.f32 %v1984_v10, %v2110_v16  ;;  %v1726_v33 = vld [vmem:[%s2554_s0 + $0x78] sm:$0xff]   ;;  %v1736_v16 = vld [vmem:[%s2554_s0 + $0xc8] sm:$0xff]  }
  0x2c   :  { %v271_v41 = vadd.f32 %v1984_v10, %v200_v32  ;;  %v379_v55 = vpack.c.bf16 %v334_v42, %v333_v39  ;;  %v258_v31 = vadd.f32 %v1984_v10, %v187_v3  ;;  %v188_v32 = vmul.f32 %v1478_v8, %v1973_v5 }
  0x2d   :  { %v204_v59 = vmul.f32 %v1510_v45, %v1973_v5  ;;  %v208_v34 = vmul.f32 %v1518_v19, %v1973_v5  ;;  %v209_v50 = vmul.f32 %v1519_v20, %v1973_v5  ;;  %v372_v35 = vpack.c.bf16 %v320_v13, %v319_v4 }
  0x2e   :  { %v335_v51 = vmax.f32 %v271_v41, 0.0  ;;  %1866 = vmatprep.mubr.bf16.mxu1 %v379_v55  ;;  %v189_v53 = vmul.f32 %v1479_v14, %v1973_v5  ;;  %v340_v6 = vmax.f32 %v276_v23, 0.0  ;;  %v341_v36 = vmax.f32 %v277_v24, 0.0 }
  0x2f   :  { %v275_v22 = vadd.f32 %v1984_v10, %v204_v59  ;;  %v210_v38 = vmul.f32 %v1522_v27, %v1973_v5  ;;  %v211_v39 = vmul.f32 %v1523_v52, %v1973_v5  ;;  %v321_v41 = vmax.f32 %v257_v28, 0.0 }
  0x30   :  { %v380_v21 = vpack.c.bf16 %v336_v61, %v335_v51  ;;  %v322_v45 = vmax.f32 %v258_v31, 0.0  ;;  %v279_v46 = vadd.f32 %v1984_v10, %v208_v34  ;;  %v280_v47 = vadd.f32 %v1984_v10, %v209_v50 }
  0x31   :  { %v339_v2 = vmax.f32 %v275_v22, 0.0  ;;  %v1526_v48 = vunpack.c.l.bf16 %v1736_v16  ;;  %v1527_v51 = vunpack.c.h.bf16 %v1736_v16  ;;  %v1530_v54 = vunpack.c.l.bf16 %v1737_v40 }
  0x32   :  { %1839 = vmatmul.mubr.bf16.gmra.mrb[8].mxu0 %v366_v56  ;;  %v203_v56 = vmul.f32 %v1507_v43, %v1973_v5  ;;  %1867 = vmatmul.mubr.bf16.gmra.mrb[4].mxu1 %v380_v21  ;;  %v1531_v55 = vunpack.c.h.bf16 %v1737_v40  ;;  %v282_v59 = vadd.f32 %v1984_v10, %v211_v39  ;;  %v260_v61 = vadd.f32 %v1984_v10, %v189_v53  ;;  %v1739_v21 = vld [vmem:[%s2554_s0 + $0xe0] sm:$0xff]  }
  0x33   :  { %1842 = vmatprep.mubr.bf16.mxu0 %v367_v57  ;;  %v273_v57 = vadd.f32 %v1984_v10, %v202_v44  ;;  %v1486_v44 = vunpack.c.l.bf16 %v1726_v33  ;;  %v382_v49 = vpack.c.bf16 %v340_v6, %v339_v2  ;;  %v1487_v0 = vunpack.c.h.bf16 %v1726_v33 }
  0x34   :  { %v274_v9 = vadd.f32 %v1984_v10, %v203_v56  ;;  %v259_v56 = vadd.f32 %v1984_v10, %v188_v32  ;;  %v373_v1 = vpack.c.bf16 %v322_v45, %v321_v41  ;;  %v343_v4 = vmax.f32 %v279_v46, 0.0  ;;  %v1741_v41 = vld [vmem:[%s2554_s0 + $0xf0] sm:$0xff]  }
  0x35   :  { %v337_v11 = vmax.f32 %v273_v57, 0.0  ;;  %v281_v57 = vadd.f32 %v1984_v10, %v210_v38  ;;  %v344_v8 = vmax.f32 %v280_v47, 0.0  ;;  %v214_v13 = vmul.f32 %v1530_v54, %v1973_v5 }
  0x36   :  { %v338_v7 = vmax.f32 %v274_v9, 0.0  ;;  %v212_v9 = vmul.f32 %v1526_v48, %v1973_v5  ;;  %v215_v14 = vmul.f32 %v1531_v55, %v1973_v5  ;;  %v346_v3 = vmax.f32 %v282_v59, 0.0 }
  0x37   :  { %v345_v18 = vmax.f32 %v281_v57, 0.0  ;;  %v193_v20 = vmul.f32 %v1487_v0, %v1973_v5  ;;  %v384_v23 = vpack.c.bf16 %v344_v8, %v343_v4  ;;  %v285_v27 = vadd.f32 %v1984_v10, %v214_v13 }
  0x38   :  { %v381_v26 = vpack.c.bf16 %v338_v7, %v337_v11  ;;  %v213_v11 = vmul.f32 %v1527_v51, %v1973_v5  ;;  %v324_v7 = vmax.f32 %v260_v61, 0.0  ;;  %v283_v24 = vadd.f32 %v1984_v10, %v212_v9 }
  0x39   :  { %v286_v52 = vadd.f32 %v1984_v10, %v215_v14  ;;  %v385_v28 = vpack.c.bf16 %v346_v3, %v345_v18  ;;  %v264_v33 = vadd.f32 %v1984_v10, %v193_v20  ;;  %v349_v2 = vmax.f32 %v285_v27, 0.0 }
  0x3a   :  { %1843 = vmatmul.mubr.bf16.gmra.mrb[12].mxu0 %v2083_v58  ;;  %v1725_v58 = vld [vmem:[%s2554_s0 + $0x70] sm:$0xff]   ;;  %1870 = vmatprep.mubr.bf16.mxu1 %v381_v26  ;;  %v1534_v26 = vunpack.c.l.bf16 %v1738_v15  ;;  %v347_v50 = vmax.f32 %v283_v24, 0.0  ;;  %v1546_v51 = vunpack.c.l.bf16 %v1741_v41  ;;  %v1547_v54 = vunpack.c.h.bf16 %v1741_v41 }
  0x3b   :  { %1846 = vmatprep.mubr.bf16.mxu0 %v2088_v60  ;;  %v278_v60 = vadd.f32 %v1984_v10, %v207_v17  ;;  %v1482_v29 = vunpack.c.l.bf16 %v1725_v58  ;;  %v1483_v30 = vunpack.c.h.bf16 %v1725_v58  ;;  %1871 = vmatmul.mubr.bf16.gmra.mrb[8].mxu1 %v382_v49  ;;  %v192_v17 = vmul.f32 %v1486_v44, %v1973_v5 }
  0x3c   :  { %v323_v58 = vmax.f32 %v259_v56, 0.0  ;;  %v350_v6 = vmax.f32 %v286_v52, 0.0  ;;  %v328_v40 = vmax.f32 %v264_v33, 0.0  ;;  %v223_v0 = vmul.f32 %v1547_v54, %v1973_v5 }
  0x3d   :  { %v342_v37 = vmax.f32 %v278_v60, 0.0  ;;  %v190_v42 = vmul.f32 %v1482_v29, %v1973_v5  ;;  %v191_v43 = vmul.f32 %v1483_v30, %v1973_v5  ;;  %v284_v60 = vadd.f32 %v1984_v10, %v213_v11 }
  0x3e   :  { %v1538_v29 = vunpack.c.l.bf16 %v1739_v21  ;;  %v1539_v30 = vunpack.c.h.bf16 %v1739_v21  ;;  %v374_v31 = vpack.c.bf16 %v324_v7, %v323_v58  ;;  %v263_v32 = vadd.f32 %v1984_v10, %v192_v17 }
  0x3f   :  { %v261_v62 = vadd.f32 %v1984_v10, %v190_v42  ;;  %v262_v63 = vadd.f32 %v1984_v10, %v191_v43  ;;  %v348_v53 = vmax.f32 %v284_v60, 0.0  ;;  %v387_v45 = vpack.c.bf16 %v350_v6, %v349_v2 }
  0x40   :  { %v219_v38 = vmul.f32 %v1539_v30, %v1973_v5  ;;  %v327_v39 = vmax.f32 %v263_v32, 0.0  ;;  %v294_v17 = vadd.f32 %v1984_v10, %v223_v0  ;;  %v1919_v52 = vmov 0.0  }
  0x41   :  { %v325_v19 = vmax.f32 %v261_v62, 0.0  ;;  %v326_v22 = vmax.f32 %v262_v63, 0.0  ;;  %v386_v44 = vpack.c.bf16 %v348_v53, %v347_v50  ;;  %v222_v63 = vmul.f32 %v1546_v51, %v1973_v5  ;;  %25 = vst [vmem:[%s2557_s5] sm:$0x1] %v1919_v52  ;;  %26 = vst [vmem:[%s2558_s6] sm:$0x1] %v1919_v52 }
  0x42   :  { %1847 = vmatmul.mubr.bf16.gmra.mrb[16].mxu0 %v2119_v25  ;;  %v383_v25 = vpack.c.bf16 %v342_v37, %v341_v36  ;;  %v1740_v36 = vld [vmem:[%s2554_s0 + $0xe8] sm:$0xff]   ;;  %v218_v37 = vmul.f32 %v1538_v29, %v1973_v5  ;;  %v290_v49 = vadd.f32 %v1984_v10, %v219_v38  ;;  %v376_v55 = vpack.c.bf16 %v328_v40, %v327_v39 }
  0x43   :  { %1850 = vmatprep.mubr.bf16.mxu0 %v371_v12  ;;  %v1535_v12 = vunpack.c.h.bf16 %v1738_v15  ;;  %v375_v34 = vpack.c.bf16 %v326_v22, %v325_v19  ;;  %v1542_v43 = vunpack.c.l.bf16 %v1740_v36  ;;  %v1543_v47 = vunpack.c.h.bf16 %v1740_v36 }
  0x44   :  { %1874 = vmatprep.mubr.bf16.mxu1 %v383_v25  ;;  %v289_v48 = vadd.f32 %v1984_v10, %v218_v37  ;;  %v354_v62 = vmax.f32 %v290_v49, 0.0  ;;  %v293_v15 = vadd.f32 %v1984_v10, %v222_v63  ;;  %v358_v20 = vmax.f32 %v294_v17, 0.0 }
  0x45   :  { %1875 = vmatmul.mubr.bf16.gmra.mrb[12].mxu1 %v384_v23  ;;  %v217_v16 = vmul.f32 %v1535_v12, %v1973_v5  ;;  %v220_v56 = vmul.f32 %v1542_v43, %v1973_v5  ;;  %v221_v59 = vmul.f32 %v1543_v47, %v1973_v5 }
  0x46   :  { %1878 = vmatprep.mubr.bf16.mxu1 %v385_v28  ;;  %v353_v61 = vmax.f32 %v289_v48, 0.0  ;;  %v357_v19 = vmax.f32 %v293_v15, 0.0 }
  0x47   :  { %v288_v46 = vadd.f32 %v1984_v10, %v217_v16  ;;  %v291_v4 = vadd.f32 %v1984_v10, %v220_v56  ;;  %v292_v9 = vadd.f32 %v1984_v10, %v221_v59 }
  0x48   :  { %v389_v14 = vpack.c.bf16 %v354_v62, %v353_v61  ;;  %v391_v24 = vpack.c.bf16 %v358_v20, %v357_v19 }
  0x49   :  { %v352_v57 = vmax.f32 %v288_v46, 0.0  ;;  %v355_v18 = vmax.f32 %v291_v4, 0.0  ;;  %v356_v3 = vmax.f32 %v292_v9, 0.0 }
  0x4a   :  { %1851 = vmatmul.mubr.bf16.gmra.mrb[20].mxu0 %v372_v35  ;;  %v216_v35 = vmul.f32 %v1534_v26, %v1973_v5 }
  0x4b   :  { %1854 = vmatprep.mubr.bf16.mxu0 %v373_v1  ;;  %v1742_v1 = vld [vmem:[%s2554_s0 + $0xf8] sm:$0xff]   ;;  %v390_v21 = vpack.c.bf16 %v356_v3, %v355_v18 }
  0x4c   :  { %v287_v42 = vadd.f32 %v1984_v10, %v216_v35  ;;  %v1550_v11 = vunpack.c.l.bf16 %v1742_v1  ;;  %v1551_v13 = vunpack.c.h.bf16 %v1742_v1 }
  0x4d   :  { %1879 = vmatmul.mubr.bf16.gmra.mrb[16].mxu1 %v386_v44 }
  0x4e   :  { %v351_v25 = vmax.f32 %v287_v42, 0.0  ;;  %1882 = vmatprep.mubr.bf16.mxu1 %v387_v45  ;;  %v224_v58 = vmul.f32 %v1550_v11, %v1973_v5  ;;  %v225_v7 = vmul.f32 %v1551_v13, %v1973_v5 }
  0x50   :  { %v388_v8 = vpack.c.bf16 %v352_v57, %v351_v25  ;;  %v295_v22 = vadd.f32 %v1984_v10, %v224_v58  ;;  %v296_v23 = vadd.f32 %v1984_v10, %v225_v7 }
  0x52   :  { %1855 = vmatmul.mubr.bf16.gmra.mrb[24].mxu0 %v374_v31  ;;  %v359_v26 = vmax.f32 %v295_v22, 0.0  ;;  %v360_v60 = vmax.f32 %v296_v23, 0.0 }
  0x53   :  { %1858 = vmatprep.mubr.bf16.mxu0 %v375_v34 }
  0x54   :  { %v392_v27 = vpack.c.bf16 %v360_v60, %v359_v26 }
  0x55   :  { %1883 = vmatmul.mubr.bf16.gmra.mrb[20].mxu1 %v388_v8 }
  0x56   :  { %1886 = vmatprep.mubr.bf16.mxu1 %v389_v14 }
  0x5a   :  { %1859 = vmatmul.mubr.bf16.gmra.mrb[28].mxu0 %v376_v55 }
  0x5d   :  { %1887 = vmatmul.mubr.bf16.gmra.mrb[24].mxu1 %v390_v21 }
  0x5e   :  { %1890 = vmatprep.mubr.bf16.mxu1 %v391_v24 }
  0x65   :  { %1891 = vmatmul.mubr.bf16.gmra.mrb[28].mxu1 %v392_v27 }
  0xf5   :  { %v1832_v5 = vpop.f32.mrb[0].mxu0 }
  0xf6   :  { %v491_v12 = vpop.f32.mrb[1].mxu0  ;;  %v1141_v34 = vmul.f32 %v1832_v5, %v1832_v5 }
  0xf7   :  { %v1833_v28 = vpop.f32.mrb[2].mxu0  ;;  %v1139_v30 = vmul.f32 %v491_v12, %v491_v12 }
  0xf8   :  { %v1560_v10 = vpack.c.bf16 %v1833_v28, %v1832_v5  ;;  %v494_v29 = vpop.f32.mrb[3].mxu0  ;;  %v1142_v53 = vmul.f32 %v1833_v28, %v1833_v28 }
  0xf9   :  { %v1555_v31 = vpack.c.bf16 %v494_v29, %v491_v12  ;;  %v1067_v32 = vadd.f32 %v494_v29, %v491_v12  ;;  %v1140_v33 = vmul.f32 %v494_v29, %v494_v29 }
  0xfa   :  { %1743 = vst [vmem:[%s2559_s4 + $0x8] sm:$0xff] %v1560_v10  }
  0xfb   :  { %1556 = vst [vmem:[%s2559_s4] sm:$0xff] %v1555_v31   ;;  %v1068_v50 = vadd.f32 %v1832_v5, %v1067_v32  ;;  %v1203_v35 = vadd.f32 %v1140_v33, %v1139_v30  ;;  %v2271_v15 = vpop.f32.mrb[0].mxu1 }
  0xfc   :  { %v2273_v17 = vpop.f32.mrb[1].mxu1 }
  0xfd   :  { %v1204_v2 = vadd.f32 %v1203_v35, %v1141_v34  ;;  %v1836_v6 = vpop.f32.mrb[4].mxu0  ;;  %v1069_v16 = vadd.f32 %v1833_v28, %v1068_v50  ;;  %v2275_v19 = vpop.f32.mrb[2].mxu1 }
  0xfe   :  { %v507_v36 = vpop.f32.mrb[5].mxu0  ;;  %v1145_v47 = vmul.f32 %v1836_v6, %v1836_v6  ;;  %v1640_v21 = vpack.c.bf16 %v2275_v19, %v2271_v15  ;;  %v2279_v22 = vpop.f32.mrb[3].mxu1 }
  0xff   :  { %v1070_v37 = vadd.f32 %v1069_v16, %v507_v36  ;;  %v1143_v38 = vmul.f32 %v507_v36, %v507_v36  ;;  %v1205_v39 = vadd.f32 %v1204_v2, %v1142_v53  ;;  %v1837_v40 = vpop.f32.mrb[6].mxu0  ;;  %v1635_v27 = vpack.c.bf16 %v2279_v22, %v2273_v17 }
 0x100   :  { %v1570_v41 = vpack.c.bf16 %v1837_v40, %v1836_v6  ;;  %v510_v42 = vpop.f32.mrb[7].mxu0  ;;  %v1146_v51 = vmul.f32 %v1837_v40, %v1837_v40  ;;  %1759 = vst [vmem:[%s2559_s4 + $0x88] sm:$0xff] %v1640_v21  }
 0x101   :  { %v1206_v43 = vadd.f32 %v1205_v39, %v1143_v38  ;;  %v1565_v44 = vpack.c.bf16 %v510_v42, %v507_v36  ;;  %v1071_v45 = vadd.f32 %v1070_v37, %v510_v42  ;;  %v1144_v46 = vmul.f32 %v510_v42, %v510_v42  ;;  %1758 = vst [vmem:[%s2559_s4 + $0x80] sm:$0xff] %v1635_v27  }
 0x102   :  { %1745 = vst [vmem:[%s2559_s4 + $0x18] sm:$0xff] %v1570_v41  }
 0x103   :  { %1744 = vst [vmem:[%s2559_s4 + $0x10] sm:$0xff] %v1565_v44   ;;  %v1072_v48 = vadd.f32 %v1836_v6, %v1071_v45  ;;  %v1207_v49 = vadd.f32 %v1206_v43, %v1144_v46 }
 0x105   :  { %v1208_v54 = vadd.f32 %v1207_v49, %v1145_v47  ;;  %v1840_v55 = vpop.f32.mrb[8].mxu0  ;;  %v1073_v56 = vadd.f32 %v1837_v40, %v1072_v48  ;;  %v2295_v33 = vpop.f32.mrb[4].mxu1 }
 0x106   :  { %v523_v25 = vpop.f32.mrb[9].mxu0  ;;  %v1149_v11 = vmul.f32 %v1840_v55, %v1840_v55  ;;  %v2297_v34 = vpop.f32.mrb[5].mxu1 }
 0x107   :  { %v1074_v57 = vadd.f32 %v1073_v56, %v523_v25  ;;  %v1147_v59 = vmul.f32 %v523_v25, %v523_v25  ;;  %v1209_v61 = vadd.f32 %v1208_v54, %v1146_v51  ;;  %v1841_v62 = vpop.f32.mrb[10].mxu0  ;;  %v2299_v6 = vpop.f32.mrb[6].mxu1 }
 0x108   :  { %v1580_v63 = vpack.c.bf16 %v1841_v62, %v1840_v55  ;;  %v526_v0 = vpop.f32.mrb[11].mxu0  ;;  %v1150_v18 = vmul.f32 %v1841_v62, %v1841_v62  ;;  %v1650_v36 = vpack.c.bf16 %v2299_v6, %v2295_v33  ;;  %v2303_v37 = vpop.f32.mrb[7].mxu1 }
 0x109   :  { %v1210_v1 = vadd.f32 %v1209_v61, %v1147_v59  ;;  %v1575_v4 = vpack.c.bf16 %v526_v0, %v523_v25  ;;  %v1075_v8 = vadd.f32 %v1074_v57, %v526_v0  ;;  %v1148_v9 = vmul.f32 %v526_v0, %v526_v0 }
 0x10a   :  { %1747 = vst [vmem:[%s2559_s4 + $0x28] sm:$0xff] %v1580_v63   ;;  %v1645_v42 = vpack.c.bf16 %v2303_v37, %v2297_v34  ;;  %1761 = vst [vmem:[%s2559_s4 + $0x98] sm:$0xff] %v1650_v36  }
 0x10b   :  { %1746 = vst [vmem:[%s2559_s4 + $0x20] sm:$0xff] %v1575_v4   ;;  %v1076_v13 = vadd.f32 %v1840_v55, %v1075_v8  ;;  %v1211_v14 = vadd.f32 %v1210_v1, %v1148_v9 }
 0x10c   :  { %1760 = vst [vmem:[%s2559_s4 + $0x90] sm:$0xff] %v1645_v42  }
 0x10d   :  { %v1212_v3 = vadd.f32 %v1211_v14, %v1149_v11  ;;  %v1844_v58 = vpop.f32.mrb[12].mxu0  ;;  %v1077_v7 = vadd.f32 %v1841_v62, %v1076_v13 }
 0x10e   :  { %v539_v20 = vpop.f32.mrb[13].mxu0  ;;  %v1153_v30 = vmul.f32 %v1844_v58, %v1844_v58  ;;  %v2319_v55 = vpop.f32.mrb[8].mxu1 }
 0x10f   :  { %v1078_v23 = vadd.f32 %v1077_v7, %v539_v20  ;;  %v1151_v24 = vmul.f32 %v539_v20, %v539_v20  ;;  %v1213_v26 = vadd.f32 %v1212_v3, %v1150_v18  ;;  %v1845_v60 = vpop.f32.mrb[14].mxu0  ;;  %v2321_v56 = vpop.f32.mrb[9].mxu1 }
 0x110   :  { %v1590_v52 = vpack.c.bf16 %v1845_v60, %v1844_v58  ;;  %v542_v5 = vpop.f32.mrb[15].mxu0  ;;  %v1154_v50 = vmul.f32 %v1845_v60, %v1845_v60  ;;  %v2323_v62 = vpop.f32.mrb[10].mxu1 }
 0x111   :  { %v1214_v12 = vadd.f32 %v1213_v26, %v1151_v24  ;;  %v1585_v28 = vpack.c.bf16 %v542_v5, %v539_v20  ;;  %v1079_v10 = vadd.f32 %v1078_v23, %v542_v5  ;;  %v1152_v29 = vmul.f32 %v542_v5, %v542_v5  ;;  %v2327_v1 = vpop.f32.mrb[11].mxu1 }
 0x112   :  { %1749 = vst [vmem:[%s2559_s4 + $0x38] sm:$0xff] %v1590_v52   ;;  %v1660_v0 = vpack.c.bf16 %v2323_v62, %v2319_v55  ;;  %v1655_v13 = vpack.c.bf16 %v2327_v1, %v2321_v56 }
 0x113   :  { %1748 = vst [vmem:[%s2559_s4 + $0x30] sm:$0xff] %v1585_v28   ;;  %v1080_v31 = vadd.f32 %v1844_v58, %v1079_v10  ;;  %v1215_v32 = vadd.f32 %v1214_v12, %v1152_v29 }
 0x114   :  { %1763 = vst [vmem:[%s2559_s4 + $0xa8] sm:$0xff] %v1660_v0   ;;  %1762 = vst [vmem:[%s2559_s4 + $0xa0] sm:$0xff] %v1655_v13  }
 0x115   :  { %v1216_v35 = vadd.f32 %v1215_v32, %v1153_v30  ;;  %v1848_v53 = vpop.f32.mrb[16].mxu0  ;;  %v1081_v2 = vadd.f32 %v1845_v60, %v1080_v31 }
 0x116   :  { %v555_v16 = vpop.f32.mrb[17].mxu0  ;;  %v1157_v49 = vmul.f32 %v1848_v53, %v1848_v53 }
 0x117   :  { %v1082_v38 = vadd.f32 %v1081_v2, %v555_v16  ;;  %v1155_v39 = vmul.f32 %v555_v16, %v555_v16  ;;  %v1217_v40 = vadd.f32 %v1216_v35, %v1154_v50  ;;  %v1849_v41 = vpop.f32.mrb[18].mxu0 }
 0x118   :  { %v1600_v43 = vpack.c.bf16 %v1849_v41, %v1848_v53  ;;  %v558_v44 = vpop.f32.mrb[19].mxu0  ;;  %v1158_v25 = vmul.f32 %v1849_v41, %v1849_v41  ;;  %v2343_v26 = vpop.f32.mrb[12].mxu1 }
 0x119   :  { %v1218_v45 = vadd.f32 %v1217_v40, %v1155_v39  ;;  %v1595_v46 = vpack.c.bf16 %v558_v44, %v555_v16  ;;  %v1083_v47 = vadd.f32 %v1082_v38, %v558_v44  ;;  %v1156_v48 = vmul.f32 %v558_v44, %v558_v44  ;;  %v2345_v60 = vpop.f32.mrb[13].mxu1 }
 0x11a   :  { %1751 = vst [vmem:[%s2559_s4 + $0x48] sm:$0xff] %v1600_v43   ;;  %v2347_v28 = vpop.f32.mrb[14].mxu1 }
 0x11b   :  { %1750 = vst [vmem:[%s2559_s4 + $0x40] sm:$0xff] %v1595_v46   ;;  %v1084_v51 = vadd.f32 %v1848_v53, %v1083_v47  ;;  %v1219_v54 = vadd.f32 %v1218_v45, %v1156_v48  ;;  %v1670_v29 = vpack.c.bf16 %v2347_v28, %v2343_v26  ;;  %v2351_v30 = vpop.f32.mrb[15].mxu1 }
 0x11c   :  { %v1665_v53 = vpack.c.bf16 %v2351_v30, %v2345_v60 }
 0x11d   :  { %v1220_v57 = vadd.f32 %v1219_v54, %v1157_v49  ;;  %v1852_v59 = vpop.f32.mrb[20].mxu0  ;;  %v1085_v61 = vadd.f32 %v1849_v41, %v1084_v51  ;;  %1765 = vst [vmem:[%s2559_s4 + $0xb8] sm:$0xff] %v1670_v29  }
 0x11e   :  { %v571_v63 = vpop.f32.mrb[21].mxu0  ;;  %v1161_v21 = vmul.f32 %v1852_v59, %v1852_v59  ;;  %1764 = vst [vmem:[%s2559_s4 + $0xb0] sm:$0xff] %v1665_v53   ;;  %v1172_v53 = vmul.f32 %v2279_v22, %v2279_v22 }
 0x11f   :  { %v1086_v4 = vadd.f32 %v1085_v61, %v571_v63  ;;  %v1159_v8 = vmul.f32 %v571_v63, %v571_v63  ;;  %v1221_v9 = vadd.f32 %v1220_v57, %v1158_v25  ;;  %v1853_v11 = vpop.f32.mrb[22].mxu0 }
 0x120   :  { %v1610_v14 = vpack.c.bf16 %v1853_v11, %v1852_v59  ;;  %v574_v18 = vpop.f32.mrb[23].mxu0  ;;  %v1162_v27 = vmul.f32 %v1853_v11, %v1853_v11  ;;  %v2367_v44 = vpop.f32.mrb[16].mxu1 }
 0x121   :  { %v1222_v3 = vadd.f32 %v1221_v9, %v1159_v8  ;;  %v1605_v58 = vpack.c.bf16 %v574_v18, %v571_v63  ;;  %v1087_v7 = vadd.f32 %v1086_v4, %v574_v18  ;;  %v1160_v20 = vmul.f32 %v574_v18, %v574_v18  ;;  %v2369_v45 = vpop.f32.mrb[17].mxu1 }
 0x122   :  { %1753 = vst [vmem:[%s2559_s4 + $0x58] sm:$0xff] %v1610_v14   ;;  %v2371_v51 = vpop.f32.mrb[18].mxu1 }
 0x123   :  { %1752 = vst [vmem:[%s2559_s4 + $0x50] sm:$0xff] %v1605_v58   ;;  %v1088_v23 = vadd.f32 %v1852_v59, %v1087_v7  ;;  %v1223_v24 = vadd.f32 %v1222_v3, %v1160_v20  ;;  %v1680_v25 = vpack.c.bf16 %v2371_v51, %v2367_v44  ;;  %v2375_v57 = vpop.f32.mrb[19].mxu1 }
 0x124   :  { %v1675_v4 = vpack.c.bf16 %v2375_v57, %v2369_v45 }
 0x125   :  { %v1224_v52 = vadd.f32 %v1223_v24, %v1161_v21  ;;  %v1856_v5 = vpop.f32.mrb[24].mxu0  ;;  %v1089_v12 = vadd.f32 %v1853_v11, %v1088_v23  ;;  %1767 = vst [vmem:[%s2559_s4 + $0xc8] sm:$0xff] %v1680_v25  }
 0x126   :  { %v587_v10 = vpop.f32.mrb[25].mxu0  ;;  %v1165_v41 = vmul.f32 %v1856_v5, %v1856_v5  ;;  %1766 = vst [vmem:[%s2559_s4 + $0xc0] sm:$0xff] %v1675_v4  }
 0x127   :  { %v1090_v31 = vadd.f32 %v1089_v12, %v587_v10  ;;  %v1163_v32 = vmul.f32 %v587_v10, %v587_v10  ;;  %v1225_v50 = vadd.f32 %v1224_v52, %v1162_v27  ;;  %v1857_v35 = vpop.f32.mrb[26].mxu0  ;;  %v1171_v52 = vmul.f32 %v2273_v17, %v2273_v17 }
 0x128   :  { %v1620_v2 = vpack.c.bf16 %v1857_v35, %v1856_v5  ;;  %v590_v16 = vpop.f32.mrb[27].mxu0  ;;  %v1166_v46 = vmul.f32 %v1857_v35, %v1857_v35  ;;  %v2391_v20 = vpop.f32.mrb[20].mxu1 }
 0x129   :  { %v1226_v36 = vadd.f32 %v1225_v50, %v1163_v32  ;;  %v1615_v38 = vpack.c.bf16 %v590_v16, %v587_v10  ;;  %v1091_v39 = vadd.f32 %v1090_v31, %v590_v16  ;;  %v1164_v40 = vmul.f32 %v590_v16, %v590_v16  ;;  %v2393_v21 = vpop.f32.mrb[21].mxu1 }
 0x12a   :  { %1755 = vst [vmem:[%s2559_s4 + $0x68] sm:$0xff] %v1620_v2  }
 0x12b   :  { %1754 = vst [vmem:[%s2559_s4 + $0x60] sm:$0xff] %v1615_v38   ;;  %v1092_v42 = vadd.f32 %v1856_v5, %v1091_v39  ;;  %v1227_v43 = vadd.f32 %v1226_v36, %v1164_v40  ;;  %v2397_v5 = vpop.f32.mrb[22].mxu1  ;;  %v1174_v39 = vmul.f32 %v2275_v19, %v2275_v19 }
 0x12c   :  { %v1690_v12 = vpack.c.bf16 %v2397_v5, %v2391_v20  ;;  %v2401_v10 = vpop.f32.mrb[23].mxu1 }
 0x12d   :  { %v1228_v47 = vadd.f32 %v1227_v43, %v1165_v41  ;;  %v1860_v48 = vpop.f32.mrb[28].mxu0  ;;  %v1093_v49 = vadd.f32 %v1857_v35, %v1092_v42  ;;  %v1685_v32 = vpack.c.bf16 %v2401_v10, %v2393_v21  ;;  %v1175_v41 = vmul.f32 %v2297_v34, %v2297_v34 }
 0x12e   :  { %v603_v54 = vpop.f32.mrb[29].mxu0  ;;  %v1169_v3 = vmul.f32 %v1860_v48, %v1860_v48  ;;  %1769 = vst [vmem:[%s2559_s4 + $0xd8] sm:$0xff] %v1690_v12   ;;  %v1183_v12 = vmul.f32 %v2345_v60, %v2345_v60 }
 0x12f   :  { %v1094_v59 = vadd.f32 %v1093_v49, %v603_v54  ;;  %v1167_v61 = vmul.f32 %v603_v54, %v603_v54  ;;  %v1229_v63 = vadd.f32 %v1228_v47, %v1166_v46  ;;  %v1861_v0 = vpop.f32.mrb[30].mxu0  ;;  %1768 = vst [vmem:[%s2559_s4 + $0xd0] sm:$0xff] %v1685_v32  }
 0x130   :  { %v1630_v8 = vpack.c.bf16 %v1861_v0, %v1860_v48  ;;  %v606_v9 = vpop.f32.mrb[31].mxu0  ;;  %v1170_v23 = vmul.f32 %v1861_v0, %v1861_v0  ;;  %v2418_v36 = vpop.f32.mrb[24].mxu1 }
 0x131   :  { %v1230_v11 = vadd.f32 %v1229_v63, %v1167_v61  ;;  %v1625_v13 = vpack.c.bf16 %v606_v9, %v603_v54  ;;  %v1095_v14 = vadd.f32 %v1094_v59, %v606_v9  ;;  %v1168_v18 = vmul.f32 %v606_v9, %v606_v9  ;;  %v2420_v38 = vpop.f32.mrb[25].mxu1 }
 0x132   :  { %1757 = vst [vmem:[%s2559_s4 + $0x78] sm:$0xff] %v1630_v8   ;;  %v2427_v42 = vpop.f32.mrb[26].mxu1  ;;  %v1176_v54 = vmul.f32 %v2303_v37, %v2303_v37  ;;  %v1179_v8 = vmul.f32 %v2321_v56, %v2321_v56 }
 0x133   :  { %1756 = vst [vmem:[%s2559_s4 + $0x70] sm:$0xff] %v1625_v13   ;;  %v1096_v58 = vadd.f32 %v1860_v48, %v1095_v14  ;;  %v1231_v7 = vadd.f32 %v1230_v11, %v1168_v18  ;;  %v1700_v43 = vpack.c.bf16 %v2427_v42, %v2418_v36 }
 0x135   :  { %v1232_v24 = vadd.f32 %v1231_v7, %v1169_v3  ;;  %v1097_v27 = vadd.f32 %v1861_v0, %v1096_v58  ;;  %1771 = vst [vmem:[%s2559_s4 + $0xe8] sm:$0xff] %v1700_v43   ;;  %v1178_v0 = vmul.f32 %v2299_v6, %v2299_v6  ;;  %v1180_v58 = vmul.f32 %v2327_v1, %v2327_v1 }
 0x137   :  { %v1098_v29 = vadd.f32 %v1097_v27, %v2273_v17  ;;  %v1233_v31 = vadd.f32 %v1232_v24, %v1170_v23  ;;  %v1173_v17 = vmul.f32 %v2271_v15, %v2271_v15  ;;  %v1182_v24 = vmul.f32 %v2323_v62, %v2323_v62 }
 0x139   :  { %v1234_v50 = vadd.f32 %v1233_v31, %v1171_v52  ;;  %v1099_v35 = vadd.f32 %v1098_v29, %v2279_v22 }
 0x13b   :  { %v1100_v2 = vadd.f32 %v2271_v15, %v1099_v35  ;;  %v1235_v16 = vadd.f32 %v1234_v50, %v1172_v53  ;;  %v2431_v15 = vpop.f32.mrb[27].mxu1  ;;  %v1184_v50 = vmul.f32 %v2351_v30, %v2351_v30 }
 0x13c   :  { %v1695_v48 = vpack.c.bf16 %v2431_v15, %v2420_v38  ;;  %v2448_v61 = vpop.f32.mrb[28].mxu1 }
 0x13d   :  { %v1236_v40 = vadd.f32 %v1235_v16, %v1173_v17  ;;  %v1101_v22 = vadd.f32 %v2275_v19, %v1100_v2  ;;  %v2450_v63 = vpop.f32.mrb[29].mxu1 }
 0x13e   :  { %1770 = vst [vmem:[%s2559_s4 + $0xe0] sm:$0xff] %v1695_v48   ;;  %v2457_v9 = vpop.f32.mrb[30].mxu1 }
 0x13f   :  { %v1102_v46 = vadd.f32 %v1101_v22, %v2297_v34  ;;  %v1237_v47 = vadd.f32 %v1236_v40, %v1174_v39  ;;  %v1177_v34 = vmul.f32 %v2295_v33, %v2295_v33  ;;  %v1710_v11 = vpack.c.bf16 %v2457_v9, %v2448_v61 }
 0x140   :  { %v1188_v22 = vmul.f32 %v2375_v57, %v2375_v57 }
 0x141   :  { %v1238_v19 = vadd.f32 %v1237_v47, %v1175_v41  ;;  %v1103_v49 = vadd.f32 %v1102_v46, %v2303_v37  ;;  %1773 = vst [vmem:[%s2559_s4 + $0xf8] sm:$0xff] %v1710_v11   ;;  %v1196_v11 = vmul.f32 %v2431_v15, %v2431_v15 }
 0x143   :  { %v1104_v25 = vadd.f32 %v2295_v33, %v1103_v49  ;;  %v1239_v59 = vadd.f32 %v1238_v19, %v1176_v54  ;;  %v2461_v33 = vpop.f32.mrb[31].mxu1  ;;  %v1192_v54 = vmul.f32 %v2401_v10, %v2401_v10 }
 0x144   :  { %v1705_v18 = vpack.c.bf16 %v2461_v33, %v2450_v63 }
 0x145   :  { %v1240_v4 = vadd.f32 %v1239_v59, %v1177_v34  ;;  %v1105_v37 = vadd.f32 %v2299_v6, %v1104_v25 }
 0x146   :  { %1772 = vst [vmem:[%s2559_s4 + $0xf0] sm:$0xff] %v1705_v18  }
 0x147   :  { %v1106_v13 = vadd.f32 %v1105_v37, %v2321_v56  ;;  %v1241_v14 = vadd.f32 %v1240_v4, %v1178_v0  ;;  %v1181_v56 = vmul.f32 %v2319_v55, %v2319_v55 }
 0x149   :  { %v1242_v6 = vadd.f32 %v1241_v14, %v1179_v8  ;;  %v1107_v3 = vadd.f32 %v1106_v13, %v2327_v1 }
 0x14b   :  { %v1108_v7 = vadd.f32 %v2319_v55, %v1107_v3  ;;  %v1243_v23 = vadd.f32 %v1242_v6, %v1180_v58  ;;  %v1185_v55 = vmul.f32 %v2343_v26, %v2343_v26 }
 0x14d   :  { %v1244_v27 = vadd.f32 %v1243_v23, %v1181_v56  ;;  %v1109_v52 = vadd.f32 %v2323_v62, %v1108_v7  ;;  %v1186_v62 = vmul.f32 %v2347_v28, %v2347_v28  ;;  %v1200_v7 = vmul.f32 %v2461_v33, %v2461_v33 }
 0x14f   :  { %v1110_v1 = vadd.f32 %v1109_v52, %v2345_v60  ;;  %v1245_v29 = vadd.f32 %v1244_v27, %v1182_v24  ;;  %v1187_v60 = vmul.f32 %v2369_v45, %v2369_v45 }
 0x151   :  { %v1246_v31 = vadd.f32 %v1245_v29, %v1183_v12  ;;  %v1111_v32 = vadd.f32 %v1110_v1, %v2351_v30 }
 0x153   :  { %v1112_v35 = vadd.f32 %v2343_v26, %v1111_v32  ;;  %v1247_v53 = vadd.f32 %v1246_v31, %v1184_v50  ;;  %v1189_v26 = vmul.f32 %v2367_v44, %v2367_v44 }
 0x155   :  { %v1248_v17 = vadd.f32 %v1247_v53, %v1185_v55  ;;  %v1113_v2 = vadd.f32 %v2347_v28, %v1112_v35  ;;  %v1190_v28 = vmul.f32 %v2371_v51, %v2371_v51 }
 0x157   :  { %v1114_v16 = vadd.f32 %v1113_v2, %v2369_v45  ;;  %v1249_v39 = vadd.f32 %v1248_v17, %v1186_v62  ;;  %v1191_v45 = vmul.f32 %v2393_v21, %v2393_v21 }
 0x159   :  { %v1250_v40 = vadd.f32 %v1249_v39, %v1187_v60  ;;  %v1115_v30 = vadd.f32 %v1114_v16, %v2375_v57 }
 0x15b   :  { %v1116_v41 = vadd.f32 %v2367_v44, %v1115_v30  ;;  %v1251_v43 = vadd.f32 %v1250_v40, %v1188_v22  ;;  %v1193_v44 = vmul.f32 %v2391_v20, %v2391_v20 }
 0x15d   :  { %v1252_v46 = vadd.f32 %v1251_v43, %v1189_v26  ;;  %v1117_v47 = vadd.f32 %v2371_v51, %v1116_v41  ;;  %v1194_v51 = vmul.f32 %v2397_v5, %v2397_v5 }
 0x15f   :  { %v1118_v48 = vadd.f32 %v1117_v47, %v2393_v21  ;;  %v1253_v19 = vadd.f32 %v1252_v46, %v1190_v28  ;;  %v1195_v21 = vmul.f32 %v2420_v38, %v2420_v38 }
 0x161   :  { %v1254_v49 = vadd.f32 %v1253_v19, %v1191_v45  ;;  %v1119_v57 = vadd.f32 %v1118_v48, %v2401_v10 }
 0x163   :  { %v1120_v34 = vadd.f32 %v2391_v20, %v1119_v57  ;;  %v1255_v25 = vadd.f32 %v1254_v49, %v1192_v54  ;;  %v1197_v20 = vmul.f32 %v2418_v36, %v2418_v36 }
 0x165   :  { %v1256_v59 = vadd.f32 %v1255_v25, %v1193_v44  ;;  %v1121_v0 = vadd.f32 %v2397_v5, %v1120_v34  ;;  %v1198_v5 = vmul.f32 %v2427_v42, %v2427_v42 }
 0x167   :  { %v1122_v4 = vadd.f32 %v1121_v0, %v2420_v38  ;;  %v1257_v37 = vadd.f32 %v1256_v59, %v1194_v51  ;;  %v1199_v38 = vmul.f32 %v2450_v63, %v2450_v63 }
 0x169   :  { %v1258_v8 = vadd.f32 %v1257_v37, %v1195_v21  ;;  %v1123_v10 = vadd.f32 %v1122_v4, %v2431_v15 }
 0x16b   :  { %v1124_v13 = vadd.f32 %v2418_v36, %v1123_v10  ;;  %v1259_v14 = vadd.f32 %v1258_v8, %v1196_v11  ;;  %v1201_v36 = vmul.f32 %v2448_v61, %v2448_v61 }
 0x16d   :  { %v1260_v18 = vadd.f32 %v1259_v14, %v1197_v20  ;;  %v1125_v6 = vadd.f32 %v2427_v42, %v1124_v13  ;;  %v1202_v42 = vmul.f32 %v2457_v9, %v2457_v9 }
 0x16f   :  { %v1126_v3 = vadd.f32 %v1125_v6, %v2450_v63  ;;  %v1261_v58 = vadd.f32 %v1260_v18, %v1198_v5 }
 0x171   :  { %v1262_v56 = vadd.f32 %v1261_v58, %v1199_v38  ;;  %v1127_v15 = vadd.f32 %v1126_v3, %v2461_v33 }
 0x173   :  { %v1128_v23 = vadd.f32 %v2448_v61, %v1127_v15  ;;  %v1263_v24 = vadd.f32 %v1262_v56, %v1200_v7  ;;  %v1066_v61 = vld [vmem:[%s2557_s5] sm:$0x1] }
 0x175   :  { %v1129_v27 = vadd.f32 %v2457_v9, %v1128_v23  ;;  %v1264_v52 = vadd.f32 %v1263_v24, %v1201_v36  ;;  %v1138_v9 = vld [vmem:[%s2558_s6] sm:$0x1] }
 0x177   :  { %v1130_v63 = vrot.slane %v1129_v27, 4  ;;  %v1265_v12 = vadd.f32 %v1264_v52, %v1202_v42 }
 0x179   :  { %v1131_v1 = vadd.f32 %v1130_v63, %v1129_v27  ;;  %v1266_v29 = vrot.slane %v1265_v12, 4 }
 0x17b   :  { %v1132_v31 = vrot.slane %v1131_v1, 2  ;;  %v1267_v32 = vadd.f32 %v1266_v29, %v1265_v12 }
 0x17d   :  { %v1133_v50 = vadd.f32 %v1132_v31, %v1131_v1  ;;  %v1268_v33 = vrot.slane %v1267_v32, 2 }
 0x17f   :  { %v1134_v55 = vrot.slane %v1133_v50, 1  ;;  %v1269_v35 = vadd.f32 %v1268_v33, %v1267_v32 }
 0x181   :  { %v1135_v53 = vadd.f32 %v1134_v55, %v1133_v50  ;;  %v1270_v62 = vrot.slane %v1269_v35, 1 }
 0x183   :  { %v1136_v17 = vadd.f32 %v1135_v53, %v1066_v61  ;;  %v1271_v2 = vadd.f32 %v1270_v62, %v1269_v35 }
 0x185   :  { %1137 = vst [vmem:[%s2557_s5] sm:$0x1] %v1136_v17  ;;  %v1272_v60 = vadd.f32 %v1271_v2, %v1138_v9 }
 0x187   :  { %1273 = vst [vmem:[%s2558_s6] sm:$0x1] %v1272_v60 }

// kernel: bottleneck_forward.7
= control target key start
LH: loop header
LB: loop body
LE: loop exit
PB: predicated region body
PF: predicated region fallthrough
CT: control target
= control target key end

     0   :  { %s2672_s0 = inlined_call_operand.vmem [shape: bf16[512,128], index: 0, kind: input, shape index: {}]   ;;  %s2673_s1 = inlined_call_operand.vmem [shape: bf16[512,256], index: 1, kind: input, shape index: {}]   ;;  %s2674_s2 = inlined_call_operand.vmem [shape: f32[1,128], index: 2, kind: input, shape index: {}]   ;;  %s2675_s3 = inlined_call_operand.vmem [shape: f32[1,128], index: 3, kind: input, shape index: {}]   ;;  %s2676_s4 = inlined_call_operand.vmem [shape: f32[1,128], index: 4, kind: input, shape index: {}]   ;;  %s2677_s5 = inlined_call_operand.vmem [shape: f32[1,128], index: 5, kind: input, shape index: {}]   ;;  %s2678_s6 = inlined_call_operand.vmem [shape: bf16[512,128], index: 6, kind: output, shape index: {}]  }
   0x1   :  { %v30_v0 = vld [vmem:[%s2673_s1] sm:$0xf]  ;;  %v32_v1 = vld [vmem:[%s2673_s1 + $0x8] sm:$0xf]  ;;  %v34_v2 = vld [vmem:[%s2673_s1 + $0x10] sm:$0xf] }
   0x2   :  { %31 = vst [vmem:[#allocation2] sm:$0xf] %v30_v0  ;;  %33 = vst [vmem:[#allocation2 + $0x4] sm:$0xf] %v32_v1  ;;  %v36_v3 = vld [vmem:[%s2673_s1 + $0x18] sm:$0xf] }
   0x3   :  { %35 = vst [vmem:[#allocation2 + $0x8] sm:$0xf] %v34_v2  ;;  %v38_v4 = vld [vmem:[%s2673_s1 + $0x20] sm:$0xf]  ;;  %v40_v5 = vld [vmem:[%s2673_s1 + $0x28] sm:$0xf] }
   0x4   :  { %37 = vst [vmem:[#allocation2 + $0xc] sm:$0xf] %v36_v3  ;;  %39 = vst [vmem:[#allocation2 + $0x10] sm:$0xf] %v38_v4  ;;  %v42_v6 = vld [vmem:[%s2673_s1 + $0x30] sm:$0xf] }
   0x5   :  { %41 = vst [vmem:[#allocation2 + $0x14] sm:$0xf] %v40_v5  ;;  %v44_v7 = vld [vmem:[%s2673_s1 + $0x38] sm:$0xf]  ;;  %v46_v8 = vld [vmem:[%s2673_s1 + $0x40] sm:$0xf] }
   0x6   :  { %43 = vst [vmem:[#allocation2 + $0x18] sm:$0xf] %v42_v6  ;;  %45 = vst [vmem:[#allocation2 + $0x1c] sm:$0xf] %v44_v7  ;;  %v48_v9 = vld [vmem:[%s2673_s1 + $0x48] sm:$0xf] }
   0x7   :  { %47 = vst [vmem:[#allocation2 + $0x20] sm:$0xf] %v46_v8  ;;  %v50_v10 = vld [vmem:[%s2673_s1 + $0x50] sm:$0xf]  ;;  %v52_v11 = vld [vmem:[%s2673_s1 + $0x58] sm:$0xf] }
   0x8   :  { %49 = vst [vmem:[#allocation2 + $0x24] sm:$0xf] %v48_v9  ;;  %51 = vst [vmem:[#allocation2 + $0x28] sm:$0xf] %v50_v10  ;;  %v54_v12 = vld [vmem:[%s2673_s1 + $0x60] sm:$0xf] }
   0x9   :  { %53 = vst [vmem:[#allocation2 + $0x2c] sm:$0xf] %v52_v11  ;;  %v56_v13 = vld [vmem:[%s2673_s1 + $0x68] sm:$0xf]  ;;  %v58_v14 = vld [vmem:[%s2673_s1 + $0x70] sm:$0xf] }
   0xa   :  { %55 = vst [vmem:[#allocation2 + $0x30] sm:$0xf] %v54_v12  ;;  %57 = vst [vmem:[#allocation2 + $0x34] sm:$0xf] %v56_v13  ;;  %v60_v15 = vld [vmem:[%s2673_s1 + $0x78] sm:$0xf] }
   0xb   :  { %59 = vst [vmem:[#allocation2 + $0x38] sm:$0xf] %v58_v14  ;;  %v62_v16 = vld [vmem:[%s2673_s1 + $0x80] sm:$0xf]  ;;  %v64_v17 = vld [vmem:[%s2673_s1 + $0x88] sm:$0xf] }
   0xc   :  { %61 = vst [vmem:[#allocation2 + $0x3c] sm:$0xf] %v60_v15  ;;  %63 = vst [vmem:[#allocation2 + $0x40] sm:$0xf] %v62_v16  ;;  %v66_v18 = vld [vmem:[%s2673_s1 + $0x90] sm:$0xf] }
   0xd   :  { %65 = vst [vmem:[#allocation2 + $0x44] sm:$0xf] %v64_v17  ;;  %v68_v19 = vld [vmem:[%s2673_s1 + $0x98] sm:$0xf]  ;;  %v70_v20 = vld [vmem:[%s2673_s1 + $0xa0] sm:$0xf] }
   0xe   :  { %67 = vst [vmem:[#allocation2 + $0x48] sm:$0xf] %v66_v18  ;;  %69 = vst [vmem:[#allocation2 + $0x4c] sm:$0xf] %v68_v19  ;;  %v72_v21 = vld [vmem:[%s2673_s1 + $0xa8] sm:$0xf] }
   0xf   :  { %71 = vst [vmem:[#allocation2 + $0x50] sm:$0xf] %v70_v20  ;;  %v74_v22 = vld [vmem:[%s2673_s1 + $0xb0] sm:$0xf]  ;;  %v76_v23 = vld [vmem:[%s2673_s1 + $0xb8] sm:$0xf] }
  0x10   :  { %73 = vst [vmem:[#allocation2 + $0x54] sm:$0xf] %v72_v21  ;;  %75 = vst [vmem:[#allocation2 + $0x58] sm:$0xf] %v74_v22  ;;  %v78_v24 = vld [vmem:[%s2673_s1 + $0xc0] sm:$0xf] }
  0x11   :  { %77 = vst [vmem:[#allocation2 + $0x5c] sm:$0xf] %v76_v23  ;;  %v80_v25 = vld [vmem:[%s2673_s1 + $0xc8] sm:$0xf]  ;;  %v82_v26 = vld [vmem:[%s2673_s1 + $0xd0] sm:$0xf] }
  0x12   :  { %79 = vst [vmem:[#allocation2 + $0x60] sm:$0xf] %v78_v24  ;;  %81 = vst [vmem:[#allocation2 + $0x64] sm:$0xf] %v80_v25  ;;  %v84_v27 = vld [vmem:[%s2673_s1 + $0xd8] sm:$0xf] }
  0x13   :  { %83 = vst [vmem:[#allocation2 + $0x68] sm:$0xf] %v82_v26  ;;  %v86_v28 = vld [vmem:[%s2673_s1 + $0xe0] sm:$0xf]  ;;  %v88_v29 = vld [vmem:[%s2673_s1 + $0xe8] sm:$0xf] }
  0x14   :  { %85 = vst [vmem:[#allocation2 + $0x6c] sm:$0xf] %v84_v27  ;;  %87 = vst [vmem:[#allocation2 + $0x70] sm:$0xf] %v86_v28  ;;  %v90_v30 = vld [vmem:[%s2673_s1 + $0xf0] sm:$0xf] }
  0x15   :  { %89 = vst [vmem:[#allocation2 + $0x74] sm:$0xf] %v88_v29  ;;  %v92_v31 = vld [vmem:[%s2673_s1 + $0xf8] sm:$0xf]  ;;  %v94_v32 = vld [vmem:[%s2673_s1 + $0x100] sm:$0xf] }
  0x16   :  { %91 = vst [vmem:[#allocation2 + $0x78] sm:$0xf] %v90_v30  ;;  %93 = vst [vmem:[#allocation2 + $0x7c] sm:$0xf] %v92_v31  ;;  %v96_v33 = vld [vmem:[%s2673_s1 + $0x108] sm:$0xf] }
  0x17   :  { %95 = vst [vmem:[#allocation2 + $0x80] sm:$0xf] %v94_v32  ;;  %v98_v34 = vld [vmem:[%s2673_s1 + $0x110] sm:$0xf]  ;;  %v100_v35 = vld [vmem:[%s2673_s1 + $0x118] sm:$0xf] }
  0x18   :  { %97 = vst [vmem:[#allocation2 + $0x84] sm:$0xf] %v96_v33  ;;  %99 = vst [vmem:[#allocation2 + $0x88] sm:$0xf] %v98_v34  ;;  %v102_v36 = vld [vmem:[%s2673_s1 + $0x120] sm:$0xf] }
  0x19   :  { %101 = vst [vmem:[#allocation2 + $0x8c] sm:$0xf] %v100_v35  ;;  %v104_v37 = vld [vmem:[%s2673_s1 + $0x128] sm:$0xf]  ;;  %v106_v38 = vld [vmem:[%s2673_s1 + $0x130] sm:$0xf] }
  0x1a   :  { %103 = vst [vmem:[#allocation2 + $0x90] sm:$0xf] %v102_v36  ;;  %105 = vst [vmem:[#allocation2 + $0x94] sm:$0xf] %v104_v37  ;;  %v108_v39 = vld [vmem:[%s2673_s1 + $0x138] sm:$0xf] }
  0x1b   :  { %107 = vst [vmem:[#allocation2 + $0x98] sm:$0xf] %v106_v38  ;;  %v110_v40 = vld [vmem:[%s2673_s1 + $0x140] sm:$0xf]  ;;  %v112_v41 = vld [vmem:[%s2673_s1 + $0x148] sm:$0xf] }
  0x1c   :  { %109 = vst [vmem:[#allocation2 + $0x9c] sm:$0xf] %v108_v39  ;;  %111 = vst [vmem:[#allocation2 + $0xa0] sm:$0xf] %v110_v40  ;;  %v114_v42 = vld [vmem:[%s2673_s1 + $0x150] sm:$0xf] }
  0x1d   :  { %113 = vst [vmem:[#allocation2 + $0xa4] sm:$0xf] %v112_v41  ;;  %v116_v43 = vld [vmem:[%s2673_s1 + $0x158] sm:$0xf]  ;;  %v118_v44 = vld [vmem:[%s2673_s1 + $0x160] sm:$0xf] }
  0x1e   :  { %115 = vst [vmem:[#allocation2 + $0xa8] sm:$0xf] %v114_v42  ;;  %117 = vst [vmem:[#allocation2 + $0xac] sm:$0xf] %v116_v43  ;;  %v120_v45 = vld [vmem:[%s2673_s1 + $0x168] sm:$0xf] }
  0x1f   :  { %119 = vst [vmem:[#allocation2 + $0xb0] sm:$0xf] %v118_v44  ;;  %v122_v46 = vld [vmem:[%s2673_s1 + $0x170] sm:$0xf]  ;;  %v124_v47 = vld [vmem:[%s2673_s1 + $0x178] sm:$0xf] }
  0x20   :  { %121 = vst [vmem:[#allocation2 + $0xb4] sm:$0xf] %v120_v45  ;;  %123 = vst [vmem:[#allocation2 + $0xb8] sm:$0xf] %v122_v46  ;;  %v126_v48 = vld [vmem:[%s2673_s1 + $0x180] sm:$0xf] }
  0x21   :  { %125 = vst [vmem:[#allocation2 + $0xbc] sm:$0xf] %v124_v47  ;;  %v128_v49 = vld [vmem:[%s2673_s1 + $0x188] sm:$0xf]  ;;  %v130_v50 = vld [vmem:[%s2673_s1 + $0x190] sm:$0xf] }
  0x22   :  { %127 = vst [vmem:[#allocation2 + $0xc0] sm:$0xf] %v126_v48  ;;  %129 = vst [vmem:[#allocation2 + $0xc4] sm:$0xf] %v128_v49  ;;  %v132_v51 = vld [vmem:[%s2673_s1 + $0x198] sm:$0xf] }
  0x23   :  { %131 = vst [vmem:[#allocation2 + $0xc8] sm:$0xf] %v130_v50  ;;  %v134_v52 = vld [vmem:[%s2673_s1 + $0x1a0] sm:$0xf]  ;;  %v136_v53 = vld [vmem:[%s2673_s1 + $0x1a8] sm:$0xf] }
  0x24   :  { %133 = vst [vmem:[#allocation2 + $0xcc] sm:$0xf] %v132_v51  ;;  %135 = vst [vmem:[#allocation2 + $0xd0] sm:$0xf] %v134_v52  ;;  %v138_v54 = vld [vmem:[%s2673_s1 + $0x1b0] sm:$0xf] }
  0x25   :  { %137 = vst [vmem:[#allocation2 + $0xd4] sm:$0xf] %v136_v53  ;;  %v140_v55 = vld [vmem:[%s2673_s1 + $0x1b8] sm:$0xf]  ;;  %v142_v56 = vld [vmem:[%s2673_s1 + $0x1c0] sm:$0xf] }
  0x26   :  { %139 = vst [vmem:[#allocation2 + $0xd8] sm:$0xf] %v138_v54  ;;  %141 = vst [vmem:[#allocation2 + $0xdc] sm:$0xf] %v140_v55  ;;  %v144_v57 = vld [vmem:[%s2673_s1 + $0x1c8] sm:$0xf] }
  0x27   :  { %143 = vst [vmem:[#allocation2 + $0xe0] sm:$0xf] %v142_v56  ;;  %v146_v58 = vld [vmem:[%s2673_s1 + $0x1d0] sm:$0xf]  ;;  %v148_v59 = vld [vmem:[%s2673_s1 + $0x1d8] sm:$0xf] }
  0x28   :  { %145 = vst [vmem:[#allocation2 + $0xe4] sm:$0xf] %v144_v57  ;;  %147 = vst [vmem:[#allocation2 + $0xe8] sm:$0xf] %v146_v58  ;;  %v150_v60 = vld [vmem:[%s2673_s1 + $0x1e0] sm:$0xf] }
  0x29   :  { %149 = vst [vmem:[#allocation2 + $0xec] sm:$0xf] %v148_v59  ;;  %v152_v61 = vld [vmem:[%s2673_s1 + $0x1e8] sm:$0xf]  ;;  %v154_v62 = vld [vmem:[%s2673_s1 + $0x1f0] sm:$0xf] }
  0x2a   :  { %151 = vst [vmem:[#allocation2 + $0xf0] sm:$0xf] %v150_v60  ;;  %153 = vst [vmem:[#allocation2 + $0xf4] sm:$0xf] %v152_v61  ;;  %v156_v63 = vld [vmem:[%s2673_s1 + $0x1f8] sm:$0xf] }
  0x2b   :  { %155 = vst [vmem:[#allocation2 + $0xf8] sm:$0xf] %v154_v62  ;;  %v1445_v0 = vld [vmem:[%s2672_s0] sm:$0xff]   ;;  %157 = vst [vmem:[#allocation2 + $0xfc] sm:$0xf] %v156_v63  ;;  %v1860_v9 = vld [vmem:[%s2672_s0 + $0x8] sm:$0xff]  }
  0x2c   :  { %v2190_v1 = vld [vmem:[%s2674_s2] ss:$0 sm:$0xff]  ;;  %v1446_v2 = vunpack.c.l.bf16 %v1445_v0  ;;  %v1447_v3 = vunpack.c.h.bf16 %v1445_v0  ;;  %v1891_v10 = vld [vmem:[#allocation2 + $0x8] sm:$0xff]   ;;  %v1450_v14 = vunpack.c.l.bf16 %v1860_v9  ;;  %v1451_v15 = vunpack.c.h.bf16 %v1860_v9  ;;  %v1861_v20 = vld [vmem:[%s2672_s0 + $0x10] sm:$0xff]  }
  0x2d   :  { %v1573_v4 = vld [vmem:[#allocation2] sm:$0xff]   ;;  %v1578_v18 = vunpack.c.l.bf16 %v1891_v10  ;;  %v1579_v19 = vunpack.c.h.bf16 %v1891_v10  ;;  %v1892_v29 = vld [vmem:[#allocation2 + $0x10] sm:$0xff]   ;;  %v1454_v32 = vunpack.c.l.bf16 %v1861_v20  ;;  %v1455_v33 = vunpack.c.h.bf16 %v1861_v20  ;;  %v1862_v42 = vld [vmem:[%s2672_s0 + $0x18] sm:$0xff]  }
  0x2e   :  { %v2195_v5 = vld [vmem:[%s2676_s4] ss:$0 sm:$0xff]  ;;  %v1574_v7 = vunpack.c.l.bf16 %v1573_v4  ;;  %v1575_v8 = vunpack.c.h.bf16 %v1573_v4  ;;  %v451_v11 = vmul.f32 %v1446_v2, %v2190_v1  ;;  %v452_v12 = vmul.f32 %v1447_v3, %v2190_v1  ;;  %v1893_v47 = vld [vmem:[#allocation2 + $0x18] sm:$0xff]  }
  0x2f   :  { %v2200_v6 = vld [vmem:[%s2675_s3] ss:$0 sm:$0xff]  ;;  %v453_v23 = vmul.f32 %v1450_v14, %v2190_v1  ;;  %v454_v24 = vmul.f32 %v1451_v15, %v2190_v1  ;;  %v723_v27 = vmul.f32 %v1578_v18, %v2195_v5  ;;  %v724_v28 = vmul.f32 %v1579_v19, %v2195_v5  ;;  %v1864_v14 = vld [vmem:[%s2672_s0 + $0x28] sm:$0xff]  }
  0x30   :  { %v2210_v13 = vld [vmem:[%s2677_s5] ss:$0 sm:$0xff]  ;;  %v721_v16 = vmul.f32 %v1574_v7, %v2195_v5  ;;  %v722_v17 = vmul.f32 %v1575_v8, %v2195_v5  ;;  %v522_v21 = vadd.f32 %v2200_v6, %v451_v11  ;;  %v523_v22 = vadd.f32 %v2200_v6, %v452_v12 }
  0x31   :  { %v524_v30 = vadd.f32 %v2200_v6, %v453_v23  ;;  %v525_v31 = vadd.f32 %v2200_v6, %v454_v24  ;;  %v794_v36 = vadd.f32 %v2210_v13, %v723_v27  ;;  %v795_v37 = vadd.f32 %v2210_v13, %v724_v28  ;;  %v1863_v52 = vld [vmem:[%s2672_s0 + $0x20] sm:$0xff]   ;;  %v1895_v23 = vld [vmem:[#allocation2 + $0x28] sm:$0xff]  }
  0x32   :  { %v792_v25 = vadd.f32 %v2210_v13, %v721_v16  ;;  %v793_v26 = vadd.f32 %v2210_v13, %v722_v17  ;;  %v455_v38 = vmul.f32 %v1454_v32, %v2190_v1  ;;  %v456_v39 = vmul.f32 %v1455_v33, %v2190_v1  ;;  %v1894_v8 = vld [vmem:[#allocation2 + $0x20] sm:$0xff]   ;;  %v1865_v32 = vld [vmem:[%s2672_s0 + $0x30] sm:$0xff]  }
  0x33   :  { %v1582_v40 = vunpack.c.l.bf16 %v1892_v29  ;;  %v1583_v41 = vunpack.c.h.bf16 %v1892_v29  ;;  %v858_v45 = vadd.f32 %v794_v36, %v524_v30  ;;  %v859_v46 = vadd.f32 %v795_v37, %v525_v31 }
  0x34   :  { %v856_v34 = vadd.f32 %v792_v25, %v522_v21  ;;  %v857_v35 = vadd.f32 %v793_v26, %v523_v22  ;;  %v526_v48 = vadd.f32 %v2200_v6, %v455_v38  ;;  %v527_v49 = vadd.f32 %v2200_v6, %v456_v39 }
  0x35   :  { %v725_v50 = vmul.f32 %v1582_v40, %v2195_v5  ;;  %v726_v51 = vmul.f32 %v1583_v41, %v2195_v5  ;;  %v922_v54 = vmax.f32 %v858_v45, 0.0  ;;  %v923_v55 = vmax.f32 %v859_v46, 0.0  ;;  %v1896_v45 = vld [vmem:[#allocation2 + $0x30] sm:$0xff]  }
  0x36   :  { %v920_v43 = vmax.f32 %v856_v34, 0.0  ;;  %v921_v44 = vmax.f32 %v857_v35, 0.0  ;;  %v1458_v56 = vunpack.c.l.bf16 %v1862_v42  ;;  %v1459_v59 = vunpack.c.h.bf16 %v1862_v42 }
  0x37   :  { %v796_v57 = vadd.f32 %v2210_v13, %v725_v50  ;;  %v797_v58 = vadd.f32 %v2210_v13, %v726_v51  ;;  %v1586_v60 = vunpack.c.l.bf16 %v1893_v47  ;;  %v1708_v61 = vpack.c.bf16 %v923_v55, %v922_v54  ;;  %v1866_v54 = vld [vmem:[%s2672_s0 + $0x38] sm:$0xff]  }
  0x38   :  { %v1703_v53 = vpack.c.bf16 %v921_v44, %v920_v43  ;;  %v457_v62 = vmul.f32 %v1458_v56, %v2190_v1  ;;  %v1587_v63 = vunpack.c.h.bf16 %v1893_v47  ;;  %v1462_v0 = vunpack.c.l.bf16 %v1863_v52 }
  0x39   :  { %v860_v2 = vadd.f32 %v796_v57, %v526_v48  ;;  %v861_v3 = vadd.f32 %v797_v58, %v527_v49  ;;  %v458_v4 = vmul.f32 %v1459_v59, %v2190_v1  ;;  %v727_v7 = vmul.f32 %v1586_v60, %v2195_v5  ;;  %1922 = vst [vmem:[%s2678_s6 + $0x8] sm:$0xff] %v1708_v61  }
  0x3a   :  { %1704 = vst [vmem:[%s2678_s6] sm:$0xff] %v1703_v53   ;;  %v528_v9 = vadd.f32 %v2200_v6, %v457_v62  ;;  %v728_v10 = vmul.f32 %v1587_v63, %v2195_v5  ;;  %v1463_v11 = vunpack.c.h.bf16 %v1863_v52  ;;  %v459_v12 = vmul.f32 %v1462_v0, %v2190_v1 }
  0x3b   :  { %v924_v15 = vmax.f32 %v860_v2, 0.0  ;;  %v925_v16 = vmax.f32 %v861_v3, 0.0  ;;  %v529_v17 = vadd.f32 %v2200_v6, %v458_v4  ;;  %v798_v18 = vadd.f32 %v2210_v13, %v727_v7  ;;  %v1897_v4 = vld [vmem:[#allocation2 + $0x38] sm:$0xff]   ;;  %v1867_v7 = vld [vmem:[%s2672_s0 + $0x40] sm:$0xff]  }
  0x3c   :  { %v799_v19 = vadd.f32 %v2210_v13, %v728_v10  ;;  %v460_v20 = vmul.f32 %v1463_v11, %v2190_v1  ;;  %v530_v21 = vadd.f32 %v2200_v6, %v459_v12  ;;  %v1590_v22 = vunpack.c.l.bf16 %v1894_v8 }
  0x3d   :  { %v1713_v24 = vpack.c.bf16 %v925_v16, %v924_v15  ;;  %v862_v25 = vadd.f32 %v798_v18, %v528_v9  ;;  %v1591_v26 = vunpack.c.h.bf16 %v1894_v8  ;;  %v1466_v27 = vunpack.c.l.bf16 %v1864_v14 }
  0x3e   :  { %v863_v28 = vadd.f32 %v799_v19, %v529_v17  ;;  %v531_v29 = vadd.f32 %v2200_v6, %v460_v20  ;;  %v729_v30 = vmul.f32 %v1590_v22, %v2195_v5  ;;  %v1467_v31 = vunpack.c.h.bf16 %v1864_v14 }
  0x3f   :  { %1923 = vst [vmem:[%s2678_s6 + $0x10] sm:$0xff] %v1713_v24   ;;  %v926_v33 = vmax.f32 %v862_v25, 0.0  ;;  %v730_v34 = vmul.f32 %v1591_v26, %v2195_v5  ;;  %v461_v35 = vmul.f32 %v1466_v27, %v2190_v1  ;;  %v1594_v36 = vunpack.c.l.bf16 %v1895_v23 }
  0x40   :  { %v927_v37 = vmax.f32 %v863_v28, 0.0  ;;  %v800_v38 = vadd.f32 %v2210_v13, %v729_v30  ;;  %v462_v39 = vmul.f32 %v1467_v31, %v2190_v1  ;;  %v1595_v40 = vunpack.c.h.bf16 %v1895_v23  ;;  %v1868_v30 = vld [vmem:[%s2672_s0 + $0x48] sm:$0xff]  }
  0x41   :  { %v801_v41 = vadd.f32 %v2210_v13, %v730_v34  ;;  %v532_v42 = vadd.f32 %v2200_v6, %v461_v35  ;;  %v731_v43 = vmul.f32 %v1594_v36, %v2195_v5  ;;  %v1470_v44 = vunpack.c.l.bf16 %v1865_v32 }
  0x42   :  { %v1718_v46 = vpack.c.bf16 %v927_v37, %v926_v33  ;;  %v864_v47 = vadd.f32 %v800_v38, %v530_v21  ;;  %v533_v48 = vadd.f32 %v2200_v6, %v462_v39  ;;  %v732_v49 = vmul.f32 %v1595_v40, %v2195_v5  ;;  %v1898_v21 = vld [vmem:[#allocation2 + $0x40] sm:$0xff]   ;;  %v1899_v39 = vld [vmem:[#allocation2 + $0x48] sm:$0xff]  }
  0x43   :  { %v865_v50 = vadd.f32 %v801_v41, %v531_v29  ;;  %v802_v51 = vadd.f32 %v2210_v13, %v731_v43  ;;  %v1471_v52 = vunpack.c.h.bf16 %v1865_v32  ;;  %v463_v53 = vmul.f32 %v1470_v44, %v2190_v1 }
  0x44   :  { %1924 = vst [vmem:[%s2678_s6 + $0x18] sm:$0xff] %v1718_v46   ;;  %v928_v55 = vmax.f32 %v864_v47, 0.0  ;;  %v803_v56 = vadd.f32 %v2210_v13, %v732_v49  ;;  %v1598_v57 = vunpack.c.l.bf16 %v1896_v45  ;;  %v1599_v58 = vunpack.c.h.bf16 %v1896_v45 }
  0x45   :  { %v929_v59 = vmax.f32 %v865_v50, 0.0  ;;  %v866_v60 = vadd.f32 %v802_v51, %v532_v42  ;;  %v464_v61 = vmul.f32 %v1471_v52, %v2190_v1  ;;  %v534_v62 = vadd.f32 %v2200_v6, %v463_v53  ;;  %v1869_v52 = vld [vmem:[%s2672_s0 + $0x50] sm:$0xff]  }
  0x46   :  { %v867_v63 = vadd.f32 %v803_v56, %v533_v48  ;;  %v733_v0 = vmul.f32 %v1598_v57, %v2195_v5  ;;  %v734_v2 = vmul.f32 %v1599_v58, %v2195_v5  ;;  %v1474_v3 = vunpack.c.l.bf16 %v1866_v54 }
  0x47   :  { %v1723_v8 = vpack.c.bf16 %v929_v59, %v928_v55  ;;  %v930_v9 = vmax.f32 %v866_v60, 0.0  ;;  %v535_v10 = vadd.f32 %v2200_v6, %v464_v61  ;;  %v1475_v11 = vunpack.c.h.bf16 %v1866_v54  ;;  %v1900_v61 = vld [vmem:[#allocation2 + $0x50] sm:$0xff]  }
  0x48   :  { %v931_v12 = vmax.f32 %v867_v63, 0.0  ;;  %v804_v14 = vadd.f32 %v2210_v13, %v733_v0  ;;  %v805_v15 = vadd.f32 %v2210_v13, %v734_v2  ;;  %v465_v16 = vmul.f32 %v1474_v3, %v2190_v1  ;;  %v1870_v3 = vld [vmem:[%s2672_s0 + $0x58] sm:$0xff]  }
  0x49   :  { %1925 = vst [vmem:[%s2678_s6 + $0x20] sm:$0xff] %v1723_v8   ;;  %v466_v17 = vmul.f32 %v1475_v11, %v2190_v1  ;;  %v1602_v18 = vunpack.c.l.bf16 %v1897_v4  ;;  %v1603_v19 = vunpack.c.h.bf16 %v1897_v4  ;;  %v1478_v20 = vunpack.c.l.bf16 %v1867_v7 }
  0x4a   :  { %v1728_v22 = vpack.c.bf16 %v931_v12, %v930_v9  ;;  %v868_v23 = vadd.f32 %v804_v14, %v534_v62  ;;  %v869_v24 = vadd.f32 %v805_v15, %v535_v10  ;;  %v536_v25 = vadd.f32 %v2200_v6, %v465_v16 }
  0x4b   :  { %v537_v26 = vadd.f32 %v2200_v6, %v466_v17  ;;  %v735_v27 = vmul.f32 %v1602_v18, %v2195_v5  ;;  %v736_v28 = vmul.f32 %v1603_v19, %v2195_v5  ;;  %v1479_v29 = vunpack.c.h.bf16 %v1867_v7  ;;  %v1901_v19 = vld [vmem:[#allocation2 + $0x58] sm:$0xff]  }
  0x4c   :  { %1926 = vst [vmem:[%s2678_s6 + $0x28] sm:$0xff] %v1728_v22   ;;  %v932_v31 = vmax.f32 %v868_v23, 0.0  ;;  %v933_v32 = vmax.f32 %v869_v24, 0.0  ;;  %v467_v33 = vmul.f32 %v1478_v20, %v2190_v1  ;;  %v1606_v34 = vunpack.c.l.bf16 %v1898_v21  ;;  %v1871_v24 = vld [vmem:[%s2672_s0 + $0x60] sm:$0xff]  }
  0x4d   :  { %v806_v35 = vadd.f32 %v2210_v13, %v735_v27  ;;  %v807_v36 = vadd.f32 %v2210_v13, %v736_v28  ;;  %v468_v37 = vmul.f32 %v1479_v29, %v2190_v1  ;;  %v1607_v38 = vunpack.c.h.bf16 %v1898_v21 }
  0x4e   :  { %v1733_v40 = vpack.c.bf16 %v933_v32, %v932_v31  ;;  %v538_v41 = vadd.f32 %v2200_v6, %v467_v33  ;;  %v737_v42 = vmul.f32 %v1606_v34, %v2195_v5  ;;  %v1482_v43 = vunpack.c.l.bf16 %v1868_v30 }
  0x4f   :  { %v870_v44 = vadd.f32 %v806_v35, %v536_v25  ;;  %v871_v45 = vadd.f32 %v807_v36, %v537_v26  ;;  %v539_v46 = vadd.f32 %v2200_v6, %v468_v37  ;;  %v738_v47 = vmul.f32 %v1607_v38, %v2195_v5  ;;  %v1902_v37 = vld [vmem:[#allocation2 + $0x60] sm:$0xff]  }
  0x50   :  { %1927 = vst [vmem:[%s2678_s6 + $0x30] sm:$0xff] %v1733_v40   ;;  %v808_v48 = vadd.f32 %v2210_v13, %v737_v42  ;;  %v1483_v49 = vunpack.c.h.bf16 %v1868_v30  ;;  %v469_v50 = vmul.f32 %v1482_v43, %v2190_v1  ;;  %v1610_v51 = vunpack.c.l.bf16 %v1899_v39 }
  0x51   :  { %v934_v53 = vmax.f32 %v870_v44, 0.0  ;;  %v935_v54 = vmax.f32 %v871_v45, 0.0  ;;  %v809_v55 = vadd.f32 %v2210_v13, %v738_v47  ;;  %v1611_v56 = vunpack.c.h.bf16 %v1899_v39 }
  0x52   :  { %v872_v57 = vadd.f32 %v808_v48, %v538_v41  ;;  %v470_v58 = vmul.f32 %v1483_v49, %v2190_v1  ;;  %v540_v59 = vadd.f32 %v2200_v6, %v469_v50  ;;  %v739_v60 = vmul.f32 %v1610_v51, %v2195_v5 }
  0x53   :  { %v1738_v62 = vpack.c.bf16 %v935_v54, %v934_v53  ;;  %v873_v63 = vadd.f32 %v809_v55, %v539_v46  ;;  %v740_v0 = vmul.f32 %v1611_v56, %v2195_v5  ;;  %v1486_v2 = vunpack.c.l.bf16 %v1869_v52  ;;  %v1872_v46 = vld [vmem:[%s2672_s0 + $0x68] sm:$0xff]  }
  0x54   :  { %v936_v4 = vmax.f32 %v872_v57, 0.0  ;;  %v541_v7 = vadd.f32 %v2200_v6, %v470_v58  ;;  %v810_v8 = vadd.f32 %v2210_v13, %v739_v60  ;;  %v1487_v9 = vunpack.c.h.bf16 %v1869_v52 }
  0x55   :  { %1928 = vst [vmem:[%s2678_s6 + $0x38] sm:$0xff] %v1738_v62   ;;  %v937_v10 = vmax.f32 %v873_v63, 0.0  ;;  %v811_v11 = vadd.f32 %v2210_v13, %v740_v0  ;;  %v471_v12 = vmul.f32 %v1486_v2, %v2190_v1  ;;  %v1614_v14 = vunpack.c.l.bf16 %v1900_v61  ;;  %v1873_v0 = vld [vmem:[%s2672_s0 + $0x70] sm:$0xff]  }
  0x56   :  { %v874_v15 = vadd.f32 %v810_v8, %v540_v59  ;;  %v472_v16 = vmul.f32 %v1487_v9, %v2190_v1  ;;  %v1615_v17 = vunpack.c.h.bf16 %v1900_v61  ;;  %v1490_v18 = vunpack.c.l.bf16 %v1870_v3  ;;  %v1903_v59 = vld [vmem:[#allocation2 + $0x68] sm:$0xff]  }
  0x57   :  { %v1743_v20 = vpack.c.bf16 %v937_v10, %v936_v4  ;;  %v875_v21 = vadd.f32 %v811_v11, %v541_v7  ;;  %v542_v22 = vadd.f32 %v2200_v6, %v471_v12  ;;  %v741_v23 = vmul.f32 %v1614_v14, %v2195_v5 }
  0x58   :  { %v938_v25 = vmax.f32 %v874_v15, 0.0  ;;  %v543_v26 = vadd.f32 %v2200_v6, %v472_v16  ;;  %v742_v27 = vmul.f32 %v1615_v17, %v2195_v5  ;;  %v1491_v28 = vunpack.c.h.bf16 %v1870_v3  ;;  %v1904_v17 = vld [vmem:[#allocation2 + $0x70] sm:$0xff]  }
  0x59   :  { %1929 = vst [vmem:[%s2678_s6 + $0x40] sm:$0xff] %v1743_v20   ;;  %v939_v29 = vmax.f32 %v875_v21, 0.0  ;;  %v812_v30 = vadd.f32 %v2210_v13, %v741_v23  ;;  %v473_v31 = vmul.f32 %v1490_v18, %v2190_v1  ;;  %v1618_v32 = vunpack.c.l.bf16 %v1901_v19 }
  0x5a   :  { %v813_v33 = vadd.f32 %v2210_v13, %v742_v27  ;;  %v474_v34 = vmul.f32 %v1491_v28, %v2190_v1  ;;  %v1619_v35 = vunpack.c.h.bf16 %v1901_v19  ;;  %v1494_v36 = vunpack.c.l.bf16 %v1871_v24 }
  0x5b   :  { %v1748_v38 = vpack.c.bf16 %v939_v29, %v938_v25  ;;  %v876_v39 = vadd.f32 %v812_v30, %v542_v22  ;;  %v544_v40 = vadd.f32 %v2200_v6, %v473_v31  ;;  %v743_v41 = vmul.f32 %v1618_v32, %v2195_v5  ;;  %v1874_v22 = vld [vmem:[%s2672_s0 + $0x78] sm:$0xff]  }
  0x5c   :  { %v877_v42 = vadd.f32 %v813_v33, %v543_v26  ;;  %v545_v43 = vadd.f32 %v2200_v6, %v474_v34  ;;  %v744_v44 = vmul.f32 %v1619_v35, %v2195_v5  ;;  %v1495_v45 = vunpack.c.h.bf16 %v1871_v24  ;;  %v1905_v35 = vld [vmem:[#allocation2 + $0x78] sm:$0xff]  }
  0x5d   :  { %1930 = vst [vmem:[%s2678_s6 + $0x48] sm:$0xff] %v1748_v38   ;;  %v940_v47 = vmax.f32 %v876_v39, 0.0  ;;  %v814_v48 = vadd.f32 %v2210_v13, %v743_v41  ;;  %v475_v49 = vmul.f32 %v1494_v36, %v2190_v1  ;;  %v1622_v50 = vunpack.c.l.bf16 %v1902_v37 }
  0x5e   :  { %v941_v51 = vmax.f32 %v877_v42, 0.0  ;;  %v815_v52 = vadd.f32 %v2210_v13, %v744_v44  ;;  %v476_v53 = vmul.f32 %v1495_v45, %v2190_v1  ;;  %v1623_v54 = vunpack.c.h.bf16 %v1902_v37  ;;  %v1875_v44 = vld [vmem:[%s2672_s0 + $0x80] sm:$0xff]  }
  0x5f   :  { %v878_v55 = vadd.f32 %v814_v48, %v544_v40  ;;  %v546_v56 = vadd.f32 %v2200_v6, %v475_v49  ;;  %v745_v57 = vmul.f32 %v1622_v50, %v2195_v5  ;;  %v1498_v58 = vunpack.c.l.bf16 %v1872_v46 }
  0x60   :  { %v1753_v60 = vpack.c.bf16 %v941_v51, %v940_v47  ;;  %v879_v61 = vadd.f32 %v815_v52, %v545_v43  ;;  %v547_v62 = vadd.f32 %v2200_v6, %v476_v53  ;;  %v746_v63 = vmul.f32 %v1623_v54, %v2195_v5  ;;  %v1906_v53 = vld [vmem:[#allocation2 + $0x80] sm:$0xff]  }
  0x61   :  { %v942_v2 = vmax.f32 %v878_v55, 0.0  ;;  %v816_v3 = vadd.f32 %v2210_v13, %v745_v57  ;;  %v1499_v4 = vunpack.c.h.bf16 %v1872_v46  ;;  %v477_v7 = vmul.f32 %v1498_v58, %v2190_v1 }
  0x62   :  { %1931 = vst [vmem:[%s2678_s6 + $0x50] sm:$0xff] %v1753_v60   ;;  %v943_v8 = vmax.f32 %v879_v61, 0.0  ;;  %v817_v9 = vadd.f32 %v2210_v13, %v746_v63  ;;  %v1626_v10 = vunpack.c.l.bf16 %v1903_v59  ;;  %v1627_v11 = vunpack.c.h.bf16 %v1903_v59 }
  0x63   :  { %v880_v12 = vadd.f32 %v816_v3, %v546_v56  ;;  %v478_v14 = vmul.f32 %v1499_v4, %v2190_v1  ;;  %v548_v15 = vadd.f32 %v2200_v6, %v477_v7  ;;  %v1502_v16 = vunpack.c.l.bf16 %v1873_v0 }
  0x64   :  { %v1758_v18 = vpack.c.bf16 %v943_v8, %v942_v2  ;;  %v881_v19 = vadd.f32 %v817_v9, %v547_v62  ;;  %v747_v20 = vmul.f32 %v1626_v10, %v2195_v5  ;;  %v748_v21 = vmul.f32 %v1627_v11, %v2195_v5  ;;  %v1876_v62 = vld [vmem:[%s2672_s0 + $0x88] sm:$0xff]  }
  0x65   :  { %v944_v23 = vmax.f32 %v880_v12, 0.0  ;;  %v549_v24 = vadd.f32 %v2200_v6, %v478_v14  ;;  %v1503_v25 = vunpack.c.h.bf16 %v1873_v0  ;;  %v479_v26 = vmul.f32 %v1502_v16, %v2190_v1 }
  0x66   :  { %1932 = vst [vmem:[%s2678_s6 + $0x58] sm:$0xff] %v1758_v18   ;;  %v945_v27 = vmax.f32 %v881_v19, 0.0  ;;  %v818_v28 = vadd.f32 %v2210_v13, %v747_v20  ;;  %v819_v29 = vadd.f32 %v2210_v13, %v748_v21  ;;  %v1630_v30 = vunpack.c.l.bf16 %v1904_v17  ;;  %v1877_v20 = vld [vmem:[%s2672_s0 + $0x90] sm:$0xff]  }
  0x67   :  { %v480_v31 = vmul.f32 %v1503_v25, %v2190_v1  ;;  %v550_v32 = vadd.f32 %v2200_v6, %v479_v26  ;;  %v1631_v33 = vunpack.c.h.bf16 %v1904_v17  ;;  %v1506_v34 = vunpack.c.l.bf16 %v1874_v22 }
  0x68   :  { %v1763_v36 = vpack.c.bf16 %v945_v27, %v944_v23  ;;  %v882_v37 = vadd.f32 %v818_v28, %v548_v15  ;;  %v883_v38 = vadd.f32 %v819_v29, %v549_v24  ;;  %v749_v39 = vmul.f32 %v1630_v30, %v2195_v5  ;;  %v1907_v15 = vld [vmem:[#allocation2 + $0x88] sm:$0xff]  }
  0x69   :  { %v551_v40 = vadd.f32 %v2200_v6, %v480_v31  ;;  %v750_v41 = vmul.f32 %v1631_v33, %v2195_v5  ;;  %v1507_v42 = vunpack.c.h.bf16 %v1874_v22  ;;  %v481_v43 = vmul.f32 %v1506_v34, %v2190_v1  ;;  %v1908_v33 = vld [vmem:[#allocation2 + $0x90] sm:$0xff]  }
  0x6a   :  { %1933 = vst [vmem:[%s2678_s6 + $0x60] sm:$0xff] %v1763_v36   ;;  %v946_v45 = vmax.f32 %v882_v37, 0.0  ;;  %v947_v46 = vmax.f32 %v883_v38, 0.0  ;;  %v820_v47 = vadd.f32 %v2210_v13, %v749_v39  ;;  %v1634_v48 = vunpack.c.l.bf16 %v1905_v35  ;;  %v1878_v38 = vld [vmem:[%s2672_s0 + $0x98] sm:$0xff]  }
  0x6b   :  { %v821_v49 = vadd.f32 %v2210_v13, %v750_v41  ;;  %v482_v50 = vmul.f32 %v1507_v42, %v2190_v1  ;;  %v552_v51 = vadd.f32 %v2200_v6, %v481_v43  ;;  %v1635_v52 = vunpack.c.h.bf16 %v1905_v35 }
  0x6c   :  { %v1768_v54 = vpack.c.bf16 %v947_v46, %v946_v45  ;;  %v884_v55 = vadd.f32 %v820_v47, %v550_v32  ;;  %v751_v56 = vmul.f32 %v1634_v48, %v2195_v5  ;;  %v1510_v57 = vunpack.c.l.bf16 %v1875_v44 }
  0x6d   :  { %v885_v58 = vadd.f32 %v821_v49, %v551_v40  ;;  %v553_v59 = vadd.f32 %v2200_v6, %v482_v50  ;;  %v752_v60 = vmul.f32 %v1635_v52, %v2195_v5  ;;  %v1511_v61 = vunpack.c.h.bf16 %v1875_v44 }
  0x6e   :  { %1934 = vst [vmem:[%s2678_s6 + $0x68] sm:$0xff] %v1768_v54   ;;  %v948_v63 = vmax.f32 %v884_v55, 0.0  ;;  %v822_v0 = vadd.f32 %v2210_v13, %v751_v56  ;;  %v483_v2 = vmul.f32 %v1510_v57, %v2190_v1  ;;  %v1638_v3 = vunpack.c.l.bf16 %v1906_v53 }
  0x6f   :  { %v949_v4 = vmax.f32 %v885_v58, 0.0  ;;  %v823_v7 = vadd.f32 %v2210_v13, %v752_v60  ;;  %v484_v8 = vmul.f32 %v1511_v61, %v2190_v1  ;;  %v1639_v9 = vunpack.c.h.bf16 %v1906_v53  ;;  %v1879_v60 = vld [vmem:[%s2672_s0 + $0xa0] sm:$0xff]  }
  0x70   :  { %v886_v10 = vadd.f32 %v822_v0, %v552_v51  ;;  %v554_v11 = vadd.f32 %v2200_v6, %v483_v2  ;;  %v753_v12 = vmul.f32 %v1638_v3, %v2195_v5  ;;  %v1514_v14 = vunpack.c.l.bf16 %v1876_v62  ;;  %v1909_v51 = vld [vmem:[#allocation2 + $0x98] sm:$0xff]  }
  0x71   :  { %v1773_v16 = vpack.c.bf16 %v949_v4, %v948_v63  ;;  %v887_v17 = vadd.f32 %v823_v7, %v553_v59  ;;  %v555_v18 = vadd.f32 %v2200_v6, %v484_v8  ;;  %v754_v19 = vmul.f32 %v1639_v9, %v2195_v5  ;;  %v1910_v8 = vld [vmem:[#allocation2 + $0xa0] sm:$0xff]  }
  0x72   :  { %v950_v21 = vmax.f32 %v886_v10, 0.0  ;;  %v824_v22 = vadd.f32 %v2210_v13, %v753_v12  ;;  %v1515_v23 = vunpack.c.h.bf16 %v1876_v62  ;;  %v485_v24 = vmul.f32 %v1514_v14, %v2190_v1 }
  0x73   :  { %1935 = vst [vmem:[%s2678_s6 + $0x70] sm:$0xff] %v1773_v16   ;;  %v951_v25 = vmax.f32 %v887_v17, 0.0  ;;  %v825_v26 = vadd.f32 %v2210_v13, %v754_v19  ;;  %v1642_v27 = vunpack.c.l.bf16 %v1907_v15  ;;  %v1643_v28 = vunpack.c.h.bf16 %v1907_v15 }
  0x74   :  { %v888_v29 = vadd.f32 %v824_v22, %v554_v11  ;;  %v486_v30 = vmul.f32 %v1515_v23, %v2190_v1  ;;  %v556_v31 = vadd.f32 %v2200_v6, %v485_v24  ;;  %v1518_v32 = vunpack.c.l.bf16 %v1877_v20 }
  0x75   :  { %v1778_v34 = vpack.c.bf16 %v951_v25, %v950_v21  ;;  %v889_v35 = vadd.f32 %v825_v26, %v555_v18  ;;  %v755_v36 = vmul.f32 %v1642_v27, %v2195_v5  ;;  %v756_v37 = vmul.f32 %v1643_v28, %v2195_v5  ;;  %v1880_v18 = vld [vmem:[%s2672_s0 + $0xa8] sm:$0xff]  }
  0x76   :  { %v952_v39 = vmax.f32 %v888_v29, 0.0  ;;  %v557_v40 = vadd.f32 %v2200_v6, %v486_v30  ;;  %v1519_v41 = vunpack.c.h.bf16 %v1877_v20  ;;  %v487_v42 = vmul.f32 %v1518_v32, %v2190_v1 }
  0x77   :  { %1936 = vst [vmem:[%s2678_s6 + $0x78] sm:$0xff] %v1778_v34   ;;  %v953_v43 = vmax.f32 %v889_v35, 0.0  ;;  %v826_v44 = vadd.f32 %v2210_v13, %v755_v36  ;;  %v827_v45 = vadd.f32 %v2210_v13, %v756_v37  ;;  %v1646_v46 = vunpack.c.l.bf16 %v1908_v33  ;;  %v1881_v36 = vld [vmem:[%s2672_s0 + $0xb0] sm:$0xff]  }
  0x78   :  { %v488_v47 = vmul.f32 %v1519_v41, %v2190_v1  ;;  %v558_v48 = vadd.f32 %v2200_v6, %v487_v42  ;;  %v1647_v49 = vunpack.c.h.bf16 %v1908_v33  ;;  %v1522_v50 = vunpack.c.l.bf16 %v1878_v38 }
  0x79   :  { %v1783_v52 = vpack.c.bf16 %v953_v43, %v952_v39  ;;  %v890_v53 = vadd.f32 %v826_v44, %v556_v31  ;;  %v891_v54 = vadd.f32 %v827_v45, %v557_v40  ;;  %v757_v55 = vmul.f32 %v1646_v46, %v2195_v5  ;;  %v1911_v31 = vld [vmem:[#allocation2 + $0xa8] sm:$0xff]  }
  0x7a   :  { %v559_v56 = vadd.f32 %v2200_v6, %v488_v47  ;;  %v758_v57 = vmul.f32 %v1647_v49, %v2195_v5  ;;  %v1523_v58 = vunpack.c.h.bf16 %v1878_v38  ;;  %v489_v59 = vmul.f32 %v1522_v50, %v2190_v1  ;;  %v1912_v49 = vld [vmem:[#allocation2 + $0xb0] sm:$0xff]  }
  0x7b   :  { %1937 = vst [vmem:[%s2678_s6 + $0x80] sm:$0xff] %v1783_v52   ;;  %v954_v61 = vmax.f32 %v890_v53, 0.0  ;;  %v955_v62 = vmax.f32 %v891_v54, 0.0  ;;  %v828_v63 = vadd.f32 %v2210_v13, %v757_v55  ;;  %v1650_v0 = vunpack.c.l.bf16 %v1909_v51  ;;  %v1882_v54 = vld [vmem:[%s2672_s0 + $0xb8] sm:$0xff]  }
  0x7c   :  { %v829_v2 = vadd.f32 %v2210_v13, %v758_v57  ;;  %v490_v3 = vmul.f32 %v1523_v58, %v2190_v1  ;;  %v560_v4 = vadd.f32 %v2200_v6, %v489_v59  ;;  %v1651_v7 = vunpack.c.h.bf16 %v1909_v51 }
  0x7d   :  { %v1788_v9 = vpack.c.bf16 %v955_v62, %v954_v61  ;;  %v892_v10 = vadd.f32 %v828_v63, %v558_v48  ;;  %v759_v11 = vmul.f32 %v1650_v0, %v2195_v5  ;;  %v1526_v12 = vunpack.c.l.bf16 %v1879_v60 }
  0x7e   :  { %v893_v14 = vadd.f32 %v829_v2, %v559_v56  ;;  %v561_v15 = vadd.f32 %v2200_v6, %v490_v3  ;;  %v760_v16 = vmul.f32 %v1651_v7, %v2195_v5  ;;  %v1527_v17 = vunpack.c.h.bf16 %v1879_v60 }
  0x7f   :  { %1938 = vst [vmem:[%s2678_s6 + $0x88] sm:$0xff] %v1788_v9   ;;  %v956_v19 = vmax.f32 %v892_v10, 0.0  ;;  %v830_v20 = vadd.f32 %v2210_v13, %v759_v11  ;;  %v491_v21 = vmul.f32 %v1526_v12, %v2190_v1  ;;  %v1654_v22 = vunpack.c.l.bf16 %v1910_v8 }
  0x80   :  { %v957_v23 = vmax.f32 %v893_v14, 0.0  ;;  %v831_v24 = vadd.f32 %v2210_v13, %v760_v16  ;;  %v492_v25 = vmul.f32 %v1527_v17, %v2190_v1  ;;  %v1655_v26 = vunpack.c.h.bf16 %v1910_v8  ;;  %v1883_v16 = vld [vmem:[%s2672_s0 + $0xc0] sm:$0xff]  }
  0x81   :  { %v894_v27 = vadd.f32 %v830_v20, %v560_v4  ;;  %v562_v28 = vadd.f32 %v2200_v6, %v491_v21  ;;  %v761_v29 = vmul.f32 %v1654_v22, %v2195_v5  ;;  %v1530_v30 = vunpack.c.l.bf16 %v1880_v18  ;;  %v1913_v4 = vld [vmem:[#allocation2 + $0xb8] sm:$0xff]  }
  0x82   :  { %v1793_v32 = vpack.c.bf16 %v957_v23, %v956_v19  ;;  %v895_v33 = vadd.f32 %v831_v24, %v561_v15  ;;  %v563_v34 = vadd.f32 %v2200_v6, %v492_v25  ;;  %v762_v35 = vmul.f32 %v1655_v26, %v2195_v5  ;;  %v1914_v25 = vld [vmem:[#allocation2 + $0xc0] sm:$0xff]  }
  0x83   :  { %v958_v37 = vmax.f32 %v894_v27, 0.0  ;;  %v832_v38 = vadd.f32 %v2210_v13, %v761_v29  ;;  %v1531_v39 = vunpack.c.h.bf16 %v1880_v18  ;;  %v493_v40 = vmul.f32 %v1530_v30, %v2190_v1 }
  0x84   :  { %1939 = vst [vmem:[%s2678_s6 + $0x90] sm:$0xff] %v1793_v32   ;;  %v959_v41 = vmax.f32 %v895_v33, 0.0  ;;  %v833_v42 = vadd.f32 %v2210_v13, %v762_v35  ;;  %v1658_v43 = vunpack.c.l.bf16 %v1911_v31  ;;  %v1659_v44 = vunpack.c.h.bf16 %v1911_v31 }
  0x85   :  { %v896_v45 = vadd.f32 %v832_v38, %v562_v28  ;;  %v494_v46 = vmul.f32 %v1531_v39, %v2190_v1  ;;  %v564_v47 = vadd.f32 %v2200_v6, %v493_v40  ;;  %v1534_v48 = vunpack.c.l.bf16 %v1881_v36 }
  0x86   :  { %v1798_v50 = vpack.c.bf16 %v959_v41, %v958_v37  ;;  %v897_v51 = vadd.f32 %v833_v42, %v563_v34  ;;  %v763_v52 = vmul.f32 %v1658_v43, %v2195_v5  ;;  %v764_v53 = vmul.f32 %v1659_v44, %v2195_v5  ;;  %v1884_v34 = vld [vmem:[%s2672_s0 + $0xc8] sm:$0xff]  }
  0x87   :  { %v960_v55 = vmax.f32 %v896_v45, 0.0  ;;  %v565_v56 = vadd.f32 %v2200_v6, %v494_v46  ;;  %v1535_v57 = vunpack.c.h.bf16 %v1881_v36  ;;  %v495_v58 = vmul.f32 %v1534_v48, %v2190_v1 }
  0x88   :  { %1940 = vst [vmem:[%s2678_s6 + $0x98] sm:$0xff] %v1798_v50   ;;  %v961_v59 = vmax.f32 %v897_v51, 0.0  ;;  %v834_v60 = vadd.f32 %v2210_v13, %v763_v52  ;;  %v835_v61 = vadd.f32 %v2210_v13, %v764_v53  ;;  %v1662_v62 = vunpack.c.l.bf16 %v1912_v49  ;;  %v1885_v52 = vld [vmem:[%s2672_s0 + $0xd0] sm:$0xff]  }
  0x89   :  { %v496_v63 = vmul.f32 %v1535_v57, %v2190_v1  ;;  %v566_v0 = vadd.f32 %v2200_v6, %v495_v58  ;;  %v1663_v2 = vunpack.c.h.bf16 %v1912_v49  ;;  %v1538_v3 = vunpack.c.l.bf16 %v1882_v54 }
  0x8a   :  { %v1803_v7 = vpack.c.bf16 %v961_v59, %v960_v55  ;;  %v898_v8 = vadd.f32 %v834_v60, %v564_v47  ;;  %v899_v9 = vadd.f32 %v835_v61, %v565_v56  ;;  %v765_v10 = vmul.f32 %v1662_v62, %v2195_v5  ;;  %v1915_v47 = vld [vmem:[#allocation2 + $0xc8] sm:$0xff]  }
  0x8b   :  { %v567_v11 = vadd.f32 %v2200_v6, %v496_v63  ;;  %v766_v12 = vmul.f32 %v1663_v2, %v2195_v5  ;;  %v1539_v14 = vunpack.c.h.bf16 %v1882_v54  ;;  %v497_v15 = vmul.f32 %v1538_v3, %v2190_v1  ;;  %v1916_v2 = vld [vmem:[#allocation2 + $0xd0] sm:$0xff]  }
  0x8c   :  { %1941 = vst [vmem:[%s2678_s6 + $0xa0] sm:$0xff] %v1803_v7   ;;  %v962_v17 = vmax.f32 %v898_v8, 0.0  ;;  %v963_v18 = vmax.f32 %v899_v9, 0.0  ;;  %v836_v19 = vadd.f32 %v2210_v13, %v765_v10  ;;  %v1666_v20 = vunpack.c.l.bf16 %v1913_v4  ;;  %v1886_v9 = vld [vmem:[%s2672_s0 + $0xd8] sm:$0xff]  }
  0x8d   :  { %v837_v21 = vadd.f32 %v2210_v13, %v766_v12  ;;  %v498_v22 = vmul.f32 %v1539_v14, %v2190_v1  ;;  %v568_v23 = vadd.f32 %v2200_v6, %v497_v15  ;;  %v1667_v24 = vunpack.c.h.bf16 %v1913_v4 }
  0x8e   :  { %v1808_v26 = vpack.c.bf16 %v963_v18, %v962_v17  ;;  %v900_v27 = vadd.f32 %v836_v19, %v566_v0  ;;  %v767_v28 = vmul.f32 %v1666_v20, %v2195_v5  ;;  %v1542_v29 = vunpack.c.l.bf16 %v1883_v16  ;;  %v2578_v18 = vld [vmem:[%s2675_s3] ss:$0 sm:$0xff] }
  0x8f   :  { %v901_v30 = vadd.f32 %v837_v21, %v567_v11  ;;  %v569_v31 = vadd.f32 %v2200_v6, %v498_v22  ;;  %v768_v32 = vmul.f32 %v1667_v24, %v2195_v5  ;;  %v1543_v33 = vunpack.c.h.bf16 %v1883_v16  ;;  %v1917_v22 = vld [vmem:[#allocation2 + $0xd8] sm:$0xff]  }
  0x90   :  { %1942 = vst [vmem:[%s2678_s6 + $0xa8] sm:$0xff] %v1808_v26   ;;  %v964_v35 = vmax.f32 %v900_v27, 0.0  ;;  %v838_v36 = vadd.f32 %v2210_v13, %v767_v28  ;;  %v499_v37 = vmul.f32 %v1542_v29, %v2190_v1  ;;  %v1670_v38 = vunpack.c.l.bf16 %v1914_v25 }
  0x91   :  { %v965_v39 = vmax.f32 %v901_v30, 0.0  ;;  %v839_v40 = vadd.f32 %v2210_v13, %v768_v32  ;;  %v500_v41 = vmul.f32 %v1543_v33, %v2190_v1  ;;  %v1671_v42 = vunpack.c.h.bf16 %v1914_v25 }
  0x92   :  { %v902_v43 = vadd.f32 %v838_v36, %v568_v23  ;;  %v570_v44 = vadd.f32 %v2200_v6, %v499_v37  ;;  %v769_v45 = vmul.f32 %v1670_v38, %v2195_v5  ;;  %v1546_v46 = vunpack.c.l.bf16 %v1884_v34 }
  0x93   :  { %v1813_v48 = vpack.c.bf16 %v965_v39, %v964_v35  ;;  %v903_v49 = vadd.f32 %v839_v40, %v569_v31  ;;  %v571_v50 = vadd.f32 %v2200_v6, %v500_v41  ;;  %v770_v51 = vmul.f32 %v1671_v42, %v2195_v5  ;;  %v1887_v31 = vld [vmem:[%s2672_s0 + $0xe0] sm:$0xff]  }
  0x94   :  { %v966_v53 = vmax.f32 %v902_v43, 0.0  ;;  %v840_v54 = vadd.f32 %v2210_v13, %v769_v45  ;;  %v1547_v55 = vunpack.c.h.bf16 %v1884_v34  ;;  %v501_v56 = vmul.f32 %v1546_v46, %v2190_v1  ;;  %v2599_v34 = vld [vmem:[%s2677_s5] ss:$0 sm:$0xff] }
  0x95   :  { %1943 = vst [vmem:[%s2678_s6 + $0xb0] sm:$0xff] %v1813_v48   ;;  %v967_v57 = vmax.f32 %v903_v49, 0.0  ;;  %v841_v58 = vadd.f32 %v2210_v13, %v770_v51  ;;  %v1674_v59 = vunpack.c.l.bf16 %v1915_v47  ;;  %v1675_v60 = vunpack.c.h.bf16 %v1915_v47  ;;  %v1918_v41 = vld [vmem:[#allocation2 + $0xe0] sm:$0xff]  }
  0x96   :  { %v904_v61 = vadd.f32 %v840_v54, %v570_v44  ;;  %v502_v62 = vmul.f32 %v1547_v55, %v2190_v1  ;;  %v572_v63 = vadd.f32 %v2200_v6, %v501_v56  ;;  %v1550_v0 = vunpack.c.l.bf16 %v1885_v52  ;;  %v2566_v1 = vld [vmem:[%s2674_s2] ss:$0 sm:$0xff] }
  0x97   :  { %v1818_v3 = vpack.c.bf16 %v967_v57, %v966_v53  ;;  %v905_v4 = vadd.f32 %v841_v58, %v571_v50  ;;  %v771_v7 = vmul.f32 %v1674_v59, %v2195_v5  ;;  %v772_v8 = vmul.f32 %v1675_v60, %v2195_v5  ;;  %v1888_v50 = vld [vmem:[%s2672_s0 + $0xe8] sm:$0xff]  }
  0x98   :  { %v968_v10 = vmax.f32 %v904_v61, 0.0  ;;  %v573_v11 = vadd.f32 %v2200_v6, %v502_v62  ;;  %v1551_v12 = vunpack.c.h.bf16 %v1885_v52  ;;  %v503_v14 = vmul.f32 %v2566_v1, %v1550_v0 }
  0x99   :  { %1944 = vst [vmem:[%s2678_s6 + $0xb8] sm:$0xff] %v1818_v3   ;;  %v969_v5 = vmax.f32 %v905_v4, 0.0  ;;  %v842_v15 = vadd.f32 %v2210_v13, %v771_v7  ;;  %v843_v16 = vadd.f32 %v2210_v13, %v772_v8  ;;  %v1678_v17 = vunpack.c.l.bf16 %v1916_v2  ;;  %v2584_v13 = vld [vmem:[%s2676_s4] ss:$0 sm:$0xff]  ;;  %v1889_v7 = vld [vmem:[%s2672_s0 + $0xf0] sm:$0xff]  }
  0x9a   :  { %v504_v6 = vmul.f32 %v2566_v1, %v1551_v12  ;;  %v574_v19 = vadd.f32 %v2578_v18, %v503_v14  ;;  %v1679_v20 = vunpack.c.h.bf16 %v1916_v2  ;;  %v1554_v21 = vunpack.c.l.bf16 %v1886_v9 }
  0x9b   :  { %v1823_v23 = vpack.c.bf16 %v969_v5, %v968_v10  ;;  %v906_v24 = vadd.f32 %v842_v15, %v572_v63  ;;  %v907_v25 = vadd.f32 %v843_v16, %v573_v11  ;;  %v773_v26 = vmul.f32 %v2584_v13, %v1678_v17  ;;  %v1919_v63 = vld [vmem:[#allocation2 + $0xe8] sm:$0xff]  }
  0x9c   :  { %v575_v27 = vadd.f32 %v2578_v18, %v504_v6  ;;  %v774_v28 = vmul.f32 %v2584_v13, %v1679_v20  ;;  %v1555_v29 = vunpack.c.h.bf16 %v1886_v9  ;;  %v505_v30 = vmul.f32 %v2566_v1, %v1554_v21  ;;  %v1920_v20 = vld [vmem:[#allocation2 + $0xf0] sm:$0xff]  }
  0x9d   :  { %1945 = vst [vmem:[%s2678_s6 + $0xc0] sm:$0xff] %v1823_v23   ;;  %v970_v32 = vmax.f32 %v906_v24, 0.0  ;;  %v971_v33 = vmax.f32 %v907_v25, 0.0  ;;  %v844_v35 = vadd.f32 %v2599_v34, %v773_v26  ;;  %v1682_v36 = vunpack.c.l.bf16 %v1917_v22  ;;  %v1890_v25 = vld [vmem:[%s2672_s0 + $0xf8] sm:$0xff]  }
  0x9e   :  { %v845_v37 = vadd.f32 %v2599_v34, %v774_v28  ;;  %v506_v38 = vmul.f32 %v2566_v1, %v1555_v29  ;;  %v576_v39 = vadd.f32 %v2578_v18, %v505_v30  ;;  %v1683_v40 = vunpack.c.h.bf16 %v1917_v22 }
  0x9f   :  { %v1828_v42 = vpack.c.bf16 %v971_v33, %v970_v32  ;;  %v908_v43 = vadd.f32 %v844_v35, %v574_v19  ;;  %v775_v44 = vmul.f32 %v2584_v13, %v1682_v36  ;;  %v1558_v45 = vunpack.c.l.bf16 %v1887_v31 }
  0xa0   :  { %v909_v46 = vadd.f32 %v845_v37, %v575_v27  ;;  %v577_v47 = vadd.f32 %v2578_v18, %v506_v38  ;;  %v776_v48 = vmul.f32 %v2584_v13, %v1683_v40  ;;  %v1559_v49 = vunpack.c.h.bf16 %v1887_v31 }
  0xa1   :  { %1946 = vst [vmem:[%s2678_s6 + $0xc8] sm:$0xff] %v1828_v42   ;;  %v972_v51 = vmax.f32 %v908_v43, 0.0  ;;  %v846_v52 = vadd.f32 %v2599_v34, %v775_v44  ;;  %v507_v53 = vmul.f32 %v2566_v1, %v1558_v45  ;;  %v1686_v54 = vunpack.c.l.bf16 %v1918_v41 }
  0xa2   :  { %v973_v55 = vmax.f32 %v909_v46, 0.0  ;;  %v847_v56 = vadd.f32 %v2599_v34, %v776_v48  ;;  %v508_v57 = vmul.f32 %v2566_v1, %v1559_v49  ;;  %v1687_v58 = vunpack.c.h.bf16 %v1918_v41 }
  0xa3   :  { %v910_v59 = vadd.f32 %v846_v52, %v576_v39  ;;  %v578_v60 = vadd.f32 %v2578_v18, %v507_v53  ;;  %v777_v61 = vmul.f32 %v2584_v13, %v1686_v54  ;;  %v1562_v62 = vunpack.c.l.bf16 %v1888_v50  ;;  %v1921_v39 = vld [vmem:[#allocation2 + $0xf8] sm:$0xff]  }
  0xa4   :  { %v1833_v0 = vpack.c.bf16 %v973_v55, %v972_v51  ;;  %v911_v2 = vadd.f32 %v847_v56, %v577_v47  ;;  %v579_v3 = vadd.f32 %v2578_v18, %v508_v57  ;;  %v778_v4 = vmul.f32 %v2584_v13, %v1687_v58 }
  0xa5   :  { %v974_v8 = vmax.f32 %v910_v59, 0.0  ;;  %v848_v9 = vadd.f32 %v2599_v34, %v777_v61  ;;  %v1563_v10 = vunpack.c.h.bf16 %v1888_v50  ;;  %v509_v11 = vmul.f32 %v2566_v1, %v1562_v62 }
  0xa6   :  { %1947 = vst [vmem:[%s2678_s6 + $0xd0] sm:$0xff] %v1833_v0   ;;  %v975_v12 = vmax.f32 %v911_v2, 0.0  ;;  %v849_v14 = vadd.f32 %v2599_v34, %v778_v4  ;;  %v1690_v5 = vunpack.c.l.bf16 %v1919_v63  ;;  %v1691_v15 = vunpack.c.h.bf16 %v1919_v63 }
  0xa7   :  { %v912_v16 = vadd.f32 %v848_v9, %v578_v60  ;;  %v510_v17 = vmul.f32 %v2566_v1, %v1563_v10  ;;  %v580_v6 = vadd.f32 %v2578_v18, %v509_v11  ;;  %v1566_v19 = vunpack.c.l.bf16 %v1889_v7 }
  0xa8   :  { %v1838_v21 = vpack.c.bf16 %v975_v12, %v974_v8  ;;  %v913_v22 = vadd.f32 %v849_v14, %v579_v3  ;;  %v779_v23 = vmul.f32 %v2584_v13, %v1690_v5  ;;  %v780_v24 = vmul.f32 %v2584_v13, %v1691_v15 }
  0xa9   :  { %v976_v26 = vmax.f32 %v912_v16, 0.0  ;;  %v581_v27 = vadd.f32 %v2578_v18, %v510_v17  ;;  %v1567_v28 = vunpack.c.h.bf16 %v1889_v7  ;;  %v511_v29 = vmul.f32 %v2566_v1, %v1566_v19 }
  0xaa   :  { %1948 = vst [vmem:[%s2678_s6 + $0xd8] sm:$0xff] %v1838_v21   ;;  %v977_v30 = vmax.f32 %v913_v22, 0.0  ;;  %v850_v31 = vadd.f32 %v2599_v34, %v779_v23  ;;  %v851_v32 = vadd.f32 %v2599_v34, %v780_v24  ;;  %v1694_v33 = vunpack.c.l.bf16 %v1920_v20 }
  0xab   :  { %v512_v35 = vmul.f32 %v2566_v1, %v1567_v28  ;;  %v582_v36 = vadd.f32 %v2578_v18, %v511_v29  ;;  %v1695_v37 = vunpack.c.h.bf16 %v1920_v20  ;;  %v1570_v38 = vunpack.c.l.bf16 %v1890_v25 }
  0xac   :  { %v1843_v40 = vpack.c.bf16 %v977_v30, %v976_v26  ;;  %v914_v41 = vadd.f32 %v850_v31, %v580_v6  ;;  %v915_v42 = vadd.f32 %v851_v32, %v581_v27  ;;  %v781_v43 = vmul.f32 %v2584_v13, %v1694_v33 }
  0xad   :  { %v583_v44 = vadd.f32 %v2578_v18, %v512_v35  ;;  %v782_v45 = vmul.f32 %v2584_v13, %v1695_v37  ;;  %v1571_v46 = vunpack.c.h.bf16 %v1890_v25  ;;  %v513_v47 = vmul.f32 %v2566_v1, %v1570_v38 }
  0xae   :  { %1949 = vst [vmem:[%s2678_s6 + $0xe0] sm:$0xff] %v1843_v40   ;;  %v978_v48 = vmax.f32 %v914_v41, 0.0  ;;  %v979_v49 = vmax.f32 %v915_v42, 0.0  ;;  %v852_v50 = vadd.f32 %v2599_v34, %v781_v43  ;;  %v1698_v51 = vunpack.c.l.bf16 %v1921_v39 }
  0xaf   :  { %v853_v52 = vadd.f32 %v2599_v34, %v782_v45  ;;  %v514_v53 = vmul.f32 %v2566_v1, %v1571_v46  ;;  %v1699_v54 = vunpack.c.h.bf16 %v1921_v39  ;;  %v584_v57 = vadd.f32 %v2578_v18, %v513_v47 }
  0xb0   :  { %v1848_v55 = vpack.c.bf16 %v979_v49, %v978_v48  ;;  %v916_v56 = vadd.f32 %v852_v50, %v582_v36  ;;  %v783_v58 = vmul.f32 %v2584_v13, %v1698_v51 }
  0xb1   :  { %v917_v59 = vadd.f32 %v853_v52, %v583_v44  ;;  %v585_v60 = vadd.f32 %v2578_v18, %v514_v53  ;;  %v784_v61 = vmul.f32 %v2584_v13, %v1699_v54 }
  0xb2   :  { %1950 = vst [vmem:[%s2678_s6 + $0xe8] sm:$0xff] %v1848_v55   ;;  %v980_v62 = vmax.f32 %v916_v56, 0.0  ;;  %v854_v63 = vadd.f32 %v2599_v34, %v783_v58 }
  0xb3   :  { %v981_v1 = vmax.f32 %v917_v59, 0.0  ;;  %v855_v0 = vadd.f32 %v2599_v34, %v784_v61 }
  0xb4   :  { %v918_v2 = vadd.f32 %v854_v63, %v584_v57 }
  0xb5   :  { %v1853_v3 = vpack.c.bf16 %v981_v1, %v980_v62  ;;  %v919_v4 = vadd.f32 %v855_v0, %v585_v60 }
  0xb6   :  { %v982_v7 = vmax.f32 %v918_v2, 0.0 }
  0xb7   :  { %1951 = vst [vmem:[%s2678_s6 + $0xf0] sm:$0xff] %v1853_v3   ;;  %v983_v18 = vmax.f32 %v919_v4, 0.0 }
  0xb9   :  { %v1858_v13 = vpack.c.bf16 %v983_v18, %v982_v7 }
  0xbb   :  { %1952 = vst [vmem:[%s2678_s6 + $0xf8] sm:$0xff] %v1858_v13  }

// kernel: bottleneck_forward.4
= control target key start
LH: loop header
LB: loop body
LE: loop exit
PB: predicated region body
PF: predicated region fallthrough
CT: control target
= control target key end

     0   :  { %v1891_v1 = vmov 0   ;;  %s2703_s1 = inlined_call_operand.vmem [shape: bf16[128,256], index: 1, kind: input, shape index: {}]   ;;  %s2704_s0 = inlined_call_operand.vmem [shape: bf16[512,128], index: 0, kind: input, shape index: {}]   ;;  %s2705_s2 = inlined_call_operand.vmem [shape: bf16[512,256], index: 2, kind: output, shape index: {0}]   ;;  %s2706_s3 = inlined_call_operand.vmem [shape: f32[1,256], index: 3, kind: output, shape index: {1}]   ;;  %s2707_s4 = inlined_call_operand.vmem [shape: f32[1,256], index: 4, kind: output, shape index: {2}]  }
   0x1   :  { %v1835_v0 = vld [vmem:[%s2703_s1 + $0x4] ss:$8 sps:$4 sm:$0xff]   ;;  %409 = vmatprep.mubr.bf16.mxu0 %v1891_v1  ;;  %569 = vmatprep.mubr.bf16.mxu1 %v1891_v1  ;;  %v1837_v2 = vld [vmem:[%s2703_s1] ss:$8 sps:$4 sm:$0xff]   ;;  %v1838_v3 = vld [vmem:[%s2703_s1 + $0x14] ss:$8 sps:$4 sm:$0xff]  }
   0x2   :  { %377 = vmatprep.subr.bf16.mxu0 %v1835_v0  ;;  %1816 = vmatprep.subr.bf16.mxu1 %v1835_v0  ;;  %v1840_v4 = vld [vmem:[%s2703_s1 + $0x10] ss:$8 sps:$4 sm:$0xff]   ;;  %v1841_v5 = vld [vmem:[%s2703_s1 + $0x24] ss:$8 sps:$4 sm:$0xff]   ;;  %v1843_v6 = vld [vmem:[%s2703_s1 + $0x20] ss:$8 sps:$4 sm:$0xff]  }
   0x3   :  { %378 = vmatpush1.bf16.msra.mxu0 %v1837_v2  ;;  %1824 = vmatpush1.bf16.msra.mxu1 %v1837_v2  ;;  %v1844_v7 = vld [vmem:[%s2703_s1 + $0x34] ss:$8 sps:$4 sm:$0xff]   ;;  %v1846_v8 = vld [vmem:[%s2703_s1 + $0x30] ss:$8 sps:$4 sm:$0xff]   ;;  %v1847_v9 = vld [vmem:[%s2703_s1 + $0x44] ss:$8 sps:$4 sm:$0xff]  }
   0x4   :  { %379 = vmatprep.subr.bf16.mxu0 %v1838_v3  ;;  %1817 = vmatprep.subr.bf16.mxu1 %v1838_v3  ;;  %v1849_v10 = vld [vmem:[%s2703_s1 + $0x40] ss:$8 sps:$4 sm:$0xff]   ;;  %v1850_v11 = vld [vmem:[%s2703_s1 + $0x54] ss:$8 sps:$4 sm:$0xff]   ;;  %v1852_v12 = vld [vmem:[%s2703_s1 + $0x50] ss:$8 sps:$4 sm:$0xff]  }
   0x5   :  { %v1853_v13 = vld [vmem:[%s2703_s1 + $0x64] ss:$8 sps:$4 sm:$0xff]   ;;  %v1855_v14 = vld [vmem:[%s2703_s1 + $0x60] ss:$8 sps:$4 sm:$0xff]   ;;  %v1856_v15 = vld [vmem:[%s2703_s1 + $0x74] ss:$8 sps:$4 sm:$0xff]  }
   0x6   :  { %v1858_v16 = vld [vmem:[%s2703_s1 + $0x70] ss:$8 sps:$4 sm:$0xff]   ;;  %v1859_v17 = vld [vmem:[%s2704_s0] sm:$0xff]   ;;  %v1860_v19 = vld [vmem:[%s2704_s0 + $0x8] sm:$0xff]  }
   0x7   :  { %380 = vmatpush1.bf16.msra.mxu0 %v1840_v4  ;;  %1825 = vmatpush1.bf16.msra.mxu1 %v1840_v4  ;;  %v1867_v18 = vld [vmem:[%s2704_s0 + $0x80] sm:$0xff]   ;;  %v1869_v20 = vld [vmem:[%s2704_s0 + $0x88] sm:$0xff]   ;;  %v1861_v21 = vld [vmem:[%s2704_s0 + $0x10] sm:$0xff]  }
   0x8   :  { %381 = vmatprep.subr.bf16.mxu0 %v1841_v5  ;;  %1818 = vmatprep.subr.bf16.mxu1 %v1841_v5  ;;  %v1871_v22 = vld [vmem:[%s2704_s0 + $0x90] sm:$0xff]   ;;  %v1862_v23 = vld [vmem:[%s2704_s0 + $0x18] sm:$0xff]   ;;  %v1863_v25 = vld [vmem:[%s2704_s0 + $0x20] sm:$0xff]  }
   0x9   :  { %v1873_v24 = vld [vmem:[%s2704_s0 + $0x98] sm:$0xff]   ;;  %v1875_v26 = vld [vmem:[%s2704_s0 + $0xa0] sm:$0xff]   ;;  %v1864_v27 = vld [vmem:[%s2704_s0 + $0x28] sm:$0xff]  }
   0xa   :  { %v1877_v28 = vld [vmem:[%s2704_s0 + $0xa8] sm:$0xff]   ;;  %v1865_v29 = vld [vmem:[%s2704_s0 + $0x30] sm:$0xff]   ;;  %v1866_v31 = vld [vmem:[%s2704_s0 + $0x38] sm:$0xff]  }
   0xb   :  { %382 = vmatpush1.bf16.msra.mxu0 %v1843_v6  ;;  %1826 = vmatpush1.bf16.msra.mxu1 %v1843_v6  ;;  %v1879_v30 = vld [vmem:[%s2704_s0 + $0xb0] sm:$0xff]   ;;  %v1881_v32 = vld [vmem:[%s2704_s0 + $0xb8] sm:$0xff]   ;;  %v1868_v33 = vld [vmem:[%s2704_s0 + $0x40] sm:$0xff]  }
   0xc   :  { %383 = vmatprep.subr.bf16.mxu0 %v1844_v7  ;;  %1819 = vmatprep.subr.bf16.mxu1 %v1844_v7  ;;  %v1883_v34 = vld [vmem:[%s2704_s0 + $0xc0] sm:$0xff]   ;;  %v1870_v35 = vld [vmem:[%s2704_s0 + $0x48] sm:$0xff]   ;;  %v1872_v37 = vld [vmem:[%s2704_s0 + $0x50] sm:$0xff]  }
   0xd   :  { %v1884_v36 = vld [vmem:[%s2704_s0 + $0xc8] sm:$0xff]   ;;  %v1885_v38 = vld [vmem:[%s2704_s0 + $0xd0] sm:$0xff]   ;;  %v1874_v39 = vld [vmem:[%s2704_s0 + $0x58] sm:$0xff]  }
   0xe   :  { %v1886_v40 = vld [vmem:[%s2704_s0 + $0xd8] sm:$0xff]   ;;  %v1876_v41 = vld [vmem:[%s2704_s0 + $0x60] sm:$0xff]   ;;  %v1878_v43 = vld [vmem:[%s2704_s0 + $0x68] sm:$0xff]  }
   0xf   :  { %384 = vmatpush1.bf16.msra.mxu0 %v1846_v8  ;;  %1827 = vmatpush1.bf16.msra.mxu1 %v1846_v8  ;;  %v1887_v42 = vld [vmem:[%s2704_s0 + $0xe0] sm:$0xff]   ;;  %v1888_v44 = vld [vmem:[%s2704_s0 + $0xe8] sm:$0xff]   ;;  %v1880_v45 = vld [vmem:[%s2704_s0 + $0x70] sm:$0xff]  }
  0x10   :  { %385 = vmatprep.subr.bf16.mxu0 %v1847_v9  ;;  %1820 = vmatprep.subr.bf16.mxu1 %v1847_v9  ;;  %v1889_v46 = vld [vmem:[%s2704_s0 + $0xf0] sm:$0xff]   ;;  %v1882_v47 = vld [vmem:[%s2704_s0 + $0x78] sm:$0xff]  }
  0x11   :  { %v1890_v48 = vld [vmem:[%s2704_s0 + $0xf8] sm:$0xff]  }
  0x13   :  { %386 = vmatpush1.bf16.msra.mxu0 %v1849_v10  ;;  %1828 = vmatpush1.bf16.msra.mxu1 %v1849_v10 }
  0x14   :  { %387 = vmatprep.subr.bf16.mxu0 %v1850_v11  ;;  %1821 = vmatprep.subr.bf16.mxu1 %v1850_v11 }
  0x17   :  { %388 = vmatpush1.bf16.msra.mxu0 %v1852_v12  ;;  %1829 = vmatpush1.bf16.msra.mxu1 %v1852_v12 }
  0x18   :  { %389 = vmatprep.subr.bf16.mxu0 %v1853_v13  ;;  %1822 = vmatprep.subr.bf16.mxu1 %v1853_v13 }
  0x1b   :  { %390 = vmatpush1.bf16.msra.mxu0 %v1855_v14  ;;  %1830 = vmatpush1.bf16.msra.mxu1 %v1855_v14 }
  0x1c   :  { %391 = vmatprep.subr.bf16.mxu0 %v1856_v15  ;;  %1823 = vmatprep.subr.bf16.mxu1 %v1856_v15 }
  0x1f   :  { %392 = vmatpush1.bf16.msra.mxu0 %v1858_v16  ;;  %1831 = vmatpush1.bf16.msra.mxu1 %v1858_v16 }
  0x22   :  { %410 = vmatmul.mubr.bf16.vlgmr.msra.gmra.mrb[0].mxu0 %v1859_v17  ;;  %570 = vmatmul.mubr.bf16.vlgmr.msra.gmra.mrb[0].mxu1 %v1867_v18 }
  0x23   :  { %419 = vmatprep.mubr.bf16.mxu0 %v1891_v1  ;;  %579 = vmatprep.mubr.bf16.mxu1 %v1891_v1 }
  0x2a   :  { %420 = vmatmul.mubr.bf16.gmra.mrb[4].mxu0 %v1860_v19  ;;  %580 = vmatmul.mubr.bf16.gmra.mrb[4].mxu1 %v1869_v20 }
  0x2b   :  { %429 = vmatprep.mubr.bf16.mxu0 %v1891_v1  ;;  %589 = vmatprep.mubr.bf16.mxu1 %v1891_v1 }
  0x32   :  { %430 = vmatmul.mubr.bf16.gmra.mrb[8].mxu0 %v1861_v21  ;;  %590 = vmatmul.mubr.bf16.gmra.mrb[8].mxu1 %v1871_v22 }
  0x33   :  { %439 = vmatprep.mubr.bf16.mxu0 %v1891_v1  ;;  %599 = vmatprep.mubr.bf16.mxu1 %v1891_v1 }
  0x3a   :  { %440 = vmatmul.mubr.bf16.gmra.mrb[12].mxu0 %v1862_v23  ;;  %600 = vmatmul.mubr.bf16.gmra.mrb[12].mxu1 %v1873_v24 }
  0x3b   :  { %449 = vmatprep.mubr.bf16.mxu0 %v1891_v1  ;;  %609 = vmatprep.mubr.bf16.mxu1 %v1891_v1 }
  0x42   :  { %450 = vmatmul.mubr.bf16.gmra.mrb[16].mxu0 %v1863_v25  ;;  %610 = vmatmul.mubr.bf16.gmra.mrb[16].mxu1 %v1875_v26 }
  0x43   :  { %459 = vmatprep.mubr.bf16.mxu0 %v1891_v1  ;;  %619 = vmatprep.mubr.bf16.mxu1 %v1891_v1 }
  0x4a   :  { %460 = vmatmul.mubr.bf16.gmra.mrb[20].mxu0 %v1864_v27  ;;  %620 = vmatmul.mubr.bf16.gmra.mrb[20].mxu1 %v1877_v28 }
  0x4b   :  { %469 = vmatprep.mubr.bf16.mxu0 %v1891_v1  ;;  %629 = vmatprep.mubr.bf16.mxu1 %v1891_v1 }
  0x52   :  { %470 = vmatmul.mubr.bf16.gmra.mrb[24].mxu0 %v1865_v29  ;;  %630 = vmatmul.mubr.bf16.gmra.mrb[24].mxu1 %v1879_v30 }
  0x53   :  { %479 = vmatprep.mubr.bf16.mxu0 %v1891_v1  ;;  %639 = vmatprep.mubr.bf16.mxu1 %v1891_v1 }
  0x5a   :  { %480 = vmatmul.mubr.bf16.gmra.mrb[28].mxu0 %v1866_v31  ;;  %640 = vmatmul.mubr.bf16.gmra.mrb[28].mxu1 %v1881_v32 }
  0x5b   :  { %489 = vmatprep.mubr.bf16.mxu0 %v1891_v1  ;;  %649 = vmatprep.mubr.bf16.mxu1 %v1891_v1 }
  0x62   :  { %490 = vmatmul.mubr.bf16.gmra.mrb[32].mxu0 %v1868_v33  ;;  %650 = vmatmul.mubr.bf16.gmra.mrb[32].mxu1 %v1883_v34 }
  0x63   :  { %499 = vmatprep.mubr.bf16.mxu0 %v1891_v1  ;;  %659 = vmatprep.mubr.bf16.mxu1 %v1891_v1 }
  0x6a   :  { %500 = vmatmul.mubr.bf16.gmra.mrb[36].mxu0 %v1870_v35  ;;  %660 = vmatmul.mubr.bf16.gmra.mrb[36].mxu1 %v1884_v36 }
  0x6b   :  { %509 = vmatprep.mubr.bf16.mxu0 %v1891_v1  ;;  %669 = vmatprep.mubr.bf16.mxu1 %v1891_v1 }
  0x72   :  { %510 = vmatmul.mubr.bf16.gmra.mrb[40].mxu0 %v1872_v37  ;;  %670 = vmatmul.mubr.bf16.gmra.mrb[40].mxu1 %v1885_v38 }
  0x73   :  { %519 = vmatprep.mubr.bf16.mxu0 %v1891_v1  ;;  %679 = vmatprep.mubr.bf16.mxu1 %v1891_v1 }
  0x7a   :  { %520 = vmatmul.mubr.bf16.gmra.mrb[44].mxu0 %v1874_v39  ;;  %680 = vmatmul.mubr.bf16.gmra.mrb[44].mxu1 %v1886_v40 }
  0x7b   :  { %529 = vmatprep.mubr.bf16.mxu0 %v1891_v1  ;;  %689 = vmatprep.mubr.bf16.mxu1 %v1891_v1 }
  0x82   :  { %530 = vmatmul.mubr.bf16.gmra.mrb[48].mxu0 %v1876_v41  ;;  %690 = vmatmul.mubr.bf16.gmra.mrb[48].mxu1 %v1887_v42 }
  0x83   :  { %539 = vmatprep.mubr.bf16.mxu0 %v1891_v1  ;;  %699 = vmatprep.mubr.bf16.mxu1 %v1891_v1 }
  0x8a   :  { %540 = vmatmul.mubr.bf16.gmra.mrb[52].mxu0 %v1878_v43  ;;  %700 = vmatmul.mubr.bf16.gmra.mrb[52].mxu1 %v1888_v44 }
  0x8b   :  { %549 = vmatprep.mubr.bf16.mxu0 %v1891_v1  ;;  %709 = vmatprep.mubr.bf16.mxu1 %v1891_v1 }
  0x92   :  { %550 = vmatmul.mubr.bf16.gmra.mrb[56].mxu0 %v1880_v45  ;;  %710 = vmatmul.mubr.bf16.gmra.mrb[56].mxu1 %v1889_v46 }
  0x93   :  { %559 = vmatprep.mubr.bf16.mxu0 %v1891_v1  ;;  %719 = vmatprep.mubr.bf16.mxu1 %v1891_v1 }
  0x9a   :  { %560 = vmatmul.mubr.bf16.gmra.mrb[60].mxu0 %v1882_v47  ;;  %720 = vmatmul.mubr.bf16.gmra.mrb[60].mxu1 %v1890_v48 }
  0xf5   :  { %v411_v49 = vpop.f32.mrb[0].mxu0  ;;  %v2095_v50 = vpop.f32.mrb[0].mxu1 }
  0xf6   :  { %v413_v51 = vpop.f32.mrb[1].mxu0  ;;  %v2097_v52 = vpop.f32.mrb[1].mxu1  ;;  %v1342_v57 = vmul.f32 %v411_v49, %v411_v49 }
  0xf7   :  { %v1752_v53 = vpack.c.bf16 %v413_v51, %v411_v49  ;;  %v415_v54 = vpop.f32.mrb[2].mxu0  ;;  %v1784_v55 = vpack.c.bf16 %v2097_v52, %v2095_v50  ;;  %v2101_v56 = vpop.f32.mrb[2].mxu1  ;;  %v1343_v58 = vmul.f32 %v413_v51, %v413_v51 }
  0xf8   :  { %v1179_v59 = vadd.f32 %v415_v54, %v411_v49  ;;  %v1344_v60 = vmul.f32 %v415_v54, %v415_v54  ;;  %v417_v61 = vpop.f32.mrb[3].mxu0  ;;  %v2103_v62 = vpop.f32.mrb[3].mxu1 }
  0xf9   :  { %1114 = vst [vmem:[%s2705_s2] sm:$0xff] %v1752_v53  ;;  %v1753_v63 = vpack.c.bf16 %v417_v61, %v415_v54  ;;  %v1248_v0 = vadd.f32 %v417_v61, %v413_v51  ;;  %v1345_v1 = vmul.f32 %v417_v61, %v417_v61  ;;  %1146 = vst [vmem:[%s2705_s2 + $0x100] sm:$0xff] %v1784_v55 }
  0xfa   :  { %v1785_v2 = vpack.c.bf16 %v2103_v62, %v2101_v56  ;;  %v1470_v3 = vadd.f32 %v1344_v60, %v1342_v57 }
  0xfb   :  { %1115 = vst [vmem:[%s2705_s2 + $0x8] sm:$0xff] %v1753_v63  ;;  %v1539_v4 = vadd.f32 %v1345_v1, %v1343_v58 }
  0xfc   :  { %1147 = vst [vmem:[%s2705_s2 + $0x108] sm:$0xff] %v1785_v2 }
  0xfd   :  { %v421_v5 = vpop.f32.mrb[4].mxu0  ;;  %v2119_v6 = vpop.f32.mrb[4].mxu1 }
  0xfe   :  { %v1180_v7 = vadd.f32 %v1179_v59, %v421_v5  ;;  %v1346_v8 = vmul.f32 %v421_v5, %v421_v5  ;;  %v423_v9 = vpop.f32.mrb[5].mxu0  ;;  %v2121_v10 = vpop.f32.mrb[5].mxu1 }
  0xff   :  { %v1754_v11 = vpack.c.bf16 %v423_v9, %v421_v5  ;;  %v1249_v12 = vadd.f32 %v1248_v0, %v423_v9  ;;  %v1347_v13 = vmul.f32 %v423_v9, %v423_v9  ;;  %v425_v14 = vpop.f32.mrb[6].mxu0  ;;  %v1786_v15 = vpack.c.bf16 %v2121_v10, %v2119_v6  ;;  %v2125_v16 = vpop.f32.mrb[6].mxu1 }
 0x100   :  { %v1471_v17 = vadd.f32 %v1470_v3, %v1346_v8  ;;  %v1181_v18 = vadd.f32 %v1180_v7, %v425_v14  ;;  %v1348_v19 = vmul.f32 %v425_v14, %v425_v14  ;;  %v427_v20 = vpop.f32.mrb[7].mxu0  ;;  %v2127_v21 = vpop.f32.mrb[7].mxu1 }
 0x101   :  { %1116 = vst [vmem:[%s2705_s2 + $0x10] sm:$0xff] %v1754_v11  ;;  %v1540_v22 = vadd.f32 %v1539_v4, %v1347_v13  ;;  %v1755_v23 = vpack.c.bf16 %v427_v20, %v425_v14  ;;  %v1250_v24 = vadd.f32 %v1249_v12, %v427_v20  ;;  %v1349_v25 = vmul.f32 %v427_v20, %v427_v20 }
 0x102   :  { %1148 = vst [vmem:[%s2705_s2 + $0x110] sm:$0xff] %v1786_v15  ;;  %v1472_v26 = vadd.f32 %v1471_v17, %v1348_v19  ;;  %v1787_v27 = vpack.c.bf16 %v2127_v21, %v2125_v16 }
 0x103   :  { %1117 = vst [vmem:[%s2705_s2 + $0x18] sm:$0xff] %v1755_v23  ;;  %v1541_v28 = vadd.f32 %v1540_v22, %v1349_v25 }
 0x104   :  { %1149 = vst [vmem:[%s2705_s2 + $0x118] sm:$0xff] %v1787_v27 }
 0x105   :  { %v431_v29 = vpop.f32.mrb[8].mxu0  ;;  %v2143_v30 = vpop.f32.mrb[8].mxu1 }
 0x106   :  { %v1182_v31 = vadd.f32 %v1181_v18, %v431_v29  ;;  %v1350_v32 = vmul.f32 %v431_v29, %v431_v29  ;;  %v433_v33 = vpop.f32.mrb[9].mxu0  ;;  %v2145_v34 = vpop.f32.mrb[9].mxu1 }
 0x107   :  { %v1756_v35 = vpack.c.bf16 %v433_v33, %v431_v29  ;;  %v1251_v36 = vadd.f32 %v1250_v24, %v433_v33  ;;  %v1351_v37 = vmul.f32 %v433_v33, %v433_v33  ;;  %v435_v38 = vpop.f32.mrb[10].mxu0  ;;  %v1788_v39 = vpack.c.bf16 %v2145_v34, %v2143_v30  ;;  %v2149_v40 = vpop.f32.mrb[10].mxu1 }
 0x108   :  { %v1473_v41 = vadd.f32 %v1472_v26, %v1350_v32  ;;  %v1183_v42 = vadd.f32 %v1182_v31, %v435_v38  ;;  %v1352_v43 = vmul.f32 %v435_v38, %v435_v38  ;;  %v437_v44 = vpop.f32.mrb[11].mxu0  ;;  %v2151_v45 = vpop.f32.mrb[11].mxu1 }
 0x109   :  { %1118 = vst [vmem:[%s2705_s2 + $0x20] sm:$0xff] %v1756_v35  ;;  %v1542_v46 = vadd.f32 %v1541_v28, %v1351_v37  ;;  %v1757_v47 = vpack.c.bf16 %v437_v44, %v435_v38  ;;  %v1252_v48 = vadd.f32 %v1251_v36, %v437_v44  ;;  %v1353_v49 = vmul.f32 %v437_v44, %v437_v44 }
 0x10a   :  { %1150 = vst [vmem:[%s2705_s2 + $0x120] sm:$0xff] %v1788_v39  ;;  %v1474_v51 = vadd.f32 %v1473_v41, %v1352_v43  ;;  %v1789_v53 = vpack.c.bf16 %v2151_v45, %v2149_v40 }
 0x10b   :  { %1119 = vst [vmem:[%s2705_s2 + $0x28] sm:$0xff] %v1757_v47  ;;  %v1543_v54 = vadd.f32 %v1542_v46, %v1353_v49 }
 0x10c   :  { %1151 = vst [vmem:[%s2705_s2 + $0x128] sm:$0xff] %v1789_v53 }
 0x10d   :  { %v441_v55 = vpop.f32.mrb[12].mxu0  ;;  %v2167_v57 = vpop.f32.mrb[12].mxu1 }
 0x10e   :  { %v1184_v58 = vadd.f32 %v1183_v42, %v441_v55  ;;  %v1354_v59 = vmul.f32 %v441_v55, %v441_v55  ;;  %v443_v60 = vpop.f32.mrb[13].mxu0  ;;  %v2169_v61 = vpop.f32.mrb[13].mxu1 }
 0x10f   :  { %v1758_v63 = vpack.c.bf16 %v443_v60, %v441_v55  ;;  %v1253_v0 = vadd.f32 %v1252_v48, %v443_v60  ;;  %v1355_v1 = vmul.f32 %v443_v60, %v443_v60  ;;  %v445_v2 = vpop.f32.mrb[14].mxu0  ;;  %v1790_v3 = vpack.c.bf16 %v2169_v61, %v2167_v57  ;;  %v2173_v4 = vpop.f32.mrb[14].mxu1 }
 0x110   :  { %v1475_v5 = vadd.f32 %v1474_v51, %v1354_v59  ;;  %v1185_v7 = vadd.f32 %v1184_v58, %v445_v2  ;;  %v1356_v8 = vmul.f32 %v445_v2, %v445_v2  ;;  %v447_v9 = vpop.f32.mrb[15].mxu0  ;;  %v2175_v11 = vpop.f32.mrb[15].mxu1 }
 0x111   :  { %1120 = vst [vmem:[%s2705_s2 + $0x30] sm:$0xff] %v1758_v63  ;;  %v1544_v12 = vadd.f32 %v1543_v54, %v1355_v1  ;;  %v1759_v13 = vpack.c.bf16 %v447_v9, %v445_v2  ;;  %v1254_v14 = vadd.f32 %v1253_v0, %v447_v9  ;;  %v1357_v15 = vmul.f32 %v447_v9, %v447_v9 }
 0x112   :  { %1152 = vst [vmem:[%s2705_s2 + $0x130] sm:$0xff] %v1790_v3  ;;  %v1476_v17 = vadd.f32 %v1475_v5, %v1356_v8  ;;  %v1791_v18 = vpack.c.bf16 %v2175_v11, %v2173_v4 }
 0x113   :  { %1121 = vst [vmem:[%s2705_s2 + $0x38] sm:$0xff] %v1759_v13  ;;  %v1545_v19 = vadd.f32 %v1544_v12, %v1357_v15 }
 0x114   :  { %1153 = vst [vmem:[%s2705_s2 + $0x138] sm:$0xff] %v1791_v18 }
 0x115   :  { %v451_v20 = vpop.f32.mrb[16].mxu0  ;;  %v2191_v22 = vpop.f32.mrb[16].mxu1 }
 0x116   :  { %v1186_v23 = vadd.f32 %v1185_v7, %v451_v20  ;;  %v1358_v24 = vmul.f32 %v451_v20, %v451_v20  ;;  %v453_v25 = vpop.f32.mrb[17].mxu0  ;;  %v2193_v26 = vpop.f32.mrb[17].mxu1 }
 0x117   :  { %v1760_v27 = vpack.c.bf16 %v453_v25, %v451_v20  ;;  %v1255_v28 = vadd.f32 %v1254_v14, %v453_v25  ;;  %v1359_v29 = vmul.f32 %v453_v25, %v453_v25  ;;  %v455_v31 = vpop.f32.mrb[18].mxu0  ;;  %v1792_v32 = vpack.c.bf16 %v2193_v26, %v2191_v22  ;;  %v2197_v33 = vpop.f32.mrb[18].mxu1 }
 0x118   :  { %v1477_v35 = vadd.f32 %v1476_v17, %v1358_v24  ;;  %v1187_v36 = vadd.f32 %v1186_v23, %v455_v31  ;;  %v1360_v37 = vmul.f32 %v455_v31, %v455_v31  ;;  %v457_v38 = vpop.f32.mrb[19].mxu0  ;;  %v2199_v39 = vpop.f32.mrb[19].mxu1 }
 0x119   :  { %1122 = vst [vmem:[%s2705_s2 + $0x40] sm:$0xff] %v1760_v27  ;;  %v1546_v41 = vadd.f32 %v1545_v19, %v1359_v29  ;;  %v1761_v42 = vpack.c.bf16 %v457_v38, %v455_v31  ;;  %v1256_v43 = vadd.f32 %v1255_v28, %v457_v38  ;;  %v1361_v44 = vmul.f32 %v457_v38, %v457_v38 }
 0x11a   :  { %1154 = vst [vmem:[%s2705_s2 + $0x140] sm:$0xff] %v1792_v32  ;;  %v1478_v46 = vadd.f32 %v1477_v35, %v1360_v37  ;;  %v1793_v47 = vpack.c.bf16 %v2199_v39, %v2197_v33 }
 0x11b   :  { %1123 = vst [vmem:[%s2705_s2 + $0x48] sm:$0xff] %v1761_v42  ;;  %v1547_v48 = vadd.f32 %v1546_v41, %v1361_v44 }
 0x11c   :  { %1155 = vst [vmem:[%s2705_s2 + $0x148] sm:$0xff] %v1793_v47 }
 0x11d   :  { %v461_v49 = vpop.f32.mrb[20].mxu0  ;;  %v2215_v51 = vpop.f32.mrb[20].mxu1 }
 0x11e   :  { %v1188_v53 = vadd.f32 %v1187_v36, %v461_v49  ;;  %v1362_v54 = vmul.f32 %v461_v49, %v461_v49  ;;  %v463_v55 = vpop.f32.mrb[21].mxu0  ;;  %v2217_v58 = vpop.f32.mrb[21].mxu1 }
 0x11f   :  { %v1762_v59 = vpack.c.bf16 %v463_v55, %v461_v49  ;;  %v1257_v60 = vadd.f32 %v1256_v43, %v463_v55  ;;  %v1363_v63 = vmul.f32 %v463_v55, %v463_v55  ;;  %v465_v0 = vpop.f32.mrb[22].mxu0  ;;  %v1794_v1 = vpack.c.bf16 %v2217_v58, %v2215_v51  ;;  %v2221_v2 = vpop.f32.mrb[22].mxu1 }
 0x120   :  { %v1479_v3 = vadd.f32 %v1478_v46, %v1362_v54  ;;  %v1189_v5 = vadd.f32 %v1188_v53, %v465_v0  ;;  %v1364_v7 = vmul.f32 %v465_v0, %v465_v0  ;;  %v467_v8 = vpop.f32.mrb[23].mxu0  ;;  %v2223_v9 = vpop.f32.mrb[23].mxu1 }
 0x121   :  { %1124 = vst [vmem:[%s2705_s2 + $0x50] sm:$0xff] %v1762_v59  ;;  %v1548_v12 = vadd.f32 %v1547_v48, %v1363_v63  ;;  %v1763_v13 = vpack.c.bf16 %v467_v8, %v465_v0  ;;  %v1258_v14 = vadd.f32 %v1257_v60, %v467_v8  ;;  %v1365_v15 = vmul.f32 %v467_v8, %v467_v8 }
 0x122   :  { %1156 = vst [vmem:[%s2705_s2 + $0x150] sm:$0xff] %v1794_v1  ;;  %v1480_v17 = vadd.f32 %v1479_v3, %v1364_v7  ;;  %v1795_v18 = vpack.c.bf16 %v2223_v9, %v2221_v2 }
 0x123   :  { %1125 = vst [vmem:[%s2705_s2 + $0x58] sm:$0xff] %v1763_v13  ;;  %v1549_v19 = vadd.f32 %v1548_v12, %v1365_v15 }
 0x124   :  { %1157 = vst [vmem:[%s2705_s2 + $0x158] sm:$0xff] %v1795_v18 }
 0x125   :  { %v471_v20 = vpop.f32.mrb[24].mxu0  ;;  %v2239_v23 = vpop.f32.mrb[24].mxu1 }
 0x126   :  { %v1190_v24 = vadd.f32 %v1189_v5, %v471_v20  ;;  %v1366_v25 = vmul.f32 %v471_v20, %v471_v20  ;;  %v473_v27 = vpop.f32.mrb[25].mxu0  ;;  %v2241_v28 = vpop.f32.mrb[25].mxu1 }
 0x127   :  { %v1764_v29 = vpack.c.bf16 %v473_v27, %v471_v20  ;;  %v1259_v31 = vadd.f32 %v1258_v14, %v473_v27  ;;  %v1367_v32 = vmul.f32 %v473_v27, %v473_v27  ;;  %v475_v35 = vpop.f32.mrb[26].mxu0  ;;  %v1796_v36 = vpack.c.bf16 %v2241_v28, %v2239_v23  ;;  %v2245_v37 = vpop.f32.mrb[26].mxu1 }
 0x128   :  { %v1481_v38 = vadd.f32 %v1480_v17, %v1366_v25  ;;  %v1191_v41 = vadd.f32 %v1190_v24, %v475_v35  ;;  %v1368_v42 = vmul.f32 %v475_v35, %v475_v35  ;;  %v477_v43 = vpop.f32.mrb[27].mxu0  ;;  %v2247_v44 = vpop.f32.mrb[27].mxu1 }
 0x129   :  { %1126 = vst [vmem:[%s2705_s2 + $0x60] sm:$0xff] %v1764_v29  ;;  %v1550_v46 = vadd.f32 %v1549_v19, %v1367_v32  ;;  %v1765_v47 = vpack.c.bf16 %v477_v43, %v475_v35  ;;  %v1260_v48 = vadd.f32 %v1259_v31, %v477_v43  ;;  %v1369_v49 = vmul.f32 %v477_v43, %v477_v43 }
 0x12a   :  { %1158 = vst [vmem:[%s2705_s2 + $0x160] sm:$0xff] %v1796_v36  ;;  %v1482_v53 = vadd.f32 %v1481_v38, %v1368_v42  ;;  %v1797_v54 = vpack.c.bf16 %v2247_v44, %v2245_v37 }
 0x12b   :  { %1127 = vst [vmem:[%s2705_s2 + $0x68] sm:$0xff] %v1765_v47  ;;  %v1551_v55 = vadd.f32 %v1550_v46, %v1369_v49 }
 0x12c   :  { %1159 = vst [vmem:[%s2705_s2 + $0x168] sm:$0xff] %v1797_v54 }
 0x12d   :  { %v481_v59 = vpop.f32.mrb[28].mxu0  ;;  %v2263_v60 = vpop.f32.mrb[28].mxu1 }
 0x12e   :  { %v1192_v63 = vadd.f32 %v1191_v41, %v481_v59  ;;  %v1370_v0 = vmul.f32 %v481_v59, %v481_v59  ;;  %v483_v1 = vpop.f32.mrb[29].mxu0  ;;  %v2265_v3 = vpop.f32.mrb[29].mxu1 }
 0x12f   :  { %v1766_v5 = vpack.c.bf16 %v483_v1, %v481_v59  ;;  %v1261_v7 = vadd.f32 %v1260_v48, %v483_v1  ;;  %v1371_v8 = vmul.f32 %v483_v1, %v483_v1  ;;  %v485_v12 = vpop.f32.mrb[30].mxu0  ;;  %v1798_v13 = vpack.c.bf16 %v2265_v3, %v2263_v60  ;;  %v2269_v14 = vpop.f32.mrb[30].mxu1 }
 0x130   :  { %v1483_v15 = vadd.f32 %v1482_v53, %v1370_v0  ;;  %v1193_v17 = vadd.f32 %v1192_v63, %v485_v12  ;;  %v1372_v18 = vmul.f32 %v485_v12, %v485_v12  ;;  %v487_v19 = vpop.f32.mrb[31].mxu0  ;;  %v2271_v20 = vpop.f32.mrb[31].mxu1 }
 0x131   :  { %1128 = vst [vmem:[%s2705_s2 + $0x70] sm:$0xff] %v1766_v5  ;;  %v1552_v24 = vadd.f32 %v1551_v55, %v1371_v8  ;;  %v1767_v25 = vpack.c.bf16 %v487_v19, %v485_v12  ;;  %v1262_v27 = vadd.f32 %v1261_v7, %v487_v19  ;;  %v1373_v29 = vmul.f32 %v487_v19, %v487_v19 }
 0x132   :  { %1160 = vst [vmem:[%s2705_s2 + $0x170] sm:$0xff] %v1798_v13  ;;  %v1484_v31 = vadd.f32 %v1483_v15, %v1372_v18  ;;  %v1799_v32 = vpack.c.bf16 %v2271_v20, %v2269_v14  ;;  %v2708_v19 = vlaneseq }
 0x133   :  { %1129 = vst [vmem:[%s2705_s2 + $0x78] sm:$0xff] %v1767_v25  ;;  %v1553_v35 = vadd.f32 %v1552_v24, %v1373_v29 }
 0x134   :  { %1161 = vst [vmem:[%s2705_s2 + $0x178] sm:$0xff] %v1799_v32  ;;  %vm2314_vm0 = vcmp.lt.s32.totalorder %v2708_v19, 256 }
 0x135   :  { %v491_v36 = vpop.f32.mrb[32].mxu0  ;;  %v2287_v38 = vpop.f32.mrb[32].mxu1 }
 0x136   :  { %v1194_v41 = vadd.f32 %v1193_v17, %v491_v36  ;;  %v1374_v42 = vmul.f32 %v491_v36, %v491_v36  ;;  %v493_v43 = vpop.f32.mrb[33].mxu0  ;;  %v2289_v46 = vpop.f32.mrb[33].mxu1 }
 0x137   :  { %v1768_v47 = vpack.c.bf16 %v493_v43, %v491_v36  ;;  %v1263_v48 = vadd.f32 %v1262_v27, %v493_v43  ;;  %v1375_v49 = vmul.f32 %v493_v43, %v493_v43  ;;  %v495_v53 = vpop.f32.mrb[34].mxu0  ;;  %v1800_v54 = vpack.c.bf16 %v2289_v46, %v2287_v38  ;;  %v2293_v55 = vpop.f32.mrb[34].mxu1 }
 0x138   :  { %v1485_v59 = vadd.f32 %v1484_v31, %v1374_v42  ;;  %v1195_v63 = vadd.f32 %v1194_v41, %v495_v53  ;;  %v1376_v0 = vmul.f32 %v495_v53, %v495_v53  ;;  %v497_v1 = vpop.f32.mrb[35].mxu0  ;;  %v2295_v5 = vpop.f32.mrb[35].mxu1  ;;  %v2747_v27 = vmov 0 }
 0x139   :  { %1130 = vst [vmem:[%s2705_s2 + $0x80] sm:$0xff] %v1768_v47  ;;  %v1554_v7 = vadd.f32 %v1553_v35, %v1375_v49  ;;  %v1769_v8 = vpack.c.bf16 %v497_v1, %v495_v53  ;;  %v1264_v12 = vadd.f32 %v1263_v48, %v497_v1  ;;  %v1377_v13 = vmul.f32 %v497_v1, %v497_v1 }
 0x13a   :  { %1162 = vst [vmem:[%s2705_s2 + $0x180] sm:$0xff] %v1800_v54  ;;  %v1486_v15 = vadd.f32 %v1485_v59, %v1376_v0  ;;  %v1801_v17 = vpack.c.bf16 %v2295_v5, %v2293_v55  ;;  %v2748_v27 = vsel %vm2314_vm0, 4294967295, %v2747_v27  ;;  %v1892_v36 = vmov 0.0  }
 0x13b   :  { %1131 = vst [vmem:[%s2705_s2 + $0x88] sm:$0xff] %v1769_v8  ;;  %v1555_v18 = vadd.f32 %v1554_v7, %v1377_v13  ;;  %2749 = vst [vmem:[#allocation2_spill] sm:$0xff] %v2748_v27 }
 0x13c   :  { %1163 = vst [vmem:[%s2705_s2 + $0x188] sm:$0xff] %v1801_v17  ;;  %23 = vst.msk [vmem:[%s2706_s3] sm:$0x3] %vm2314_vm0, %v1892_v36 }
 0x13d   :  { %v501_v24 = vpop.f32.mrb[36].mxu0  ;;  %v2311_v25 = vpop.f32.mrb[36].mxu1  ;;  %24 = vst.msk [vmem:[%s2707_s4] sm:$0x3] %vm2314_vm0, %v1892_v36 }
 0x13e   :  { %v1196_v29 = vadd.f32 %v1195_v63, %v501_v24  ;;  %v1378_v31 = vmul.f32 %v501_v24, %v501_v24  ;;  %v503_v32 = vpop.f32.mrb[37].mxu0  ;;  %v2318_v35 = vpop.f32.mrb[37].mxu1 }
 0x13f   :  { %v1770_v41 = vpack.c.bf16 %v503_v32, %v501_v24  ;;  %v1265_v42 = vadd.f32 %v1264_v12, %v503_v32  ;;  %v1379_v43 = vmul.f32 %v503_v32, %v503_v32  ;;  %v505_v47 = vpop.f32.mrb[38].mxu0  ;;  %v1802_v48 = vpack.c.bf16 %v2318_v35, %v2311_v25  ;;  %v2327_v49 = vpop.f32.mrb[38].mxu1 }
 0x140   :  { %v1487_v53 = vadd.f32 %v1486_v15, %v1378_v31  ;;  %v1197_v54 = vadd.f32 %v1196_v29, %v505_v47  ;;  %v1380_v59 = vmul.f32 %v505_v47, %v505_v47  ;;  %v507_v63 = vpop.f32.mrb[39].mxu0  ;;  %v2334_v0 = vpop.f32.mrb[39].mxu1 }
 0x141   :  { %1132 = vst [vmem:[%s2705_s2 + $0x90] sm:$0xff] %v1770_v41  ;;  %v1556_v1 = vadd.f32 %v1555_v18, %v1379_v43  ;;  %v1771_v7 = vpack.c.bf16 %v507_v63, %v505_v47  ;;  %v1266_v8 = vadd.f32 %v1265_v42, %v507_v63  ;;  %v1381_v12 = vmul.f32 %v507_v63, %v507_v63 }
 0x142   :  { %1164 = vst [vmem:[%s2705_s2 + $0x190] sm:$0xff] %v1802_v48  ;;  %v1488_v13 = vadd.f32 %v1487_v53, %v1380_v59  ;;  %v1803_v15 = vpack.c.bf16 %v2334_v0, %v2327_v49 }
 0x143   :  { %1133 = vst [vmem:[%s2705_s2 + $0x98] sm:$0xff] %v1771_v7  ;;  %v1557_v17 = vadd.f32 %v1556_v1, %v1381_v12 }
 0x144   :  { %1165 = vst [vmem:[%s2705_s2 + $0x198] sm:$0xff] %v1803_v15 }
 0x145   :  { %v511_v18 = vpop.f32.mrb[40].mxu0  ;;  %v2350_v24 = vpop.f32.mrb[40].mxu1 }
 0x146   :  { %v1198_v29 = vadd.f32 %v1197_v54, %v511_v18  ;;  %v1382_v31 = vmul.f32 %v511_v18, %v511_v18  ;;  %v513_v32 = vpop.f32.mrb[41].mxu0  ;;  %v2352_v36 = vpop.f32.mrb[41].mxu1 }
 0x147   :  { %v1772_v41 = vpack.c.bf16 %v513_v32, %v511_v18  ;;  %v1267_v42 = vadd.f32 %v1266_v8, %v513_v32  ;;  %v1383_v43 = vmul.f32 %v513_v32, %v513_v32  ;;  %v515_v47 = vpop.f32.mrb[42].mxu0  ;;  %v1804_v48 = vpack.c.bf16 %v2352_v36, %v2350_v24  ;;  %v2356_v53 = vpop.f32.mrb[42].mxu1 }
 0x148   :  { %v1489_v59 = vadd.f32 %v1488_v13, %v1382_v31  ;;  %v1199_v63 = vadd.f32 %v1198_v29, %v515_v47  ;;  %v1384_v1 = vmul.f32 %v515_v47, %v515_v47  ;;  %v517_v7 = vpop.f32.mrb[43].mxu0  ;;  %v2358_v12 = vpop.f32.mrb[43].mxu1 }
 0x149   :  { %2750 = vst [vmem:[#allocation3_spill] sm:$0xff] %v2358_v12  ;;  %1134 = vst [vmem:[%s2705_s2 + $0xa0] sm:$0xff] %v1772_v41  ;;  %v1558_v54 = vadd.f32 %v1557_v17, %v1383_v43  ;;  %v1773_v15 = vpack.c.bf16 %v517_v7, %v515_v47  ;;  %v1268_v8 = vadd.f32 %v1267_v42, %v517_v7 }
 0x14a   :  { %v1385_v18 = vmul.f32 %v517_v7, %v517_v7  ;;  %1166 = vst [vmem:[%s2705_s2 + $0x1a0] sm:$0xff] %v1804_v48  ;;  %v1490_v32 = vadd.f32 %v1489_v59, %v1384_v1  ;;  %v1805_v13 = vpack.c.bf16 %v2358_v12, %v2356_v53 }
 0x14b   :  { %1135 = vst [vmem:[%s2705_s2 + $0xa8] sm:$0xff] %v1773_v15 }
 0x14c   :  { %v1559_v29 = vadd.f32 %v1558_v54, %v1385_v18  ;;  %1167 = vst [vmem:[%s2705_s2 + $0x1a8] sm:$0xff] %v1805_v13 }
 0x14d   :  { %v521_v17 = vpop.f32.mrb[44].mxu0  ;;  %v2374_v31 = vpop.f32.mrb[44].mxu1 }
 0x14e   :  { %2751 = vst [vmem:[#allocation4_spill] sm:$0xff] %v2374_v31  ;;  %v1200_v41 = vadd.f32 %v1199_v63, %v521_v17  ;;  %v1386_v42 = vmul.f32 %v521_v17, %v521_v17  ;;  %v523_v43 = vpop.f32.mrb[45].mxu0  ;;  %v2376_v47 = vpop.f32.mrb[45].mxu1 }
 0x14f   :  { %2752 = vst [vmem:[#allocation5_spill] sm:$0xff] %v2376_v47  ;;  %v1774_v48 = vpack.c.bf16 %v523_v43, %v521_v17  ;;  %v1269_v59 = vadd.f32 %v1268_v8, %v523_v43  ;;  %v1387_v1 = vmul.f32 %v523_v43, %v523_v43  ;;  %v525_v7 = vpop.f32.mrb[46].mxu0  ;;  %v1806_v15 = vpack.c.bf16 %v2376_v47, %v2374_v31  ;;  %v2380_v54 = vpop.f32.mrb[46].mxu1 }
 0x150   :  { %2753 = vst [vmem:[#allocation6_spill] sm:$0xff] %v2380_v54  ;;  %v1491_v18 = vadd.f32 %v1490_v32, %v1386_v42  ;;  %v1201_v19 = vadd.f32 %v1200_v41, %v525_v7  ;;  %v1388_v13 = vmul.f32 %v525_v7, %v525_v7  ;;  %v527_v27 = vpop.f32.mrb[47].mxu0  ;;  %v2382_v12 = vpop.f32.mrb[47].mxu1 }
 0x151   :  { %2754 = vst [vmem:[#allocation7_spill] sm:$0xff] %v2382_v12  ;;  %1136 = vst [vmem:[%s2705_s2 + $0xb0] sm:$0xff] %v1774_v48  ;;  %v1560_v63 = vadd.f32 %v1559_v29, %v1387_v1  ;;  %v1775_v17 = vpack.c.bf16 %v527_v27, %v525_v7  ;;  %v1270_v8 = vadd.f32 %v1269_v59, %v527_v27 }
 0x152   :  { %v1389_v43 = vmul.f32 %v527_v27, %v527_v27  ;;  %1168 = vst [vmem:[%s2705_s2 + $0x1b0] sm:$0xff] %v1806_v15  ;;  %v1492_v47 = vadd.f32 %v1491_v18, %v1388_v13  ;;  %v1807_v32 = vpack.c.bf16 %v2382_v12, %v2380_v54 }
 0x153   :  { %1137 = vst [vmem:[%s2705_s2 + $0xb8] sm:$0xff] %v1775_v17 }
 0x154   :  { %v1561_v41 = vadd.f32 %v1560_v63, %v1389_v43  ;;  %1169 = vst [vmem:[%s2705_s2 + $0x1b8] sm:$0xff] %v1807_v32 }
 0x155   :  { %v531_v29 = vpop.f32.mrb[48].mxu0  ;;  %v2398_v42 = vpop.f32.mrb[48].mxu1 }
 0x156   :  { %2755 = vst [vmem:[#allocation8_spill] sm:$0xff] %v2398_v42  ;;  %v1202_v27 = vadd.f32 %v1201_v19, %v531_v29  ;;  %v1390_v48 = vmul.f32 %v531_v29, %v531_v29  ;;  %v533_v59 = vpop.f32.mrb[49].mxu0  ;;  %v2400_v1 = vpop.f32.mrb[49].mxu1 }
 0x157   :  { %2756 = vst [vmem:[#allocation9_spill] sm:$0xff] %v2400_v1  ;;  %v1776_v7 = vpack.c.bf16 %v533_v59, %v531_v29  ;;  %v1271_v15 = vadd.f32 %v1270_v8, %v533_v59  ;;  %v1391_v18 = vmul.f32 %v533_v59, %v533_v59  ;;  %v535_v13 = vpop.f32.mrb[50].mxu0  ;;  %v1808_v17 = vpack.c.bf16 %v2400_v1, %v2398_v42  ;;  %v2404_v63 = vpop.f32.mrb[50].mxu1 }
 0x158   :  { %2757 = vst [vmem:[#allocation10_spill] sm:$0xff] %v2404_v63  ;;  %v1493_v43 = vadd.f32 %v1492_v47, %v1390_v48  ;;  %v1203_v12 = vadd.f32 %v1202_v27, %v535_v13  ;;  %v1392_v32 = vmul.f32 %v535_v13, %v535_v13  ;;  %v537_v54 = vpop.f32.mrb[51].mxu0  ;;  %v2406_v31 = vpop.f32.mrb[51].mxu1 }
 0x159   :  { %2758 = vst [vmem:[#allocation11_spill] sm:$0xff] %v2406_v31  ;;  %1138 = vst [vmem:[%s2705_s2 + $0xc0] sm:$0xff] %v1776_v7  ;;  %v1562_v19 = vadd.f32 %v1561_v41, %v1391_v18  ;;  %v1777_v29 = vpack.c.bf16 %v537_v54, %v535_v13  ;;  %v1272_v8 = vadd.f32 %v1271_v15, %v537_v54 }
 0x15a   :  { %v1393_v59 = vmul.f32 %v537_v54, %v537_v54  ;;  %1170 = vst [vmem:[%s2705_s2 + $0x1c0] sm:$0xff] %v1808_v17  ;;  %v1494_v1 = vadd.f32 %v1493_v43, %v1392_v32  ;;  %v1809_v47 = vpack.c.bf16 %v2406_v31, %v2404_v63 }
 0x15b   :  { %1139 = vst [vmem:[%s2705_s2 + $0xc8] sm:$0xff] %v1777_v29 }
 0x15c   :  { %v1563_v27 = vadd.f32 %v1562_v19, %v1393_v59  ;;  %1171 = vst [vmem:[%s2705_s2 + $0x1c8] sm:$0xff] %v1809_v47 }
 0x15d   :  { %v541_v41 = vpop.f32.mrb[52].mxu0  ;;  %v2422_v48 = vpop.f32.mrb[52].mxu1 }
 0x15e   :  { %2759 = vst [vmem:[#allocation12_spill] sm:$0xff] %v2422_v48  ;;  %v1204_v54 = vadd.f32 %v1203_v12, %v541_v41  ;;  %v1394_v7 = vmul.f32 %v541_v41, %v541_v41  ;;  %v543_v15 = vpop.f32.mrb[53].mxu0  ;;  %v2424_v18 = vpop.f32.mrb[53].mxu1 }
 0x15f   :  { %2760 = vst [vmem:[#allocation13_spill] sm:$0xff] %v2424_v18  ;;  %v1778_v13 = vpack.c.bf16 %v543_v15, %v541_v41  ;;  %v1273_v17 = vadd.f32 %v1272_v8, %v543_v15  ;;  %v1395_v43 = vmul.f32 %v543_v15, %v543_v15  ;;  %v545_v32 = vpop.f32.mrb[54].mxu0  ;;  %v1810_v29 = vpack.c.bf16 %v2424_v18, %v2422_v48  ;;  %v2428_v19 = vpop.f32.mrb[54].mxu1 }
 0x160   :  { %2761 = vst [vmem:[#allocation14_spill] sm:$0xff] %v2428_v19  ;;  %v1495_v59 = vadd.f32 %v1494_v1, %v1394_v7  ;;  %v1205_v31 = vadd.f32 %v1204_v54, %v545_v32  ;;  %v1396_v47 = vmul.f32 %v545_v32, %v545_v32  ;;  %v547_v63 = vpop.f32.mrb[55].mxu0  ;;  %v2430_v42 = vpop.f32.mrb[55].mxu1 }
 0x161   :  { %2762 = vst [vmem:[#allocation15_spill] sm:$0xff] %v2430_v42  ;;  %1140 = vst [vmem:[%s2705_s2 + $0xd0] sm:$0xff] %v1778_v13  ;;  %v1564_v12 = vadd.f32 %v1563_v27, %v1395_v43  ;;  %v1779_v41 = vpack.c.bf16 %v547_v63, %v545_v32  ;;  %v1274_v8 = vadd.f32 %v1273_v17, %v547_v63 }
 0x162   :  { %v1397_v15 = vmul.f32 %v547_v63, %v547_v63  ;;  %1172 = vst [vmem:[%s2705_s2 + $0x1d0] sm:$0xff] %v1810_v29  ;;  %v1496_v18 = vadd.f32 %v1495_v59, %v1396_v47  ;;  %v1811_v1 = vpack.c.bf16 %v2430_v42, %v2428_v19 }
 0x163   :  { %1141 = vst [vmem:[%s2705_s2 + $0xd8] sm:$0xff] %v1779_v41 }
 0x164   :  { %v1565_v54 = vadd.f32 %v1564_v12, %v1397_v15  ;;  %1173 = vst [vmem:[%s2705_s2 + $0x1d8] sm:$0xff] %v1811_v1 }
 0x165   :  { %v551_v27 = vpop.f32.mrb[56].mxu0  ;;  %v2446_v7 = vpop.f32.mrb[56].mxu1 }
 0x166   :  { %2763 = vst [vmem:[#allocation16_spill] sm:$0xff] %v2446_v7  ;;  %v1206_v63 = vadd.f32 %v1205_v31, %v551_v27  ;;  %v1398_v13 = vmul.f32 %v551_v27, %v551_v27  ;;  %v553_v17 = vpop.f32.mrb[57].mxu0  ;;  %v2448_v43 = vpop.f32.mrb[57].mxu1 }
 0x167   :  { %2764 = vst [vmem:[#allocation17_spill] sm:$0xff] %v2448_v43  ;;  %v1780_v32 = vpack.c.bf16 %v553_v17, %v551_v27  ;;  %v1275_v29 = vadd.f32 %v1274_v8, %v553_v17  ;;  %v1399_v59 = vmul.f32 %v553_v17, %v553_v17  ;;  %v555_v47 = vpop.f32.mrb[58].mxu0  ;;  %v1812_v41 = vpack.c.bf16 %v2448_v43, %v2446_v7  ;;  %v2452_v12 = vpop.f32.mrb[58].mxu1 }
 0x168   :  { %2765 = vst [vmem:[#allocation18_spill] sm:$0xff] %v2452_v12  ;;  %v1497_v15 = vadd.f32 %v1496_v18, %v1398_v13  ;;  %v1207_v42 = vadd.f32 %v1206_v63, %v555_v47  ;;  %v1400_v1 = vmul.f32 %v555_v47, %v555_v47  ;;  %v557_v19 = vpop.f32.mrb[59].mxu0  ;;  %v2454_v48 = vpop.f32.mrb[59].mxu1 }
 0x169   :  { %2766 = vst [vmem:[#allocation19_spill] sm:$0xff] %v2454_v48  ;;  %1142 = vst [vmem:[%s2705_s2 + $0xe0] sm:$0xff] %v1780_v32  ;;  %v1566_v31 = vadd.f32 %v1565_v54, %v1399_v59  ;;  %v1781_v27 = vpack.c.bf16 %v557_v19, %v555_v47  ;;  %v1276_v8 = vadd.f32 %v1275_v29, %v557_v19 }
 0x16a   :  { %v1401_v17 = vmul.f32 %v557_v19, %v557_v19  ;;  %1174 = vst [vmem:[%s2705_s2 + $0x1e0] sm:$0xff] %v1812_v41  ;;  %v1498_v43 = vadd.f32 %v1497_v15, %v1400_v1  ;;  %v1813_v18 = vpack.c.bf16 %v2454_v48, %v2452_v12 }
 0x16b   :  { %1143 = vst [vmem:[%s2705_s2 + $0xe8] sm:$0xff] %v1781_v27 }
 0x16c   :  { %v1567_v63 = vadd.f32 %v1566_v31, %v1401_v17  ;;  %1175 = vst [vmem:[%s2705_s2 + $0x1e8] sm:$0xff] %v1813_v18 }
 0x16d   :  { %v561_v54 = vpop.f32.mrb[60].mxu0  ;;  %v2470_v13 = vpop.f32.mrb[60].mxu1 }
 0x16e   :  { %v1208_v19 = vadd.f32 %v1207_v42, %v561_v54  ;;  %v1402_v32 = vmul.f32 %v561_v54, %v561_v54  ;;  %v563_v29 = vpop.f32.mrb[61].mxu0  ;;  %v2472_v59 = vpop.f32.mrb[61].mxu1 }
 0x16f   :  { %2767 = vst [vmem:[#allocation20_spill] sm:$0xff] %v2472_v59  ;;  %v1782_v47 = vpack.c.bf16 %v563_v29, %v561_v54  ;;  %v1277_v41 = vadd.f32 %v1276_v8, %v563_v29  ;;  %v1403_v15 = vmul.f32 %v563_v29, %v563_v29  ;;  %v565_v1 = vpop.f32.mrb[62].mxu0  ;;  %v1814_v27 = vpack.c.bf16 %v2472_v59, %v2470_v13  ;;  %v2476_v31 = vpop.f32.mrb[62].mxu1 }
 0x170   :  { %v1499_v17 = vadd.f32 %v1498_v43, %v1402_v32  ;;  %v1209_v48 = vadd.f32 %v1208_v19, %v565_v1  ;;  %v1404_v18 = vmul.f32 %v565_v1, %v565_v1  ;;  %v567_v12 = vpop.f32.mrb[63].mxu0  ;;  %v2478_v7 = vpop.f32.mrb[63].mxu1  ;;  %v1406_v43 = vmul.f32 %v2095_v50, %v2095_v50 }
 0x171   :  { %1144 = vst [vmem:[%s2705_s2 + $0xf0] sm:$0xff] %v1782_v47  ;;  %v1568_v42 = vadd.f32 %v1567_v63, %v1403_v15  ;;  %v1783_v54 = vpack.c.bf16 %v567_v12, %v565_v1  ;;  %v1278_v8 = vadd.f32 %v1277_v41, %v567_v12  ;;  %v1405_v29 = vmul.f32 %v567_v12, %v567_v12 }
 0x172   :  { %1176 = vst [vmem:[%s2705_s2 + $0x1f0] sm:$0xff] %v1814_v27  ;;  %v1210_v19 = vadd.f32 %v1209_v48, %v2095_v50  ;;  %v1500_v32 = vadd.f32 %v1499_v17, %v1404_v18  ;;  %v1815_v59 = vpack.c.bf16 %v2478_v7, %v2476_v31  ;;  %v1407_v47 = vmul.f32 %v2097_v52, %v2097_v52 }
 0x173   :  { %1145 = vst [vmem:[%s2705_s2 + $0xf8] sm:$0xff] %v1783_v54  ;;  %v1279_v12 = vadd.f32 %v1278_v8, %v2097_v52  ;;  %v1569_v63 = vadd.f32 %v1568_v42, %v1405_v29  ;;  %v1408_v41 = vmul.f32 %v2101_v56, %v2101_v56  ;;  %v1409_v48 = vmul.f32 %v2103_v62, %v2103_v62 }
 0x174   :  { %v1211_v15 = vadd.f32 %v1210_v19, %v2101_v56  ;;  %v1501_v50 = vadd.f32 %v1500_v32, %v1406_v43  ;;  %1177 = vst [vmem:[%s2705_s2 + $0x1f8] sm:$0xff] %v1815_v59  ;;  %v1410_v52 = vmul.f32 %v2119_v6, %v2119_v6  ;;  %v1411_v56 = vmul.f32 %v2121_v10, %v2121_v10 }
 0x175   :  { %v1280_v1 = vadd.f32 %v1279_v12, %v2103_v62  ;;  %v1570_v27 = vadd.f32 %v1569_v63, %v1407_v47  ;;  %v1412_v59 = vmul.f32 %v2125_v16, %v2125_v16  ;;  %v1413_v62 = vmul.f32 %v2127_v21, %v2127_v21 }
 0x176   :  { %v1212_v17 = vadd.f32 %v1211_v15, %v2119_v6  ;;  %v1502_v18 = vadd.f32 %v1501_v50, %v1408_v41  ;;  %v1414_v6 = vmul.f32 %v2143_v30, %v2143_v30 }
 0x177   :  { %v1281_v42 = vadd.f32 %v1280_v1, %v2121_v10  ;;  %v1571_v54 = vadd.f32 %v1570_v27, %v1409_v48  ;;  %v1415_v10 = vmul.f32 %v2145_v34, %v2145_v34 }
 0x178   :  { %v1213_v8 = vadd.f32 %v1212_v17, %v2125_v16  ;;  %v1503_v29 = vadd.f32 %v1502_v18, %v1410_v52  ;;  %v1416_v16 = vmul.f32 %v2149_v40, %v2149_v40 }
 0x179   :  { %v1282_v43 = vadd.f32 %v1281_v42, %v2127_v21  ;;  %v1572_v19 = vadd.f32 %v1571_v54, %v1411_v56  ;;  %v1417_v21 = vmul.f32 %v2151_v45, %v2151_v45 }
 0x17a   :  { %v1214_v32 = vadd.f32 %v1213_v8, %v2143_v30  ;;  %v1504_v47 = vadd.f32 %v1503_v29, %v1412_v59  ;;  %v1418_v30 = vmul.f32 %v2167_v57, %v2167_v57 }
 0x17b   :  { %v1283_v12 = vadd.f32 %v1282_v43, %v2145_v34  ;;  %v1573_v63 = vadd.f32 %v1572_v19, %v1413_v62  ;;  %v1419_v34 = vmul.f32 %v2169_v61, %v2169_v61 }
 0x17c   :  { %v1215_v41 = vadd.f32 %v1214_v32, %v2149_v40  ;;  %v1505_v15 = vadd.f32 %v1504_v47, %v1414_v6  ;;  %v1420_v40 = vmul.f32 %v2173_v4, %v2173_v4 }
 0x17d   :  { %v1284_v50 = vadd.f32 %v1283_v12, %v2151_v45  ;;  %v1574_v48 = vadd.f32 %v1573_v63, %v1415_v10  ;;  %v1421_v45 = vmul.f32 %v2175_v11, %v2175_v11 }
 0x17e   :  { %v1216_v1 = vadd.f32 %v1215_v41, %v2167_v57  ;;  %v1506_v27 = vadd.f32 %v1505_v15, %v1416_v16  ;;  %v1422_v57 = vmul.f32 %v2191_v22, %v2191_v22 }
 0x17f   :  { %v1285_v52 = vadd.f32 %v1284_v50, %v2169_v61  ;;  %v1575_v17 = vadd.f32 %v1574_v48, %v1417_v21  ;;  %v1423_v61 = vmul.f32 %v2193_v26, %v2193_v26 }
 0x180   :  { %v1217_v18 = vadd.f32 %v1216_v1, %v2173_v4  ;;  %v1507_v56 = vadd.f32 %v1506_v27, %v1418_v30  ;;  %v1424_v4 = vmul.f32 %v2197_v33, %v2197_v33 }
 0x181   :  { %v1286_v42 = vadd.f32 %v1285_v52, %v2175_v11  ;;  %v1576_v54 = vadd.f32 %v1575_v17, %v1419_v34  ;;  %v1425_v11 = vmul.f32 %v2199_v39, %v2199_v39 }
 0x182   :  { %v1508_v59 = vadd.f32 %v1507_v56, %v1420_v40  ;;  %v1218_v8 = vadd.f32 %v1217_v18, %v2191_v22  ;;  %v1426_v22 = vmul.f32 %v2215_v51, %v2215_v51 }
 0x183   :  { %v1577_v29 = vadd.f32 %v1576_v54, %v1421_v45  ;;  %v1287_v62 = vadd.f32 %v1286_v42, %v2193_v26  ;;  %v1427_v26 = vmul.f32 %v2217_v58, %v2217_v58 }
 0x184   :  { %v1219_v43 = vadd.f32 %v1218_v8, %v2197_v33  ;;  %v1509_v19 = vadd.f32 %v1508_v59, %v1422_v57  ;;  %v1428_v33 = vmul.f32 %v2221_v2, %v2221_v2  ;;  %v1438_v8 = vmul.f32 %v2287_v38, %v2287_v38 }
 0x185   :  { %v1288_v6 = vadd.f32 %v1287_v62, %v2199_v39  ;;  %v1578_v32 = vadd.f32 %v1577_v29, %v1423_v61  ;;  %v1429_v39 = vmul.f32 %v2223_v9, %v2223_v9  ;;  %v1439_v29 = vmul.f32 %v2289_v46, %v2289_v46 }
 0x186   :  { %v1220_v47 = vadd.f32 %v1219_v43, %v2215_v51  ;;  %v1510_v10 = vadd.f32 %v1509_v19, %v1424_v4  ;;  %v1430_v51 = vmul.f32 %v2239_v23, %v2239_v23  ;;  %v1440_v43 = vmul.f32 %v2293_v55, %v2293_v55 }
 0x187   :  { %v1289_v12 = vadd.f32 %v1288_v6, %v2217_v58  ;;  %v1579_v63 = vadd.f32 %v1578_v32, %v1425_v11  ;;  %v1431_v58 = vmul.f32 %v2241_v28, %v2241_v28  ;;  %v1441_v11 = vmul.f32 %v2295_v5, %v2295_v5 }
 0x188   :  { %v1221_v16 = vadd.f32 %v1220_v47, %v2221_v2  ;;  %v1511_v41 = vadd.f32 %v1510_v10, %v1426_v22  ;;  %v1432_v2 = vmul.f32 %v2245_v37, %v2245_v37  ;;  %v1442_v32 = vmul.f32 %v2311_v25, %v2311_v25 }
 0x189   :  { %v1290_v15 = vadd.f32 %v1289_v12, %v2223_v9  ;;  %v1580_v21 = vadd.f32 %v1579_v63, %v1427_v26  ;;  %v1433_v9 = vmul.f32 %v2247_v44, %v2247_v44  ;;  %v1443_v47 = vmul.f32 %v2318_v35, %v2318_v35 }
 0x18a   :  { %v1222_v50 = vadd.f32 %v1221_v16, %v2239_v23  ;;  %v1512_v48 = vadd.f32 %v1511_v41, %v1428_v33  ;;  %v1434_v23 = vmul.f32 %v2263_v60, %v2263_v60  ;;  %v1444_v26 = vmul.f32 %v2327_v49, %v2327_v49 }
 0x18b   :  { %v1291_v30 = vadd.f32 %v1290_v15, %v2241_v28  ;;  %v1581_v1 = vadd.f32 %v1580_v21, %v1429_v39  ;;  %v1435_v28 = vmul.f32 %v2265_v3, %v2265_v3  ;;  %v1445_v63 = vmul.f32 %v2334_v0, %v2334_v0 }
 0x18c   :  { %v1223_v27 = vadd.f32 %v1222_v50, %v2245_v37  ;;  %v1513_v34 = vadd.f32 %v1512_v48, %v1430_v51  ;;  %v1436_v37 = vmul.f32 %v2269_v14, %v2269_v14  ;;  %v1446_v16 = vmul.f32 %v2350_v24, %v2350_v24 }
 0x18d   :  { %v1292_v52 = vadd.f32 %v1291_v30, %v2247_v44  ;;  %v1582_v17 = vadd.f32 %v1581_v1, %v1431_v58  ;;  %v1437_v44 = vmul.f32 %v2271_v20, %v2271_v20  ;;  %v1447_v39 = vmul.f32 %v2352_v36, %v2352_v36 }
 0x18e   :  { %v1224_v40 = vadd.f32 %v1223_v27, %v2263_v60  ;;  %v1514_v18 = vadd.f32 %v1513_v34, %v1432_v2  ;;  %v1448_v21 = vmul.f32 %v2356_v53, %v2356_v53 }
 0x18f   :  { %v1293_v56 = vadd.f32 %v1292_v52, %v2265_v3  ;;  %v1583_v45 = vadd.f32 %v1582_v17, %v1433_v9 }
 0x190   :  { %v1225_v42 = vadd.f32 %v1224_v40, %v2269_v14  ;;  %v1515_v54 = vadd.f32 %v1514_v18, %v1434_v23  ;;  %v2772_v40 = vld [vmem:[#allocation7_spill] sm:$0xff] }
 0x191   :  { %v1294_v57 = vadd.f32 %v1293_v56, %v2271_v20  ;;  %v1584_v59 = vadd.f32 %v1583_v45, %v1435_v28  ;;  %v1453_v28 = vmul.f32 %v2772_v40, %v2772_v40  ;;  %v2773_v45 = vld [vmem:[#allocation8_spill] sm:$0xff] }
 0x192   :  { %v1226_v60 = vadd.f32 %v1225_v42, %v2287_v38  ;;  %v1516_v61 = vadd.f32 %v1515_v54, %v1436_v37  ;;  %v1454_v42 = vmul.f32 %v2773_v45, %v2773_v45 }
 0x193   :  { %v1295_v3 = vadd.f32 %v1294_v57, %v2289_v46  ;;  %v1585_v62 = vadd.f32 %v1584_v59, %v1437_v44  ;;  %v2774_v44 = vld [vmem:[#allocation9_spill] sm:$0xff] }
 0x194   :  { %v1517_v14 = vadd.f32 %v1516_v61, %v1438_v8  ;;  %v1227_v4 = vadd.f32 %v1226_v60, %v2293_v55  ;;  %v1455_v59 = vmul.f32 %v2774_v44, %v2774_v44  ;;  %v2775_v8 = vld [vmem:[#allocation10_spill] sm:$0xff] }
 0x195   :  { %v1586_v20 = vadd.f32 %v1585_v62, %v1439_v29  ;;  %v1296_v19 = vadd.f32 %v1295_v3, %v2295_v5  ;;  %v1456_v3 = vmul.f32 %v2775_v8, %v2775_v8  ;;  %v2776_v62 = vld [vmem:[#allocation11_spill] sm:$0xff] }
 0x196   :  { %v1518_v38 = vadd.f32 %v1517_v14, %v1440_v43  ;;  %v1228_v6 = vadd.f32 %v1227_v4, %v2311_v25  ;;  %v1457_v4 = vmul.f32 %v2776_v62, %v2776_v62 }
 0x197   :  { %v1587_v46 = vadd.f32 %v1586_v20, %v1441_v11  ;;  %v1297_v22 = vadd.f32 %v1296_v19, %v2318_v35  ;;  %v2777_v20 = vld [vmem:[#allocation12_spill] sm:$0xff] }
 0x198   :  { %v1519_v10 = vadd.f32 %v1518_v38, %v1442_v32  ;;  %v1229_v55 = vadd.f32 %v1228_v6, %v2327_v49  ;;  %v1458_v11 = vmul.f32 %v2777_v20, %v2777_v20  ;;  %v2778_v6 = vld [vmem:[#allocation13_spill] sm:$0xff] }
 0x199   :  { %v1588_v12 = vadd.f32 %v1587_v46, %v1443_v47  ;;  %v1298_v5 = vadd.f32 %v1297_v22, %v2334_v0  ;;  %v2768_v0 = vld [vmem:[#allocation3_spill] sm:$0xff]  ;;  %v1459_v46 = vmul.f32 %v2778_v6, %v2778_v6  ;;  %v2779_v47 = vld [vmem:[#allocation14_spill] sm:$0xff] }
 0x19a   :  { %v1520_v33 = vadd.f32 %v1519_v10, %v1444_v26  ;;  %v1230_v25 = vadd.f32 %v1229_v55, %v2350_v24  ;;  %v1449_v48 = vmul.f32 %v2768_v0, %v2768_v0  ;;  %v2769_v24 = vld [vmem:[#allocation4_spill] sm:$0xff]  ;;  %v1460_v55 = vmul.f32 %v2779_v47, %v2779_v47 }
 0x19b   :  { %v1589_v41 = vadd.f32 %v1588_v12, %v1445_v63  ;;  %v1299_v35 = vadd.f32 %v1298_v5, %v2352_v36  ;;  %v1450_v1 = vmul.f32 %v2769_v24, %v2769_v24  ;;  %v2770_v36 = vld [vmem:[#allocation5_spill] sm:$0xff]  ;;  %v2780_v12 = vld [vmem:[#allocation15_spill] sm:$0xff] }
 0x19c   :  { %v1521_v15 = vadd.f32 %v1520_v33, %v1446_v16  ;;  %v1231_v49 = vadd.f32 %v1230_v25, %v2356_v53  ;;  %v1451_v34 = vmul.f32 %v2770_v36, %v2770_v36  ;;  %v2771_v53 = vld [vmem:[#allocation6_spill] sm:$0xff]  ;;  %v1461_v63 = vmul.f32 %v2780_v12, %v2780_v12  ;;  %v2781_v25 = vld [vmem:[#allocation16_spill] sm:$0xff] }
 0x19d   :  { %v1590_v51 = vadd.f32 %v1589_v41, %v1447_v39  ;;  %v1300_v50 = vadd.f32 %v1299_v35, %v2768_v0  ;;  %v1452_v17 = vmul.f32 %v2771_v53, %v2771_v53  ;;  %v1462_v41 = vmul.f32 %v2781_v25, %v2781_v25  ;;  %v2782_v39 = vld [vmem:[#allocation17_spill] sm:$0xff] }
 0x19e   :  { %v1522_v58 = vadd.f32 %v1521_v15, %v1448_v21  ;;  %v1232_v30 = vadd.f32 %v1231_v49, %v2769_v24  ;;  %v1463_v49 = vmul.f32 %v2782_v39, %v2782_v39  ;;  %v2784_v24 = vld [vmem:[#allocation19_spill] sm:$0xff] }
 0x19f   :  { %v1591_v2 = vadd.f32 %v1590_v51, %v1449_v48  ;;  %v1301_v27 = vadd.f32 %v1300_v50, %v2770_v36  ;;  %v2783_v51 = vld [vmem:[#allocation18_spill] sm:$0xff]  ;;  %v1466_v48 = vmul.f32 %v2470_v13, %v2470_v13 }
 0x1a0   :  { %v1523_v9 = vadd.f32 %v1522_v58, %v1450_v1  ;;  %v1233_v52 = vadd.f32 %v1232_v30, %v2771_v53  ;;  %v1464_v50 = vmul.f32 %v2783_v51, %v2783_v51  ;;  %v1465_v1 = vmul.f32 %v2784_v24, %v2784_v24 }
 0x1a1   :  { %v1592_v23 = vadd.f32 %v1591_v2, %v1451_v34  ;;  %v1302_v18 = vadd.f32 %v1301_v27, %v2772_v40  ;;  %v2785_v2 = vld [vmem:[#allocation20_spill] sm:$0xff] }
 0x1a2   :  { %v1524_v56 = vadd.f32 %v1523_v9, %v1452_v17  ;;  %v1234_v37 = vadd.f32 %v1233_v52, %v2773_v45  ;;  %v1467_v36 = vmul.f32 %v2785_v2, %v2785_v2 }
 0x1a3   :  { %v1593_v54 = vadd.f32 %v1592_v23, %v1453_v28  ;;  %v1303_v57 = vadd.f32 %v1302_v18, %v2774_v44  ;;  %v1468_v23 = vmul.f32 %v2476_v31, %v2476_v31  ;;  %v1469_v28 = vmul.f32 %v2478_v7, %v2478_v7 }
 0x1a4   :  { %v1525_v60 = vadd.f32 %v1524_v56, %v1454_v42  ;;  %v1235_v61 = vadd.f32 %v1234_v37, %v2775_v8 }
 0x1a5   :  { %v1594_v29 = vadd.f32 %v1593_v54, %v1455_v59  ;;  %v1304_v14 = vadd.f32 %v1303_v57, %v2776_v62  ;;  %v1893_v57 = vmov 1966171168  }
 0x1a6   :  { %v1526_v43 = vadd.f32 %v1525_v60, %v1456_v3  ;;  %v1236_v19 = vadd.f32 %v1235_v61, %v2777_v20  ;;  %v1321_v59 = vunpack.c.l.s4 %v1893_v57 }
 0x1a7   :  { %v1595_v38 = vadd.f32 %v1594_v29, %v1457_v4  ;;  %v1305_v32 = vadd.f32 %v1304_v14, %v2778_v6 }
 0x1a8   :  { %v1527_v22 = vadd.f32 %v1526_v43, %v1458_v11  ;;  %v1237_v10 = vadd.f32 %v1236_v19, %v2779_v47  ;;  %v1322_v4 = vunpack.c.0.s8 %v1321_v59  ;;  %v2786_v43 = vlaneseq }
 0x1a9   :  { %v1596_v26 = vadd.f32 %v1595_v38, %v1459_v46  ;;  %v1306_v5 = vadd.f32 %v1305_v32, %v2780_v12 }
 0x1aa   :  { %v1528_v33 = vadd.f32 %v1527_v22, %v1460_v55  ;;  %v1238_v16 = vadd.f32 %v1237_v10, %v2781_v25 }
 0x1ab   :  { %v1597_v35 = vadd.f32 %v1596_v26, %v1461_v63  ;;  %v1307_v15 = vadd.f32 %v1306_v5, %v2782_v39 }
 0x1ac   :  { %v1529_v21 = vadd.f32 %v1528_v33, %v1462_v41  ;;  %v1239_v0 = vadd.f32 %v1238_v16, %v2783_v51  ;;  %v1178_v33 = vld [vmem:[%s2706_s3] sm:$0x3] }
 0x1ad   :  { %v1598_v58 = vadd.f32 %v1597_v35, %v1463_v49  ;;  %v1308_v30 = vadd.f32 %v1307_v15, %v2784_v24  ;;  %v1341_v41 = vld [vmem:[%s2707_s4] sm:$0x3] }
 0x1ae   :  { %v1530_v27 = vadd.f32 %v1529_v21, %v1464_v50  ;;  %v1240_v34 = vadd.f32 %v1239_v0, %v2470_v13 }
 0x1af   :  { %v1599_v9 = vadd.f32 %v1598_v58, %v1465_v1  ;;  %v1309_v53 = vadd.f32 %v1308_v30, %v2785_v2 }
 0x1b0   :  { %v1531_v52 = vadd.f32 %v1530_v27, %v1466_v48  ;;  %v1241_v17 = vadd.f32 %v1240_v34, %v2476_v31 }
 0x1b1   :  { %v1600_v40 = vadd.f32 %v1599_v9, %v1467_v36  ;;  %v1310_v18 = vadd.f32 %v1309_v53, %v2478_v7  ;;  %v1324_v7 = vshrl.u32 %v2786_v43, 7 }
 0x1b2   :  { %v1242_v56 = vrot.slane %v1241_v17, 4  ;;  %v1532_v45 = vadd.f32 %v1531_v52, %v1468_v23 }
 0x1b3   :  { %v1311_v37 = vrot.slane %v1310_v18, 4  ;;  %v1601_v42 = vadd.f32 %v1600_v40, %v1469_v28  ;;  %v1325_v47 = vsub.s32 %v1322_v4, %v1324_v7 }
 0x1b4   :  { %v1243_v13 = vadd.f32 %v1242_v56, %v1241_v17  ;;  %v1533_v54 = vrot.slane %v1532_v45, 4 }
 0x1b5   :  { %v1312_v44 = vadd.f32 %v1311_v37, %v1310_v18  ;;  %v1602_v60 = vrot.slane %v1601_v42, 4 }
 0x1b6   :  { %v1244_v8 = vrot.slane %v1243_v13, 2  ;;  %v1534_v61 = vadd.f32 %v1533_v54, %v1532_v45 }
 0x1b7   :  { %v1313_v3 = vrot.slane %v1312_v44, 2  ;;  %v1603_v31 = vadd.f32 %v1602_v60, %v1601_v42 }
 0x1b8   :  { %v1245_v29 = vadd.f32 %v1244_v8, %v1243_v13  ;;  %v1535_v62 = vrot.slane %v1534_v61, 2 }
 0x1b9   :  { %v1314_v14 = vadd.f32 %v1313_v3, %v1312_v44  ;;  %v1604_v20 = vrot.slane %v1603_v31, 2 }
 0x1ba   :  { %v1246_v19 = vrot.slane %v1245_v29, 1  ;;  %v1536_v11 = vadd.f32 %v1535_v62, %v1534_v61 }
 0x1bb   :  { %v1315_v38 = vrot.slane %v1314_v14, 1  ;;  %v1605_v6 = vadd.f32 %v1604_v20, %v1603_v31 }
 0x1bc   :  { %v1247_v32 = vadd.f32 %v1246_v19, %v1245_v29  ;;  %v1537_v46 = vrot.slane %v1536_v11, 1 }
 0x1bd   :  { %v1316_v22 = vadd.f32 %v1315_v38, %v1314_v14  ;;  %v1606_v10 = vrot.slane %v1605_v6, 1 }
 0x1be   :  { %v1538_v55 = vadd.f32 %v1537_v46, %v1536_v11 }
 0x1bf   :  { %v1319_v26 = vcombine.low %v1247_v32, %v1316_v22  ;;  %v1607_v12 = vadd.f32 %v1606_v10, %v1605_v6 }
 0x1c1   :  { %v1326_v5 = vrot.slane %v1319_v26, %v1325_v47  ;;  %v1610_v63 = vcombine.low %v1538_v55, %v1607_v12 }
 0x1c3   :  { %v1333_v25 = vrot.slane %v1326_v5, %v1325_v47  ;;  %v1617_v16 = vrot.slane %v1610_v63, %v1325_v47 }
 0x1c5   :  { %v1335_v35 = vadd.f32 %v1333_v25, %v1178_v33  ;;  %v1624_v39 = vrot.slane %v1617_v16, %v1325_v47 }
 0x1c7   :  { %1340 = vst.msk [vmem:[%s2706_s3] sm:$0x3] %vm2314_vm0, %v1335_v35  ;;  %v1626_v49 = vadd.f32 %v1624_v39, %v1341_v41 }
 0x1c9   :  { %1627 = vst.msk [vmem:[%s2707_s4] sm:$0x3] %vm2314_vm0, %v1626_v49 }

// kernel: bottleneck_forward.5
= control target key start
LH: loop header
LB: loop body
LE: loop exit
PB: predicated region body
PF: predicated region fallthrough
CT: control target
= control target key end

     0   :  { %s5745_s21 = smov 0   ;;  %s5747_s22 = smov 0   ;;  %s7147_s0 = inlined_call_operand.vmem [shape: bf16[2,16,16,256], index: 0, kind: input, shape index: {}]   ;;  %s7148_s1 = inlined_call_operand.vmem [shape: f32[1,128], index: 1, kind: input, shape index: {}]   ;;  %s7149_s2 = inlined_call_operand.vmem [shape: f32[1,128], index: 2, kind: input, shape index: {}]   ;;  %s7150_s3 = inlined_call_operand.vmem [shape: bf16[9,128,128], index: 3, kind: input, shape index: {}]   ;;  %s7151_s4 = inlined_call_operand.vmem [shape: bf16[2,16,16,128], index: 4, kind: output, shape index: {0}]   ;;  %s7152_s5 = inlined_call_operand.vmem [shape: f32[1,128], index: 5, kind: output, shape index: {1}]   ;;  %s7153_s6 = inlined_call_operand.vmem [shape: f32[1,128], index: 6, kind: output, shape index: {2}]  }
   0x1   :  { %s5749_s23 = smov 0  }
   0x2 LB: > { %s5761_s24 = sadd.s32 4294967295, %s5702_s23   ;;  %s5764_s25 = sadd.s32 1, %s5702_s23   ;;  %s5702_s23 = sphi %s5749_s23, %s7175_s23   ;;  %s5698_s22 = sphi %s5747_s22, %s7174_s22   ;;  %s5694_s21 = sphi %s5745_s21, %s7173_s21  }
   0x3   : > { %s21_s26 = ssub.s32 %s5702_s23, %s5764_s25  ;;  %s24_s27 = sadd.s32 1, %s5698_s22 }
   0x4   : > { %p22_p0 = scmp.eq.s32.totalorder %s21_s26, 0  ;;  %p31_p1 = scmp.ne.s32.totalorder %s5698_s22, %s5694_s21 }
   0x5   : > { %p32_p2 = scmp.eq.s32.totalorder %s5702_s23, 0  ;;  %p4293_p4 = scmp.ge.s32.totalorder %s5702_s23, 2 }
   0x6   : > { %s5773_s28 = scalar_select %p22_p0, %s5698_s22, %s24_s27  }
   0x7   : > { %p33_p3 = por %p32_p2, %p31_p1  ;;  %197 = sbr.rel (%p4293_p4) target bundleno = 39 (0x27), region = 28 }
   0xe   : > { %200 = sbr.rel (!%p33_p3) target bundleno = 39 (0x27), region = 32  ;;  %s202_s29 = sand.u32 (%p33_p3), 1, %s5698_s22  }
   0xf   : > { %s4787_s30 = sshll.u32 (%p33_p3), %s5702_s23, 8  ;;  %s4294_s7 = sshll.u32 (%p33_p3), %s202_s29, 7 }
  0x10   : > { %s5781_s10 = scalar_lea.vmem (%p33_p3), %s7147_s0, %s4787_s30  ;;  %s5785_s11 = scalar_lea.vmem (%p33_p3), [#allocation3], %s4294_s7 }
  0x11   : > { %v4297_v0 = vld [vmem:[%s5781_s10 + $0x4] sm:$0xf] (%p33_p3)  ;;  %v4298_v1 = vld [vmem:[%s5781_s10 + $0xc] sm:$0xf] (%p33_p3)  ;;  %v4299_v2 = vld [vmem:[%s5781_s10 + $0x14] sm:$0xf] (%p33_p3) }
  0x12   : > { %225 = vst [vmem:[%s5785_s11] sm:$0xf] (%p33_p3), %v4297_v0  ;;  %227 = vst [vmem:[%s5785_s11 + $0x4] sm:$0xf] (%p33_p3), %v4298_v1  ;;  %v4300_v3 = vld [vmem:[%s5781_s10 + $0x1c] sm:$0xf] (%p33_p3) }
  0x13   : > { %v4301_v4 = vld [vmem:[%s5781_s10 + $0x24] sm:$0xf] (%p33_p3)  ;;  %229 = vst [vmem:[%s5785_s11 + $0x8] sm:$0xf] (%p33_p3), %v4299_v2  ;;  %231 = vst [vmem:[%s5785_s11 + $0xc] sm:$0xf] (%p33_p3), %v4300_v3 }
  0x14   : > { %233 = vst [vmem:[%s5785_s11 + $0x10] sm:$0xf] (%p33_p3), %v4301_v4  ;;  %v4302_v5 = vld [vmem:[%s5781_s10 + $0x2c] sm:$0xf] (%p33_p3)  ;;  %v4303_v6 = vld [vmem:[%s5781_s10 + $0x34] sm:$0xf] (%p33_p3) }
  0x15   : > { %v4304_v7 = vld [vmem:[%s5781_s10 + $0x3c] sm:$0xf]  ;;  %235 = vst [vmem:[%s5785_s11 + $0x14] sm:$0xf] %v4302_v5  ;;  %237 = vst [vmem:[%s5785_s11 + $0x18] sm:$0xf] %v4303_v6 }
  0x16   : > { %239 = vst [vmem:[%s5785_s11 + $0x1c] sm:$0xf] %v4304_v7  ;;  %v4305_v8 = vld [vmem:[%s5781_s10 + $0x44] sm:$0xf]  ;;  %v4306_v9 = vld [vmem:[%s5781_s10 + $0x4c] sm:$0xf] }
  0x17   : > { %v4307_v10 = vld [vmem:[%s5781_s10 + $0x54] sm:$0xf]  ;;  %241 = vst [vmem:[%s5785_s11 + $0x20] sm:$0xf] %v4305_v8  ;;  %243 = vst [vmem:[%s5785_s11 + $0x24] sm:$0xf] %v4306_v9 }
  0x18   : > { %245 = vst [vmem:[%s5785_s11 + $0x28] sm:$0xf] %v4307_v10  ;;  %v4308_v11 = vld [vmem:[%s5781_s10 + $0x5c] sm:$0xf]  ;;  %v4309_v12 = vld [vmem:[%s5781_s10 + $0x64] sm:$0xf] }
  0x19   : > { %v4310_v13 = vld [vmem:[%s5781_s10 + $0x6c] sm:$0xf]  ;;  %247 = vst [vmem:[%s5785_s11 + $0x2c] sm:$0xf] %v4308_v11  ;;  %249 = vst [vmem:[%s5785_s11 + $0x30] sm:$0xf] %v4309_v12 }
  0x1a   : > { %251 = vst [vmem:[%s5785_s11 + $0x34] sm:$0xf] %v4310_v13  ;;  %v4311_v14 = vld [vmem:[%s5781_s10 + $0x74] sm:$0xf]  ;;  %v4312_v15 = vld [vmem:[%s5781_s10 + $0x7c] sm:$0xf] }
  0x1b   : > { %v4313_v16 = vld [vmem:[%s5781_s10 + $0x84] sm:$0xf]  ;;  %253 = vst [vmem:[%s5785_s11 + $0x38] sm:$0xf] %v4311_v14  ;;  %255 = vst [vmem:[%s5785_s11 + $0x3c] sm:$0xf] %v4312_v15 }
  0x1c   : > { %257 = vst [vmem:[%s5785_s11 + $0x40] sm:$0xf] %v4313_v16  ;;  %v4314_v17 = vld [vmem:[%s5781_s10 + $0x8c] sm:$0xf]  ;;  %v4315_v18 = vld [vmem:[%s5781_s10 + $0x94] sm:$0xf] }
  0x1d   : > { %v4316_v19 = vld [vmem:[%s5781_s10 + $0x9c] sm:$0xf]  ;;  %259 = vst [vmem:[%s5785_s11 + $0x44] sm:$0xf] %v4314_v17  ;;  %261 = vst [vmem:[%s5785_s11 + $0x48] sm:$0xf] %v4315_v18 }
  0x1e   : > { %263 = vst [vmem:[%s5785_s11 + $0x4c] sm:$0xf] %v4316_v19  ;;  %v4317_v20 = vld [vmem:[%s5781_s10 + $0xa4] sm:$0xf]  ;;  %v4318_v21 = vld [vmem:[%s5781_s10 + $0xac] sm:$0xf] }
  0x1f   : > { %v4319_v22 = vld [vmem:[%s5781_s10 + $0xb4] sm:$0xf]  ;;  %265 = vst [vmem:[%s5785_s11 + $0x50] sm:$0xf] %v4317_v20  ;;  %267 = vst [vmem:[%s5785_s11 + $0x54] sm:$0xf] %v4318_v21 }
  0x20   : > { %269 = vst [vmem:[%s5785_s11 + $0x58] sm:$0xf] %v4319_v22  ;;  %v4320_v23 = vld [vmem:[%s5781_s10 + $0xbc] sm:$0xf]  ;;  %v4321_v24 = vld [vmem:[%s5781_s10 + $0xc4] sm:$0xf] }
  0x21   : > { %v4322_v25 = vld [vmem:[%s5781_s10 + $0xcc] sm:$0xf]  ;;  %271 = vst [vmem:[%s5785_s11 + $0x5c] sm:$0xf] %v4320_v23  ;;  %273 = vst [vmem:[%s5785_s11 + $0x60] sm:$0xf] %v4321_v24 }
  0x22   : > { %275 = vst [vmem:[%s5785_s11 + $0x64] sm:$0xf] %v4322_v25  ;;  %v4323_v26 = vld [vmem:[%s5781_s10 + $0xd4] sm:$0xf]  ;;  %v4324_v27 = vld [vmem:[%s5781_s10 + $0xdc] sm:$0xf] }
  0x23   : > { %v4325_v28 = vld [vmem:[%s5781_s10 + $0xe4] sm:$0xf]  ;;  %277 = vst [vmem:[%s5785_s11 + $0x68] sm:$0xf] %v4323_v26  ;;  %279 = vst [vmem:[%s5785_s11 + $0x6c] sm:$0xf] %v4324_v27 }
  0x24   : > { %281 = vst [vmem:[%s5785_s11 + $0x70] sm:$0xf] %v4325_v28  ;;  %v4326_v29 = vld [vmem:[%s5781_s10 + $0xec] sm:$0xf]  ;;  %v4327_v30 = vld [vmem:[%s5781_s10 + $0xf4] sm:$0xf] }
  0x25   : > { %v4328_v31 = vld [vmem:[%s5781_s10 + $0xfc] sm:$0xf]  ;;  %283 = vst [vmem:[%s5785_s11 + $0x74] sm:$0xf] %v4326_v29  ;;  %285 = vst [vmem:[%s5785_s11 + $0x78] sm:$0xf] %v4327_v30 }
  0x26   : > { %287 = vst [vmem:[%s5785_s11 + $0x7c] sm:$0xf] %v4328_v31 }
  0x27 PF: > { %p4329_p5 = scmp.ge.s32.totalorder %s5702_s23, 1  ;;  %p373_p6 = scmp.lt.s32.totalorder %s5702_s23, 3 }
  0x29   : > { %p374_p7 = pnand %p4329_p5, %p373_p6 }
  0x2a   : > { %s380_s12 = sand.u32 (!%p374_p7), 1, %s5694_s21   ;;  %p409_p8 = scmp.lt.s32.totalorder (!%p374_p7), %s5761_s24, 1 }
  0x2b   : > { %377 = sbr.rel (%p374_p7) target bundleno = 634 (0x27a), region = 73  ;;  %s4330_s13 = sshll.u32 (!%p374_p7), %s380_s12, 7 }
  0x2c   : > { %s5859_s19 = scalar_lea.vmem (!%p374_p7), [#allocation3], %s4330_s13  ;;  %p4333_p9 = scmp.ne.s32.totalorder (!%p374_p7), %s5761_s24, 0 }
  0x32   : > { %s410_s14 = scalar_select %p409_p8, %s5761_s24, 1 }
  0x33   : > { %418 = sbr.rel (%p4333_p9) target bundleno = 80 (0x50), region = 81  ;;  %v5708_v32 = vmov (!%p4333_p9), 0.0   ;;  %v5709_v33 = vmov (!%p4333_p9), 0  }
  0x34   : > { %s4788_s15 = sshll.u32 %s410_s14, 7  ;;  %419 = vst [vmem:[%s7152_s5] sm:$0x1] (!%p4333_p9), %v5708_v32  ;;  %420 = vst [vmem:[%s7153_s6] sm:$0x1] (!%p4333_p9), %v5708_v32 }
  0x35   : > { %s5857_s18 = scalar_lea.vmem %s7151_s4, %s4788_s15  ;;  %421 = vst [vmem:[#allocation2] sm:$0xf] (!%p4333_p9), %v5709_v33  ;;  %422 = vst [vmem:[#allocation2 + $0x4] sm:$0xf] (!%p4333_p9), %v5709_v33 }
  0x36   : > { %423 = vst [vmem:[#allocation2 + $0x8] sm:$0x1] (!%p4333_p9), %v5709_v33  ;;  %424 = vst [vmem:[#allocation2 + $0xc] sm:$0xf] (!%p4333_p9), %v5709_v33 }
  0x37   : > { %425 = vst [vmem:[#allocation2 + $0x10] sm:$0xf] (!%p4333_p9), %v5709_v33  ;;  %426 = vst [vmem:[#allocation2 + $0x14] sm:$0x1] (!%p4333_p9), %v5709_v33 }
  0x38   : > { %427 = vst [vmem:[#allocation2 + $0x18] sm:$0xf] (!%p4333_p9), %v5709_v33  ;;  %428 = vst [vmem:[#allocation2 + $0x1c] sm:$0xf] (!%p4333_p9), %v5709_v33 }
  0x39   : > { %429 = vst [vmem:[#allocation2 + $0x20] sm:$0x1] (!%p4333_p9), %v5709_v33  ;;  %430 = vst [vmem:[#allocation2 + $0x24] sm:$0xf] (!%p4333_p9), %v5709_v33 }
  0x3a   : > { %431 = vst [vmem:[#allocation2 + $0x28] sm:$0xf] %v5709_v33  ;;  %432 = vst [vmem:[#allocation2 + $0x2c] sm:$0x1] %v5709_v33 }
  0x3b   : > { %433 = vst [vmem:[#allocation2 + $0x30] sm:$0xf] %v5709_v33  ;;  %434 = vst [vmem:[#allocation2 + $0x34] sm:$0xf] %v5709_v33 }
  0x3c   : > { %435 = vst [vmem:[#allocation2 + $0x38] sm:$0x1] %v5709_v33  ;;  %436 = vst [vmem:[#allocation2 + $0x3c] sm:$0xf] %v5709_v33 }
  0x3d   : > { %437 = vst [vmem:[#allocation2 + $0x40] sm:$0xf] %v5709_v33  ;;  %438 = vst [vmem:[#allocation2 + $0x44] sm:$0x1] %v5709_v33 }
  0x3e   : > { %439 = vst [vmem:[#allocation2 + $0x48] sm:$0xf] %v5709_v33  ;;  %440 = vst [vmem:[#allocation2 + $0x4c] sm:$0xf] %v5709_v33 }
  0x3f   : > { %441 = vst [vmem:[#allocation2 + $0x50] sm:$0x1] %v5709_v33  ;;  %442 = vst [vmem:[#allocation2 + $0x54] sm:$0xf] %v5709_v33 }
  0x40   : > { %443 = vst [vmem:[#allocation2 + $0x58] sm:$0xf] %v5709_v33  ;;  %444 = vst [vmem:[#allocation2 + $0x5c] sm:$0x1] %v5709_v33 }
  0x41   : > { %445 = vst [vmem:[#allocation2 + $0x60] sm:$0xf] %v5709_v33  ;;  %446 = vst [vmem:[#allocation2 + $0x64] sm:$0xf] %v5709_v33 }
  0x42   : > { %447 = vst [vmem:[#allocation2 + $0x68] sm:$0x1] %v5709_v33  ;;  %448 = vst [vmem:[#allocation2 + $0x6c] sm:$0xf] %v5709_v33 }
  0x43   : > { %449 = vst [vmem:[#allocation2 + $0x70] sm:$0xf] %v5709_v33  ;;  %450 = vst [vmem:[#allocation2 + $0x74] sm:$0x1] %v5709_v33 }
  0x44   : > { %451 = vst [vmem:[#allocation2 + $0x78] sm:$0xf] %v5709_v33  ;;  %452 = vst [vmem:[#allocation2 + $0x7c] sm:$0xf] %v5709_v33 }
  0x45   : > { %453 = vst [vmem:[#allocation2 + $0x80] sm:$0x1] %v5709_v33  ;;  %454 = vst [vmem:[#allocation2 + $0x84] sm:$0xf] %v5709_v33 }
  0x46   : > { %455 = vst [vmem:[#allocation2 + $0x88] sm:$0xf] %v5709_v33  ;;  %456 = vst [vmem:[#allocation2 + $0x8c] sm:$0x1] %v5709_v33 }
  0x47   : > { %457 = vst [vmem:[#allocation2 + $0x90] sm:$0xf] %v5709_v33  ;;  %458 = vst [vmem:[#allocation2 + $0x94] sm:$0xf] %v5709_v33 }
  0x48   : > { %459 = vst [vmem:[#allocation2 + $0x98] sm:$0x1] %v5709_v33  ;;  %460 = vst [vmem:[#allocation2 + $0x9c] sm:$0xf] %v5709_v33 }
  0x49   : > { %461 = vst [vmem:[#allocation2 + $0xa0] sm:$0xf] %v5709_v33  ;;  %462 = vst [vmem:[#allocation2 + $0xa4] sm:$0x1] %v5709_v33 }
  0x4a   : > { %463 = vst [vmem:[#allocation2 + $0xa8] sm:$0xf] %v5709_v33  ;;  %464 = vst [vmem:[#allocation2 + $0xac] sm:$0xf] %v5709_v33 }
  0x4b   : > { %465 = vst [vmem:[#allocation2 + $0xb0] sm:$0x1] %v5709_v33  ;;  %466 = vst [vmem:[#allocation2 + $0xb4] sm:$0xf] %v5709_v33 }
  0x4c   : > { %467 = vst [vmem:[#allocation2 + $0xb8] sm:$0xf] %v5709_v33  ;;  %468 = vst [vmem:[#allocation2 + $0xbc] sm:$0x1] %v5709_v33 }
  0x4d   : > { %469 = vst [vmem:[#allocation2 + $0xc0] sm:$0xf] %v5709_v33  ;;  %470 = vst [vmem:[#allocation2 + $0xc4] sm:$0xf] %v5709_v33 }
  0x4e   : > { %471 = vst [vmem:[#allocation2 + $0xc8] sm:$0x1] %v5709_v33  ;;  %472 = vst [vmem:[#allocation2 + $0xcc] sm:$0xf] %v5709_v33 }
  0x4f   : > { %473 = vst [vmem:[#allocation2 + $0xd0] sm:$0xf] %v5709_v33  ;;  %474 = vst [vmem:[#allocation2 + $0xd4] sm:$0x1] %v5709_v33 }
  0x50 PF: > { %v4841_v34 = vld [vmem:[%s5859_s19] sm:$0xff]   ;;  %v5872_v35 = vld [vmem:[%s7148_s1] ss:$0 sm:$0xff]  ;;  %vm1069_vm0 = vcmask 1043456   ;;  %vm1070_vm1 = vsmask.f32 7938 }
  0x51   : > { %v4842_v36 = vunpack.c.l.bf16 %v4841_v34  ;;  %v4843_v37 = vunpack.c.h.bf16 %v4841_v34  ;;  %v5877_v38 = vld [vmem:[%s7149_s2] ss:$0 sm:$0xff]  ;;  %vm745_vm2 = vsmask.f32 256  ;;  %vm746_vm3 = vsmask.f32 4368  ;;  %vm5900_vm5 = vmand %vm1069_vm0, %vm1070_vm1 }
  0x52   : > { %v4944_v39 = vld [vmem:[%s5859_s19 + $0x8] sm:$0xff]   ;;  %vm1076_vm4 = vcmask 1040384   ;;  %v4945_v44 = vld [vmem:[%s5859_s19 + $0x10] sm:$0xff]   ;;  %v4946_v49 = vld [vmem:[%s5859_s19 + $0x18] sm:$0xff]   ;;  %s6076_s7 = smov 0  }
  0x53   : > { %v546_v40 = vmul.f32 %v4842_v36, %v5872_v35  ;;  %v547_v41 = vmul.f32 %v4843_v37, %v5872_v35  ;;  %v4846_v42 = vunpack.c.l.bf16 %v4944_v39  ;;  %v4847_v43 = vunpack.c.h.bf16 %v4944_v39  ;;  %v1072_v16 = vld [vmem:[#allocation2 + $0xc] sm:$0xf]  ;;  %vm5906_vm6 = vmor %vm745_vm2, %vm746_vm3 }
  0x54   : > { %v4850_v50 = vunpack.c.l.bf16 %v4945_v44  ;;  %v4851_v51 = vunpack.c.h.bf16 %v4945_v44  ;;  %v4854_v52 = vunpack.c.l.bf16 %v4946_v49  ;;  %v4855_v53 = vunpack.c.h.bf16 %v4946_v49  ;;  %vm5912_vm7 = vmand %vm1076_vm4, %vm745_vm2  ;;  %v1078_v22 = vld [vmem:[#allocation2 + $0x14] sm:$0x1] }
  0x55   : > { %v585_v45 = vadd.f32 %v5877_v38, %v546_v40  ;;  %v586_v46 = vadd.f32 %v5877_v38, %v547_v41  ;;  %v548_v47 = vmul.f32 %v4846_v42, %v5872_v35  ;;  %v549_v48 = vmul.f32 %v4847_v43, %v5872_v35  ;;  %v1081_v40 = vld [vmem:[#allocation2 + $0x18] sm:$0xf] }
  0x56   : > { %v550_v58 = vmul.f32 %v4850_v50, %v5872_v35  ;;  %v551_v59 = vmul.f32 %v4851_v51, %v5872_v35  ;;  %v552_v60 = vmul.f32 %v4854_v52, %v5872_v35  ;;  %v553_v61 = vmul.f32 %v4855_v53, %v5872_v35  ;;  %v1085_v41 = vld [vmem:[#allocation2 + $0x20] sm:$0x1]  ;;  %v4947_v51 = vld [vmem:[%s5859_s19 + $0x20] sm:$0xff]  }
  0x57   : > { %v617_v54 = vmax.f32 %v585_v45, 0.0  ;;  %v618_v55 = vmax.f32 %v586_v46, 0.0  ;;  %v587_v56 = vadd.f32 %v5877_v38, %v548_v47  ;;  %v588_v57 = vadd.f32 %v5877_v38, %v549_v48  ;;  %v4948_v52 = vld [vmem:[%s5859_s19 + $0x28] sm:$0xff]  }
  0x58   : > { %v589_v2 = vadd.f32 %v5877_v38, %v550_v58  ;;  %v590_v3 = vadd.f32 %v5877_v38, %v551_v59  ;;  %v591_v4 = vadd.f32 %v5877_v38, %v552_v60  ;;  %v592_v5 = vadd.f32 %v5877_v38, %v553_v61  ;;  %v1088_v61 = vld [vmem:[#allocation2 + $0x24] sm:$0xf] }
  0x59   : > { %v4789_v62 = vpack.c.bf16 %v617_v54, %v617_v54  ;;  %v4790_v63 = vpack.c.bf16 %v618_v55, %v618_v55  ;;  %v619_v0 = vmax.f32 %v587_v56, 0.0  ;;  %v620_v1 = vmax.f32 %v588_v57, 0.0 }
  0x5a   : > { %v621_v13 = vmax.f32 %v589_v2, 0.0  ;;  %v622_v14 = vmax.f32 %v590_v3, 0.0  ;;  %v623_v19 = vmax.f32 %v591_v4, 0.0  ;;  %v624_v20 = vmax.f32 %v592_v5, 0.0 }
  0x5b   : > { %v749_v6 = vshrl.u32 %v4789_v62, 16  ;;  %v752_v7 = vshll.u32 %v4789_v62, 16  ;;  %v757_v8 = vshrl.u32 %v4790_v63, 16  ;;  %v760_v9 = vshll.u32 %v4790_v63, 16  ;;  %v1092_v62 = vld [vmem:[#allocation2 + $0x2c] sm:$0x1] }
  0x5c   : > { %v4791_v11 = vpack.c.bf16 %v619_v0, %v619_v0  ;;  %v4792_v12 = vpack.c.bf16 %v620_v1, %v620_v1  ;;  %v4793_v33 = vpack.c.bf16 %v621_v13, %v621_v13  ;;  %v4794_v34 = vpack.c.bf16 %v622_v14, %v622_v14  ;;  %v4949_v13 = vld [vmem:[%s5859_s19 + $0x30] sm:$0xff]  }
  0x5d   : > { %v751_v15 = vrot.slane %v749_v6, 7  ;;  %v759_v18 = vrot.slane %v757_v8, 7  ;;  %v4795_v42 = vpack.c.bf16 %v623_v19, %v623_v19  ;;  %v4796_v60 = vpack.c.bf16 %v624_v20, %v624_v20 }
  0x5e   : > { %v766_v23 = vshrl.u32 %v4791_v11, 16  ;;  %v769_v24 = vshll.u32 %v4791_v11, 16  ;;  %v774_v25 = vshrl.u32 %v4792_v12, 16  ;;  %v777_v26 = vshll.u32 %v4792_v12, 16 }
  0x5f   : > { %v754_v27 = vor.u32 %v752_v7, %v751_v15  ;;  %v755_v28 = vrot.slane %v751_v15, 4  ;;  %v762_v29 = vor.u32 %v760_v9, %v759_v18  ;;  %v764_v30 = vrot.slane %v759_v18, 4  ;;  %v1095_v7 = vld [vmem:[#allocation2 + $0x30] sm:$0xf] }
  0x60   : > { %v768_v31 = vrot.slane %v766_v23, 7  ;;  %v776_v32 = vrot.slane %v774_v25, 7  ;;  %v783_v47 = vshrl.u32 %v4793_v33, 16  ;;  %v786_v48 = vshll.u32 %v4793_v33, 16 }
  0x61   : > { %v1073_v36 = vsel %vm5900_vm5, %v754_v27, %v1072_v16  ;;  %v763_v37 = vsel %vm5906_vm6, %v755_v28, %v762_v29  ;;  %v1079_v39 = vsel %vm5912_vm7, %v764_v30, %v1078_v22  ;;  %v791_v49 = vshrl.u32 %v4794_v34, 16 }
  0x62   : > { %1074 = vst [vmem:[#allocation2 + $0xc] sm:$0xf] %v1073_v36  ;;  %1075 = vst [vmem:[#allocation2 + $0x10] sm:$0xf] %v763_v37  ;;  %v771_v43 = vor.u32 %v769_v24, %v768_v31  ;;  %v772_v44 = vrot.slane %v768_v31, 4  ;;  %v779_v45 = vor.u32 %v777_v26, %v776_v32  ;;  %v781_v46 = vrot.slane %v776_v32, 4 }
  0x63   : > { %1080 = vst [vmem:[#allocation2 + $0x14] sm:$0x1] %v1079_v39  ;;  %v794_v50 = vshll.u32 %v4794_v34, 16  ;;  %v800_v56 = vshrl.u32 %v4795_v42, 16  ;;  %v785_v57 = vrot.slane %v783_v47, 7  ;;  %v793_v58 = vrot.slane %v791_v49, 7 }
  0x64   : > { %v1082_v53 = vsel %vm5900_vm5, %v771_v43, %v1081_v40  ;;  %v780_v54 = vsel %vm5906_vm6, %v772_v44, %v779_v45  ;;  %v1086_v55 = vsel %vm5912_vm7, %v781_v46, %v1085_v41  ;;  %v803_v59 = vshll.u32 %v4795_v42, 16  ;;  %v1099_v24 = vld [vmem:[#allocation2 + $0x38] sm:$0x1]  ;;  %v4950_v39 = vld [vmem:[%s5859_s19 + $0x38] sm:$0xff]  }
  0x65   : > { %1083 = vst [vmem:[#allocation2 + $0x18] sm:$0xf] %v1082_v53  ;;  %1084 = vst [vmem:[#allocation2 + $0x1c] sm:$0xf] %v780_v54  ;;  %v802_v63 = vrot.slane %v800_v56, 7  ;;  %v4858_v0 = vunpack.c.l.bf16 %v4947_v51  ;;  %v4859_v1 = vunpack.c.h.bf16 %v4947_v51  ;;  %v4862_v2 = vunpack.c.l.bf16 %v4948_v52 }
  0x66   : > { %1087 = vst [vmem:[#allocation2 + $0x20] sm:$0x1] %v1086_v55  ;;  %v788_v3 = vor.u32 %v786_v48, %v785_v57  ;;  %v789_v4 = vrot.slane %v785_v57, 4  ;;  %v796_v5 = vor.u32 %v794_v50, %v793_v58  ;;  %v798_v6 = vrot.slane %v793_v58, 4 }
  0x67   : > { %v805_v8 = vor.u32 %v803_v59, %v802_v63  ;;  %v806_v9 = vrot.slane %v802_v63, 4  ;;  %v808_v11 = vshrl.u32 %v4796_v60, 16  ;;  %v811_v12 = vshll.u32 %v4796_v60, 16 }
  0x68   : > { %v1089_v14 = vsel %vm5900_vm5, %v788_v3, %v1088_v61  ;;  %v797_v15 = vsel %vm5906_vm6, %v789_v4, %v796_v5  ;;  %v1093_v16 = vsel %vm5912_vm7, %v798_v6, %v1092_v62  ;;  %v554_v18 = vmul.f32 %v4858_v0, %v5872_v35  ;;  %v1102_v0 = vld [vmem:[#allocation2 + $0x3c] sm:$0xf] }
  0x69   : > { %1090 = vst [vmem:[#allocation2 + $0x24] sm:$0xf] %v1089_v14  ;;  %1091 = vst [vmem:[#allocation2 + $0x28] sm:$0xf] %v797_v15  ;;  %v1096_v19 = vsel %vm5900_vm5, %v805_v8, %v1095_v7  ;;  %v810_v20 = vrot.slane %v808_v11, 7  ;;  %v555_v22 = vmul.f32 %v4859_v1, %v5872_v35  ;;  %v556_v23 = vmul.f32 %v4862_v2, %v5872_v35 }
  0x6a   : > { %1094 = vst [vmem:[#allocation2 + $0x2c] sm:$0x1] %v1093_v16  ;;  %1097 = vst [vmem:[#allocation2 + $0x30] sm:$0xf] %v1096_v19  ;;  %v593_v25 = vadd.f32 %v5877_v38, %v554_v18  ;;  %v4863_v26 = vunpack.c.h.bf16 %v4948_v52  ;;  %v4866_v27 = vunpack.c.l.bf16 %v4949_v13  ;;  %v4867_v28 = vunpack.c.h.bf16 %v4949_v13  ;;  %v1106_v2 = vld [vmem:[#allocation2 + $0x44] sm:$0x1] }
  0x6b   : > { %v813_v29 = vor.u32 %v811_v12, %v810_v20  ;;  %v815_v30 = vrot.slane %v810_v20, 4  ;;  %v594_v31 = vadd.f32 %v5877_v38, %v555_v22  ;;  %v595_v32 = vadd.f32 %v5877_v38, %v556_v23  ;;  %v1109_v8 = vld [vmem:[#allocation2 + $0x48] sm:$0xf]  ;;  %v4951_v22 = vld [vmem:[%s5859_s19 + $0x40] sm:$0xff]  }
  0x6c   : > { %v625_v33 = vmax.f32 %v593_v25, 0.0  ;;  %v557_v34 = vmul.f32 %v4863_v26, %v5872_v35  ;;  %v558_v36 = vmul.f32 %v4866_v27, %v5872_v35  ;;  %v559_v37 = vmul.f32 %v4867_v28, %v5872_v35  ;;  %v1113_v26 = vld [vmem:[#allocation2 + $0x50] sm:$0x1] }
  0x6d   : > { %v814_v40 = vsel %vm5906_vm6, %v806_v9, %v813_v29  ;;  %v1100_v41 = vsel %vm5912_vm7, %v815_v30, %v1099_v24  ;;  %v626_v42 = vmax.f32 %v594_v31, 0.0  ;;  %v627_v43 = vmax.f32 %v595_v32, 0.0  ;;  %v1116_v32 = vld [vmem:[#allocation2 + $0x54] sm:$0xf] }
  0x6e   : > { %1098 = vst [vmem:[#allocation2 + $0x34] sm:$0xf] %v814_v40  ;;  %1101 = vst [vmem:[#allocation2 + $0x38] sm:$0x1] %v1100_v41  ;;  %v4797_v44 = vpack.c.bf16 %v625_v33, %v625_v33  ;;  %v596_v45 = vadd.f32 %v5877_v38, %v557_v34  ;;  %v597_v46 = vadd.f32 %v5877_v38, %v558_v36  ;;  %v4870_v50 = vunpack.c.l.bf16 %v4950_v39 }
  0x6f   : > { %v598_v47 = vadd.f32 %v5877_v38, %v559_v37  ;;  %v4798_v48 = vpack.c.bf16 %v626_v42, %v626_v42  ;;  %v4799_v49 = vpack.c.bf16 %v627_v43, %v627_v43  ;;  %v4871_v51 = vunpack.c.h.bf16 %v4950_v39  ;;  %v4952_v39 = vld [vmem:[%s5859_s19 + $0x48] sm:$0xff]  }
  0x70   : > { %v817_v52 = vshrl.u32 %v4797_v44, 16  ;;  %v820_v53 = vshll.u32 %v4797_v44, 16  ;;  %v628_v54 = vmax.f32 %v596_v45, 0.0  ;;  %v629_v55 = vmax.f32 %v597_v46, 0.0 }
  0x71   : > { %v825_v56 = vshrl.u32 %v4798_v48, 16  ;;  %v828_v57 = vshll.u32 %v4798_v48, 16  ;;  %v834_v58 = vshrl.u32 %v4799_v49, 16  ;;  %v837_v59 = vshll.u32 %v4799_v49, 16  ;;  %v1120_v49 = vld [vmem:[#allocation2 + $0x5c] sm:$0x1] }
  0x72   : > { %v819_v60 = vrot.slane %v817_v52, 7  ;;  %v4800_v61 = vpack.c.bf16 %v628_v54, %v628_v54  ;;  %v4801_v62 = vpack.c.bf16 %v629_v55, %v629_v55  ;;  %v630_v63 = vmax.f32 %v598_v47, 0.0 }
  0x73   : > { %v827_v1 = vrot.slane %v825_v56, 7  ;;  %v836_v3 = vrot.slane %v834_v58, 7  ;;  %v560_v4 = vmul.f32 %v4870_v50, %v5872_v35  ;;  %v561_v5 = vmul.f32 %v4871_v51, %v5872_v35 }
  0x74   : > { %v822_v6 = vor.u32 %v820_v53, %v819_v60  ;;  %v823_v7 = vrot.slane %v819_v60, 4  ;;  %v842_v9 = vshrl.u32 %v4800_v61, 16  ;;  %v845_v11 = vshll.u32 %v4800_v61, 16  ;;  %v4953_v61 = vld [vmem:[%s5859_s19 + $0x50] sm:$0xff]  }
  0x75   : > { %v830_v12 = vor.u32 %v828_v57, %v827_v1  ;;  %v832_v13 = vrot.slane %v827_v1, 4  ;;  %v839_v14 = vor.u32 %v837_v59, %v836_v3  ;;  %v840_v15 = vrot.slane %v836_v3, 4 }
  0x76   : > { %v1103_v16 = vsel %vm5900_vm5, %v822_v6, %v1102_v0  ;;  %v844_v18 = vrot.slane %v842_v9, 7  ;;  %v851_v19 = vshrl.u32 %v4801_v62, 16  ;;  %v854_v20 = vshll.u32 %v4801_v62, 16 }
  0x77   : > { %1104 = vst [vmem:[#allocation2 + $0x3c] sm:$0xf] %v1103_v16  ;;  %v831_v23 = vsel %vm5906_vm6, %v823_v7, %v830_v12  ;;  %v1107_v24 = vsel %vm5912_vm7, %v832_v13, %v1106_v2  ;;  %v1110_v25 = vsel %vm5900_vm5, %v839_v14, %v1109_v8  ;;  %v4802_v27 = vpack.c.bf16 %v630_v63, %v630_v63 }
  0x78   : > { %1105 = vst [vmem:[#allocation2 + $0x40] sm:$0xf] %v831_v23  ;;  %1108 = vst [vmem:[#allocation2 + $0x44] sm:$0x1] %v1107_v24  ;;  %v847_v28 = vor.u32 %v845_v11, %v844_v18  ;;  %v849_v29 = vrot.slane %v844_v18, 4  ;;  %v853_v30 = vrot.slane %v851_v19, 7  ;;  %v599_v31 = vadd.f32 %v5877_v38, %v560_v4 }
  0x79   : > { %1111 = vst [vmem:[#allocation2 + $0x48] sm:$0xf] %v1110_v25  ;;  %v859_v33 = vshrl.u32 %v4802_v27, 16  ;;  %v862_v34 = vshll.u32 %v4802_v27, 16  ;;  %v600_v36 = vadd.f32 %v5877_v38, %v561_v5  ;;  %v4874_v37 = vunpack.c.l.bf16 %v4951_v22  ;;  %v1123_v11 = vld [vmem:[#allocation2 + $0x60] sm:$0xf] }
  0x7a   : > { %v848_v40 = vsel %vm5906_vm6, %v840_v15, %v847_v28  ;;  %v1114_v41 = vsel %vm5912_vm7, %v849_v29, %v1113_v26  ;;  %v856_v42 = vor.u32 %v854_v20, %v853_v30  ;;  %v857_v43 = vrot.slane %v853_v30, 4  ;;  %v1127_v19 = vld [vmem:[#allocation2 + $0x68] sm:$0x1] }
  0x7b   : > { %1112 = vst [vmem:[#allocation2 + $0x4c] sm:$0xf] %v848_v40  ;;  %1115 = vst [vmem:[#allocation2 + $0x50] sm:$0x1] %v1114_v41  ;;  %v861_v44 = vrot.slane %v859_v33, 7  ;;  %v631_v45 = vmax.f32 %v599_v31, 0.0  ;;  %v562_v47 = vmul.f32 %v4874_v37, %v5872_v35  ;;  %v4875_v50 = vunpack.c.h.bf16 %v4951_v22 }
  0x7c   : > { %v632_v46 = vmax.f32 %v600_v36, 0.0  ;;  %v1117_v48 = vsel %vm5900_vm5, %v856_v42, %v1116_v32  ;;  %v4878_v51 = vunpack.c.l.bf16 %v4952_v39  ;;  %v4879_v52 = vunpack.c.h.bf16 %v4952_v39  ;;  %v4954_v42 = vld [vmem:[%s5859_s19 + $0x58] sm:$0xff]  }
  0x7d   : > { %1118 = vst [vmem:[#allocation2 + $0x54] sm:$0xf] %v1117_v48  ;;  %v864_v53 = vor.u32 %v862_v34, %v861_v44  ;;  %v866_v54 = vrot.slane %v861_v44, 4  ;;  %v4803_v55 = vpack.c.bf16 %v631_v45, %v631_v45  ;;  %v601_v57 = vadd.f32 %v5877_v38, %v562_v47  ;;  %v1130_v34 = vld [vmem:[#allocation2 + $0x6c] sm:$0xf] }
  0x7e   : > { %v4804_v56 = vpack.c.bf16 %v632_v46, %v632_v46  ;;  %v563_v58 = vmul.f32 %v4875_v50, %v5872_v35  ;;  %v564_v59 = vmul.f32 %v4878_v51, %v5872_v35  ;;  %v565_v60 = vmul.f32 %v4879_v52, %v5872_v35  ;;  %v1134_v52 = vld [vmem:[#allocation2 + $0x74] sm:$0x1] }
  0x7f   : > { %v865_v62 = vsel %vm5906_vm6, %v857_v43, %v864_v53  ;;  %v1121_v63 = vsel %vm5912_vm7, %v866_v54, %v1120_v49  ;;  %v868_v0 = vshrl.u32 %v4803_v55, 16  ;;  %v871_v1 = vshll.u32 %v4803_v55, 16  ;;  %v1137_v53 = vld [vmem:[#allocation2 + $0x78] sm:$0xf] }
  0x80   : > { %1119 = vst [vmem:[#allocation2 + $0x58] sm:$0xf] %v865_v62  ;;  %1122 = vst [vmem:[#allocation2 + $0x5c] sm:$0x1] %v1121_v63  ;;  %v876_v2 = vshrl.u32 %v4804_v56, 16  ;;  %v879_v3 = vshll.u32 %v4804_v56, 16  ;;  %v602_v5 = vadd.f32 %v5877_v38, %v563_v58  ;;  %v603_v7 = vadd.f32 %v5877_v38, %v564_v59 }
  0x81   : > { %v633_v4 = vmax.f32 %v601_v57, 0.0  ;;  %v870_v6 = vrot.slane %v868_v0, 7  ;;  %v604_v8 = vadd.f32 %v5877_v38, %v565_v60  ;;  %v4882_v9 = vunpack.c.l.bf16 %v4953_v61 }
  0x82   : > { %v878_v12 = vrot.slane %v876_v2, 7  ;;  %v634_v14 = vmax.f32 %v602_v5, 0.0  ;;  %v4883_v15 = vunpack.c.h.bf16 %v4953_v61  ;;  %v635_v20 = vmax.f32 %v603_v7, 0.0  ;;  %v1141_v61 = vld [vmem:[#allocation2 + $0x80] sm:$0x1]  ;;  %v4955_v2 = vld [vmem:[%s5859_s19 + $0x60] sm:$0xff]  }
  0x83   : > { %v4805_v13 = vpack.c.bf16 %v633_v4, %v633_v4  ;;  %v873_v16 = vor.u32 %v871_v1, %v870_v6  ;;  %v874_v18 = vrot.slane %v870_v6, 4  ;;  %v636_v22 = vmax.f32 %v604_v8, 0.0  ;;  %v6011_v7 = vld [vmem:[%s5859_s19 + $0x68] sm:$0xff]  }
  0x84   : > { %v881_v23 = vor.u32 %v879_v3, %v878_v12  ;;  %v883_v24 = vrot.slane %v878_v12, 4  ;;  %v4806_v28 = vpack.c.bf16 %v634_v14, %v634_v14  ;;  %v4807_v29 = vpack.c.bf16 %v635_v20, %v635_v20 }
  0x85   : > { %v885_v25 = vshrl.u32 %v4805_v13, 16  ;;  %v888_v26 = vshll.u32 %v4805_v13, 16  ;;  %v1124_v27 = vsel %vm5900_vm5, %v873_v16, %v1123_v11  ;;  %v4808_v30 = vpack.c.bf16 %v636_v22, %v636_v22 }
  0x86   : > { %1125 = vst [vmem:[#allocation2 + $0x60] sm:$0xf] %v1124_v27  ;;  %v882_v31 = vsel %vm5906_vm6, %v874_v18, %v881_v23  ;;  %v1128_v32 = vsel %vm5912_vm7, %v883_v24, %v1127_v19  ;;  %v566_v36 = vmul.f32 %v4882_v9, %v5872_v35  ;;  %v893_v37 = vshrl.u32 %v4806_v28, 16 }
  0x87   : > { %v887_v33 = vrot.slane %v885_v25, 7  ;;  %1126 = vst [vmem:[#allocation2 + $0x64] sm:$0xf] %v882_v31  ;;  %1129 = vst [vmem:[#allocation2 + $0x68] sm:$0x1] %v1128_v32  ;;  %v896_v39 = vshll.u32 %v4806_v28, 16  ;;  %v567_v50 = vmul.f32 %v4883_v15, %v5872_v35  ;;  %v4886_v55 = vunpack.c.l.bf16 %v4954_v42 }
  0x88   : > { %v902_v40 = vshrl.u32 %v4807_v29, 16  ;;  %v905_v41 = vshll.u32 %v4807_v29, 16  ;;  %v910_v45 = vshrl.u32 %v4808_v30, 16  ;;  %v913_v46 = vshll.u32 %v4808_v30, 16  ;;  %v1144_v31 = vld [vmem:[#allocation2 + $0x84] sm:$0xf] }
  0x89   : > { %v890_v43 = vor.u32 %v888_v26, %v887_v33  ;;  %v891_v44 = vrot.slane %v887_v33, 4  ;;  %v895_v47 = vrot.slane %v893_v37, 7  ;;  %v605_v49 = vadd.f32 %v5877_v38, %v566_v36 }
  0x8a   : > { %v904_v48 = vrot.slane %v902_v40, 7  ;;  %v912_v54 = vrot.slane %v910_v45, 7  ;;  %v4887_v56 = vunpack.c.h.bf16 %v4954_v42  ;;  %v606_v1 = vadd.f32 %v5877_v38, %v567_v50  ;;  %v1148_v42 = vld [vmem:[#allocation2 + $0x8c] sm:$0x1] }
  0x8b   : > { %v1131_v51 = vsel %vm5900_vm5, %v890_v43, %v1130_v34  ;;  %v898_v57 = vor.u32 %v896_v39, %v895_v47  ;;  %v900_v58 = vrot.slane %v895_v47, 4  ;;  %v637_v0 = vmax.f32 %v605_v49, 0.0 }
  0x8c   : > { %1132 = vst [vmem:[#allocation2 + $0x6c] sm:$0xf] %v1131_v51  ;;  %v907_v59 = vor.u32 %v905_v41, %v904_v48  ;;  %v908_v60 = vrot.slane %v904_v48, 4  ;;  %v915_v62 = vor.u32 %v913_v46, %v912_v54  ;;  %v917_v63 = vrot.slane %v912_v54, 4 }
  0x8d   : > { %v899_v3 = vsel %vm5906_vm6, %v891_v44, %v898_v57  ;;  %v1135_v4 = vsel %vm5912_vm7, %v900_v58, %v1134_v52  ;;  %v568_v6 = vmul.f32 %v4886_v55, %v5872_v35  ;;  %v4809_v11 = vpack.c.bf16 %v637_v0, %v637_v0  ;;  %v1151_v57 = vld [vmem:[#allocation2 + $0x90] sm:$0xf]  ;;  %v1155_v0 = vld [vmem:[#allocation2 + $0x98] sm:$0x1] }
  0x8e   : > { %v1138_v5 = vsel %vm5900_vm5, %v907_v59, %v1137_v53  ;;  %1133 = vst [vmem:[#allocation2 + $0x70] sm:$0xf] %v899_v3  ;;  %1136 = vst [vmem:[#allocation2 + $0x74] sm:$0x1] %v1135_v4  ;;  %v916_v8 = vsel %vm5906_vm6, %v908_v60, %v915_v62  ;;  %v1142_v9 = vsel %vm5912_vm7, %v917_v63, %v1141_v61  ;;  %v638_v12 = vmax.f32 %v606_v1, 0.0 }
  0x8f   : > { %1139 = vst [vmem:[#allocation2 + $0x78] sm:$0xf] %v1138_v5  ;;  %1140 = vst [vmem:[#allocation2 + $0x7c] sm:$0xf] %v916_v8  ;;  %v607_v13 = vadd.f32 %v5877_v38, %v568_v6  ;;  %v569_v14 = vmul.f32 %v4887_v56, %v5872_v35  ;;  %v4890_v15 = vunpack.c.l.bf16 %v4955_v2  ;;  %v4891_v16 = vunpack.c.h.bf16 %v4955_v2 }
  0x90   : > { %1143 = vst [vmem:[#allocation2 + $0x80] sm:$0x1] %v1142_v9  ;;  %v919_v18 = vshrl.u32 %v4809_v11, 16  ;;  %v922_v19 = vshll.u32 %v4809_v11, 16  ;;  %v4810_v20 = vpack.c.bf16 %v638_v12, %v638_v12  ;;  %v4894_v22 = vunpack.c.l.bf16 %v6011_v7  ;;  %v1158_v11 = vld [vmem:[#allocation2 + $0x9c] sm:$0xf] }
  0x91   : > { %v639_v23 = vmax.f32 %v607_v13, 0.0  ;;  %v608_v24 = vadd.f32 %v5877_v38, %v569_v14  ;;  %v570_v25 = vmul.f32 %v4890_v15, %v5872_v35  ;;  %v571_v26 = vmul.f32 %v4891_v16, %v5872_v35  ;;  %v4957_v16 = vld [vmem:[%s5859_s19 + $0x70] sm:$0xff]  }
  0x92   : > { %v921_v27 = vrot.slane %v919_v18, 7  ;;  %v927_v28 = vshrl.u32 %v4810_v20, 16  ;;  %v930_v29 = vshll.u32 %v4810_v20, 16  ;;  %v572_v30 = vmul.f32 %v4894_v22, %v5872_v35  ;;  %v4958_v18 = vld [vmem:[%s5859_s19 + $0x78] sm:$0xff]  }
  0x93   : > { %v4811_v32 = vpack.c.bf16 %v639_v23, %v639_v23  ;;  %v640_v33 = vmax.f32 %v608_v24, 0.0  ;;  %v609_v34 = vadd.f32 %v5877_v38, %v570_v25  ;;  %v610_v36 = vadd.f32 %v5877_v38, %v571_v26  ;;  %v1162_v24 = vld [vmem:[#allocation2 + $0xa4] sm:$0x1] }
  0x94   : > { %v924_v37 = vor.u32 %v922_v19, %v921_v27  ;;  %v925_v39 = vrot.slane %v921_v27, 4  ;;  %v929_v40 = vrot.slane %v927_v28, 7  ;;  %v611_v41 = vadd.f32 %v5877_v38, %v572_v30 }
  0x95   : > { %v936_v43 = vshrl.u32 %v4811_v32, 16  ;;  %v939_v44 = vshll.u32 %v4811_v32, 16  ;;  %v4812_v45 = vpack.c.bf16 %v640_v33, %v640_v33  ;;  %v641_v46 = vmax.f32 %v609_v34, 0.0 }
  0x96   : > { %v1145_v47 = vsel %vm5900_vm5, %v924_v37, %v1144_v31  ;;  %v932_v48 = vor.u32 %v930_v29, %v929_v40  ;;  %v934_v49 = vrot.slane %v929_v40, 4  ;;  %v642_v50 = vmax.f32 %v610_v36, 0.0  ;;  %v1165_v29 = vld [vmem:[#allocation2 + $0xa8] sm:$0xf] }
  0x97   : > { %1146 = vst [vmem:[#allocation2 + $0x84] sm:$0xf] %v1145_v47  ;;  %v938_v51 = vrot.slane %v936_v43, 7  ;;  %v944_v52 = vshrl.u32 %v4812_v45, 16  ;;  %v947_v53 = vshll.u32 %v4812_v45, 16  ;;  %v4813_v54 = vpack.c.bf16 %v641_v46, %v641_v46 }
  0x98   : > { %v933_v55 = vsel %vm5906_vm6, %v925_v39, %v932_v48  ;;  %v1149_v56 = vsel %vm5912_vm7, %v934_v49, %v1148_v42  ;;  %v4814_v58 = vpack.c.bf16 %v642_v50, %v642_v50  ;;  %v643_v59 = vmax.f32 %v611_v41, 0.0 }
  0x99   : > { %1147 = vst [vmem:[#allocation2 + $0x88] sm:$0xf] %v933_v55  ;;  %1150 = vst [vmem:[#allocation2 + $0x8c] sm:$0x1] %v1149_v56  ;;  %v941_v60 = vor.u32 %v939_v44, %v938_v51  ;;  %v942_v61 = vrot.slane %v938_v51, 4  ;;  %v946_v62 = vrot.slane %v944_v52, 7  ;;  %v4895_v15 = vunpack.c.h.bf16 %v6011_v7 }
  0x9a   : > { %v953_v63 = vshrl.u32 %v4813_v54, 16  ;;  %v956_v1 = vshll.u32 %v4813_v54, 16  ;;  %v961_v2 = vshrl.u32 %v4814_v58, 16  ;;  %v964_v3 = vshll.u32 %v4814_v58, 16 }
  0x9b   : > { %v4815_v4 = vpack.c.bf16 %v643_v59, %v643_v59  ;;  %v1152_v5 = vsel %vm5900_vm5, %v941_v60, %v1151_v57  ;;  %v949_v6 = vor.u32 %v947_v53, %v946_v62  ;;  %v951_v8 = vrot.slane %v946_v62, 4  ;;  %v1169_v62 = vld [vmem:[#allocation2 + $0xb0] sm:$0x1] }
  0x9c   : > { %v955_v9 = vrot.slane %v953_v63, 7  ;;  %1153 = vst [vmem:[#allocation2 + $0x90] sm:$0xf] %v1152_v5  ;;  %v963_v12 = vrot.slane %v961_v2, 7  ;;  %v573_v28 = vmul.f32 %v4895_v15, %v5872_v35  ;;  %v4898_v30 = vunpack.c.l.bf16 %v4957_v16 }
  0x9d   : > { %v970_v13 = vshrl.u32 %v4815_v4, 16  ;;  %v973_v14 = vshll.u32 %v4815_v4, 16  ;;  %v950_v19 = vsel %vm5906_vm6, %v942_v61, %v949_v6  ;;  %v1156_v20 = vsel %vm5912_vm7, %v951_v8, %v1155_v0 }
  0x9e   : > { %v958_v22 = vor.u32 %v956_v1, %v955_v9  ;;  %v959_v23 = vrot.slane %v955_v9, 4  ;;  %1154 = vst [vmem:[#allocation2 + $0x94] sm:$0xf] %v950_v19  ;;  %1157 = vst [vmem:[#allocation2 + $0x98] sm:$0x1] %v1156_v20  ;;  %v966_v25 = vor.u32 %v964_v3, %v963_v12  ;;  %v968_v26 = vrot.slane %v963_v12, 4 }
  0x9f   : > { %v972_v27 = vrot.slane %v970_v13, 7  ;;  %v4899_v31 = vunpack.c.h.bf16 %v4957_v16  ;;  %v4902_v32 = vunpack.c.l.bf16 %v4958_v18  ;;  %v612_v37 = vadd.f32 %v5877_v38, %v573_v28  ;;  %v1172_v12 = vld [vmem:[#allocation2 + $0xb4] sm:$0xf]  ;;  %v1176_v13 = vld [vmem:[#allocation2 + $0xbc] sm:$0x1] }
  0xa0   : > { %v1159_v7 = vsel %vm5900_vm5, %v958_v22, %v1158_v11  ;;  %v967_v33 = vsel %vm5906_vm6, %v959_v23, %v966_v25  ;;  %v1163_v34 = vsel %vm5912_vm7, %v968_v26, %v1162_v24  ;;  %v574_v39 = vmul.f32 %v4898_v30, %v5872_v35  ;;  %v1179_v20 = vld [vmem:[#allocation2 + $0xc0] sm:$0xf]  ;;  %v1183_v30 = vld [vmem:[#allocation2 + $0xc8] sm:$0x1] }
  0xa1   : > { %1160 = vst [vmem:[#allocation2 + $0x9c] sm:$0xf] %v1159_v7  ;;  %v975_v36 = vor.u32 %v973_v14, %v972_v27  ;;  %1161 = vst [vmem:[#allocation2 + $0xa0] sm:$0xf] %v967_v33  ;;  %v575_v40 = vmul.f32 %v4899_v31, %v5872_v35  ;;  %v576_v41 = vmul.f32 %v4902_v32, %v5872_v35  ;;  %v644_v43 = vmax.f32 %v612_v37, 0.0 }
  0xa2   : > { %1164 = vst [vmem:[#allocation2 + $0xa4] sm:$0x1] %v1163_v34  ;;  %v4903_v44 = vunpack.c.h.bf16 %v4958_v18  ;;  %v613_v45 = vadd.f32 %v5877_v38, %v574_v39  ;;  %v976_v59 = vrot.slane %v972_v27, 4 }
  0xa3   : > { %v1166_v42 = vsel %vm5900_vm5, %v975_v36, %v1165_v29  ;;  %v614_v46 = vadd.f32 %v5877_v38, %v575_v40  ;;  %v615_v47 = vadd.f32 %v5877_v38, %v576_v41  ;;  %v4816_v48 = vpack.c.bf16 %v644_v43, %v644_v43 }
  0xa4   : > { %1167 = vst [vmem:[#allocation2 + $0xa8] sm:$0xf] %v1166_v42  ;;  %v577_v49 = vmul.f32 %v4903_v44, %v5872_v35  ;;  %v645_v50 = vmax.f32 %v613_v45, 0.0 }
  0xa5   : > { %v646_v51 = vmax.f32 %v614_v46, 0.0  ;;  %v647_v52 = vmax.f32 %v615_v47, 0.0  ;;  %v978_v53 = vshrl.u32 %v4816_v48, 16  ;;  %v981_v54 = vshll.u32 %v4816_v48, 16 }
  0xa6   : > { %v616_v55 = vadd.f32 %v5877_v38, %v577_v49  ;;  %v4817_v56 = vpack.c.bf16 %v645_v50, %v645_v50 }
  0xa7   : > { %v4818_v57 = vpack.c.bf16 %v646_v51, %v646_v51  ;;  %v4819_v58 = vpack.c.bf16 %v647_v52, %v647_v52  ;;  %v980_v60 = vrot.slane %v978_v53, 7 }
  0xa8   : > { %v648_v61 = vmax.f32 %v616_v55, 0.0  ;;  %v987_v63 = vshrl.u32 %v4817_v56, 16  ;;  %v990_v0 = vshll.u32 %v4817_v56, 16 }
  0xa9   : > { %v995_v1 = vshrl.u32 %v4818_v57, 16  ;;  %v998_v2 = vshll.u32 %v4818_v57, 16  ;;  %v983_v3 = vor.u32 %v981_v54, %v980_v60  ;;  %v985_v35 = vrot.slane %v980_v60, 4 }
  0xaa   : > { %v1004_v4 = vshrl.u32 %v4819_v58, 16  ;;  %v1007_v5 = vshll.u32 %v4819_v58, 16  ;;  %v989_v6 = vrot.slane %v987_v63, 7  ;;  %v4820_v9 = vpack.c.bf16 %v648_v61, %v648_v61 }
  0xab   : > { %v997_v8 = vrot.slane %v995_v1, 7  ;;  %v984_v38 = vsel %vm5906_vm6, %v976_v59, %v983_v3  ;;  %v1170_v11 = vsel %vm5912_vm7, %v985_v35, %v1169_v62 }
  0xac   : > { %v1006_v14 = vrot.slane %v1004_v4, 7  ;;  %1168 = vst [vmem:[#allocation2 + $0xac] sm:$0xf] %v984_v38  ;;  %1171 = vst [vmem:[#allocation2 + $0xb0] sm:$0x1] %v1170_v11  ;;  %v992_v15 = vor.u32 %v990_v0, %v989_v6  ;;  %v993_v16 = vrot.slane %v989_v6, 4 }
  0xad   : > { %v1000_v18 = vor.u32 %v998_v2, %v997_v8  ;;  %v1002_v19 = vrot.slane %v997_v8, 4  ;;  %v1012_v23 = vshrl.u32 %v4820_v9, 16  ;;  %v1015_v24 = vshll.u32 %v4820_v9, 16 }
  0xae   : > { %v1009_v22 = vor.u32 %v1007_v5, %v1006_v14  ;;  %v1173_v25 = vsel %vm5900_vm5, %v992_v15, %v1172_v12  ;;  %v1010_v7 = vrot.slane %v1006_v14, 4 }
  0xaf   : > { %v1001_v26 = vsel %vm5906_vm6, %v993_v16, %v1000_v18  ;;  %v1177_v27 = vsel %vm5912_vm7, %v1002_v19, %v1176_v13  ;;  %1174 = vst [vmem:[#allocation2 + $0xb4] sm:$0xf] %v1173_v25  ;;  %v1014_v29 = vrot.slane %v1012_v23, 7 }
  0xb0   : > { %1175 = vst [vmem:[#allocation2 + $0xb8] sm:$0xf] %v1001_v26  ;;  %1178 = vst [vmem:[#allocation2 + $0xbc] sm:$0x1] %v1177_v27  ;;  %v1180_v28 = vsel %vm5900_vm5, %v1009_v22, %v1179_v20 }
  0xb1   : > { %1181 = vst [vmem:[#allocation2 + $0xc0] sm:$0xf] %v1180_v28  ;;  %v1017_v31 = vor.u32 %v1015_v24, %v1014_v29  ;;  %v1019_v32 = vrot.slane %v1014_v29, 4 }
  0xb3   : > { %v1018_v33 = vsel %vm5906_vm6, %v1010_v7, %v1017_v31  ;;  %v1184_v34 = vsel %vm5912_vm7, %v1019_v32, %v1183_v30 }
  0xb4   : > { %1182 = vst [vmem:[#allocation2 + $0xc4] sm:$0xf] %v1018_v33  ;;  %1185 = vst [vmem:[#allocation2 + $0xc8] sm:$0x1] %v1184_v34 }
  0xb5 LB: >> { %v5576_v10 = vld [vmem:[%s7150_s3 + $0x40] sm:$0xff]   ;;  %v5578_v21 = vld [vmem:[%s7150_s3 + $0x48] sm:$0xff]   ;;  %v5580_v37 = vld [vmem:[%s7150_s3 + $0x50] sm:$0xff]   ;;  %s4821_s27 = smul.u32 96, %s5706_s7  ;;  %vm1236_vm8 = vsmask.f32 3328  ;;  %s5706_s7 = sphi %s6076_s7, %s1191_s7  }
  0xb6   : >> { %v5577_v17 = vld [vmem:[%s7150_s3 + $0x100] sm:$0xff]   ;;  %5110 = vmatprep.subr.bf16.mxu1 %v5576_v10  ;;  %v5579_v36 = vld [vmem:[%s7150_s3 + $0x108] sm:$0xff]   ;;  %v5581_v39 = vld [vmem:[%s7150_s3 + $0x110] sm:$0xff]   ;;  %vm1237_vm9 = vsmask.f32 7440  ;;  %vm1842_vm11 = vcmask 1042432  }
  0xb7   : >> { %5238 = vmatprep.subr.bf16.mxu0 %v5577_v17  ;;  %5111 = vmatpush3.bf16.msra.mxu1 %v5576_v10  ;;  %v5582_v40 = vld [vmem:[%s7150_s3 + $0x58] sm:$0xff]   ;;  %v5584_v42 = vld [vmem:[%s7150_s3 + $0x60] sm:$0xff]   ;;  %v5586_v44 = vld [vmem:[%s7150_s3 + $0x68] sm:$0xff]   ;;  %s6118_s14 = scalar_lea.vmem [#allocation2], %s4821_s27  ;;  %vm1843_vm12 = vcmask 1046532  }
  0xb8   : >> { %5239 = vmatpush3.bf16.msra.mxu0 %v5577_v17  ;;  %5112 = vmatprep.subr.bf16.mxu1 %v5578_v21  ;;  %v5583_v41 = vld [vmem:[%s7150_s3 + $0x118] sm:$0xff]   ;;  %v5585_v43 = vld [vmem:[%s7150_s3 + $0x120] sm:$0xff]   ;;  %v5587_v45 = vld [vmem:[%s7150_s3 + $0x128] sm:$0xff]  }
  0xb9   : >> { %5240 = vmatprep.subr.bf16.mxu0 %v5579_v36  ;;  %v5588_v59 = vld [vmem:[%s7150_s3 + $0x70] sm:$0xff]   ;;  %v5590_v4 = vld [vmem:[%s7150_s3 + $0x78] sm:$0xff]   ;;  %vm6157_vm10 = vmor %vm1236_vm8, %vm1237_vm9 }
  0xba   : >> { %v5589_v63 = vld [vmem:[%s7150_s3 + $0x130] sm:$0xff]   ;;  %v5591_v22 = vld [vmem:[%s7150_s3 + $0x138] sm:$0xff]   ;;  %vm6454_vm13 = vmor %vm1842_vm11, %vm1843_vm12 }
  0xbb   : >> { %5113 = vmatpush3.bf16.msra.mxu1 %v5578_v21  ;;  %v6121_v46 = vld [vmem:[%s6118_s14] sm:$0xf]  ;;  %v6124_v47 = vld [vmem:[%s6118_s14 + $0x4] sm:$0xf]  ;;  %v6127_v48 = vld [vmem:[%s6118_s14 + $0x8] sm:$0x1] }
  0xbc   : >> { %5241 = vmatpush3.bf16.msra.mxu0 %v5579_v36  ;;  %5114 = vmatprep.subr.bf16.mxu1 %v5580_v37  ;;  %v1240_v49 = vshrl.u32 %v6121_v46, 16  ;;  %v1243_v50 = vshll.u32 %v6121_v46, 16  ;;  %v1249_v51 = vshll.u32 %v6124_v47, 16  ;;  %v1253_v52 = vshrl.u32 %v6124_v47, 16  ;;  %v4509_v54 = vld [vmem:[%s6118_s14 + $0xc] sm:$0xf] }
  0xbd   : >> { %5242 = vmatprep.subr.bf16.mxu0 %v5581_v39  ;;  %v1259_v53 = vshll.u32 %v6127_v48, 16  ;;  %v6136_v57 = vld [vmem:[%s6118_s14 + $0x10] sm:$0xf]  ;;  %v6139_v58 = vld [vmem:[%s6118_s14 + $0x14] sm:$0x1]  ;;  %v2382_v62 = vshrl.u32 %v4509_v54, 16 }
  0xbe   : >> { %v1242_v55 = vrot.slane %v1240_v49, 4  ;;  %v1245_v56 = vrot.slane %v1243_v50, 5  ;;  %v1251_v60 = vrot.slane %v1249_v51, 5  ;;  %v1255_v61 = vrot.slane %v1253_v52, 4  ;;  %v6150_v35 = vld [vmem:[%s6118_s14 + $0xc] sm:$0xf] }
  0xbf   : >> { %5115 = vmatpush3.bf16.msra.mxu1 %v5580_v37  ;;  %v2385_v1 = vshll.u32 %v4509_v54, 16  ;;  %v2391_v2 = vshll.u32 %v6136_v57, 16  ;;  %v2395_v3 = vshrl.u32 %v6136_v57, 16  ;;  %v1261_v8 = vrot.slane %v1259_v53, 5  ;;  %v6163_v11 = vld [vmem:[%s6118_s14 + $0x10] sm:$0xf] }
  0xc0   : >> { %5243 = vmatpush3.bf16.msra.mxu0 %v5581_v39  ;;  %5116 = vmatprep.subr.bf16.mxu1 %v5582_v40  ;;  %v1246_v0 = vor.u32 %v1245_v56, %v1242_v55  ;;  %v1256_v6 = vor.u32 %v1255_v61, %v1251_v60  ;;  %v2384_v9 = vrot.slane %v2382_v62, 4  ;;  %v2401_v38 = vshll.u32 %v6139_v58, 16  ;;  %v6173_v26 = vld [vmem:[%s6118_s14 + $0x14] sm:$0x1]  ;;  %v4512_v28 = vld [vmem:[%s6118_s14 + $0x18] sm:$0xf] }
  0xc1   : >> { %5244 = vmatprep.subr.bf16.mxu0 %v5583_v41  ;;  %v2387_v13 = vrot.slane %v2385_v1, 5  ;;  %v2393_v14 = vrot.slane %v2391_v2, 5  ;;  %v2397_v15 = vrot.slane %v2395_v3, 4  ;;  %v1264_v19 = vshrl.u32 %v6150_v35, 16  ;;  %v6181_v32 = vld [vmem:[%s6118_s14 + $0x1c] sm:$0xf] }
  0xc2   : >> { %v1247_v12 = vrot.slane %v1246_v0, 4  ;;  %v1257_v16 = vrot.slane %v1256_v6, 4  ;;  %v2403_v18 = vrot.slane %v2401_v38, 5  ;;  %v1267_v20 = vshll.u32 %v6150_v35, 16  ;;  %v5592_v21 = vld [vmem:[%s7150_s3] sm:$0xff]  }
  0xc3   : >> { %5117 = vmatpush3.bf16.msra.mxu1 %v5582_v40  ;;  %v2388_v24 = vor.u32 %v2387_v13, %v2384_v9  ;;  %v2398_v25 = vor.u32 %v2397_v15, %v2393_v14  ;;  %v1273_v27 = vshll.u32 %v6163_v11, 16  ;;  %v1266_v29 = vrot.slane %v1264_v19, 4  ;;  %v6189_v36 = vld [vmem:[%s7150_s3 + $0x140] sm:$0xff]   ;;  %v6210_v3 = vld [vmem:[%s6118_s14 + $0x1c] sm:$0xf] }
  0xc4   : >> { %5245 = vmatpush3.bf16.msra.mxu0 %v5583_v41  ;;  %5118 = vmatprep.subr.bf16.mxu1 %v5584_v42  ;;  %v1252_v23 = vsel %vm6157_vm10, %v1247_v12, %v1251_v60  ;;  %v1262_v7 = vsel %vm6157_vm10, %v1257_v16, %v1261_v8  ;;  %v1269_v30 = vrot.slane %v1267_v20, 5  ;;  %v1277_v31 = vshrl.u32 %v6163_v11, 16  ;;  %v6193_v41 = vld [vmem:[%s6118_s14 + $0x20] sm:$0x1]  ;;  %v4515_v12 = vld [vmem:[%s6118_s14 + $0x24] sm:$0xf] }
  0xc5   : >> { %5246 = vmatprep.subr.bf16.mxu0 %v5585_v43  ;;  %v4387_v33 = vcombine.low %v1252_v23, %v1262_v7  ;;  %v2389_v34 = vrot.slane %v2388_v24, 4  ;;  %v2399_v10 = vrot.slane %v2398_v25, 4  ;;  %v1275_v17 = vrot.slane %v1273_v27, 5  ;;  %v5594_v16 = vld [vmem:[%s7150_s3 + $0x8] sm:$0xff]  }
  0xc6   : >> { %v1270_v37 = vor.u32 %v1269_v30, %v1266_v29  ;;  %v1279_v39 = vrot.slane %v1277_v31, 4  ;;  %v1283_v40 = vshll.u32 %v6173_v26, 16  ;;  %v2415_v55 = vshll.u32 %v6181_v32, 16  ;;  %v6225_v24 = vld [vmem:[%s6118_s14 + $0x28] sm:$0xf]  ;;  %v5596_v30 = vld [vmem:[%s7150_s3 + $0x10] sm:$0xff]  }
  0xc7   : >> { %5119 = vmatpush3.bf16.msra.mxu1 %v5584_v42  ;;  %5126 = vmatprep.mubr.bf16.mxu1 %v4387_v33  ;;  %v2394_v42 = vsel %vm6157_vm10, %v2389_v34, %v2393_v14  ;;  %v2419_v56 = vshrl.u32 %v6181_v32, 16  ;;  %v1297_v20 = vshll.u32 %v6210_v3, 16  ;;  %v6230_v7 = vld [vmem:[%s6118_s14 + $0x2c] sm:$0x1]  ;;  %v2430_v29 = vshrl.u32 %v4515_v12, 16 }
  0xc8   : >> { %5247 = vmatpush3.bf16.msra.mxu0 %v5585_v43  ;;  %5120 = vmatprep.subr.bf16.mxu1 %v5586_v44  ;;  %v2404_v43 = vsel %vm6157_vm10, %v2399_v10, %v2403_v18  ;;  %v1271_v50 = vrot.slane %v1270_v37, 4  ;;  %v1280_v51 = vor.u32 %v1279_v39, %v1275_v17  ;;  %v1285_v52 = vrot.slane %v1283_v40, 5  ;;  %v5595_v31 = vld [vmem:[%s7150_s3 + $0x148] sm:$0xff]   ;;  %v6239_v37 = vld [vmem:[%s6118_s14 + $0x24] sm:$0xf] }
  0xc9   : >> { %5248 = vmatprep.subr.bf16.mxu0 %v5587_v45  ;;  %v4549_v49 = vcombine.low %v2394_v42, %v2404_v43  ;;  %v2417_v1 = vrot.slane %v2415_v55, 5  ;;  %v2421_v2 = vrot.slane %v2419_v56, 4  ;;  %v1299_v33 = vrot.slane %v1297_v20, 5  ;;  %v4518_v56 = vld [vmem:[%s6118_s14 + $0x30] sm:$0xf] }
  0xca   : >> { %v1276_v61 = vsel %vm6157_vm10, %v1271_v50, %v1275_v17  ;;  %v1281_v62 = vrot.slane %v1280_v51, 4  ;;  %v2433_v17 = vshll.u32 %v4515_v12, 16  ;;  %v2432_v42 = vrot.slane %v2430_v29, 4  ;;  %v6246_v50 = vld [vmem:[%s6118_s14 + $0x28] sm:$0xf]  ;;  %v5598_v12 = vld [vmem:[%s7150_s3 + $0x18] sm:$0xff]  }
  0xcb   : >> { %5121 = vmatpush3.bf16.msra.mxu1 %v5586_v44  ;;  %v2406_v44 = vshrl.u32 %v4512_v28, 16  ;;  %5254 = vmatprep.mubr.bf16.mxu0 %v4549_v49  ;;  %v2422_v15 = vor.u32 %v2421_v2, %v2417_v1  ;;  %v2443_v49 = vshrl.u32 %v6225_v24, 16  ;;  %v6249_v51 = vld [vmem:[%s6118_s14 + $0x2c] sm:$0x1]  ;;  %v1312_v55 = vshrl.u32 %v6239_v37, 16  ;;  %v5597_v2 = vld [vmem:[%s7150_s3 + $0x150] sm:$0xff]  }
  0xcc   : >> { %5249 = vmatpush3.bf16.msra.mxu0 %v5587_v45  ;;  %5122 = vmatprep.subr.bf16.mxu1 %v5588_v59  ;;  %v2409_v45 = vshll.u32 %v4512_v28, 16  ;;  %v1286_v6 = vsel %vm6157_vm10, %v1281_v62, %v1285_v52  ;;  %v1331_v20 = vshll.u32 %v6249_v51, 16  ;;  %v5599_v29 = vld [vmem:[%s7150_s3 + $0x158] sm:$0xff]  }
  0xcd   : >> { %5250 = vmatprep.subr.bf16.mxu0 %v5589_v63  ;;  %v2408_v53 = vrot.slane %v2406_v44, 4  ;;  %v4388_v13 = vcombine.low %v1276_v61, %v1286_v6  ;;  %v2423_v27 = vrot.slane %v2422_v15, 4 }
  0xce   : >> { %v2411_v54 = vrot.slane %v2409_v45, 5  ;;  %v2435_v45 = vrot.slane %v2433_v17, 5 }
  0xcf   : >> { %5123 = vmatpush3.bf16.msra.mxu1 %v5588_v59  ;;  %v6202_v59 = vld [vmem:[%s6118_s14 + $0x18] sm:$0xf] }
  0xd0   : >> { %5251 = vmatpush3.bf16.msra.mxu0 %v5589_v63  ;;  %5124 = vmatprep.subr.bf16.mxu1 %v5590_v4  ;;  %v2425_v63 = vshll.u32 %v6193_v41, 16  ;;  %v2412_v0 = vor.u32 %v2411_v54, %v2408_v53  ;;  %v1288_v38 = vshrl.u32 %v6202_v59, 16  ;;  %v1291_v18 = vshll.u32 %v6202_v59, 16 }
  0xd1   : >> { %5252 = vmatprep.subr.bf16.mxu0 %v5591_v22  ;;  %v2449_v54 = vshll.u32 %v6230_v7, 16  ;;  %v2436_v62 = vor.u32 %v2435_v45, %v2432_v42 }
  0xd2   : >> { %v2427_v8 = vrot.slane %v2425_v63, 5  ;;  %v2413_v14 = vrot.slane %v2412_v0, 4  ;;  %v1290_v19 = vrot.slane %v1288_v38, 4  ;;  %v1293_v28 = vrot.slane %v1291_v18, 5 }
  0xd3   : >> { %5125 = vmatpush3.bf16.msra.mxu1 %v5590_v4  ;;  %v1230_v4 = vld [vmem:[%s6118_s14 + $0x20] sm:$0x1]  ;;  %v2445_v63 = vrot.slane %v2443_v49, 4  ;;  %v1315_v0 = vshll.u32 %v6239_v37, 16  ;;  %v2451_v6 = vrot.slane %v2449_v54, 5  ;;  %v1321_v38 = vshll.u32 %v6246_v50, 16 }
  0xd4   : >> { %5253 = vmatpush3.bf16.msra.mxu0 %v5591_v22  ;;  %5142 = vmatprep.subr.bf16.mxu1 %v5592_v21  ;;  %v1301_v22 = vshrl.u32 %v6210_v3, 16  ;;  %v1307_v23 = vshll.u32 %v1230_v4, 16  ;;  %v2418_v25 = vsel %vm6157_vm10, %v2413_v14, %v2417_v1  ;;  %v2428_v39 = vsel %vm6157_vm10, %v2423_v27, %v2427_v8  ;;  %v6256_v1 = vld [vmem:[%s6118_s14 + $0x34] sm:$0xf]  ;;  %v6275_v27 = vld [vmem:[%s6118_s14 + $0x38] sm:$0x1] }
  0xd5   : >> { %5270 = vmatprep.subr.bf16.mxu0 %v6189_v36  ;;  %v1294_v40 = vor.u32 %v1293_v28, %v1290_v19  ;;  %v4550_v43 = vcombine.low %v2418_v25, %v2428_v39  ;;  %v1314_v8 = vrot.slane %v1312_v55, 4  ;;  %v2437_v14 = vrot.slane %v2436_v62, 4  ;;  %v6282_v39 = vld [vmem:[%s6118_s14 + $0x30] sm:$0xf] }
  0xd6   : >> { %5127 = vmatmul.mubr.bf16.vlgmr.msra.gmra.mrb[0].mxu1 %v4388_v13  ;;  %v1303_v34 = vrot.slane %v1301_v22, 4  ;;  %v1309_v10 = vrot.slane %v1307_v23, 5  ;;  %v1323_v18 = vrot.slane %v1321_v38, 5  ;;  %v1325_v19 = vshrl.u32 %v6246_v50, 16 }
  0xd7   : >> { %5143 = vmatpush3.bf16.msra.mxu1 %v5592_v21  ;;  %v2439_v21 = vshll.u32 %v6225_v24, 16  ;;  %v1295_v52 = vrot.slane %v1294_v40, 4  ;;  %5255 = vmatmul.mubr.bf16.vlgmr.msra.gmra.mrb[0].mxu0 %v4550_v43  ;;  %v2454_v28 = vshrl.u32 %v4518_v56, 16  ;;  %v2463_v17 = vshll.u32 %v6256_v1, 16  ;;  %v6288_v43 = vld [vmem:[%s6118_s14 + $0x34] sm:$0xf] }
  0xd8   : >> { %5144 = vmatprep.subr.bf16.mxu1 %v5594_v16  ;;  %v1304_v44 = vor.u32 %v1303_v34, %v1299_v33  ;;  %5271 = vmatpush3.bf16.msra.mxu0 %v6189_v36  ;;  %v1317_v36 = vrot.slane %v1315_v0, 5  ;;  %v1333_v34 = vrot.slane %v1331_v20, 5  ;;  %v2473_v55 = vshll.u32 %v6275_v27, 16 }
  0xd9   : >> { %v2441_v53 = vrot.slane %v2439_v21, 5  ;;  %v1300_v4 = vsel %vm6157_vm10, %v1295_v52, %v1299_v33  ;;  %5272 = vmatprep.subr.bf16.mxu0 %v5595_v31  ;;  %v1327_v33 = vrot.slane %v1325_v19, 4  ;;  %v2456_v21 = vrot.slane %v2454_v28, 4  ;;  %v6313_v19 = vld [vmem:[%s6118_s14 + $0x40] sm:$0xf]  ;;  %v5604_v28 = vld [vmem:[%s7150_s3 + $0x30] sm:$0xff]  }
  0xda   : >> { %v1305_v61 = vrot.slane %v1304_v44, 4  ;;  %v1318_v25 = vor.u32 %v1317_v36, %v1314_v8  ;;  %v2465_v52 = vrot.slane %v2463_v17, 5  ;;  %v1339_v0 = vshll.u32 %v6282_v39, 16 }
  0xdb   : >> { %5145 = vmatpush3.bf16.msra.mxu1 %v5594_v16  ;;  %v2446_v15 = vor.u32 %v2445_v63, %v2441_v53  ;;  %v2442_v22 = vsel %vm6157_vm10, %v2437_v14, %v2441_v53  ;;  %v1328_v45 = vor.u32 %v1327_v33, %v1323_v18  ;;  %v6298_v63 = vld [vmem:[%s6118_s14 + $0x38] sm:$0x1]  ;;  %v2475_v38 = vrot.slane %v2473_v55, 5  ;;  %v4521_v14 = vld [vmem:[%s6118_s14 + $0x3c] sm:$0xf] }
  0xdc   : >> { %5146 = vmatprep.subr.bf16.mxu1 %v5596_v30  ;;  %v1310_v13 = vsel %vm6157_vm10, %v1305_v61, %v1309_v10  ;;  %5273 = vmatpush3.bf16.msra.mxu0 %v5595_v31  ;;  %v2457_v10 = vshll.u32 %v4518_v56, 16  ;;  %v1319_v42 = vrot.slane %v1318_v25, 4  ;;  %v5600_v31 = vld [vmem:[%s7150_s3 + $0x20] sm:$0xff]   ;;  %v1336_v56 = vshrl.u32 %v6282_v39, 16 }
  0xdd   : >> { %v4389_v16 = vcombine.low %v1300_v4, %v1310_v13  ;;  %v2447_v23 = vrot.slane %v2446_v15, 4  ;;  %5274 = vmatprep.subr.bf16.mxu0 %v5597_v2  ;;  %v1329_v61 = vrot.slane %v1328_v45, 4  ;;  %v1345_v4 = vshll.u32 %v6288_v43, 16  ;;  %v6334_v45 = vld [vmem:[%s6118_s14 + $0x40] sm:$0xf] }
  0xde   : >> { %v2459_v49 = vrot.slane %v2457_v10, 5  ;;  %v1324_v53 = vsel %vm6157_vm10, %v1319_v42, %v1323_v18  ;;  %v1349_v13 = vshrl.u32 %v6288_v43, 16  ;;  %v1355_v25 = vshll.u32 %v6298_v63, 16  ;;  %v6322_v10 = vld [vmem:[%s6118_s14 + $0x44] sm:$0x1]  ;;  %v5603_v42 = vld [vmem:[%s7150_s3 + $0x168] sm:$0xff]  }
  0xdf   : >> { %5147 = vmatpush3.bf16.msra.mxu1 %v5596_v30  ;;  %5130 = vmatprep.mubr.bf16.mxu1 %v4389_v16  ;;  %v2452_v40 = vsel %vm6157_vm10, %v2447_v23, %v2451_v6  ;;  %v2467_v30 = vshrl.u32 %v6256_v1, 16  ;;  %v5602_v6 = vld [vmem:[%s7150_s3 + $0x28] sm:$0xff]   ;;  %v1334_v15 = vsel %vm6157_vm10, %v1329_v61, %v1333_v34  ;;  %v1341_v16 = vrot.slane %v1339_v0, 5  ;;  %v6337_v55 = vld [vmem:[%s6118_s14 + $0x44] sm:$0x1] }
  0xe0   : >> { %5148 = vmatprep.subr.bf16.mxu1 %v5598_v12  ;;  %v4551_v44 = vcombine.low %v2442_v22, %v2452_v40  ;;  %v2460_v62 = vor.u32 %v2459_v49, %v2456_v21  ;;  %5275 = vmatpush3.bf16.msra.mxu0 %v5597_v2  ;;  %v5601_v2 = vld [vmem:[%s7150_s3 + $0x160] sm:$0xff]   ;;  %v1347_v18 = vrot.slane %v1345_v4, 5  ;;  %v4390_v20 = vcombine.low %v1324_v53, %v1334_v15  ;;  %v6350_v15 = vld [vmem:[%s6118_s14 + $0x4c] sm:$0xf] }
  0xe1   : >> { %v2469_v54 = vrot.slane %v2467_v30, 4  ;;  %5276 = vmatprep.subr.bf16.mxu0 %v5599_v29  ;;  %v1351_v23 = vrot.slane %v1349_v13, 4  ;;  %v2478_v17 = vshrl.u32 %v4521_v14, 16  ;;  %v2481_v40 = vshll.u32 %v4521_v14, 16  ;;  %7164 = vst [vmem:[#allocation4_spill] sm:$0xff] %v6337_v55 }
  0xe2   : >> { %5258 = vmatprep.mubr.bf16.mxu0 %v4551_v44  ;;  %v2461_v36 = vrot.slane %v2460_v62, 4  ;;  %5131 = vmatmul.mubr.bf16.gmra.mrb[4].mxu1 %v4390_v20  ;;  %v6331_v44 = vld [vmem:[%s6118_s14 + $0x3c] sm:$0xf]  ;;  %v2491_v0 = vshrl.u32 %v6313_v19, 16  ;;  %v2497_v4 = vshll.u32 %v6322_v10, 16 }
  0xe3   : >> { %5149 = vmatpush3.bf16.msra.mxu1 %v5598_v12  ;;  %v2470_v8 = vor.u32 %v2469_v54, %v2465_v52  ;;  %v1338_v12 = vrot.slane %v1336_v56, 4  ;;  %v1352_v30 = vor.u32 %v1351_v23, %v1347_v18  ;;  %v2480_v53 = vrot.slane %v2478_v17, 4  ;;  %v5606_v56 = vld [vmem:[%s7150_s3 + $0x38] sm:$0xff]  }
  0xe4   : >> { %5150 = vmatprep.subr.bf16.mxu1 %v5600_v31  ;;  %v2466_v33 = vsel %vm6157_vm10, %v2461_v36, %v2465_v52  ;;  %5277 = vmatpush3.bf16.msra.mxu0 %v5599_v29  ;;  %v2487_v29 = vshll.u32 %v6313_v19, 16  ;;  %v2483_v54 = vrot.slane %v2481_v40, 5  ;;  %v1360_v13 = vshrl.u32 %v6331_v44, 16 }
  0xe5   : >> { %v2471_v22 = vrot.slane %v2470_v8, 4  ;;  %v1342_v34 = vor.u32 %v1341_v16, %v1338_v12  ;;  %5278 = vmatprep.subr.bf16.mxu0 %v5601_v2  ;;  %v1353_v61 = vrot.slane %v1352_v30, 4  ;;  %v4524_v8 = vld [vmem:[%s6118_s14 + $0x48] sm:$0xf]  ;;  %v1363_v14 = vshll.u32 %v6331_v44, 16 }
  0xe6   : >> { %v2489_v62 = vrot.slane %v2487_v29, 5  ;;  %v2484_v12 = vor.u32 %v2483_v54, %v2480_v53  ;;  %v2493_v16 = vrot.slane %v2491_v0, 4  ;;  %v2499_v20 = vrot.slane %v2497_v4, 5 }
  0xe7   : >> { %5151 = vmatpush3.bf16.msra.mxu1 %v5600_v31  ;;  %v2476_v21 = vsel %vm6157_vm10, %v2471_v22, %v2475_v38  ;;  %v1357_v31 = vrot.slane %v1355_v25, 5  ;;  %v1343_v52 = vrot.slane %v1342_v34, 4  ;;  %v1369_v22 = vshll.u32 %v6334_v45, 16 }
  0xe8   : >> { %5152 = vmatprep.subr.bf16.mxu1 %v5602_v6  ;;  %v4552_v49 = vcombine.low %v2466_v33, %v2476_v21  ;;  %5279 = vmatpush3.bf16.msra.mxu0 %v5601_v2  ;;  %v2485_v23 = vrot.slane %v2484_v12, 4  ;;  %v1365_v25 = vrot.slane %v1363_v14, 5  ;;  %v5605_v33 = vld [vmem:[%s7150_s3 + $0x170] sm:$0xff]   ;;  %v2494_v34 = vor.u32 %v2493_v16, %v2489_v62  ;;  %v6376_v12 = vld [vmem:[%s6118_s14 + $0x48] sm:$0xf] }
  0xe9   : >> { %v1348_v38 = vsel %vm6157_vm10, %v1343_v52, %v1347_v18  ;;  %v1358_v36 = vsel %vm6157_vm10, %v1353_v61, %v1357_v31  ;;  %v1362_v18 = vrot.slane %v1360_v13, 4  ;;  %5280 = vmatprep.subr.bf16.mxu0 %v5603_v42  ;;  %v1371_v17 = vrot.slane %v1369_v22, 5  ;;  %v6363_v31 = vld [vmem:[%s6118_s14 + $0x50] sm:$0x1]  ;;  %v6368_v52 = vld [vmem:[%s7150_s3 + $0x80] sm:$0xff]  }
  0xea   : >> { %5259 = vmatmul.mubr.bf16.gmra.mrb[4].mxu0 %v4552_v49  ;;  %v1373_v40 = vshrl.u32 %v6334_v45, 16  ;;  %v1379_v21 = vshll.u32 %v6337_v55, 16  ;;  %v2490_v2 = vsel %vm6157_vm10, %v2485_v23, %v2489_v62  ;;  %v2502_v29 = vshrl.u32 %v4524_v8, 16  ;;  %v5607_v62 = vld [vmem:[%s7150_s3 + $0x178] sm:$0xff]   ;;  %v6382_v16 = vld [vmem:[%s6118_s14 + $0x4c] sm:$0xf] }
  0xeb   : >> { %5153 = vmatpush3.bf16.msra.mxu1 %v5602_v6  ;;  %v4391_v6 = vcombine.low %v1348_v38, %v1358_v36  ;;  %v1366_v30 = vor.u32 %v1365_v25, %v1362_v18  ;;  %v2505_v49 = vshll.u32 %v4524_v8, 16  ;;  %v2495_v53 = vrot.slane %v2494_v34, 4  ;;  %v6387_v25 = vld [vmem:[%s6118_s14 + $0x50] sm:$0x1]  ;;  %v4527_v34 = vld [vmem:[%s6118_s14 + $0x54] sm:$0xf] }
  0xec   : >> { %5154 = vmatprep.subr.bf16.mxu1 %v5604_v28  ;;  %v1375_v54 = vrot.slane %v1373_v40, 4  ;;  %v2511_v61 = vshll.u32 %v6350_v15, 16  ;;  %5281 = vmatpush3.bf16.msra.mxu0 %v5603_v42  ;;  %v2504_v4 = vrot.slane %v2502_v29, 4  ;;  %v2515_v38 = vshrl.u32 %v6350_v15, 16  ;;  %7165 = vst [vmem:[#allocation5_spill] sm:$0xff] %v6387_v25 }
  0xed   : >> { %5134 = vmatprep.mubr.bf16.mxu1 %v4391_v6  ;;  %v1367_v0 = vrot.slane %v1366_v30, 4  ;;  %v2507_v8 = vrot.slane %v2505_v49, 5  ;;  %5282 = vmatprep.subr.bf16.mxu0 %v5605_v33  ;;  %v2500_v13 = vsel %vm6157_vm10, %v2495_v53, %v2499_v20  ;;  %v2521_v42 = vshll.u32 %v6363_v31, 16  ;;  %v6398_v49 = vld [vmem:[%s7150_s3 + $0x180] sm:$0xff]  }
  0xee   : >> { %v1376_v14 = vor.u32 %v1375_v54, %v1371_v17  ;;  %v2513_v36 = vrot.slane %v2511_v61, 5  ;;  %v4553_v22 = vcombine.low %v2490_v2, %v2500_v13  ;;  %v2517_v18 = vrot.slane %v2515_v38, 4 }
  0xef   : >> { %5155 = vmatpush3.bf16.msra.mxu1 %v5604_v28  ;;  %v1381_v28 = vrot.slane %v1379_v21, 5  ;;  %v1372_v6 = vsel %vm6157_vm10, %v1367_v0, %v1371_v17  ;;  %v2508_v23 = vor.u32 %v2507_v8, %v2504_v4  ;;  %v2523_v20 = vrot.slane %v2521_v42, 5  ;;  %v6404_v0 = vld [vmem:[%s6118_s14 + $0x58] sm:$0xf]  ;;  %v6412_v42 = vld [vmem:[%s6118_s14 + $0x54] sm:$0xf] }
  0xf0   : >> { %5156 = vmatprep.subr.bf16.mxu1 %v5606_v56  ;;  %v1377_v40 = vrot.slane %v1376_v14, 4  ;;  %v1384_v21 = vshrl.u32 %v6376_v12, 16  ;;  %v1387_v30 = vshll.u32 %v6376_v12, 16  ;;  %5283 = vmatpush3.bf16.msra.mxu0 %v5605_v33  ;;  %v2518_v17 = vor.u32 %v2517_v18, %v2513_v36  ;;  %v6409_v14 = vld [vmem:[%s6118_s14 + $0x5c] sm:$0x1] }
  0xf1   : >> { %5262 = vmatprep.mubr.bf16.mxu0 %v4553_v22  ;;  %v1393_v2 = vshll.u32 %v6382_v16, 16  ;;  %v1397_v29 = vshrl.u32 %v6382_v16, 16  ;;  %5284 = vmatprep.subr.bf16.mxu0 %v5607_v62  ;;  %v1403_v61 = vshll.u32 %v6387_v25, 16  ;;  %v6439_v25 = vld [vmem:[%s6118_s14 + $0x68] sm:$0x1] }
  0xf2   : >> { %v1382_v53 = vsel %vm6157_vm10, %v1377_v40, %v1381_v28  ;;  %v1386_v33 = vrot.slane %v1384_v21, 4  ;;  %v1389_v54 = vrot.slane %v1387_v30, 5  ;;  %v2519_v38 = vrot.slane %v2518_v17, 4  ;;  %v6415_v40 = vld [vmem:[%s6118_s14 + $0x58] sm:$0xf] }
  0xf3   : >> { %5157 = vmatpush3.bf16.msra.mxu1 %v5606_v56  ;;  %v2509_v56 = vrot.slane %v2508_v23, 4  ;;  %v4392_v4 = vcombine.low %v1372_v6, %v1382_v53  ;;  %v1395_v13 = vrot.slane %v1393_v2, 5  ;;  %v1399_v23 = vrot.slane %v1397_v29, 4 }
  0xf4   : >> { %5174 = vmatprep.subr.bf16.mxu1 %v6368_v52  ;;  %v1390_v22 = vor.u32 %v1389_v54, %v1386_v33  ;;  %v1405_v18 = vrot.slane %v1403_v61, 5  ;;  %v2526_v28 = vshrl.u32 %v4527_v34, 16  ;;  %5285 = vmatpush3.bf16.msra.mxu0 %v5607_v62  ;;  %v2524_v6 = vsel %vm6157_vm10, %v2519_v38, %v2523_v20  ;;  %v6424_v54 = vld [vmem:[%s6118_s14 + $0x5c] sm:$0x1] }
  0xf5   : >> { %v2514_v8 = vsel %vm6157_vm10, %v2509_v56, %v2513_v36  ;;  %5135 = vmatmul.mubr.bf16.gmra.mrb[8].mxu1 %v4392_v4  ;;  %v2529_v36 = vshll.u32 %v4527_v34, 16  ;;  %v2535_v21 = vshll.u32 %v6404_v0, 16  ;;  %v2539_v30 = vshrl.u32 %v6404_v0, 16  ;;  %5302 = vmatprep.subr.bf16.mxu0 %v6398_v49  ;;  %v4530_v34 = vld [vmem:[%s6118_s14 + $0x60] sm:$0xf] }
  0xf6   : >> { %v4554_v56 = vcombine.low %v2514_v8, %v2524_v6  ;;  %v1391_v17 = vrot.slane %v1390_v22, 4  ;;  %v1400_v2 = vor.u32 %v1399_v23, %v1395_v13  ;;  %v2528_v29 = vrot.slane %v2526_v28, 4 }
  0xf7   : >> { %v2531_v62 = vrot.slane %v2529_v36, 5  ;;  %v2537_v53 = vrot.slane %v2535_v21, 5  ;;  %v2541_v33 = vrot.slane %v2539_v30, 4  ;;  %v2545_v20 = vshll.u32 %v6409_v14, 16  ;;  %v6433_v36 = vld [vmem:[%s6118_s14 + $0x64] sm:$0xf] }
  0xf8   : >> { %5263 = vmatmul.mubr.bf16.gmra.mrb[8].mxu0 %v4554_v56  ;;  %v1396_v61 = vsel %vm6157_vm10, %v1391_v17, %v1395_v13  ;;  %v1401_v4 = vrot.slane %v1400_v2, 4  ;;  %v1408_v8 = vshrl.u32 %v6412_v42, 16  ;;  %v1411_v38 = vshll.u32 %v6412_v42, 16 }
  0xf9   : >> { %v2532_v22 = vor.u32 %v2531_v62, %v2528_v29  ;;  %v2542_v23 = vor.u32 %v2541_v33, %v2537_v53  ;;  %v2547_v28 = vrot.slane %v2545_v20, 5  ;;  %v1417_v6 = vshll.u32 %v6415_v40, 16  ;;  %v4565_v29 = vld [vmem:[%s6118_s14 + $0xc] sm:$0xe] }
  0xfa   : >> { %v1406_v21 = vsel %vm6157_vm10, %v1401_v4, %v1405_v18  ;;  %v1410_v30 = vrot.slane %v1408_v8, 4  ;;  %v1413_v56 = vrot.slane %v1411_v38, 5  ;;  %v1421_v13 = vshrl.u32 %v6415_v40, 16 }
  0xfb   : >> { %v4393_v17 = vcombine.low %v1396_v61, %v1406_v21  ;;  %v2533_v2 = vrot.slane %v2532_v22, 4  ;;  %v2543_v60 = vrot.slane %v2542_v23, 4  ;;  %v1419_v9 = vrot.slane %v1417_v6, 5 }
  0xfc   : >> { %v1414_v62 = vor.u32 %v1413_v56, %v1410_v30  ;;  %v1423_v33 = vrot.slane %v1421_v13, 4  ;;  %v1427_v20 = vshll.u32 %v6424_v54, 16  ;;  %v2550_v55 = vshrl.u32 %v4530_v34, 16 }
  0xfd   : >> { %5138 = vmatprep.mubr.bf16.mxu1 %v4393_v17  ;;  %v2538_v18 = vsel %vm6157_vm10, %v2533_v2, %v2537_v53  ;;  %v2548_v4 = vsel %vm6157_vm10, %v2543_v60, %v2547_v28  ;;  %v2553_v8 = vshll.u32 %v4530_v34, 16  ;;  %v2559_v61 = vshll.u32 %v6433_v36, 16 }
  0xfe   : >> { %v4555_v38 = vcombine.low %v2538_v18, %v2548_v4  ;;  %v1415_v22 = vrot.slane %v1414_v62, 4  ;;  %v1424_v23 = vor.u32 %v1423_v33, %v1419_v9  ;;  %v1429_v6 = vrot.slane %v1427_v20, 5  ;;  %v4566_v20 = vld [vmem:[%s6118_s14 + $0x18] sm:$0xe]  ;;  %v4567_v18 = vld [vmem:[%s6118_s14 + $0x24] sm:$0xe] }
  0xff   : >> { %v2552_v21 = vrot.slane %v2550_v55, 4  ;;  %v2555_v30 = vrot.slane %v2553_v8, 5  ;;  %v2561_v56 = vrot.slane %v2559_v61, 5  ;;  %v2563_v13 = vshrl.u32 %v6433_v36, 16 }
 0x100   : >> { %5266 = vmatprep.mubr.bf16.mxu0 %v4555_v38  ;;  %v1420_v53 = vsel %vm6157_vm10, %v1415_v22, %v1419_v9  ;;  %v1425_v17 = vrot.slane %v1424_v23, 4  ;;  %v2569_v60 = vshll.u32 %v6439_v25, 16  ;;  %v4573_v34 = vrot.slane %v4565_v29, 9 }
 0x101   : >> { %v2556_v28 = vor.u32 %v2555_v30, %v2552_v21  ;;  %v2565_v2 = vrot.slane %v2563_v13, 4  ;;  %v2817_v55 = vrot.slane %v6136_v57, 5  ;;  %v4403_v9 = vcombine.low %v6121_v46, %v6124_v47 }
 0x102   : >> { %v1430_v33 = vsel %vm6157_vm10, %v1425_v17, %v1429_v6  ;;  %v2571_v61 = vrot.slane %v2569_v60, 5  ;;  %v2831_v6 = vrot.slane %v6225_v24, 5  ;;  %v7168_v46 = vrot.slane %v6181_v32, 5  ;;  %v6504_v32 = vld [vmem:[%s6118_s14 + $0x48] sm:$0xe] }
 0x103   : >> { %v4394_v4 = vcombine.low %v1420_v53, %v1430_v33  ;;  %v2557_v29 = vrot.slane %v2556_v28, 4  ;;  %v2566_v8 = vor.u32 %v2565_v2, %v2561_v56  ;;  %v2818_v38 = vsel %vm6454_vm13, %v4573_v34, %v2817_v55  ;;  %v4568_v34 = vld [vmem:[%s6118_s14 + $0x30] sm:$0xe] }
 0x104   : >> { %v2819_v22 = vrot.slane %v2817_v55, 4  ;;  %v2826_v47 = vrot.slane %v7168_v46, 4  ;;  %v2827_v21 = vrot.slane %v6193_v41, 5  ;;  %v7169_v30 = vrot.slane %v6139_v58, 5 }
 0x105   : >> { %5139 = vmatmul.mubr.bf16.gmra.mrb[12].mxu1 %v4394_v4  ;;  %v2562_v57 = vsel %vm6157_vm10, %v2557_v29, %v2561_v56  ;;  %v2567_v23 = vrot.slane %v2566_v8, 4  ;;  %v4574_v56 = vrot.slane %v4566_v20, 9  ;;  %v4575_v60 = vrot.slane %v4567_v18, 9  ;;  %v4569_v20 = vld [vmem:[%s6118_s14 + $0x3c] sm:$0xe]  ;;  %v5612_v4 = vld [vmem:[%s7150_s3 + $0x88] sm:$0xff]  }
 0x106   : >> { %5158 = vmatprep.mubr.bf16.mxu1 %v4403_v9  ;;  %v2821_v13 = vsel %vm6454_vm13, %v2819_v22, %v7169_v30  ;;  %v2833_v28 = vrot.slane %v2831_v6, 4  ;;  %v2834_v2 = vrot.slane %v6230_v7, 5  ;;  %v1850_v41 = vrot.slane %v6127_v48, 5 }
 0x107   : >> { %v2572_v53 = vsel %vm6157_vm10, %v2567_v23, %v2571_v61  ;;  %v4597_v17 = vcombine.low %v2818_v38, %v2821_v13  ;;  %v1857_v58 = vrot.slane %v6173_v26, 5  ;;  %v4404_v55 = vcombine.low %v6150_v35, %v6163_v11  ;;  %v5618_v13 = vld [vmem:[%s7150_s3 + $0x98] sm:$0xff]  }
 0x108   : >> { %v4556_v24 = vcombine.low %v2562_v57, %v2572_v53  ;;  %v2828_v33 = vsel %vm6454_vm13, %v2826_v47, %v2827_v21  ;;  %v4405_v9 = vcombine.low %v6202_v59, %v6210_v3  ;;  %v7170_v18 = vmov %v7168_v46  ;;  %v6514_v57 = vld [vmem:[%s6118_s14 + $0x54] sm:$0xe] }
 0x109   : >> { %v2825_v7 = vsel %vm6454_vm13, %v4574_v56, %v7170_v18  ;;  %v4576_v35 = vrot.slane %v4568_v34, 9  ;;  %v2838_v11 = vrot.slane %v6256_v1, 5  ;;  %v2845_v29 = vrot.slane %v6313_v19, 5  ;;  %v5613_v19 = vld [vmem:[%s7150_s3 + $0x188] sm:$0xff]  }
 0x10a   : >> { %5267 = vmatmul.mubr.bf16.gmra.mrb[12].mxu0 %v4556_v24  ;;  %v2832_v59 = vsel %vm6454_vm13, %v4575_v60, %v2831_v6  ;;  %v2835_v3 = vsel %vm6454_vm13, %v2833_v28, %v2834_v2  ;;  %v2841_v8 = vrot.slane %v6275_v27, 5  ;;  %v4577_v61 = vrot.slane %v4569_v20, 9  ;;  %v6517_v27 = vld [vmem:[%s6118_s14 + $0x60] sm:$0xe]  ;;  %v6544_v28 = vld [vmem:[%s6118_s14 + $0x4] sm:$0xf] }
 0x10b   : >> { %5286 = vmatprep.mubr.bf16.mxu0 %v4597_v17  ;;  %v2848_v38 = vrot.slane %v6322_v10, 5  ;;  %v2852_v22 = vrot.slane %v6350_v15, 5  ;;  %v4598_v1 = vcombine.low %v2825_v7, %v2828_v33  ;;  %v4599_v23 = vcombine.low %v2832_v59, %v2835_v3  ;;  %v5622_v20 = vld [vmem:[%s7150_s3 + $0xa0] sm:$0xff]   ;;  %v6599_v15 = vld [vmem:[%s6118_s14 + $0x18] sm:$0xe] }
 0x10c   : >> { %v2840_v6 = vrot.slane %v2838_v11, 4  ;;  %v2847_v46 = vrot.slane %v2845_v29, 4  ;;  %v4406_v10 = vcombine.low %v6239_v37, %v6246_v50  ;;  %v2839_v47 = vsel %vm6454_vm13, %v4576_v35, %v2838_v11  ;;  %v6567_v11 = vld [vmem:[%s6118_s14 + $0x10] sm:$0xf] }
 0x10d   : >> { %5159 = vmatmul.mubr.bf16.vlgmr.msra.gmra.mrb[0].mxu1 %v4404_v55  ;;  %v4407_v21 = vcombine.low %v6282_v39, %v6288_v43  ;;  %v4578_v30 = vrot.slane %v6504_v32, 9  ;;  %v2854_v37 = vrot.slane %v2852_v22, 4  ;;  %v2855_v53 = vrot.slane %v6363_v31, 5  ;;  %v5617_v39 = vld [vmem:[%s7150_s3 + $0x190] sm:$0xff]   ;;  %v1818_v55 = vld [vmem:[%s6118_s14] sm:$0xe] }
 0x10e   : >> { %5175 = vmatpush3.bf16.msra.mxu1 %v6368_v52  ;;  %5162 = vmatprep.mubr.bf16.mxu1 %v4405_v9  ;;  %v5616_v52 = vld [vmem:[%s7150_s3 + $0x90] sm:$0xff]   ;;  %v4579_v17 = vrot.slane %v6514_v57, 9  ;;  %v2859_v56 = vrot.slane %v6404_v0, 5  ;;  %v2862_v60 = vrot.slane %v6409_v14, 5  ;;  %v4580_v34 = vrot.slane %v6517_v27, 9 }
 0x10f   : >> { %5176 = vmatprep.subr.bf16.mxu1 %v5612_v4  ;;  %v2866_v24 = vrot.slane %v6433_v36, 5  ;;  %v1847_v31 = vrot.slane %v6544_v28, 5  ;;  %v2842_v0 = vsel %vm6454_vm13, %v2840_v6, %v2841_v8  ;;  %v2846_v2 = vsel %vm6454_vm13, %v4577_v61, %v2845_v29  ;;  %v1821_v32 = vld [vmem:[%s6118_s14 + $0x24] sm:$0xe]  ;;  %v1823_v28 = vld [vmem:[%s6118_s14 + $0x3c] sm:$0xe] }
 0x110   : >> { %v2849_v14 = vsel %vm6454_vm13, %v2847_v46, %v2848_v38  ;;  %v4600_v33 = vcombine.low %v2839_v47, %v2842_v0  ;;  %v2861_v18 = vrot.slane %v2859_v56, 4  ;;  %v2869_v7 = vrot.slane %v6439_v25, 5  ;;  %v5624_v38 = vld [vmem:[%s7150_s3 + $0xa8] sm:$0xff]   ;;  %v5674_v0 = vld [vmem:[%s6118_s14 + $0x1c] sm:$0xf]  ;;  %v5629_v25 = vld [vmem:[%s7150_s3 + $0x1b0] sm:$0xff]  }
 0x111   : >> { %v4601_v9 = vcombine.low %v2846_v2, %v2849_v14  ;;  %v4419_v35 = vrot.slane %v1818_v55, 9  ;;  %v1854_v29 = vrot.slane %v6567_v11, 5  ;;  %v1868_v59 = vrot.slane %v6246_v50, 5  ;;  %v1825_v11 = vld [vmem:[%s6118_s14 + $0x54] sm:$0xe] }
 0x112   : >> { %5287 = vmatmul.mubr.bf16.vlgmr.msra.gmra.mrb[0].mxu0 %v4598_v1  ;;  %5177 = vmatpush3.bf16.msra.mxu1 %v5612_v4  ;;  %v6564_v4 = vrot.slane %v2866_v24, 4  ;;  %v1849_v3 = vrot.slane %v1847_v31, 4  ;;  %v1871_v8 = vrot.slane %v6249_v51, 5  ;;  %v4408_v61 = vcombine.low %v6331_v44, %v6334_v45 }
 0x113   : >> { %5303 = vmatpush3.bf16.msra.mxu0 %v6398_v49  ;;  %5290 = vmatprep.mubr.bf16.mxu0 %v4599_v23  ;;  %v5619_v49 = vld [vmem:[%s7150_s3 + $0x198] sm:$0xff]   ;;  %v4409_v1 = vcombine.low %v6376_v12, %v6382_v16  ;;  %v4422_v50 = vrot.slane %v1821_v32, 9  ;;  %v1870_v57 = vrot.slane %v1868_v59, 4  ;;  %v2853_v51 = vsel %vm6454_vm13, %v4578_v30, %v2852_v22  ;;  %v5623_v23 = vld [vmem:[%s7150_s3 + $0x1a0] sm:$0xff]  }
 0x114   : >> { %5304 = vmatprep.subr.bf16.mxu0 %v5613_v19  ;;  %5178 = vmatprep.subr.bf16.mxu1 %v5616_v52  ;;  %v2856_v44 = vsel %vm6454_vm13, %v2854_v37, %v2855_v53  ;;  %v2860_v12 = vsel %vm6454_vm13, %v4579_v17, %v2859_v56  ;;  %v2863_v6 = vsel %vm6454_vm13, %v2861_v18, %v2862_v60  ;;  %v1875_v47 = vrot.slane %v6288_v43, 5  ;;  %v1822_v37 = vld [vmem:[%s6118_s14 + $0x30] sm:$0xe]  ;;  %v5625_v17 = vld [vmem:[%s7150_s3 + $0x1a8] sm:$0xff]  }
 0x115   : >> { %5163 = vmatmul.mubr.bf16.gmra.mrb[4].mxu1 %v4406_v10  ;;  %v6603_v22 = vsel %vm6454_vm13, %v4422_v50, %v1868_v59  ;;  %v6607_v46 = vsel %vm6454_vm13, %v1870_v57, %v1871_v8  ;;  %v4410_v30 = vcombine.low %v6412_v42, %v6415_v40  ;;  %v1878_v53 = vrot.slane %v6298_v63, 5  ;;  %v5628_v63 = vld [vmem:[%s7150_s3 + $0xb0] sm:$0xff]   ;;  %v7172_v8 = vld [vmem:[#allocation5_spill] sm:$0xff]  ;;  %v5631_v50 = vld [vmem:[%s7150_s3 + $0x1b8] sm:$0xff]  }
 0x116   : >> { %5179 = vmatpush3.bf16.msra.mxu1 %v5616_v52  ;;  %5166 = vmatprep.mubr.bf16.mxu1 %v4407_v21  ;;  %v4446_v52 = vcombine.low %v6603_v22, %v6607_v46  ;;  %v4602_v21 = vcombine.low %v2853_v51, %v2856_v44  ;;  %v4603_v43 = vcombine.low %v2860_v12, %v2863_v6  ;;  %v4423_v42 = vrot.slane %v1822_v37, 9  ;;  %v5644_v22 = vld [vmem:[%s6118_s14 + $0x48] sm:$0xff]   ;;  %v5645_v46 = vld [vmem:[%s7150_s3 + $0xe0] sm:$0xff]  }
 0x117   : >> { %5305 = vmatpush3.bf16.msra.mxu0 %v5613_v19  ;;  %5180 = vmatprep.subr.bf16.mxu1 %v5618_v13  ;;  %v6583_v19 = vld [vmem:[%s6118_s14 + $0xc] sm:$0xe]  ;;  %v1848_v56 = vsel %vm6454_vm13, %v4419_v35, %v1847_v31  ;;  %v1851_v60 = vsel %vm6454_vm13, %v1849_v3, %v1850_v41  ;;  %v1861_v2 = vrot.slane %v5674_v0, 5  ;;  %v1882_v14 = vrot.slane %v6334_v45, 5  ;;  %v7171_v31 = vld [vmem:[#allocation4_spill] sm:$0xff] }
 0x118   : >> { %5306 = vmatprep.subr.bf16.mxu0 %v5617_v39  ;;  %v4420_v10 = vrot.slane %v6583_v19, 9  ;;  %v1885_v55 = vrot.slane %v7171_v31, 5  ;;  %v2867_v45 = vsel %vm6454_vm13, %v4580_v34, %v2866_v24  ;;  %v5630_v41 = vld [vmem:[%s7150_s3 + $0xb8] sm:$0xff]   ;;  %v2870_v36 = vsel %vm6454_vm13, %v6564_v4, %v2869_v7  ;;  %v1824_v4 = vld [vmem:[%s6118_s14 + $0x48] sm:$0xe] }
 0x119   : >> { %v1884_v59 = vrot.slane %v1882_v14, 4  ;;  %v4443_v27 = vcombine.low %v1848_v56, %v1851_v60  ;;  %v1863_v24 = vrot.slane %v1861_v2, 4  ;;  %v1889_v32 = vrot.slane %v6382_v16, 5  ;;  %v6734_v60 = vld [vmem:[%s6118_s14 + $0x20] sm:$0x1] }
 0x11a   : >> { %5291 = vmatmul.mubr.bf16.gmra.mrb[4].mxu0 %v4600_v33  ;;  %5181 = vmatpush3.bf16.msra.mxu1 %v5618_v13  ;;  %v1856_v13 = vrot.slane %v1854_v29, 4  ;;  %v4421_v33 = vrot.slane %v6599_v15, 9  ;;  %v1855_v16 = vsel %vm6454_vm13, %v4420_v10, %v1854_v29  ;;  %v1896_v44 = vrot.slane %v6415_v40, 5  ;;  %v5633_v40 = vld [vmem:[%s7150_s3 + $0xc0] sm:$0xff]  }
 0x11b   : >> { %5307 = vmatpush3.bf16.msra.mxu0 %v5617_v39  ;;  %5294 = vmatprep.mubr.bf16.mxu0 %v4601_v9  ;;  %v1877_v39 = vrot.slane %v1875_v47, 4  ;;  %v4424_v9 = vrot.slane %v1823_v28, 9  ;;  %v6669_v3 = vsel %vm6454_vm13, %v1884_v59, %v1885_v55  ;;  %v1891_v19 = vrot.slane %v1889_v32, 4  ;;  %v5637_v28 = vld [vmem:[%s7150_s3 + $0x1c8] sm:$0xff]  }
 0x11c   : >> { %5308 = vmatprep.subr.bf16.mxu0 %v5619_v49  ;;  %5182 = vmatprep.subr.bf16.mxu1 %v5622_v20  ;;  %v1858_v57 = vsel %vm6454_vm13, %v1856_v13, %v1857_v58  ;;  %v1862_v51 = vsel %vm6454_vm13, %v4421_v33, %v1861_v2  ;;  %v1899_v29 = vrot.slane %v6424_v54, 5  ;;  %v4426_v6 = vrot.slane %v1825_v11, 9  ;;  %v5636_v13 = vld [vmem:[%s7150_s3 + $0xc8] sm:$0xff]   ;;  %v4666_v33 = vld [vmem:[%s6118_s14 + $0x24] sm:$0xf] }
 0x11d   : >> { %5167 = vmatmul.mubr.bf16.gmra.mrb[8].mxu1 %v4408_v61  ;;  %v6644_v48 = vsel %vm6454_vm13, %v1877_v39, %v1878_v53  ;;  %v6665_v34 = vsel %vm6454_vm13, %v4424_v9, %v1882_v14  ;;  %v1892_v61 = vrot.slane %v7172_v8, 5  ;;  %v1898_v15 = vrot.slane %v1896_v44, 4  ;;  %v5635_v53 = vld [vmem:[%s7150_s3 + $0x1c0] sm:$0xff]   ;;  %v5639_v14 = vld [vmem:[%s7150_s3 + $0xd0] sm:$0xff]   ;;  %v6755_v59 = vld [vmem:[%s6118_s14 + $0x28] sm:$0xf] }
 0x11e   : >> { %5183 = vmatpush3.bf16.msra.mxu1 %v5622_v20  ;;  %5170 = vmatprep.mubr.bf16.mxu1 %v4409_v1  ;;  %v5675_v20 = vld [vmem:[%s6118_s14 + $0x20] sm:$0x1]  ;;  %v4448_v7 = vcombine.low %v6665_v34, %v6669_v3  ;;  %v4425_v1 = vrot.slane %v1824_v4, 9  ;;  %v4444_v10 = vcombine.low %v1855_v16, %v1858_v57  ;;  %v5634_v39 = vld [vmem:[%s6118_s14 + $0x24] sm:$0xff]   ;;  %v5641_v9 = vld [vmem:[%s7150_s3 + $0x1d0] sm:$0xff]  }
 0x11f   : >> { %5309 = vmatpush3.bf16.msra.mxu0 %v5619_v49  ;;  %5184 = vmatprep.subr.bf16.mxu1 %v5624_v38  ;;  %v6640_v49 = vsel %vm6454_vm13, %v4423_v42, %v1875_v47  ;;  %v1864_v18 = vrot.slane %v5675_v20, 5  ;;  %v6704_v58 = vsel %vm6454_vm13, %v1891_v19, %v1892_v61  ;;  %v6713_v47 = vsel %vm6454_vm13, %v4426_v6, %v1896_v44  ;;  %v5640_v4 = vld [vmem:[%s6118_s14 + $0x3c] sm:$0xff]   ;;  %v6774_v16 = vld [vmem:[%s6118_s14 + $0x34] sm:$0xf]  ;;  %v6797_v6 = vld [vmem:[%s6118_s14 + $0x38] sm:$0x1] }
 0x120   : >> { %5310 = vmatprep.subr.bf16.mxu0 %v5623_v23  ;;  %v4447_v35 = vcombine.low %v6640_v49, %v6644_v48  ;;  %v6700_v26 = vsel %vm6454_vm13, %v4425_v1, %v1889_v32  ;;  %v5643_v8 = vld [vmem:[%s7150_s3 + $0x1d8] sm:$0xff]   ;;  %v3385_v61 = vshll.u32 %v6755_v59, 16  ;;  %v3409_v11 = vshll.u32 %v6774_v16, 16 }
 0x121   : >> { %v1865_v12 = vsel %vm6454_vm13, %v1863_v24, %v1864_v18  ;;  %v4449_v54 = vcombine.low %v6700_v26, %v6704_v58  ;;  %v3379_v24 = vshll.u32 %v4666_v33, 16  ;;  %v3413_v44 = vshrl.u32 %v6774_v16, 16  ;;  %v5649_v26 = vld [vmem:[%s7150_s3 + $0x1e8] sm:$0xff]   ;;  %v5651_v58 = vld [vmem:[%s7150_s3 + $0xf0] sm:$0xff]  }
 0x122   : >> { %5295 = vmatmul.mubr.bf16.gmra.mrb[8].mxu0 %v4602_v21  ;;  %5185 = vmatpush3.bf16.msra.mxu1 %v5624_v38  ;;  %v4604_v38 = vcombine.low %v2867_v45, %v2870_v36  ;;  %v4445_v21 = vcombine.low %v1862_v51, %v1865_v12  ;;  %v5642_v45 = vld [vmem:[%s7150_s3 + $0xd8] sm:$0xff]   ;;  %v6758_v36 = vld [vmem:[%s6118_s14 + $0x2c] sm:$0x1]  ;;  %v3801_v5 = vrot.slane %v6774_v16, 5 }
 0x123   : >> { %5311 = vmatpush3.bf16.msra.mxu0 %v5623_v23  ;;  %5298 = vmatprep.mubr.bf16.mxu0 %v4603_v43  ;;  %v5632_v23 = vld [vmem:[%s6118_s14 + $0x18] sm:$0xff]   ;;  %v3395_v19 = vshll.u32 %v6758_v36, 16  ;;  %v3797_v16 = vrot.slane %v6758_v36, 5 }
 0x124   : >> { %5312 = vmatprep.subr.bf16.mxu0 %v5625_v17  ;;  %5186 = vmatprep.subr.bf16.mxu1 %v5628_v63  ;;  %v6729_v43 = vld [vmem:[%s6118_s14 + $0x1c] sm:$0xf] }
 0x125   : >> { %5171 = vmatmul.mubr.bf16.gmra.mrb[12].mxu1 %v4410_v30  ;;  %v6717_v30 = vsel %vm6454_vm13, %v1898_v15, %v1899_v29  ;;  %v3361_v0 = vshll.u32 %v6729_v43, 16  ;;  %v3365_v2 = vshrl.u32 %v6729_v43, 16  ;;  %v5647_v29 = vld [vmem:[%s7150_s3 + $0x1e0] sm:$0xff]  }
 0x126   : >> { %5187 = vmatpush3.bf16.msra.mxu1 %v5628_v63  ;;  %5190 = vmatprep.mubr.bf16.mxu1 %v4443_v27  ;;  %v4450_v37 = vcombine.low %v6713_v47, %v6717_v30  ;;  %v5638_v63 = vld [vmem:[%s6118_s14 + $0x30] sm:$0xff]   ;;  %v3376_v27 = vshrl.u32 %v4666_v33, 16  ;;  %v6841_v33 = vrot.slane %v3395_v19, 5 }
 0x127   : >> { %5313 = vmatpush3.bf16.msra.mxu0 %v5625_v17  ;;  %5188 = vmatprep.subr.bf16.mxu1 %v5630_v41  ;;  %v4663_v17 = vld [vmem:[%s6118_s14 + $0x18] sm:$0xf]  ;;  %v6752_v20 = vrot.slane %v3361_v0, 5  ;;  %v3367_v18 = vrot.slane %v3365_v2, 4 }
 0x128   : >> { %5314 = vmatprep.subr.bf16.mxu0 %v5629_v25  ;;  %v3352_v56 = vshrl.u32 %v4663_v17, 16  ;;  %v3355_v42 = vshll.u32 %v4663_v17, 16  ;;  %v3378_v48 = vrot.slane %v3376_v27, 4  ;;  %v5650_v17 = vld [vmem:[%s6118_s14 + $0x60] sm:$0xff]   ;;  %v5654_v27 = vld [vmem:[%s7150_s3 + $0xf8] sm:$0xff]  }
 0x12a   : >> { %5299 = vmatmul.mubr.bf16.gmra.mrb[12].mxu0 %v4604_v38  ;;  %5189 = vmatpush3.bf16.msra.mxu1 %v5630_v41  ;;  %v3354_v31 = vrot.slane %v3352_v56, 4  ;;  %v3357_v55 = vrot.slane %v3355_v42, 5  ;;  %v3371_v41 = vshll.u32 %v6734_v60, 16  ;;  %v3389_v38 = vshrl.u32 %v6755_v59, 16 }
 0x12b   : >> { %5315 = vmatpush3.bf16.msra.mxu0 %v5629_v25  ;;  %5318 = vmatprep.mubr.bf16.mxu0 %v5632_v23  ;;  %v4669_v25 = vld [vmem:[%s6118_s14 + $0x30] sm:$0xf]  ;;  %v6794_v23 = vrot.slane %v3385_v61, 5  ;;  %v6812_v42 = vrot.slane %v3409_v11, 5  ;;  %v6859_v61 = vld [vmem:[%s6118_s14 + $0x44] sm:$0x1] }
 0x12c   : >> { %5316 = vmatprep.subr.bf16.mxu0 %v5631_v50  ;;  %5206 = vmatprep.subr.bf16.mxu1 %v5633_v40  ;;  %v3358_v32 = vor.u32 %v3357_v55, %v3354_v31  ;;  %v3400_v1 = vshrl.u32 %v4669_v25, 16  ;;  %v6781_v49 = vrot.slane %v3371_v41, 5  ;;  %v3403_v51 = vshll.u32 %v4669_v25, 16 }
 0x12d   : >> { %5191 = vmatmul.mubr.bf16.vlgmr.msra.gmra.mrb[0].mxu1 %v4444_v10  ;;  %v3391_v12 = vrot.slane %v3389_v38, 4  ;;  %v4672_v10 = vld [vmem:[%s6118_s14 + $0x3c] sm:$0xf] }
 0x12e   : >> { %5207 = vmatpush3.bf16.msra.mxu1 %v5633_v40  ;;  %5194 = vmatprep.mubr.bf16.mxu1 %v4445_v21  ;;  %v6787_v57 = vrot.slane %v3358_v32, 4  ;;  %v6801_v15 = vrot.slane %v3400_v1, 4  ;;  %v3405_v56 = vrot.slane %v3403_v51, 5  ;;  %v3424_v2 = vshrl.u32 %v4672_v10, 16  ;;  %v5652_v1 = vld [vmem:[%s6118_s14 + $0x6c] sm:$0xff]  }
 0x12f   : >> { %5317 = vmatpush3.bf16.msra.mxu0 %v5631_v50  ;;  %5208 = vmatprep.subr.bf16.mxu1 %v5636_v13  ;;  %v5648_v50 = vld [vmem:[%s7150_s3 + $0xe8] sm:$0xff]   ;;  %v3392_v0 = vor.u32 %v3391_v12, %v6794_v23  ;;  %v3427_v34 = vshll.u32 %v4672_v10, 16 }
 0x130   : >> { %5334 = vmatprep.subr.bf16.mxu0 %v5635_v53  ;;  %v3406_v25 = vor.u32 %v3405_v56, %v6801_v15  ;;  %v3426_v38 = vrot.slane %v3424_v2, 4  ;;  %v5657_v15 = vld [vmem:[%s6118_s14 + $0x18] sm:$0xff]   ;;  %v6897_v2 = vld [vmem:[%s6118_s14 + $0x64] sm:$0xf] }
 0x131   : >> { %v6852_v32 = vrot.slane %v3392_v0, 4  ;;  %v4681_v0 = vld [vmem:[%s6118_s14 + $0x60] sm:$0xf] }
 0x132   : >> { %5319 = vmatmul.mubr.bf16.vlgmr.msra.gmra.mrb[0].mxu0 %v5634_v39  ;;  %5209 = vmatpush3.bf16.msra.mxu1 %v5636_v13  ;;  %v6805_v13 = vld [vmem:[%s6118_s14 + $0x40] sm:$0xf]  ;;  %v3415_v39 = vrot.slane %v3413_v44, 4  ;;  %v3407_v11 = vrot.slane %v3406_v25, 4  ;;  %v3443_v44 = vshll.u32 %v6859_v61, 16 }
 0x133   : >> { %5335 = vmatpush3.bf16.msra.mxu0 %v5635_v53  ;;  %5322 = vmatprep.mubr.bf16.mxu0 %v5638_v63  ;;  %v5646_v53 = vld [vmem:[%s6118_s14 + $0x54] sm:$0xff]   ;;  %v3419_v63 = vshll.u32 %v6797_v6, 16  ;;  %v3433_v3 = vshll.u32 %v6805_v13, 16  ;;  %v6925_v25 = vld [vmem:[%s6118_s14 + $0x5c] sm:$0x1] }
 0x134   : >> { %5336 = vmatprep.subr.bf16.mxu0 %v5637_v28  ;;  %5210 = vmatprep.subr.bf16.mxu1 %v5639_v14 }
 0x135   : >> { %5195 = vmatmul.mubr.bf16.gmra.mrb[4].mxu1 %v4446_v52  ;;  %v3368_v52 = vor.u32 %v3367_v18, %v6752_v20 }
 0x136   : >> { %5211 = vmatpush3.bf16.msra.mxu1 %v5639_v14  ;;  %5198 = vmatprep.mubr.bf16.mxu1 %v4447_v35  ;;  %v3381_v35 = vrot.slane %v3379_v24, 5  ;;  %v6823_v14 = vld [vmem:[%s6118_s14 + $0x4c] sm:$0xf] }
 0x137   : >> { %5337 = vmatpush3.bf16.msra.mxu0 %v5637_v28  ;;  %5212 = vmatprep.subr.bf16.mxu1 %v5642_v45  ;;  %v6799_v40 = vrot.slane %v3368_v52, 4  ;;  %v4675_v28 = vld [vmem:[%s6118_s14 + $0x48] sm:$0xf]  ;;  %v3457_v41 = vshll.u32 %v6823_v14, 16  ;;  %v3461_v18 = vshrl.u32 %v6823_v14, 16  ;;  %v5656_v24 = vld [vmem:[%s6118_s14 + $0xc] sm:$0xff]  }
 0x138   : >> { %5338 = vmatprep.subr.bf16.mxu0 %v5641_v9  ;;  %v3382_v21 = vor.u32 %v3381_v35, %v3378_v48 }
 0x139   : >> { %v3374_v31 = vsel %vm6157_vm10, %v6799_v40, %v6781_v49  ;;  %v6865_v49 = vld [vmem:[%s6118_s14 + $0x50] sm:$0x1]  ;;  %v6870_v19 = vrot.slane %v3457_v41, 5  ;;  %v6880_v40 = vld [vmem:[%s6118_s14 + $0x58] sm:$0xf] }
 0x13a   : >> { %5323 = vmatmul.mubr.bf16.gmra.mrb[4].mxu0 %v5640_v4  ;;  %5213 = vmatpush3.bf16.msra.mxu1 %v5642_v45  ;;  %v6839_v55 = vrot.slane %v3382_v21, 4  ;;  %v3451_v45 = vshll.u32 %v4675_v28, 16  ;;  %v3416_v4 = vor.u32 %v3415_v39, %v6812_v42  ;;  %v3467_v12 = vshll.u32 %v6865_v49, 16 }
 0x13b   : >> { %5339 = vmatpush3.bf16.msra.mxu0 %v5641_v9  ;;  %5326 = vmatprep.mubr.bf16.mxu0 %v5644_v22  ;;  %v3448_v9 = vshrl.u32 %v4675_v28, 16  ;;  %v3429_v22 = vrot.slane %v3427_v34, 5  ;;  %v3398_v21 = vsel %vm6157_vm10, %v6852_v32, %v6841_v33  ;;  %v3412_v34 = vsel %vm6157_vm10, %v3407_v11, %v6812_v42  ;;  %v6922_v32 = vld [vmem:[%s7150_s3 + $0x210] sm:$0xff]  }
 0x13c   : >> { %5340 = vmatprep.subr.bf16.mxu0 %v5643_v8  ;;  %5214 = vmatprep.subr.bf16.mxu1 %v5645_v46  ;;  %v3453_v35 = vrot.slane %v3451_v45, 5  ;;  %v3417_v47 = vrot.slane %v3416_v4, 4  ;;  %v3388_v10 = vsel %vm6157_vm10, %v6839_v55, %v6794_v23  ;;  %v5660_v23 = vld [vmem:[%s6118_s14 + $0x24] sm:$0xff]   ;;  %v3485_v28 = vshrl.u32 %v6880_v40, 16 }
 0x13d   : >> { %5199 = vmatmul.mubr.bf16.gmra.mrb[8].mxu1 %v4448_v7  ;;  %v3437_v7 = vshrl.u32 %v6805_v13, 16  ;;  %v3450_v48 = vrot.slane %v3448_v9, 4  ;;  %v3430_v30 = vor.u32 %v3429_v22, %v3426_v38  ;;  %v6915_v42 = vrot.slane %v3467_v12, 5  ;;  %v4684_v22 = vld [vmem:[%s6118_s14 + $0x6c] sm:$0xf] }
 0x13e   : >> { %5215 = vmatpush3.bf16.msra.mxu1 %v5645_v46  ;;  %5202 = vmatprep.mubr.bf16.mxu1 %v4449_v54  ;;  %v3364_v54 = vsel %vm6157_vm10, %v6787_v57, %v6752_v20  ;;  %v5653_v20 = vld [vmem:[%s7150_s3 + $0x1f0] sm:$0xff]   ;;  %v6861_v46 = vrot.slane %v3433_v3, 5  ;;  %v5655_v57 = vld [vmem:[%s7150_s3 + $0x1f8] sm:$0xff]   ;;  %v6903_v3 = vrot.slane %v3443_v44, 5  ;;  %v3496_v55 = vshrl.u32 %v4681_v0, 16 }
 0x13f   : >> { %5341 = vmatpush3.bf16.msra.mxu0 %v5643_v8  ;;  %5216 = vmatprep.subr.bf16.mxu1 %v5648_v50  ;;  %v6856_v8 = vrot.slane %v3419_v63, 5  ;;  %v3439_v52 = vrot.slane %v3437_v7, 4  ;;  %v4703_v51 = vcombine.low %v3364_v54, %v3374_v31  ;;  %v3481_v7 = vshll.u32 %v6880_v40, 16 }
 0x140   : >> { %5342 = vmatprep.subr.bf16.mxu0 %v5647_v29  ;;  %v3431_v54 = vrot.slane %v3430_v30, 4  ;;  %v3499_v33 = vshll.u32 %v4681_v0, 16  ;;  %v3505_v9 = vshll.u32 %v6897_v2, 16  ;;  %v3509_v45 = vshrl.u32 %v6897_v2, 16 }
 0x141   : >> { %v6927_v4 = vrot.slane %v3481_v7, 5  ;;  %v3520_v30 = vshrl.u32 %v4684_v22, 16 }
 0x142   : >> { %5327 = vmatmul.mubr.bf16.gmra.mrb[8].mxu0 %v5646_v53  ;;  %5217 = vmatpush3.bf16.msra.mxu1 %v5648_v50  ;;  %v3463_v50 = vrot.slane %v3461_v18, 4  ;;  %v5658_v53 = vld [vmem:[%s7150_s3 + $0x200] sm:$0xff]   ;;  %v3436_v11 = vsel %vm6157_vm10, %v3431_v54, %v6861_v46 }
 0x143   : >> { %5343 = vmatpush3.bf16.msra.mxu0 %v5647_v29  ;;  %5330 = vmatprep.mubr.bf16.mxu0 %v5650_v17  ;;  %v4678_v29 = vld [vmem:[%s6118_s14 + $0x54] sm:$0xf]  ;;  %v3454_v17 = vor.u32 %v3453_v35, %v3450_v48  ;;  %v3501_v48 = vrot.slane %v3499_v33, 5  ;;  %v6934_v35 = vrot.slane %v3505_v9, 5 }
 0x144   : >> { %5344 = vmatprep.subr.bf16.mxu0 %v5649_v26  ;;  %5218 = vmatprep.subr.bf16.mxu1 %v5651_v58  ;;  %v3464_v56 = vor.u32 %v3463_v50, %v6870_v19  ;;  %v3472_v39 = vshrl.u32 %v4678_v29, 16  ;;  %v3475_v63 = vshll.u32 %v4678_v29, 16  ;;  %v3511_v50 = vrot.slane %v3509_v45, 4  ;;  %v6944_v29 = vld [vmem:[%s6118_s14 + $0x68] sm:$0x1] }
 0x145   : >> { %5203 = vmatmul.mubr.bf16.gmra.mrb[12].mxu1 %v4450_v37  ;;  %v3440_v37 = vor.u32 %v3439_v52, %v6861_v46  ;;  %v3455_v41 = vrot.slane %v3454_v17, 4  ;;  %v6932_v52 = vld [vmem:[%s6118_s14 + $0x70] sm:$0xf]  ;;  %v6953_v46 = vld [vmem:[%s7150_s3 + $0x218] sm:$0xff]   ;;  %v3491_v17 = vshll.u32 %v6925_v25, 16 }
 0x146   : >> { %5219 = vmatpush3.bf16.msra.mxu1 %v5651_v58  ;;  %5222 = vmatprep.mubr.bf16.mxu1 %v5656_v24  ;;  %v3422_v58 = vsel %vm6157_vm10, %v3417_v47, %v6856_v8  ;;  %v3465_v18 = vrot.slane %v3464_v56, 4  ;;  %v4704_v24 = vcombine.low %v3388_v10, %v3398_v21  ;;  %v3487_v8 = vrot.slane %v3485_v28, 4  ;;  %v5664_v47 = vld [vmem:[%s6118_s14 + $0x3c] sm:$0xff]   ;;  %v4723_v45 = vld [vmem:[%s6118_s14 + $0x48] sm:$0xe] }
 0x147   : >> { %5345 = vmatpush3.bf16.msra.mxu0 %v5649_v26  ;;  %5220 = vmatprep.subr.bf16.mxu1 %v5654_v27  ;;  %v6910_v26 = vld [vmem:[%s7150_s3 + $0x208] sm:$0xff]   ;;  %v3441_v31 = vrot.slane %v3440_v37, 4  ;;  %v4705_v38 = vcombine.low %v3412_v34, %v3422_v58  ;;  %v3523_v37 = vshll.u32 %v4684_v22, 16  ;;  %v3529_v12 = vshll.u32 %v6932_v52, 16 }
 0x148   : >> { %5346 = vmatprep.subr.bf16.mxu0 %v5653_v20  ;;  %v3460_v10 = vsel %vm6157_vm10, %v3455_v41, %v6870_v19  ;;  %v3488_v21 = vor.u32 %v3487_v8, %v6927_v4  ;;  %v3493_v54 = vrot.slane %v3491_v17, 5  ;;  %v5665_v41 = vld [vmem:[%s6118_s14 + $0x48] sm:$0xff]  }
 0x149   : >> { %v3525_v34 = vrot.slane %v3523_v37, 5  ;;  %v5667_v22 = vld [vmem:[%s7150_s3 + $0x228] sm:$0xff]  }
 0x14a   : >> { %5331 = vmatmul.mubr.bf16.gmra.mrb[12].mxu0 %v5652_v1  ;;  %5221 = vmatpush3.bf16.msra.mxu1 %v5654_v27  ;;  %v3477_v27 = vrot.slane %v3475_v63, 5  ;;  %v3498_v1 = vrot.slane %v3496_v55, 4  ;;  %v3515_v63 = vshll.u32 %v6944_v29, 16  ;;  %v3489_v58 = vrot.slane %v3488_v21, 4  ;;  %v5666_v55 = vld [vmem:[%s7150_s3 + $0x220] sm:$0xff]  }
 0x14b   : >> { %5347 = vmatpush3.bf16.msra.mxu0 %v5653_v20  ;;  %5350 = vmatprep.mubr.bf16.mxu0 %v4703_v51  ;;  %v3474_v20 = vrot.slane %v3472_v39, 4  ;;  %v5661_v51 = vld [vmem:[%s6118_s14 + $0x30] sm:$0xff]   ;;  %v3512_v39 = vor.u32 %v3511_v50, %v6934_v35  ;;  %v4725_v21 = vld [vmem:[%s6118_s14 + $0x60] sm:$0xe] }
 0x14c   : >> { %5348 = vmatprep.subr.bf16.mxu0 %v5655_v57  ;;  %5398 = vmatprep.subr.bf16.mxu1 %v5658_v53  ;;  %v3502_v56 = vor.u32 %v3501_v48, %v3498_v1  ;;  %v4731_v1 = vrot.slane %v4723_v45, 9 }
 0x14d   : >> { %5223 = vmatmul.mubr.bf16.vlgmr.msra.gmra.mrb[0].mxu1 %v5657_v15  ;;  %v3478_v44 = vor.u32 %v3477_v27, %v3474_v20  ;;  %v3533_v15 = vshrl.u32 %v6932_v52, 16  ;;  %v3513_v9 = vrot.slane %v3512_v39, 4  ;;  %v5668_v20 = vld [vmem:[%s6118_s14 + $0x54] sm:$0xff]  }
 0x14e   : >> { %5406 = vmatpush3.bf16.msra.mxu1 %v5658_v53  ;;  %5226 = vmatprep.mubr.bf16.mxu1 %v5660_v23  ;;  %v3522_v23 = vrot.slane %v3520_v30, 4  ;;  %v3503_v33 = vrot.slane %v3502_v56, 4 }
 0x14f   : >> { %5349 = vmatpush3.bf16.msra.mxu0 %v5655_v57  ;;  %5399 = vmatprep.subr.bf16.mxu1 %v6910_v26  ;;  %v3446_v57 = vsel %vm6157_vm10, %v3441_v31, %v6903_v3  ;;  %v3479_v0 = vrot.slane %v3478_v44, 4  ;;  %v6968_v3 = vrot.slane %v3529_v12, 5  ;;  %v3535_v7 = vrot.slane %v3533_v15, 4  ;;  %v6973_v31 = vld [vmem:[%s6118_s14 + $0x74] sm:$0x1] }
 0x150   : >> { %5366 = vmatprep.subr.bf16.mxu0 %v5658_v53  ;;  %v4706_v19 = vcombine.low %v3436_v11, %v3446_v57  ;;  %v3526_v27 = vor.u32 %v3525_v34, %v3522_v23  ;;  %v3539_v8 = vshll.u32 %v6973_v31, 16  ;;  %v3508_v50 = vsel %vm6157_vm10, %v3503_v33, %v6934_v35  ;;  %v5671_v23 = vld [vmem:[%s7150_s3 + $0x238] sm:$0xff]  }
 0x151   : >> { %v3790_v44 = vrot.slane %v6734_v60, 5  ;;  %v4724_v60 = vld [vmem:[%s6118_s14 + $0x54] sm:$0xe]  ;;  %v3829_v15 = vrot.slane %v6897_v2, 5  ;;  %v3794_v34 = vrot.slane %v6755_v59, 5  ;;  %v3839_v36 = vrot.slane %v6973_v31, 5 }
 0x152   : >> { %5351 = vmatmul.mubr.bf16.vlgmr.msra.gmra.mrb[0].mxu0 %v4704_v24  ;;  %5407 = vmatpush3.bf16.msra.mxu1 %v6910_v26  ;;  %v3536_v24 = vor.u32 %v3535_v7, %v6968_v3  ;;  %v3541_v37 = vrot.slane %v3539_v8, 5  ;;  %v4733_v7 = vrot.slane %v4725_v21, 9 }
 0x153   : >> { %5367 = vmatpush3.bf16.msra.mxu0 %v5658_v53  ;;  %5354 = vmatprep.mubr.bf16.mxu0 %v4705_v38  ;;  %v3470_v53 = vsel %vm6157_vm10, %v3465_v18, %v6915_v42  ;;  %v3815_v42 = vrot.slane %v6823_v14, 5  ;;  %v3787_v18 = vrot.slane %v6729_v43, 5  ;;  %v3484_v14 = vsel %vm6157_vm10, %v3479_v0, %v6927_v4  ;;  %v4719_v38 = vld [vmem:[%s6118_s14 + $0x18] sm:$0xe]  ;;  %v4720_v0 = vld [vmem:[%s6118_s14 + $0x24] sm:$0xe] }
 0x154   : >> { %5368 = vmatprep.subr.bf16.mxu0 %v6910_v26  ;;  %5400 = vmatprep.subr.bf16.mxu1 %v6922_v32  ;;  %v4707_v28 = vcombine.low %v3460_v10, %v3470_v53  ;;  %v3494_v43 = vsel %vm6157_vm10, %v3489_v58, %v3493_v54  ;;  %v3818_v4 = vrot.slane %v6865_v49, 5  ;;  %v4727_v11 = vrot.slane %v4719_v38, 9  ;;  %v5670_v10 = vld [vmem:[%s7150_s3 + $0x230] sm:$0xff]   ;;  %v5669_v53 = vld [vmem:[%s6118_s14 + $0x60] sm:$0xff]  }
 0x155   : >> { %5227 = vmatmul.mubr.bf16.gmra.mrb[4].mxu1 %v5661_v51  ;;  %v3817_v48 = vrot.slane %v3815_v42, 4  ;;  %v3822_v51 = vrot.slane %v6880_v40, 5  ;;  %v3789_v57 = vrot.slane %v3787_v18, 4  ;;  %v4708_v49 = vcombine.low %v3484_v14, %v3494_v43 }
 0x156   : >> { %5408 = vmatpush3.bf16.msra.mxu1 %v6922_v32  ;;  %5230 = vmatprep.mubr.bf16.mxu1 %v5664_v47  ;;  %v3527_v47 = vrot.slane %v3526_v27, 4  ;;  %v3537_v30 = vrot.slane %v3536_v24, 4  ;;  %v3816_v12 = vsel %vm6454_vm13, %v4731_v1, %v3815_v42  ;;  %v3788_v56 = vsel %vm6454_vm13, %v4727_v11, %v3787_v18  ;;  %v4721_v42 = vld [vmem:[%s6118_s14 + $0x30] sm:$0xe] }
 0x157   : >> { %5369 = vmatpush3.bf16.msra.mxu0 %v6910_v26  ;;  %5401 = vmatprep.subr.bf16.mxu1 %v6953_v46  ;;  %v3517_v26 = vrot.slane %v3515_v63, 5  ;;  %v3819_v40 = vsel %vm6454_vm13, %v3817_v48, %v3818_v4  ;;  %v3824_v17 = vrot.slane %v3822_v51, 4  ;;  %v3791_v39 = vsel %vm6454_vm13, %v3789_v57, %v3790_v44  ;;  %v4722_v48 = vld [vmem:[%s6118_s14 + $0x3c] sm:$0xe] }
 0x158   : >> { %5370 = vmatprep.subr.bf16.mxu0 %v6922_v32  ;;  %v3532_v2 = vsel %vm6157_vm10, %v3527_v47, %v6968_v3  ;;  %v3542_v63 = vsel %vm6157_vm10, %v3537_v30, %v3541_v37  ;;  %v3832_v58 = vrot.slane %v6944_v29, 5  ;;  %v4728_v3 = vrot.slane %v4720_v0, 9 }
 0x159   : >> { %v4751_v33 = vcombine.low %v3788_v56, %v3791_v39  ;;  %v3836_v29 = vrot.slane %v6932_v52, 5  ;;  %v4729_v18 = vrot.slane %v4721_v42, 9  ;;  %v3803_v14 = vrot.slane %v3801_v5, 4 }
 0x15a   : >> { %5355 = vmatmul.mubr.bf16.gmra.mrb[4].mxu0 %v4706_v19  ;;  %5409 = vmatpush3.bf16.msra.mxu1 %v6953_v46  ;;  %v4755_v19 = vcombine.low %v3816_v12, %v3819_v40  ;;  %v3795_v38 = vsel %vm6454_vm13, %v4728_v3, %v3794_v34  ;;  %v3811_v11 = vrot.slane %v6859_v61, 5 }
 0x15b   : >> { %5371 = vmatpush3.bf16.msra.mxu0 %v6922_v32  ;;  %5358 = vmatprep.mubr.bf16.mxu0 %v4707_v28  ;;  %v3518_v32 = vsel %vm6157_vm10, %v3513_v9, %v3517_v26  ;;  %v3831_v28 = vrot.slane %v3829_v15, 4  ;;  %v3796_v9 = vrot.slane %v3794_v34, 4  ;;  %v3830_v26 = vsel %vm6454_vm13, %v4733_v7, %v3829_v15 }
 0x15c   : >> { %5372 = vmatprep.subr.bf16.mxu0 %v6953_v46  ;;  %5402 = vmatprep.subr.bf16.mxu1 %v5666_v55  ;;  %v4709_v35 = vcombine.low %v3508_v50, %v3518_v32  ;;  %v3838_v8 = vrot.slane %v3836_v29, 4 }
 0x15d   : >> { %5231 = vmatmul.mubr.bf16.gmra.mrb[8].mxu1 %v5665_v41  ;;  %v3833_v45 = vsel %vm6454_vm13, %v3831_v28, %v3832_v58  ;;  %v4726_v41 = vld [vmem:[%s6118_s14 + $0x6c] sm:$0xe]  ;;  %v3798_v43 = vsel %vm6454_vm13, %v3796_v9, %v3797_v16  ;;  %s4839_s14 = sshll.u32 %s5706_s7, 6  ;;  %s1191_s7 = sadd.s32 1, %s5706_s7  }
 0x15e   : >> { %5410 = vmatpush3.bf16.msra.mxu1 %v5666_v55  ;;  %5234 = vmatprep.mubr.bf16.mxu1 %v5668_v20  ;;  %v3804_v20 = vrot.slane %v6797_v6, 5  ;;  %v4757_v52 = vcombine.low %v3830_v26, %v3833_v45  ;;  %v4734_v24 = vrot.slane %v4726_v41, 9  ;;  %v3802_v6 = vsel %vm6454_vm13, %v4729_v18, %v3801_v5  ;;  %s7084_s8 = scalar_lea.vmem %s5857_s18, %s4839_s14  ;;  %p1188_p10 = scmp.ge.s32.totalorder %s1191_s7, 2  }
 0x15f   : >> { %5373 = vmatpush3.bf16.msra.mxu0 %v6953_v46  ;;  %5403 = vmatprep.subr.bf16.mxu1 %v5667_v22  ;;  %v3825_v46 = vrot.slane %v6925_v25, 5  ;;  %v4732_v25 = vrot.slane %v4724_v60, 9  ;;  %v4752_v31 = vcombine.low %v3795_v38, %v3798_v43  ;;  %v3840_v50 = vsel %vm6454_vm13, %v3838_v8, %v3839_v36 }
 0x160   : >> { %5374 = vmatprep.subr.bf16.mxu0 %v5666_v55  ;;  %v3805_v1 = vsel %vm6454_vm13, %v3803_v14, %v3804_v20  ;;  %v3837_v4 = vsel %vm6454_vm13, %v4734_v24, %v3836_v29 }
 0x161   : >> { %v3826_v54 = vsel %vm6454_vm13, %v3824_v17, %v3825_v46  ;;  %v3823_v59 = vsel %vm6454_vm13, %v4732_v25, %v3822_v51  ;;  %v4753_v32 = vcombine.low %v3802_v6, %v3805_v1  ;;  %v4758_v57 = vcombine.low %v3837_v4, %v3840_v50 }
 0x162   : >> { %5359 = vmatmul.mubr.bf16.gmra.mrb[8].mxu0 %v4708_v49  ;;  %5411 = vmatpush3.bf16.msra.mxu1 %v5667_v22  ;;  %v4756_v27 = vcombine.low %v3823_v59, %v3826_v54 }
 0x163   : >> { %5375 = vmatpush3.bf16.msra.mxu0 %v5666_v55  ;;  %5362 = vmatprep.mubr.bf16.mxu0 %v4709_v35  ;;  %v4710_v55 = vcombine.low %v3532_v2, %v3542_v63 }
 0x164   : >> { %5376 = vmatprep.subr.bf16.mxu0 %v5667_v22  ;;  %5404 = vmatprep.subr.bf16.mxu1 %v5670_v10 }
 0x165   : >> { %5235 = vmatmul.mubr.bf16.gmra.mrb[12].mxu1 %v5669_v53 }
 0x166   : >> { %5412 = vmatpush3.bf16.msra.mxu1 %v5670_v10  ;;  %5390 = vmatprep.mubr.bf16.mxu1 %v4755_v19 }
 0x167   : >> { %5377 = vmatpush3.bf16.msra.mxu0 %v5667_v22  ;;  %5405 = vmatprep.subr.bf16.mxu1 %v5671_v23  ;;  %v3808_v22 = vrot.slane %v6805_v13, 5  ;;  %v4730_v13 = vrot.slane %v4722_v48, 9 }
 0x168   : >> { %5378 = vmatprep.subr.bf16.mxu0 %v5670_v10 }
 0x169   : >> { %v3810_v51 = vrot.slane %v3808_v22, 4  ;;  %v3809_v44 = vsel %vm6454_vm13, %v4730_v13, %v3808_v22 }
 0x16a   : >> { %5363 = vmatmul.mubr.bf16.gmra.mrb[12].mxu0 %v4710_v55  ;;  %5413 = vmatpush3.bf16.msra.mxu1 %v5671_v23 }
 0x16b   : >> { %5379 = vmatpush3.bf16.msra.mxu0 %v5670_v10  ;;  %5382 = vmatprep.mubr.bf16.mxu0 %v4751_v33  ;;  %v3812_v49 = vsel %vm6454_vm13, %v3810_v51, %v3811_v11 }
 0x16c   : >> { %5380 = vmatprep.subr.bf16.mxu0 %v5671_v23  ;;  %v4754_v47 = vcombine.low %v3809_v44, %v3812_v49 }
 0x16d   : >> { %5391 = vmatmul.mubr.bf16.vlgmr.msra.gmra.mrb[16].mxu1 %v4756_v27 }
 0x16e   : >> { %5394 = vmatprep.mubr.bf16.mxu1 %v4757_v52 }
 0x16f   : >> { %5381 = vmatpush3.bf16.msra.mxu0 %v5671_v23 }
 0x172   : >> { %5383 = vmatmul.mubr.bf16.vlgmr.msra.gmra.mrb[0].mxu0 %v4752_v31 }
 0x173   : >> { %5386 = vmatprep.mubr.bf16.mxu0 %v4753_v32 }
 0x175   : >> { %5395 = vmatmul.mubr.bf16.gmra.mrb[20].mxu1 %v4758_v57 }
 0x17a   : >> { %5387 = vmatmul.mubr.bf16.gmra.mrb[4].mxu0 %v4754_v47 }
 0x220   : >> { %v5224_v30 = vpop.f32.mrb[0].mxu1 }
 0x221   : >> { %v2278_v37 = vpop.f32.mrb[1].mxu1 }
 0x222   : >> { %v5225_v35 = vpop.f32.mrb[2].mxu1 }
 0x223   : >> { %v2281_v12 = vpop.f32.mrb[3].mxu1 }
 0x228   : >> { %v7068_v40 = vpop.f32.mrb[4].mxu1 }
 0x229   : >> { %v7070_v60 = vpop.f32.mrb[5].mxu1 }
 0x22a   : >> { %v7072_v61 = vpop.f32.mrb[6].mxu1 }
 0x22b   : >> { %v7074_v15 = vpop.f32.mrb[7].mxu1 }
 0x230   : >> { %v5232_v10 = vpop.f32.mrb[8].mxu1 }
 0x231   : >> { %v2310_v21 = vpop.f32.mrb[9].mxu1 }
 0x232   : >> { %v5233_v17 = vpop.f32.mrb[10].mxu1 }
 0x233   : >> { %v2313_v62 = vpop.f32.mrb[11].mxu1 }
 0x235   : >> { %v5360_v46 = vpop.f32.mrb[8].mxu0 }
 0x236   : >> { %v5422_v53 = vadd.f32 %v5360_v46, %v5232_v10  ;;  %v3706_v56 = vpop.f32.mrb[9].mxu0 }
 0x237   : >> { %v5424_v39 = vadd.f32 %v3706_v56, %v2310_v21  ;;  %v5361_v2 = vpop.f32.mrb[10].mxu0 }
 0x238   : >> { %v5426_v63 = vadd.f32 %v5361_v2, %v5233_v17  ;;  %v3709_v19 = vpop.f32.mrb[11].mxu0  ;;  %v5236_v0 = vpop.f32.mrb[12].mxu1 }
 0x239   : >> { %v5428_v25 = vadd.f32 %v3709_v19, %v2313_v62  ;;  %v2326_v23 = vpop.f32.mrb[13].mxu1 }
 0x23a   : >> { %v5237_v34 = vpop.f32.mrb[14].mxu1 }
 0x23b   : >> { %v2329_v7 = vpop.f32.mrb[15].mxu1 }
 0x23d   : >> { %v5364_v28 = vpop.f32.mrb[12].mxu0 }
 0x23e   : >> { %v5430_v58 = vadd.f32 %v5364_v28, %v5236_v0  ;;  %v3722_v5 = vpop.f32.mrb[13].mxu0 }
 0x23f   : >> { %v5432_v3 = vadd.f32 %v3722_v5, %v2326_v23  ;;  %v5365_v54 = vpop.f32.mrb[14].mxu0 }
 0x240   : >> { %v5434_v42 = vadd.f32 %v5365_v54, %v5237_v34  ;;  %v3725_v55 = vpop.f32.mrb[15].mxu0  ;;  %v5392_v33 = vpop.f32.mrb[16].mxu1 }
 0x241   : >> { %v5436_v59 = vadd.f32 %v3725_v55, %v2329_v7  ;;  %v7076_v29 = vadd.f32 %v5422_v53, %v5392_v33  ;;  %v4004_v9 = vpop.f32.mrb[17].mxu1 }
 0x242   : >> { %v7079_v16 = vadd.f32 %v5424_v39, %v4004_v9  ;;  %v5393_v26 = vpop.f32.mrb[18].mxu1 }
 0x243   : >> { %v7081_v45 = vadd.f32 %v5426_v63, %v5393_v26  ;;  %v4007_v41 = vpop.f32.mrb[19].mxu1 }
 0x244   : >> { %v7086_v18 = vadd.f32 %v5428_v25, %v4007_v41  ;;  %v4167_v55 = vmul.f32 %v7079_v16, %v7079_v16  ;;  %v4169_v41 = vmul.f32 %v7076_v29, %v7076_v29 }
 0x245   : >> { %v5384_v14 = vpop.f32.mrb[0].mxu0  ;;  %v4932_v20 = vpack.c.bf16 %v7081_v45, %v7076_v29 }
 0x246   : >> { %v5414_v27 = vadd.f32 %v5384_v14, %v5224_v30  ;;  %v3972_v52 = vpop.f32.mrb[1].mxu0  ;;  %v4927_v24 = vpack.c.bf16 %v7086_v18, %v7079_v16 }
 0x247   : >> { %v5415_v8 = vadd.f32 %v3972_v52, %v2278_v37  ;;  %v5385_v36 = vpop.f32.mrb[2].mxu0  ;;  %4963 = vst [vmem:[%s7084_s8 + $0x28] sm:$0xff] %v4932_v20  }
 0x248   : >> { %v5416_v38 = vadd.f32 %v5385_v36, %v5225_v35  ;;  %v3975_v43 = vpop.f32.mrb[3].mxu0  ;;  %4962 = vst [vmem:[%s7084_s8 + $0x20] sm:$0xff] %v4927_v24   ;;  %v5396_v22 = vpop.f32.mrb[20].mxu1  ;;  %v4161_v47 = vmul.f32 %v5414_v27, %v5414_v27 }
 0x249   : >> { %v5417_v6 = vadd.f32 %v3975_v43, %v2281_v12  ;;  %v7094_v1 = vadd.f32 %v5430_v58, %v5396_v22  ;;  %v4020_v48 = vpop.f32.mrb[21].mxu1  ;;  %v4159_v32 = vmul.f32 %v5415_v8, %v5415_v8 }
 0x24a   : >> { %v4912_v31 = vpack.c.bf16 %v5416_v38, %v5414_v27  ;;  %v5433_v4 = vadd.f32 %v5432_v3, %v4020_v48  ;;  %v5397_v50 = vpop.f32.mrb[22].mxu1  ;;  %v4162_v62 = vmul.f32 %v5416_v38, %v5416_v38 }
 0x24b   : >> { %v4907_v13 = vpack.c.bf16 %v5417_v6, %v5415_v8  ;;  %v4135_v51 = vadd.f32 %v5417_v6, %v5415_v8  ;;  %v4160_v11 = vmul.f32 %v5417_v6, %v5417_v6  ;;  %v4023_v57 = vpop.f32.mrb[23].mxu1  ;;  %v5435_v44 = vadd.f32 %v5434_v42, %v5397_v50 }
 0x24c   : >> { %4959 = vst [vmem:[%s7084_s8 + $0x8] sm:$0xff] %v4912_v31   ;;  %v5437_v49 = vadd.f32 %v5436_v59, %v4023_v57 }
 0x24d   : >> { %4908 = vst [vmem:[%s7084_s8] sm:$0xff] %v4907_v13   ;;  %v4136_v30 = vadd.f32 %v5414_v27, %v4135_v51  ;;  %v4175_v37 = vadd.f32 %v4160_v11, %v4159_v32  ;;  %v5388_v35 = vpop.f32.mrb[4].mxu0  ;;  %v4942_v21 = vpack.c.bf16 %v5435_v44, %v7094_v1  ;;  %v4170_v27 = vmul.f32 %v7081_v45, %v7081_v45 }
 0x24e   : >> { %v5418_v12 = vadd.f32 %v5388_v35, %v7068_v40  ;;  %v3988_v10 = vpop.f32.mrb[5].mxu0  ;;  %v4937_v17 = vpack.c.bf16 %v5437_v49, %v5433_v4  ;;  %v4172_v43 = vmul.f32 %v5437_v49, %v5437_v49 }
 0x24f   : >> { %v4176_v46 = vadd.f32 %v4175_v37, %v4161_v47  ;;  %v5419_v53 = vadd.f32 %v3988_v10, %v7070_v60  ;;  %v4137_v56 = vadd.f32 %v5416_v38, %v4136_v30  ;;  %v5389_v39 = vpop.f32.mrb[6].mxu0  ;;  %4965 = vst [vmem:[%s7084_s8 + $0x38] sm:$0xff] %v4942_v21   ;;  %v4134_v37 = vld [vmem:[%s7152_s5] sm:$0x1] }
 0x250   : >> { %v5420_v2 = vadd.f32 %v5389_v39, %v7072_v61  ;;  %v3991_v63 = vpop.f32.mrb[7].mxu0  ;;  %4964 = vst [vmem:[%s7084_s8 + $0x30] sm:$0xff] %v4937_v17   ;;  %v4165_v60 = vmul.f32 %v5418_v12, %v5418_v12 }
 0x251   : >> { %v4138_v19 = vadd.f32 %v5419_v53, %v4137_v56  ;;  %v4163_v0 = vmul.f32 %v5419_v53, %v5419_v53  ;;  %v4177_v40 = vadd.f32 %v4176_v46, %v4162_v62  ;;  %v5421_v25 = vadd.f32 %v3991_v63, %v7074_v15 }
 0x252   : >> { %v4922_v23 = vpack.c.bf16 %v5420_v2, %v5418_v12  ;;  %v4166_v54 = vmul.f32 %v5420_v2, %v5420_v2  ;;  %v4168_v15 = vmul.f32 %v7086_v18, %v7086_v18 }
 0x253   : >> { %v4178_v34 = vadd.f32 %v4177_v40, %v4163_v0  ;;  %v4917_v7 = vpack.c.bf16 %v5421_v25, %v5419_v53  ;;  %v4139_v28 = vadd.f32 %v5421_v25, %v4138_v19  ;;  %v4164_v58 = vmul.f32 %v5421_v25, %v5421_v25 }
 0x254   : >> { %4961 = vst [vmem:[%s7084_s8 + $0x18] sm:$0xff] %v4922_v23  }
 0x255   : >> { %4960 = vst [vmem:[%s7084_s8 + $0x10] sm:$0xff] %v4917_v7   ;;  %v4140_v5 = vadd.f32 %v5418_v12, %v4139_v28  ;;  %v4179_v3 = vadd.f32 %v4178_v34, %v4164_v58 }
 0x257   : >> { %v4141_v61 = vadd.f32 %v5420_v2, %v4140_v5  ;;  %v4180_v42 = vadd.f32 %v4179_v3, %v4165_v60 }
 0x259   : >> { %v4142_v33 = vadd.f32 %v7079_v16, %v4141_v61  ;;  %v4181_v59 = vadd.f32 %v4180_v42, %v4166_v54  ;;  %v4171_v16 = vmul.f32 %v5433_v4, %v5433_v4 }
 0x25b   : >> { %v4182_v9 = vadd.f32 %v4181_v59, %v4167_v55  ;;  %v4143_v26 = vadd.f32 %v7086_v18, %v4142_v33  ;;  %v4173_v18 = vmul.f32 %v7094_v1, %v7094_v1 }
 0x25d   : >> { %v4144_v14 = vadd.f32 %v7076_v29, %v4143_v26  ;;  %v4183_v20 = vadd.f32 %v4182_v9, %v4168_v15  ;;  %v4174_v29 = vmul.f32 %v5435_v44, %v5435_v44 }
 0x25f   : >> { %v4145_v52 = vadd.f32 %v7081_v45, %v4144_v14  ;;  %v4184_v24 = vadd.f32 %v4183_v20, %v4169_v41 }
 0x261   : >> { %v4146_v8 = vadd.f32 %v5433_v4, %v4145_v52  ;;  %v4185_v36 = vadd.f32 %v4184_v24, %v4170_v27 }
 0x263   : >> { %v4147_v38 = vadd.f32 %v5437_v49, %v4146_v8  ;;  %v4186_v22 = vadd.f32 %v4185_v36, %v4171_v16 }
 0x265   : >> { %v4148_v6 = vadd.f32 %v7094_v1, %v4147_v38  ;;  %v4187_v48 = vadd.f32 %v4186_v22, %v4172_v43 }
 0x267   : >> { %v4149_v31 = vadd.f32 %v5435_v44, %v4148_v6  ;;  %v4188_v50 = vadd.f32 %v4187_v48, %v4173_v18  ;;  %v4158_v44 = vld [vmem:[%s7153_s6] sm:$0x1] }
 0x269   : >> { %v4150_v32 = vrot.slane %v4149_v31, 4  ;;  %v4189_v13 = vadd.f32 %v4188_v50, %v4174_v29 }
 0x26b   : >> { %v4151_v51 = vadd.f32 %v4150_v32, %v4149_v31  ;;  %v4190_v45 = vrot.slane %v4189_v13, 4 }
 0x26d   : >> { %v4152_v11 = vrot.slane %v4151_v51, 2  ;;  %v4191_v57 = vadd.f32 %v4190_v45, %v4189_v13 }
 0x26f   : >> { %v4153_v4 = vadd.f32 %v4152_v11, %v4151_v51  ;;  %v4192_v47 = vrot.slane %v4191_v57, 2 }
 0x271   : >> { %v4154_v30 = vrot.slane %v4153_v4, 1  ;;  %v4193_v49 = vadd.f32 %v4192_v47, %v4191_v57 }
 0x273   : >> { %v4155_v35 = vadd.f32 %v4154_v30, %v4153_v4  ;;  %v4194_v1 = vrot.slane %v4193_v49, 1  ;;  %1190 = sbr.rel (!%p1188_p10) target bundleno = 181 (0xb5), region = 152 }
 0x275   : >> { %v4156_v12 = vadd.f32 %v4155_v35, %v4134_v37  ;;  %v4195_v10 = vadd.f32 %v4194_v1, %v4193_v49 }
 0x277   : >> { %4157 = vst [vmem:[%s7152_s5] sm:$0x1] %v4156_v12  ;;  %v4196_v21 = vadd.f32 %v4195_v10, %v4158_v44 }
 0x279   : >> { %4197 = vst [vmem:[%s7153_s6] sm:$0x1] %v4196_v21 }
 0x27a PF: > { %p14_p11 = scmp.ge.s32.totalorder %s5764_s25, 4   ;;  %s7173_s21 = smov %s5698_s22 }
 0x27b   : > { %s7174_s22 = smov %s5773_s28  ;;  %s7175_s23 = smov %s5764_s25 }
 0x27c   :  { %16 = sbr.rel (!%p14_p11) target bundleno = 2 (0x2), region = 163 }

</bundles_post_ra>
